<compile_context>
chip_gen: v7x
topology: tpu7x:2x2x1
jax: 0.10.0
libtpu: 0.0.40
codegen_flags: <defaults>
</compile_context>

<pallas_src>
import jax
import jax.numpy as jnp
from jax.experimental import pallas as pl
from jax.experimental.pallas import tpu as pltpu

IMG = 28                         # input spatial size
G1 = IMG - 2                     # 26: conv1 output grid (width == row stride of the flat grid)
G2 = IMG - 4                     # 24: conv2 valid output grid
C1, C2 = 32, 64                  # conv channel counts
POOL = 12                        # pooled spatial size
N1 = G1 * G1                     # 676 conv1 output positions per image
RZ = (G2 - 1) * G1 + (G2 - 1) + 1   # 622 flat conv2 rows computed on the 26-wide grid
NSEL = RZ - 1 - G1               # 595 rows of the shifted-max (uncompacted pooled) grid
NP = POOL * POOL                 # 144 pooled positions per image
FC1_IN = NP * C2                 # 9216
FC1_OUT, NCLS = 128, 10
KTAPS = 16                       # conv1 im2col taps, zero-padded 9 -> 16 (MXU-friendly K)


# --------------------------- kernel 1: conv1 -> conv2 -> pool -> compact ---------------------------

def _conv_pool_kernel(xcol_ref, w1_ref, b1_ref, w2_ref, b2_ref, sel_ref, o_ref):
    # conv1: single (676, 16) @ (16, 32) MXU dot (taps 9..15 are zero padding), f32.
    xcol = xcol_ref[...]                                              # (676, 16) f32
    a1 = jnp.dot(xcol, w1_ref[...], preferred_element_type=jnp.float32)
    a1 = jnp.maximum(a1 + b1_ref[...], 0.0)                           # (676, 32) f32

    # conv2: build the (622, 288) im2col of a1 on the flat 26-wide grid (9 shifted views
    # concatenated along lanes), cast to bf16 ONCE, single K=288 MXU dot, f32 accumulation.
    taps = jnp.concatenate(
        [a1[dy * G1 + dx: dy * G1 + dx + RZ, :] for dy in range(3) for dx in range(3)],
        axis=-1)                                                      # (622, 288) f32
    z = jnp.dot(taps.astype(jnp.bfloat16), w2_ref[...],
                preferred_element_type=jnp.float32)
    z = jnp.maximum(z + b2_ref[...], 0.0)                             # (622, 64) f32

    # 2x2 / stride-2 max pool as shifted maxes on the flat row grid (no transposes).
    zw = jnp.maximum(z[:RZ - 1, :], z[1:, :])                         # (621, 64): w-pairs
    zhw = jnp.maximum(zw[:NSEL, :], zw[G1:, :])                       # (595, 64): h-pairs

    # Compact the 144 valid pooled rows with a batch-independent 0/1 selection dot (f32,
    # exact).  Rows come out in (hp, wp) order with 64 channels each.
    pooled = jnp.dot(sel_ref[...], zhw, preferred_element_type=jnp.float32)   # (144, 64)
    o_ref[...] = pooled.astype(o_ref.dtype)


def conv_pool(xcol, w1, b1, w2, b2, sel):
    batch = xcol.shape[0]
    return pl.pallas_call(
        _conv_pool_kernel,
        out_shape=jax.ShapeDtypeStruct((batch, NP, C2), jnp.bfloat16),
        grid=(batch,),
        in_specs=[
            pl.BlockSpec((None, N1, KTAPS), lambda b: (b, 0, 0)),     # per-image im2col block
            pl.BlockSpec((KTAPS, C1), lambda b: (0, 0)),              # conv1 weights (resident)
            pl.BlockSpec((1, C1), lambda b: (0, 0)),
            pl.BlockSpec((9 * C1, C2), lambda b: (0, 0)),             # conv2 weights (288, 64)
            pl.BlockSpec((1, C2), lambda b: (0, 0)),
            pl.BlockSpec((NP, NSEL), lambda b: (0, 0)),               # selection matrix (144, 595)
        ],
        out_specs=pl.BlockSpec((None, NP, C2), lambda b: (b, 0, 0)),
        compiler_params=pltpu.CompilerParams(dimension_semantics=("parallel",)),
    )(xcol, w1, b1, w2, b2, sel)


# --------------------------- kernel 2: fc1 + relu + fc2 + log_softmax ---------------------------

def _head_kernel(x_ref, w1_ref, b1_ref, w2_ref, b2_ref, o_ref):
    h = jnp.dot(x_ref[...], w1_ref[...], preferred_element_type=jnp.float32)
    h = jnp.maximum(h + b1_ref[...], 0.0)                             # (bh, 128) f32
    logits = jnp.dot(h, w2_ref[...], preferred_element_type=jnp.float32) + b2_ref[...]
    m = jnp.max(logits, axis=-1, keepdims=True)
    s = logits - m
    lse = jnp.log(jnp.sum(jnp.exp(s), axis=-1, keepdims=True))
    o_ref[...] = s - lse


def _head_block(batch):
    for cand in (256, 128, 64, 32, 16, 8):
        if batch % cand == 0:
            return cand
    return batch                                                      # small / odd batches


def mlp_head(xf, w1, b1, w2, b2):
    batch = xf.shape[0]
    bh = _head_block(batch)
    return pl.pallas_call(
        _head_kernel,
        out_shape=jax.ShapeDtypeStruct((batch, NCLS), jnp.float32),
        grid=(batch // bh,),
        in_specs=[
            pl.BlockSpec((bh, FC1_IN), lambda i: (i, 0)),
            pl.BlockSpec((FC1_IN, FC1_OUT), lambda i: (0, 0)),
            pl.BlockSpec((1, FC1_OUT), lambda i: (0, 0)),
            pl.BlockSpec((FC1_OUT, NCLS), lambda i: (0, 0)),
            pl.BlockSpec((1, NCLS), lambda i: (0, 0)),
        ],
        out_specs=pl.BlockSpec((bh, NCLS), lambda i: (i, 0)),
        compiler_params=pltpu.CompilerParams(dimension_semantics=("parallel",)),
    )(xf, w1, b1, w2, b2)


# --------------------------- parameter prep (batch-independent, hoisted) ---------------------------

def prepare_params(params):
    # conv1 weights as a (16, 32) tap matrix; rows ordered (ky*3 + kx), rows 9..15 zero pad.
    w1 = jnp.transpose(params["conv1_w"][:, 0], (1, 2, 0)).reshape(9, C1)
    w1 = jnp.pad(w1, ((0, KTAPS - 9), (0, 0)))
    b1 = params["conv1_b"].reshape(1, C1)
    # conv2 weights as (288, 64) matching the (dy, dx, cin) tap-concat order, bf16.
    w2 = jnp.transpose(params["conv2_w"], (2, 3, 1, 0)).reshape(9 * C1, C2).astype(jnp.bfloat16)
    b2 = params["conv2_b"].reshape(1, C2)
    # fc1 weights permuted so the kernel's (hp, wp, c) flatten matches torch's (c, hp, wp) flatten.
    fw1 = params["fc1_w"].reshape(FC1_OUT, C2, POOL, POOL)
    fw1 = jnp.transpose(fw1, (2, 3, 1, 0)).reshape(FC1_IN, FC1_OUT).astype(jnp.bfloat16)
    fb1 = params["fc1_b"].reshape(1, FC1_OUT)
    fw2 = jnp.transpose(params["fc2_w"], (1, 0))                      # (128, 10) f32 (tiny; kept f32)
    fb2 = params["fc2_b"].reshape(1, NCLS)
    # Batch-independent per-image selection: pooled (hp, wp) -> flat zhw row 52*hp + 2*wp.
    p = jnp.arange(NP)
    src = (p // POOL) * (2 * G1) + (p % POOL) * 2
    sel = jnp.zeros((NP, NSEL), jnp.float32).at[p, src].set(1.0)
    return {"w1": w1, "b1": b1, "w2": w2, "b2": b2,
            "fw1": fw1, "fb1": fb1, "fw2": fw2, "fb2": fb2, "sel": sel}


def mnist_cnn_forward(x_nchw, prep):
    # TODO(synk): dropout1 / dropout2 implemented as eval-mode identity (no RNG masking).
    batch = x_nchw.shape[0]
    x = x_nchw.astype(jnp.float32).reshape(batch, IMG, IMG)
    # conv1 im2col (layout plumbing only): 9 shifted 26x26 windows, zero-padded to 16 taps.
    cols = [x[:, ey:ey + G1, ex:ex + G1].reshape(batch, N1)
            for ey in range(3) for ex in range(3)]
    xcol = jnp.stack(cols, axis=-1)                                   # (B, 676, 9)
    xcol = jnp.pad(xcol, ((0, 0), (0, 0), (0, KTAPS - 9)))            # (B, 676, 16)
    pooled = conv_pool(xcol, prep["w1"], prep["b1"], prep["w2"], prep["b2"],
                       prep["sel"])                                   # (B, 144, 64) bf16
    xf = pooled.reshape(batch, FC1_IN)                                # free reshape -> (B, 9216)
    return mlp_head(xf, prep["fw1"], prep["fb1"], prep["fw2"], prep["fb2"])


# --------------------------- reference (pure JAX) & harness ---------------------------

def init_params(key):
    ks = jax.random.split(key, 8)

    def n(k, shape, scale):
        return scale * jax.random.normal(k, shape, dtype=jnp.float32)

    return {
        "conv1_w": n(ks[0], (32, 1, 3, 3), 0.2),
        "conv1_b": n(ks[1], (32,), 0.1),
        "conv2_w": n(ks[2], (64, 32, 3, 3), 0.05),
        "conv2_b": n(ks[3], (64,), 0.1),
        "fc1_w": n(ks[4], (128, 9216), 0.01),
        "fc1_b": n(ks[5], (128,), 0.1),
        "fc2_w": n(ks[6], (10, 128), 0.05),
        "fc2_b": n(ks[7], (10,), 0.1),
    }


def reference_forward(x, params):
    xn = jnp.transpose(x, (0, 2, 3, 1))
    w1 = jnp.transpose(params["conv1_w"], (2, 3, 1, 0))
    y = jax.lax.conv_general_dilated(xn, w1, (1, 1), "VALID",
                                     dimension_numbers=("NHWC", "HWIO", "NHWC"))
    y = jnp.maximum(y + params["conv1_b"], 0.0)
    w2 = jnp.transpose(params["conv2_w"], (2, 3, 1, 0))
    y = jax.lax.conv_general_dilated(y, w2, (1, 1), "VALID",
                                     dimension_numbers=("NHWC", "HWIO", "NHWC"))
    y = jnp.maximum(y + params["conv2_b"], 0.0)
    b = y.shape[0]
    y = y.reshape(b, POOL, 2, POOL, 2, C2).max(axis=(2, 4))
    f = y.reshape(b, FC1_IN)
    w1f = jnp.transpose(params["fc1_w"].reshape(FC1_OUT, C2, POOL, POOL),
                        (2, 3, 1, 0)).reshape(FC1_IN, FC1_OUT)
    h = jnp.maximum(f @ w1f + params["fc1_b"], 0.0)
    logits = h @ params["fc2_w"].T + params["fc2_b"]
    return jax.nn.log_softmax(logits, axis=-1)


if __name__ == "__main__":
    key = jax.random.PRNGKey(0)
    k_in, k_par, k_in2 = jax.random.split(key, 3)
    params = init_params(k_par)
    prep = prepare_params(params)                      # batch-independent prep
    fwd = jax.jit(mnist_cnn_forward)

    # MNIST geometry is forced by fc1 (9216 = 64 * 12 * 12): input must be (B, 1, 28, 28).
    x = jax.random.normal(k_in, (2, 1, IMG, IMG), dtype=jnp.float32)   # NCHW, like PyTorch
    out = jax.block_until_ready(fwd(x, prep))
    assert out.shape == (2, NCLS) and out.dtype == jnp.float32
    # log_softmax self-consistency: each row of exp(out) sums to 1.
    assert bool(jnp.all(jnp.abs(jnp.sum(jnp.exp(out), axis=1) - 1.0) < 1e-3))
    # gross-error check vs. a pure-JAX reference (loose tolerance for bf16 matmul operands).
    ref = reference_forward(x, params)
    assert float(jnp.max(jnp.abs(out - ref))) < 0.05

    # batch-size independence (prep is no longer tied to a batch; odd batch exercises fallbacks).
    x3 = jax.random.normal(k_in2, (3, 1, IMG, IMG), dtype=jnp.float32)
    out3 = jax.block_until_ready(fwd(x3, prep))
    ref3 = reference_forward(x3, params)
    assert out3.shape == (3, NCLS)
    assert float(jnp.max(jnp.abs(out3 - ref3))) < 0.05

    print("KERNEL_OK")
</pallas_src>

<mosaic_0001>
module attributes {stable_mosaic.version = 11 : i64} {
  func.func @_conv_pool_kernel(%arg0: i32, %arg1: memref<1x676x16xf32, #tpu.memory_space<vmem>>, %arg2: memref<16x32xf32, #tpu.memory_space<vmem>>, %arg3: memref<1x32xf32, #tpu.memory_space<vmem>>, %arg4: memref<288x64xbf16, #tpu.memory_space<vmem>>, %arg5: memref<1x64xf32, #tpu.memory_space<vmem>>, %arg6: memref<144x595xf32, #tpu.memory_space<vmem>>, %arg7: memref<1x144x64xbf16, #tpu.memory_space<vmem>>) attributes {dimension_semantics = [#tpu.dimension_semantics<parallel>], iteration_bounds = array<i64: 2>, scalar_prefetch = 0 : i64, scratch_operands = 0 : i64, tpu.core_type = #tpu.core_type<tc>, window_params = [{transform_indices = @transform_0, window_bounds = array<i64: 1, 676, 16>}, {pipeline_mode = #tpu.pipeline_mode<synchronous>, transform_indices = @transform_1, window_bounds = array<i64: 16, 32>}, {pipeline_mode = #tpu.pipeline_mode<synchronous>, transform_indices = @transform_2, window_bounds = array<i64: 1, 32>}, {pipeline_mode = #tpu.pipeline_mode<synchronous>, transform_indices = @transform_3, window_bounds = array<i64: 288, 64>}, {pipeline_mode = #tpu.pipeline_mode<synchronous>, transform_indices = @transform_4, window_bounds = array<i64: 1, 64>}, {pipeline_mode = #tpu.pipeline_mode<synchronous>, transform_indices = @transform_5, window_bounds = array<i64: 144, 595>}, {transform_indices = @transform_6, window_bounds = array<i64: 1, 144, 64>}]} {
    %c0 = arith.constant 0 : index
    %c0_0 = arith.constant 0 : index
    %c0_1 = arith.constant 0 : index
    %0 = vector.load %arg1[%c0, %c0_0, %c0_1] : memref<1x676x16xf32, #tpu.memory_space<vmem>>, vector<1x676x16xf32>
    %1 = vector.shape_cast %0 : vector<1x676x16xf32> to vector<676x16xf32>
    %c0_2 = arith.constant 0 : index
    %c0_3 = arith.constant 0 : index
    %2 = vector.load %arg2[%c0_2, %c0_3] : memref<16x32xf32, #tpu.memory_space<vmem>>, vector<16x32xf32>
    %cst = arith.constant dense<0.000000e+00> : vector<676x32xf32>
    %3 = tpu.matmul %1, %2, %cst {dimension_numbers = #tpu.dot_dimension_numbers<[1], [0], [0], [1], [0, 0, 1, 1], [], []>} : vector<676x16xf32>, vector<16x32xf32>, vector<676x32xf32> -> vector<676x32xf32>
    %c0_4 = arith.constant 0 : index
    %c0_5 = arith.constant 0 : index
    %4 = vector.load %arg3[%c0_4, %c0_5] : memref<1x32xf32, #tpu.memory_space<vmem>>, vector<1x32xf32>
    %5 = vector.broadcast %4 : vector<1x32xf32> to vector<676x32xf32>
    %6 = arith.addf %3, %5 : vector<676x32xf32>
    %cst_6 = arith.constant 0.000000e+00 : f32
    %7 = vector.broadcast %cst_6 : f32 to vector<676x32xf32>
    %8 = arith.maximumf %6, %7 : vector<676x32xf32>
    %9 = vector.extract_strided_slice %8 {offsets = [0, 0], sizes = [622, 32], strides = [1, 1]} : vector<676x32xf32> to vector<622x32xf32>
    %10 = vector.extract_strided_slice %8 {offsets = [1, 0], sizes = [622, 32], strides = [1, 1]} : vector<676x32xf32> to vector<622x32xf32>
    %11 = vector.extract_strided_slice %8 {offsets = [2, 0], sizes = [622, 32], strides = [1, 1]} : vector<676x32xf32> to vector<622x32xf32>
    %12 = vector.extract_strided_slice %8 {offsets = [26, 0], sizes = [622, 32], strides = [1, 1]} : vector<676x32xf32> to vector<622x32xf32>
    %13 = vector.extract_strided_slice %8 {offsets = [27, 0], sizes = [622, 32], strides = [1, 1]} : vector<676x32xf32> to vector<622x32xf32>
    %14 = vector.extract_strided_slice %8 {offsets = [28, 0], sizes = [622, 32], strides = [1, 1]} : vector<676x32xf32> to vector<622x32xf32>
    %15 = vector.extract_strided_slice %8 {offsets = [52, 0], sizes = [622, 32], strides = [1, 1]} : vector<676x32xf32> to vector<622x32xf32>
    %16 = vector.extract_strided_slice %8 {offsets = [53, 0], sizes = [622, 32], strides = [1, 1]} : vector<676x32xf32> to vector<622x32xf32>
    %17 = vector.extract_strided_slice %8 {offsets = [54, 0], sizes = [622, 32], strides = [1, 1]} : vector<676x32xf32> to vector<622x32xf32>
    %18 = tpu.concatenate %9, %10, %11, %12, %13, %14, %15, %16, %17 in 1 : vector<622x32xf32>, vector<622x32xf32>, vector<622x32xf32>, vector<622x32xf32>, vector<622x32xf32>, vector<622x32xf32>, vector<622x32xf32>, vector<622x32xf32>, vector<622x32xf32> -> vector<622x288xf32>
    %19 = arith.truncf %18 : vector<622x288xf32> to vector<622x288xbf16>
    %c0_7 = arith.constant 0 : index
    %c0_8 = arith.constant 0 : index
    %20 = vector.load %arg4[%c0_7, %c0_8] : memref<288x64xbf16, #tpu.memory_space<vmem>>, vector<288x64xbf16>
    %cst_9 = arith.constant dense<0.000000e+00> : vector<622x64xf32>
    %21 = tpu.matmul %19, %20, %cst_9 {dimension_numbers = #tpu.dot_dimension_numbers<[1], [0], [0], [1], [0, 0, 1, 1], [], []>} : vector<622x288xbf16>, vector<288x64xbf16>, vector<622x64xf32> -> vector<622x64xf32>
    %c0_10 = arith.constant 0 : index
    %c0_11 = arith.constant 0 : index
    %22 = vector.load %arg5[%c0_10, %c0_11] : memref<1x64xf32, #tpu.memory_space<vmem>>, vector<1x64xf32>
    %23 = vector.broadcast %22 : vector<1x64xf32> to vector<622x64xf32>
    %24 = arith.addf %21, %23 : vector<622x64xf32>
    %cst_12 = arith.constant 0.000000e+00 : f32
    %25 = vector.broadcast %cst_12 : f32 to vector<622x64xf32>
    %26 = arith.maximumf %24, %25 : vector<622x64xf32>
    %27 = vector.extract_strided_slice %26 {offsets = [0, 0], sizes = [621, 64], strides = [1, 1]} : vector<622x64xf32> to vector<621x64xf32>
    %28 = vector.extract_strided_slice %26 {offsets = [1, 0], sizes = [621, 64], strides = [1, 1]} : vector<622x64xf32> to vector<621x64xf32>
    %29 = arith.maximumf %27, %28 : vector<621x64xf32>
    %30 = vector.extract_strided_slice %29 {offsets = [0, 0], sizes = [595, 64], strides = [1, 1]} : vector<621x64xf32> to vector<595x64xf32>
    %31 = vector.extract_strided_slice %29 {offsets = [26, 0], sizes = [595, 64], strides = [1, 1]} : vector<621x64xf32> to vector<595x64xf32>
    %32 = arith.maximumf %30, %31 : vector<595x64xf32>
    %c0_13 = arith.constant 0 : index
    %c0_14 = arith.constant 0 : index
    %33 = vector.load %arg6[%c0_13, %c0_14] : memref<144x595xf32, #tpu.memory_space<vmem>>, vector<144x595xf32>
    %cst_15 = arith.constant dense<0.000000e+00> : vector<144x64xf32>
    %34 = tpu.matmul %33, %32, %cst_15 {dimension_numbers = #tpu.dot_dimension_numbers<[1], [0], [0], [1], [0, 0, 1, 1], [], []>} : vector<144x595xf32>, vector<595x64xf32>, vector<144x64xf32> -> vector<144x64xf32>
    %35 = arith.truncf %34 : vector<144x64xf32> to vector<144x64xbf16>
    %c0_16 = arith.constant 0 : index
    %c0_17 = arith.constant 0 : index
    %c0_18 = arith.constant 0 : index
    %36 = vector.load %arg7[%c0_16, %c0_17, %c0_18] : memref<1x144x64xbf16, #tpu.memory_space<vmem>>, vector<1x144x64xbf16>
    %37 = vector.shape_cast %36 : vector<1x144x64xbf16> to vector<144x64xbf16>
    %38 = vector.shape_cast %35 : vector<144x64xbf16> to vector<1x144x64xbf16>
    tpu.vector_store %arg7[%c0_16, %c0_17, %c0_18], %38 {strides = array<i32>} : memref<1x144x64xbf16, #tpu.memory_space<vmem>>, vector<1x144x64xbf16>,
    return
  }
  func.func @transform_0(%arg0: i32) -> (i32, i32, i32) {
    %c0_i32 = arith.constant 0 : i32
    %c0_i32_0 = arith.constant 0 : i32
    %c0_i32_1 = arith.constant 0 : i32
    return %arg0, %c0_i32, %c0_i32_0 : i32, i32, i32
  }
  func.func @transform_1(%arg0: i32) -> (i32, i32) {
    %c0_i32 = arith.constant 0 : i32
    %c0_i32_0 = arith.constant 0 : i32
    %c0_i32_1 = arith.constant 0 : i32
    return %c0_i32, %c0_i32_0 : i32, i32
  }
  func.func @transform_2(%arg0: i32) -> (i32, i32) {
    %c0_i32 = arith.constant 0 : i32
    %c0_i32_0 = arith.constant 0 : i32
    %c0_i32_1 = arith.constant 0 : i32
    return %c0_i32, %c0_i32_0 : i32, i32
  }
  func.func @transform_3(%arg0: i32) -> (i32, i32) {
    %c0_i32 = arith.constant 0 : i32
    %c0_i32_0 = arith.constant 0 : i32
    %c0_i32_1 = arith.constant 0 : i32
    return %c0_i32, %c0_i32_0 : i32, i32
  }
  func.func @transform_4(%arg0: i32) -> (i32, i32) {
    %c0_i32 = arith.constant 0 : i32
    %c0_i32_0 = arith.constant 0 : i32
    %c0_i32_1 = arith.constant 0 : i32
    return %c0_i32, %c0_i32_0 : i32, i32
  }
  func.func @transform_5(%arg0: i32) -> (i32, i32) {
    %c0_i32 = arith.constant 0 : i32
    %c0_i32_0 = arith.constant 0 : i32
    %c0_i32_1 = arith.constant 0 : i32
    return %c0_i32, %c0_i32_0 : i32, i32
  }
  func.func @transform_6(%arg0: i32) -> (i32, i32, i32) {
    %c0_i32 = arith.constant 0 : i32
    %c0_i32_0 = arith.constant 0 : i32
    %c0_i32_1 = arith.constant 0 : i32
    return %arg0, %c0_i32, %c0_i32_0 : i32, i32, i32
  }
}

module attributes {stable_mosaic.version = 11 : i64} {
  func.func @_head_kernel(%arg0: i32, %arg1: memref<2x9216xbf16, #tpu.memory_space<vmem>>, %arg2: memref<9216x128xbf16, #tpu.memory_space<vmem>>, %arg3: memref<1x128xf32, #tpu.memory_space<vmem>>, %arg4: memref<128x10xf32, #tpu.memory_space<vmem>>, %arg5: memref<1x10xf32, #tpu.memory_space<vmem>>, %arg6: memref<2x10xf32, #tpu.memory_space<vmem>>) attributes {dimension_semantics = [#tpu.dimension_semantics<parallel>], iteration_bounds = array<i64: 1>, scalar_prefetch = 0 : i64, scratch_operands = 0 : i64, tpu.core_type = #tpu.core_type<tc>, window_params = [{transform_indices = @transform_0, window_bounds = array<i64: 2, 9216>}, {pipeline_mode = #tpu.pipeline_mode<synchronous>, transform_indices = @transform_1, window_bounds = array<i64: 9216, 128>}, {pipeline_mode = #tpu.pipeline_mode<synchronous>, transform_indices = @transform_2, window_bounds = array<i64: 1, 128>}, {pipeline_mode = #tpu.pipeline_mode<synchronous>, transform_indices = @transform_3, window_bounds = array<i64: 128, 10>}, {pipeline_mode = #tpu.pipeline_mode<synchronous>, transform_indices = @transform_4, window_bounds = array<i64: 1, 10>}, {transform_indices = @transform_5, window_bounds = array<i64: 2, 10>}]} {
    %c0 = arith.constant 0 : index
    %c0_0 = arith.constant 0 : index
    %0 = vector.load %arg1[%c0, %c0_0] : memref<2x9216xbf16, #tpu.memory_space<vmem>>, vector<2x9216xbf16>
    %c0_1 = arith.constant 0 : index
    %c0_2 = arith.constant 0 : index
    %1 = vector.load %arg2[%c0_1, %c0_2] : memref<9216x128xbf16, #tpu.memory_space<vmem>>, vector<9216x128xbf16>
    %cst = arith.constant dense<0.000000e+00> : vector<2x128xf32>
    %2 = tpu.matmul %0, %1, %cst {dimension_numbers = #tpu.dot_dimension_numbers<[1], [0], [0], [1], [0, 0, 1, 1], [], []>} : vector<2x9216xbf16>, vector<9216x128xbf16>, vector<2x128xf32> -> vector<2x128xf32>
    %c0_3 = arith.constant 0 : index
    %c0_4 = arith.constant 0 : index
    %3 = vector.load %arg3[%c0_3, %c0_4] : memref<1x128xf32, #tpu.memory_space<vmem>>, vector<1x128xf32>
    %4 = vector.broadcast %3 : vector<1x128xf32> to vector<2x128xf32>
    %5 = arith.addf %2, %4 : vector<2x128xf32>
    %cst_5 = arith.constant 0.000000e+00 : f32
    %6 = vector.broadcast %cst_5 : f32 to vector<2x128xf32>
    %7 = arith.maximumf %5, %6 : vector<2x128xf32>
    %c0_6 = arith.constant 0 : index
    %c0_7 = arith.constant 0 : index
    %8 = vector.load %arg4[%c0_6, %c0_7] : memref<128x10xf32, #tpu.memory_space<vmem>>, vector<128x10xf32>
    %cst_8 = arith.constant dense<0.000000e+00> : vector<2x10xf32>
    %9 = tpu.matmul %7, %8, %cst_8 {dimension_numbers = #tpu.dot_dimension_numbers<[1], [0], [0], [1], [0, 0, 1, 1], [], []>} : vector<2x128xf32>, vector<128x10xf32>, vector<2x10xf32> -> vector<2x10xf32>
    %c0_9 = arith.constant 0 : index
    %c0_10 = arith.constant 0 : index
    %10 = vector.load %arg5[%c0_9, %c0_10] : memref<1x10xf32, #tpu.memory_space<vmem>>, vector<1x10xf32>
    %11 = vector.broadcast %10 : vector<1x10xf32> to vector<2x10xf32>
    %12 = arith.addf %9, %11 : vector<2x10xf32>
    %cst_11 = arith.constant dense<0xFF800000> : vector<2xf32>
    %13 = vector.multi_reduction <maximumf>, %12, %cst_11 [1] : vector<2x10xf32> to vector<2xf32>
    %14 = vector.shape_cast %13 : vector<2xf32> to vector<2x1xf32>
    %15 = vector.broadcast %14 : vector<2x1xf32> to vector<2x10xf32>
    %16 = arith.subf %12, %15 : vector<2x10xf32>
    %17 = math.exp %16 : vector<2x10xf32>
    %cst_12 = arith.constant dense<0.000000e+00> : vector<2xf32>
    %18 = vector.multi_reduction <add>, %17, %cst_12 [1] : vector<2x10xf32> to vector<2xf32>
    %19 = vector.shape_cast %18 : vector<2xf32> to vector<2x1xf32>
    %20 = math.log %19 : vector<2x1xf32>
    %21 = vector.broadcast %20 : vector<2x1xf32> to vector<2x10xf32>
    %22 = arith.subf %16, %21 : vector<2x10xf32>
    %c0_13 = arith.constant 0 : index
    %c0_14 = arith.constant 0 : index
    %23 = vector.load %arg6[%c0_13, %c0_14] : memref<2x10xf32, #tpu.memory_space<vmem>>, vector<2x10xf32>
    tpu.vector_store %arg6[%c0_13, %c0_14], %22 {strides = array<i32>} : memref<2x10xf32, #tpu.memory_space<vmem>>, vector<2x10xf32>,
    return
  }
  func.func @transform_0(%arg0: i32) -> (i32, i32) {
    %c0_i32 = arith.constant 0 : i32
    %c0_i32_0 = arith.constant 0 : i32
    return %arg0, %c0_i32 : i32, i32
  }
  func.func @transform_1(%arg0: i32) -> (i32, i32) {
    %c0_i32 = arith.constant 0 : i32
    %c0_i32_0 = arith.constant 0 : i32
    %c0_i32_1 = arith.constant 0 : i32
    return %c0_i32, %c0_i32_0 : i32, i32
  }
  func.func @transform_2(%arg0: i32) -> (i32, i32) {
    %c0_i32 = arith.constant 0 : i32
    %c0_i32_0 = arith.constant 0 : i32
    %c0_i32_1 = arith.constant 0 : i32
    return %c0_i32, %c0_i32_0 : i32, i32
  }
  func.func @transform_3(%arg0: i32) -> (i32, i32) {
    %c0_i32 = arith.constant 0 : i32
    %c0_i32_0 = arith.constant 0 : i32
    %c0_i32_1 = arith.constant 0 : i32
    return %c0_i32, %c0_i32_0 : i32, i32
  }
  func.func @transform_4(%arg0: i32) -> (i32, i32) {
    %c0_i32 = arith.constant 0 : i32
    %c0_i32_0 = arith.constant 0 : i32
    %c0_i32_1 = arith.constant 0 : i32
    return %c0_i32, %c0_i32_0 : i32, i32
  }
  func.func @transform_5(%arg0: i32) -> (i32, i32) {
    %c0_i32 = arith.constant 0 : i32
    %c0_i32_0 = arith.constant 0 : i32
    return %arg0, %c0_i32 : i32, i32
  }
}

</mosaic_0001>

<bundles_post_ra>
// kernel: mnist_cnn_forward.2
= control target key start
LH: loop header
LB: loop body
LE: loop exit
PB: predicated region body
PF: predicated region fallthrough
CT: control target
= control target key end

     0   :  { %s9420_s21 = smov 0   ;;  %s15614_s0 = inlined_call_operand.vmem [shape: f32[2,676,16], index: 0, kind: input, shape index: {}]   ;;  %s15615_s1 = inlined_call_operand.vmem [shape: f32[16,32], index: 1, kind: input, shape index: {}]   ;;  %s15616_s2 = inlined_call_operand.vmem [shape: f32[1,32], index: 2, kind: input, shape index: {}]   ;;  %s15617_s3 = inlined_call_operand.vmem [shape: bf16[288,64], index: 3, kind: input, shape index: {}]   ;;  %s15618_s4 = inlined_call_operand.vmem [shape: f32[1,64], index: 4, kind: input, shape index: {}]   ;;  %s15619_s5 = inlined_call_operand.vmem [shape: f32[144,595], index: 5, kind: input, shape index: {}]   ;;  %s15620_s6 = inlined_call_operand.vmem [shape: bf16[2,144,64], index: 6, kind: output, shape index: {}]  }
   0x1 LB: > { %s6925_s22 = sadd.s32 4294967295, %s9376_s21   ;;  %p6929_p0 = scmp.ge.s32.totalorder %s9376_s21, 1  ;;  %s9376_s21 = sphi %s9420_s21, %s16_s21  }
   0x2   : > { %p212_p1 = scmp.lt.s32.totalorder %s9376_s21, 3 }
   0x4   : > { %p213_p2 = pnand %p6929_p0, %p212_p1 }
   0x6   : > { %216 = sbr.rel (%p213_p2) target bundleno = 1672 (0x688), region = 44 }
   0xd   : > { %v338_v0 = vld [vmem:[%s15615_s1] sm:$0xff]  ;;  %v339_v1 = vld [vmem:[%s15615_s1 + $0x8] sm:$0xff]  ;;  %p242_p3 = scmp.lt.s32.totalorder %s6925_s22, 1  ;;  %v15624_v2 = vmov 0.0|0.0   ;;  %vm9379_vm0 = vmmov 0   ;;  %v15629_v4 = vmov 0.0  }
   0xe   : > { %7758 = vmatprep.subr.bf16.mxu0 %v15624_v2  ;;  %v7759_v3 = vpack.c.bf16 %v339_v1, %v338_v0  ;;  %7294 = vmatprep.mubr.msk.f32.mxu0 %vm9379_vm0, %v15629_v4  ;;  %vm347_vm1 = vcmask 130048   ;;  %vm1646_vm2 = vcmask 1045504   ;;  %vm1256_vm3 = vcmask 1046528   ;;  %s9382_s8 = smov 64   ;;  %s9383_s9 = smov 32  }
   0xf   : > { %s16618_s22 = smov (!%p242_p3, %s6925_s22), 1  ;;  %vm2516_vm4 = vcmask 1043456   ;;  %vm3151_vm5 = vcmask 1042432   ;;  %s9384_s16 = smov 96   ;;  %vm2280_vm6 = vcmask 1044480   ;;  %vm3779_vm7 = vcmask 261120  }
  0x10   : > { %7760 = vmatpush3.bf16.msra.mxu0 %v7759_v3  ;;  %s8159_s27 = smul.u32 680, %s16618_s22  ;;  %vm3858_vm8 = vcmask 523264   ;;  %vm3937_vm9 = vcmask 785408   ;;  %vm3543_vm10 = vcmask 1041408   ;;  %vm6256_vm11 = vcmask 678912  }
  0x11   : > { %vm6851_vm12 = vcmask 519168  }
  0x12   : > { %s9443_s30 = scalar_lea.vmem %s15614_s0, %s8159_s27 }
  0x13   : > { %v253_v5 = vld [vmem:[%s9443_s30] sm:$0xff]  ;;  %v254_v6 = vld [vmem:[%s9443_s30 + $0x8] sm:$0xff]  ;;  %v255_v7 = vld [vmem:[%s9443_s30 + $0x10] sm:$0xff] }
  0x14   : > { %7295 = vmatmul.mubr.msk.f32.vlgmr.msra.gmra.mrb[0].mxu0 %vm347_vm1, %v253_v5  ;;  %v256_v8 = vld [vmem:[%s9443_s30 + $0x18] sm:$0xff]  ;;  %v257_v9 = vld [vmem:[%s9443_s30 + $0x20] sm:$0xff]  ;;  %v258_v10 = vld [vmem:[%s9443_s30 + $0x28] sm:$0xff] }
  0x15   : > { %7297 = vmatprep.mubr.msk.f32.mxu0 %vm9379_vm0, %v15629_v4  ;;  %v259_v11 = vld [vmem:[%s9443_s30 + $0x30] sm:$0xff]  ;;  %v260_v12 = vld [vmem:[%s9443_s30 + $0x38] sm:$0xff]  ;;  %v261_v13 = vld [vmem:[%s9443_s30 + $0x40] sm:$0xff] }
  0x16   : > { %v262_v14 = vld [vmem:[%s9443_s30 + $0x48] sm:$0xff]  ;;  %v263_v15 = vld [vmem:[%s9443_s30 + $0x50] sm:$0xff]  ;;  %v264_v16 = vld [vmem:[%s9443_s30 + $0x58] sm:$0xff] }
  0x17   : > { %v265_v17 = vld [vmem:[%s9443_s30 + $0x60] sm:$0xff]  ;;  %v266_v18 = vld [vmem:[%s9443_s30 + $0x68] sm:$0xff]  ;;  %v267_v19 = vld [vmem:[%s9443_s30 + $0x70] sm:$0xff] }
  0x18   : > { %7298 = vmatmul.mubr.msk.f32.gmra.mrb[2].mxu0 %vm347_vm1, %v254_v6  ;;  %v268_v20 = vld [vmem:[%s9443_s30 + $0x78] sm:$0xff]  ;;  %v269_v21 = vld [vmem:[%s9443_s30 + $0x80] sm:$0xff]  ;;  %v270_v22 = vld [vmem:[%s9443_s30 + $0x88] sm:$0xff] }
  0x19   : > { %7300 = vmatprep.mubr.msk.f32.mxu0 %vm9379_vm0, %v15629_v4  ;;  %v271_v23 = vld [vmem:[%s9443_s30 + $0x90] sm:$0xff]  ;;  %v272_v24 = vld [vmem:[%s9443_s30 + $0x98] sm:$0xff]  ;;  %v273_v25 = vld [vmem:[%s9443_s30 + $0xa0] sm:$0xff] }
  0x1a   : > { %v274_v26 = vld [vmem:[%s9443_s30 + $0xa8] sm:$0xff]  ;;  %v275_v27 = vld [vmem:[%s9443_s30 + $0xb0] sm:$0xff]  ;;  %v276_v28 = vld [vmem:[%s9443_s30 + $0xb8] sm:$0xff] }
  0x1b   : > { %v277_v29 = vld [vmem:[%s9443_s30 + $0xc0] sm:$0xff]  ;;  %v278_v30 = vld [vmem:[%s9443_s30 + $0xc8] sm:$0xff]  ;;  %v279_v31 = vld [vmem:[%s9443_s30 + $0xd0] sm:$0xff] }
  0x1c   : > { %7301 = vmatmul.mubr.msk.f32.gmra.mrb[4].mxu0 %vm347_vm1, %v255_v7  ;;  %v280_v32 = vld [vmem:[%s9443_s30 + $0xd8] sm:$0xff]  ;;  %v281_v33 = vld [vmem:[%s9443_s30 + $0xe0] sm:$0xff]  ;;  %v282_v34 = vld [vmem:[%s9443_s30 + $0xe8] sm:$0xff] }
  0x1d   : > { %7303 = vmatprep.mubr.msk.f32.mxu0 %vm9379_vm0, %v15629_v4  ;;  %v283_v35 = vld [vmem:[%s9443_s30 + $0xf0] sm:$0xff]  ;;  %v284_v36 = vld [vmem:[%s9443_s30 + $0xf8] sm:$0xff]  ;;  %v285_v37 = vld [vmem:[%s9443_s30 + $0x100] sm:$0xff] }
  0x1e   : > { %v286_v38 = vld [vmem:[%s9443_s30 + $0x108] sm:$0xff]  ;;  %v287_v39 = vld [vmem:[%s9443_s30 + $0x110] sm:$0xff]  ;;  %v288_v40 = vld [vmem:[%s9443_s30 + $0x118] sm:$0xff] }
  0x1f   : > { %v289_v41 = vld [vmem:[%s9443_s30 + $0x120] sm:$0xff]  ;;  %v290_v42 = vld [vmem:[%s9443_s30 + $0x128] sm:$0xff]  ;;  %v291_v43 = vld [vmem:[%s9443_s30 + $0x130] sm:$0xff] }
  0x20   : > { %7304 = vmatmul.mubr.msk.f32.gmra.mrb[6].mxu0 %vm347_vm1, %v256_v8  ;;  %v292_v44 = vld [vmem:[%s9443_s30 + $0x138] sm:$0xff]  ;;  %v293_v45 = vld [vmem:[%s9443_s30 + $0x140] sm:$0xff]  ;;  %v294_v46 = vld [vmem:[%s9443_s30 + $0x148] sm:$0xff] }
  0x21   : > { %7306 = vmatprep.mubr.msk.f32.mxu0 %vm9379_vm0, %v15629_v4  ;;  %v295_v47 = vld [vmem:[%s9443_s30 + $0x150] sm:$0xff]  ;;  %v296_v48 = vld [vmem:[%s9443_s30 + $0x158] sm:$0xff]  ;;  %v297_v49 = vld [vmem:[%s9443_s30 + $0x160] sm:$0xff] }
  0x22   : > { %v298_v50 = vld [vmem:[%s9443_s30 + $0x168] sm:$0xff]  ;;  %v299_v51 = vld [vmem:[%s9443_s30 + $0x170] sm:$0xff]  ;;  %v300_v52 = vld [vmem:[%s9443_s30 + $0x178] sm:$0xff] }
  0x23   : > { %v301_v53 = vld [vmem:[%s9443_s30 + $0x180] sm:$0xff]  ;;  %v302_v54 = vld [vmem:[%s9443_s30 + $0x188] sm:$0xff]  ;;  %v303_v55 = vld [vmem:[%s9443_s30 + $0x190] sm:$0xff] }
  0x24   : > { %7307 = vmatmul.mubr.msk.f32.gmra.mrb[8].mxu0 %vm347_vm1, %v257_v9  ;;  %v304_v56 = vld [vmem:[%s9443_s30 + $0x198] sm:$0xff]  ;;  %v305_v57 = vld [vmem:[%s9443_s30 + $0x1a0] sm:$0xff]  ;;  %v306_v58 = vld [vmem:[%s9443_s30 + $0x1a8] sm:$0xff] }
  0x25   : > { %7309 = vmatprep.mubr.msk.f32.mxu0 %vm9379_vm0, %v15629_v4  ;;  %v307_v61 = vld [vmem:[%s9443_s30 + $0x1b0] sm:$0xff]  ;;  %v308_v0 = vld [vmem:[%s9443_s30 + $0x1b8] sm:$0xff]  ;;  %v309_v5 = vld [vmem:[%s9443_s30 + $0x1c0] sm:$0xff] }
  0x26   : > { %v310_v8 = vld [vmem:[%s9443_s30 + $0x1c8] sm:$0xff] }
  0x28   : > { %7310 = vmatmul.mubr.msk.f32.gmra.mrb[10].mxu0 %vm347_vm1, %v258_v10 }
  0x29   : > { %7312 = vmatprep.mubr.msk.f32.mxu0 %vm9379_vm0, %v15629_v4 }
  0x2c   : > { %7313 = vmatmul.mubr.msk.f32.gmra.mrb[12].mxu0 %vm347_vm1, %v259_v11  ;;  %v311_v11 = vld [vmem:[%s9443_s30 + $0x1d0] sm:$0xff] }
  0x2d   : > { %7315 = vmatprep.mubr.msk.f32.mxu0 %vm9379_vm0, %v15629_v4 }
  0x30   : > { %7316 = vmatmul.mubr.msk.f32.gmra.mrb[14].mxu0 %vm347_vm1, %v260_v12 }
  0x31   : > { %7318 = vmatprep.mubr.msk.f32.mxu0 %vm9379_vm0, %v15629_v4 }
  0x34   : > { %7319 = vmatmul.mubr.msk.f32.gmra.mrb[16].mxu0 %vm347_vm1, %v261_v13 }
  0x35   : > { %7321 = vmatprep.mubr.msk.f32.mxu0 %vm9379_vm0, %v15629_v4 }
  0x38   : > { %7322 = vmatmul.mubr.msk.f32.gmra.mrb[18].mxu0 %vm347_vm1, %v262_v14  ;;  %v312_v14 = vld [vmem:[%s9443_s30 + $0x1d8] sm:$0xff] }
  0x39   : > { %7324 = vmatprep.mubr.msk.f32.mxu0 %vm9379_vm0, %v15629_v4 }
  0x3c   : > { %7325 = vmatmul.mubr.msk.f32.gmra.mrb[20].mxu0 %vm347_vm1, %v263_v15 }
  0x3d   : > { %7327 = vmatprep.mubr.msk.f32.mxu0 %vm9379_vm0, %v15629_v4 }
  0x40   : > { %7328 = vmatmul.mubr.msk.f32.gmra.mrb[22].mxu0 %vm347_vm1, %v264_v16 }
  0x41   : > { %7330 = vmatprep.mubr.msk.f32.mxu0 %vm9379_vm0, %v15629_v4 }
  0x44   : > { %7331 = vmatmul.mubr.msk.f32.gmra.mrb[24].mxu0 %vm347_vm1, %v265_v17  ;;  %v313_v17 = vld [vmem:[%s9443_s30 + $0x1e0] sm:$0xff] }
  0x45   : > { %7333 = vmatprep.mubr.msk.f32.mxu0 %vm9379_vm0, %v15629_v4 }
  0x48   : > { %7334 = vmatmul.mubr.msk.f32.gmra.mrb[26].mxu0 %vm347_vm1, %v266_v18 }
  0x49   : > { %7336 = vmatprep.mubr.msk.f32.mxu0 %vm9379_vm0, %v15629_v4 }
  0x4c   : > { %7337 = vmatmul.mubr.msk.f32.gmra.mrb[28].mxu0 %vm347_vm1, %v267_v19 }
  0x4d   : > { %7339 = vmatprep.mubr.msk.f32.mxu0 %vm9379_vm0, %v15629_v4 }
  0x50   : > { %7340 = vmatmul.mubr.msk.f32.gmra.mrb[30].mxu0 %vm347_vm1, %v268_v20  ;;  %v314_v20 = vld [vmem:[%s9443_s30 + $0x1e8] sm:$0xff] }
  0x51   : > { %7342 = vmatprep.mubr.msk.f32.mxu0 %vm9379_vm0, %v15629_v4 }
  0x54   : > { %7343 = vmatmul.mubr.msk.f32.gmra.mrb[32].mxu0 %vm347_vm1, %v269_v21 }
  0x55   : > { %7345 = vmatprep.mubr.msk.f32.mxu0 %vm9379_vm0, %v15629_v4 }
  0x58   : > { %7346 = vmatmul.mubr.msk.f32.gmra.mrb[34].mxu0 %vm347_vm1, %v270_v22 }
  0x59   : > { %7348 = vmatprep.mubr.msk.f32.mxu0 %vm9379_vm0, %v15629_v4 }
  0x5c   : > { %7349 = vmatmul.mubr.msk.f32.gmra.mrb[36].mxu0 %vm347_vm1, %v271_v23  ;;  %v315_v23 = vld [vmem:[%s9443_s30 + $0x1f0] sm:$0xff] }
  0x5d   : > { %7351 = vmatprep.mubr.msk.f32.mxu0 %vm9379_vm0, %v15629_v4 }
  0x60   : > { %7352 = vmatmul.mubr.msk.f32.gmra.mrb[38].mxu0 %vm347_vm1, %v272_v24 }
  0x61   : > { %7354 = vmatprep.mubr.msk.f32.mxu0 %vm9379_vm0, %v15629_v4 }
  0x64   : > { %7355 = vmatmul.mubr.msk.f32.gmra.mrb[40].mxu0 %vm347_vm1, %v273_v25 }
  0x65   : > { %7357 = vmatprep.mubr.msk.f32.mxu0 %vm9379_vm0, %v15629_v4 }
  0x68   : > { %7358 = vmatmul.mubr.msk.f32.gmra.mrb[42].mxu0 %vm347_vm1, %v274_v26  ;;  %v316_v26 = vld [vmem:[%s9443_s30 + $0x1f8] sm:$0xff] }
  0x69   : > { %7360 = vmatprep.mubr.msk.f32.mxu0 %vm9379_vm0, %v15629_v4 }
  0x6c   : > { %7361 = vmatmul.mubr.msk.f32.gmra.mrb[44].mxu0 %vm347_vm1, %v275_v27 }
  0x6d   : > { %7363 = vmatprep.mubr.msk.f32.mxu0 %vm9379_vm0, %v15629_v4 }
  0x70   : > { %7364 = vmatmul.mubr.msk.f32.gmra.mrb[46].mxu0 %vm347_vm1, %v276_v28 }
  0x71   : > { %7366 = vmatprep.mubr.msk.f32.mxu0 %vm9379_vm0, %v15629_v4 }
  0x74   : > { %7367 = vmatmul.mubr.msk.f32.gmra.mrb[48].mxu0 %vm347_vm1, %v277_v29  ;;  %v317_v29 = vld [vmem:[%s9443_s30 + $0x200] sm:$0xff] }
  0x75   : > { %7369 = vmatprep.mubr.msk.f32.mxu0 %vm9379_vm0, %v15629_v4 }
  0x78   : > { %7370 = vmatmul.mubr.msk.f32.gmra.mrb[50].mxu0 %vm347_vm1, %v278_v30 }
  0x79   : > { %7372 = vmatprep.mubr.msk.f32.mxu0 %vm9379_vm0, %v15629_v4 }
  0x7c   : > { %7373 = vmatmul.mubr.msk.f32.gmra.mrb[52].mxu0 %vm347_vm1, %v279_v31 }
  0x7d   : > { %7375 = vmatprep.mubr.msk.f32.mxu0 %vm9379_vm0, %v15629_v4 }
  0x80   : > { %7376 = vmatmul.mubr.msk.f32.gmra.mrb[54].mxu0 %vm347_vm1, %v280_v32  ;;  %v318_v32 = vld [vmem:[%s9443_s30 + $0x208] sm:$0xff] }
  0x81   : > { %7378 = vmatprep.mubr.msk.f32.mxu0 %vm9379_vm0, %v15629_v4 }
  0x84   : > { %7379 = vmatmul.mubr.msk.f32.gmra.mrb[56].mxu0 %vm347_vm1, %v281_v33 }
  0x85   : > { %7381 = vmatprep.mubr.msk.f32.mxu0 %vm9379_vm0, %v15629_v4 }
  0x88   : > { %7382 = vmatmul.mubr.msk.f32.gmra.mrb[58].mxu0 %vm347_vm1, %v282_v34 }
  0x89   : > { %7384 = vmatprep.mubr.msk.f32.mxu0 %vm9379_vm0, %v15629_v4 }
  0x8c   : > { %7385 = vmatmul.mubr.msk.f32.gmra.mrb[60].mxu0 %vm347_vm1, %v283_v35  ;;  %v319_v35 = vld [vmem:[%s9443_s30 + $0x210] sm:$0xff] }
  0x8d   : > { %7387 = vmatprep.mubr.msk.f32.mxu0 %vm9379_vm0, %v15629_v4 }
  0x90   : > { %7388 = vmatmul.mubr.msk.f32.gmra.mrb[62].mxu0 %vm347_vm1, %v284_v36 }
  0x91   : > { %7390 = vmatprep.mubr.msk.f32.mxu0 %vm9379_vm0, %v15629_v4 }
  0x94   : > { %7391 = vmatmul.mubr.msk.f32.gmra.mrb[64].mxu0 %vm347_vm1, %v285_v37 }
  0x95   : > { %7393 = vmatprep.mubr.msk.f32.mxu0 %vm9379_vm0, %v15629_v4 }
  0x98   : > { %7394 = vmatmul.mubr.msk.f32.gmra.mrb[66].mxu0 %vm347_vm1, %v286_v38  ;;  %v320_v38 = vld [vmem:[%s9443_s30 + $0x218] sm:$0xff] }
  0x99   : > { %7396 = vmatprep.mubr.msk.f32.mxu0 %vm9379_vm0, %v15629_v4 }
  0x9c   : > { %7397 = vmatmul.mubr.msk.f32.gmra.mrb[68].mxu0 %vm347_vm1, %v287_v39 }
  0x9d   : > { %7399 = vmatprep.mubr.msk.f32.mxu0 %vm9379_vm0, %v15629_v4 }
  0xa0   : > { %7400 = vmatmul.mubr.msk.f32.gmra.mrb[70].mxu0 %vm347_vm1, %v288_v40 }
  0xa1   : > { %7402 = vmatprep.mubr.msk.f32.mxu0 %vm9379_vm0, %v15629_v4 }
  0xa4   : > { %7403 = vmatmul.mubr.msk.f32.gmra.mrb[72].mxu0 %vm347_vm1, %v289_v41  ;;  %v321_v41 = vld [vmem:[%s9443_s30 + $0x220] sm:$0xff] }
  0xa5   : > { %7405 = vmatprep.mubr.msk.f32.mxu0 %vm9379_vm0, %v15629_v4 }
  0xa8   : > { %7406 = vmatmul.mubr.msk.f32.gmra.mrb[74].mxu0 %vm347_vm1, %v290_v42  ;;  %v9346_v42 = vld [vmem:[%s15617_s3] sm:$0xff]  }
  0xa9   : > { %7408 = vmatprep.mubr.msk.f32.mxu0 %vm9379_vm0, %v15629_v4 }
  0xac   : > { %7409 = vmatmul.mubr.msk.f32.gmra.mrb[76].mxu0 %vm347_vm1, %v291_v43  ;;  %v15631_v43 = vmov 0  }
  0xad   : > { %7411 = vmatprep.mubr.msk.f32.mxu0 %vm9379_vm0, %v15629_v4  ;;  %7877 = vmatprep.subr.bf16.mxu1 %v15631_v43 }
  0xae   : > { %4635 = vmatprep.subr.bf16.mxu0 %v15631_v43  ;;  %7893 = vmatpush1.bf16.msra.mxu1 %v9346_v42 }
  0xaf   : > { %4636 = vmatpush1.bf16.msra.mxu0 %v9346_v42  ;;  %7878 = vmatprep.subr.bf16.mxu1 %v15631_v43 }
  0xb0   : > { %7412 = vmatmul.mubr.msk.f32.gmra.mrb[78].mxu0 %vm347_vm1, %v292_v44  ;;  %4637 = vmatprep.subr.bf16.mxu0 %v15631_v43 }
  0xb1   : > { %7414 = vmatprep.mubr.msk.f32.mxu0 %vm9379_vm0, %v15629_v4 }
  0xb4   : > { %7415 = vmatmul.mubr.msk.f32.gmra.mrb[80].mxu0 %vm347_vm1, %v293_v45 }
  0xb5   : > { %7417 = vmatprep.mubr.msk.f32.mxu0 %vm9379_vm0, %v15629_v4 }
  0xb8   : > { %7418 = vmatmul.mubr.msk.f32.gmra.mrb[82].mxu0 %vm347_vm1, %v294_v46  ;;  %v322_v46 = vld [vmem:[%s9443_s30 + $0x228] sm:$0xff] }
  0xb9   : > { %7420 = vmatprep.mubr.msk.f32.mxu0 %vm9379_vm0, %v15629_v4 }
  0xbc   : > { %7421 = vmatmul.mubr.msk.f32.gmra.mrb[84].mxu0 %vm347_vm1, %v295_v47  ;;  %v9347_v47 = vld [vmem:[%s15617_s3 + $0x8] sm:$0xff]  }
  0xbd   : > { %7423 = vmatprep.mubr.msk.f32.mxu0 %vm9379_vm0, %v15629_v4  ;;  %7894 = vmatpush1.bf16.msra.mxu1 %v9347_v47 }
  0xbe   : > { %4638 = vmatpush1.bf16.msra.mxu0 %v9347_v47  ;;  %7879 = vmatprep.subr.bf16.mxu1 %v15631_v43 }
  0xbf   : > { %4639 = vmatprep.subr.bf16.mxu0 %v15631_v43 }
  0xc0   : > { %7424 = vmatmul.mubr.msk.f32.gmra.mrb[86].mxu0 %vm347_vm1, %v296_v48 }
  0xc1   : > { %7426 = vmatprep.mubr.msk.f32.mxu0 %vm9379_vm0, %v15629_v4 }
  0xc4   : > { %7427 = vmatmul.mubr.msk.f32.gmra.mrb[88].mxu0 %vm347_vm1, %v297_v49 }
  0xc5   : > { %7429 = vmatprep.mubr.msk.f32.mxu0 %vm9379_vm0, %v15629_v4 }
  0xc8   : > { %7430 = vmatmul.mubr.msk.f32.gmra.mrb[90].mxu0 %vm347_vm1, %v298_v50  ;;  %v323_v50 = vld [vmem:[%s9443_s30 + $0x230] sm:$0xff] }
  0xc9   : > { %7432 = vmatprep.mubr.msk.f32.mxu0 %vm9379_vm0, %v15629_v4 }
  0xcc   : > { %7433 = vmatmul.mubr.msk.f32.gmra.mrb[92].mxu0 %vm347_vm1, %v299_v51  ;;  %v9348_v51 = vld [vmem:[%s15617_s3 + $0x10] sm:$0xff]  }
  0xcd   : > { %7435 = vmatprep.mubr.msk.f32.mxu0 %vm9379_vm0, %v15629_v4  ;;  %7895 = vmatpush1.bf16.msra.mxu1 %v9348_v51 }
  0xce   : > { %4640 = vmatpush1.bf16.msra.mxu0 %v9348_v51  ;;  %7880 = vmatprep.subr.bf16.mxu1 %v15631_v43 }
  0xcf   : > { %4641 = vmatprep.subr.bf16.mxu0 %v15631_v43 }
  0xd0   : > { %7436 = vmatmul.mubr.msk.f32.gmra.mrb[94].mxu0 %vm347_vm1, %v300_v52 }
  0xd1   : > { %7438 = vmatprep.mubr.msk.f32.mxu0 %vm9379_vm0, %v15629_v4 }
  0xd4   : > { %7439 = vmatmul.mubr.msk.f32.gmra.mrb[96].mxu0 %vm347_vm1, %v301_v53 }
  0xd5   : > { %7441 = vmatprep.mubr.msk.f32.mxu0 %vm9379_vm0, %v15629_v4 }
  0xd8   : > { %7442 = vmatmul.mubr.msk.f32.gmra.mrb[98].mxu0 %vm347_vm1, %v302_v54  ;;  %v324_v54 = vld [vmem:[%s9443_s30 + $0x238] sm:$0xff] }
  0xd9   : > { %7444 = vmatprep.mubr.msk.f32.mxu0 %vm9379_vm0, %v15629_v4 }
  0xdc   : > { %7445 = vmatmul.mubr.msk.f32.gmra.mrb[100].mxu0 %vm347_vm1, %v303_v55  ;;  %v9349_v55 = vld [vmem:[%s15617_s3 + $0x18] sm:$0xff]  }
  0xdd   : > { %7447 = vmatprep.mubr.msk.f32.mxu0 %vm9379_vm0, %v15629_v4  ;;  %7896 = vmatpush1.bf16.msra.mxu1 %v9349_v55 }
  0xde   : > { %4642 = vmatpush1.bf16.msra.mxu0 %v9349_v55  ;;  %7881 = vmatprep.subr.bf16.mxu1 %v15631_v43 }
  0xdf   : > { %4643 = vmatprep.subr.bf16.mxu0 %v15631_v43 }
  0xe0   : > { %7448 = vmatmul.mubr.msk.f32.gmra.mrb[102].mxu0 %vm347_vm1, %v304_v56 }
  0xe1   : > { %7450 = vmatprep.mubr.msk.f32.mxu0 %vm9379_vm0, %v15629_v4 }
  0xe4   : > { %7451 = vmatmul.mubr.msk.f32.gmra.mrb[104].mxu0 %vm347_vm1, %v305_v57 }
  0xe5   : > { %7453 = vmatprep.mubr.msk.f32.mxu0 %vm9379_vm0, %v15629_v4 }
  0xe7   : > { %v9658_v59 = vpop.f32.mrb[0].mxu0 }
  0xe8   : > { %v7296_v60 = vpop.f32.mrb[1].mxu0  ;;  %7454 = vmatmul.mubr.msk.f32.gmra.mrb[106].mxu0 %vm347_vm1, %v306_v58  ;;  %v325_v58 = vld [vmem:[%s9443_s30 + $0x240] sm:$0xff] }
  0xe9   : > { %7456 = vmatprep.mubr.msk.f32.mxu0 %vm9379_vm0, %v15629_v4  ;;  %v9350_v60 = vld [vmem:[%s15617_s3 + $0x20] sm:$0xff]  }
  0xea   : > { %7897 = vmatpush1.bf16.msra.mxu1 %v9350_v60  ;;  %4644 = vmatpush1.bf16.msra.mxu0 %v9350_v60  ;;  %v330_v60 = vld [vmem:[%s9443_s30 + $0x268] sm:$0xff] }
  0xeb   : > { %v9664_v62 = vpop.f32.mrb[2].mxu0  ;;  %7882 = vmatprep.subr.bf16.mxu1 %v15631_v43  ;;  %4645 = vmatprep.subr.bf16.mxu0 %v15631_v43 }
  0xec   : > { %v7299_v63 = vpop.f32.mrb[3].mxu0  ;;  %7457 = vmatmul.mubr.msk.f32.gmra.mrb[108].mxu0 %vm347_vm1, %v307_v61 }
  0xed   : > { %7459 = vmatprep.mubr.msk.f32.mxu0 %vm9379_vm0, %v15629_v4 }
  0xef   : > { %v9670_v1 = vpop.f32.mrb[4].mxu0 }
  0xf0   : > { %v7302_v3 = vpop.f32.mrb[5].mxu0  ;;  %7460 = vmatmul.mubr.msk.f32.gmra.mrb[110].mxu0 %vm347_vm1, %v308_v0  ;;  %v326_v0 = vld [vmem:[%s9443_s30 + $0x248] sm:$0xff] }
  0xf1   : > { %7462 = vmatprep.mubr.msk.f32.mxu0 %vm9379_vm0, %v15629_v4  ;;  %v9351_v3 = vld [vmem:[%s15617_s3 + $0x28] sm:$0xff]  }
  0xf2   : > { %7898 = vmatpush1.bf16.msra.mxu1 %v9351_v3  ;;  %4646 = vmatpush1.bf16.msra.mxu0 %v9351_v3 }
  0xf3   : > { %v9676_v6 = vpop.f32.mrb[6].mxu0  ;;  %7883 = vmatprep.subr.bf16.mxu1 %v15631_v43  ;;  %4647 = vmatprep.subr.bf16.mxu0 %v15631_v43 }
  0xf4   : > { %v7305_v7 = vpop.f32.mrb[7].mxu0  ;;  %7463 = vmatmul.mubr.msk.f32.gmra.mrb[112].mxu0 %vm347_vm1, %v309_v5  ;;  %v9809_v5 = vld [vmem:[%s15616_s2] ss:$0 sm:$0xff] }
  0xf5   : > { %7465 = vmatprep.mubr.msk.f32.mxu0 %vm9379_vm0, %v15629_v4  ;;  %v670_v55 = vadd.f32 %v9809_v5, %v9658_v59 }
  0xf7   : > { %v9682_v9 = vpop.f32.mrb[8].mxu0 }
  0xf8   : > { %v7308_v10 = vpop.f32.mrb[9].mxu0  ;;  %7466 = vmatmul.mubr.msk.f32.gmra.mrb[114].mxu0 %vm347_vm1, %v310_v8 }
  0xf9   : > { %7468 = vmatprep.mubr.msk.f32.mxu0 %vm9379_vm0, %v15629_v4 }
  0xfb   : > { %v9688_v12 = vpop.f32.mrb[10].mxu0 }
  0xfc   : > { %v7311_v13 = vpop.f32.mrb[11].mxu0  ;;  %7469 = vmatmul.mubr.msk.f32.gmra.mrb[116].mxu0 %vm347_vm1, %v311_v11 }
  0xfd   : > { %7471 = vmatprep.mubr.msk.f32.mxu0 %vm9379_vm0, %v15629_v4  ;;  %v327_v13 = vld [vmem:[%s9443_s30 + $0x250] sm:$0xff] }
  0xff   : > { %v9694_v15 = vpop.f32.mrb[12].mxu0 }
 0x100   : > { %v7314_v16 = vpop.f32.mrb[13].mxu0  ;;  %7472 = vmatmul.mubr.msk.f32.gmra.mrb[118].mxu0 %vm347_vm1, %v312_v14 }
 0x101   : > { %7474 = vmatprep.mubr.msk.f32.mxu0 %vm9379_vm0, %v15629_v4 }
 0x103   : > { %v9700_v18 = vpop.f32.mrb[14].mxu0 }
 0x104   : > { %v7317_v19 = vpop.f32.mrb[15].mxu0  ;;  %7475 = vmatmul.mubr.msk.f32.gmra.mrb[120].mxu0 %vm347_vm1, %v313_v17 }
 0x105   : > { %7477 = vmatprep.mubr.msk.f32.mxu0 %vm9379_vm0, %v15629_v4 }
 0x107   : > { %v9706_v21 = vpop.f32.mrb[16].mxu0 }
 0x108   : > { %v7320_v22 = vpop.f32.mrb[17].mxu0  ;;  %7478 = vmatmul.mubr.msk.f32.gmra.mrb[122].mxu0 %vm347_vm1, %v314_v20 }
 0x109   : > { %7480 = vmatprep.mubr.msk.f32.mxu0 %vm9379_vm0, %v15629_v4  ;;  %v9352_v22 = vld [vmem:[%s15617_s3 + $0x30] sm:$0xff]  }
 0x10a   : > { %7899 = vmatpush1.bf16.msra.mxu1 %v9352_v22  ;;  %4648 = vmatpush1.bf16.msra.mxu0 %v9352_v22  ;;  %v331_v22 = vld [vmem:[%s9443_s30 + $0x270] sm:$0xff] }
 0x10b   : > { %v9712_v24 = vpop.f32.mrb[18].mxu0  ;;  %7884 = vmatprep.subr.bf16.mxu1 %v15631_v43  ;;  %4649 = vmatprep.subr.bf16.mxu0 %v15631_v43 }
 0x10c   : > { %v7323_v25 = vpop.f32.mrb[19].mxu0  ;;  %7481 = vmatmul.mubr.msk.f32.gmra.mrb[124].mxu0 %vm347_vm1, %v315_v23  ;;  %v328_v23 = vld [vmem:[%s9443_s30 + $0x258] sm:$0xff] }
 0x10d   : > { %7483 = vmatprep.mubr.msk.f32.mxu0 %vm9379_vm0, %v15629_v4 }
 0x10f   : > { %v9718_v27 = vpop.f32.mrb[20].mxu0 }
 0x110   : > { %15883 = vst [vmem:[#allocation2_spill] sm:$0xff] %v9718_v27  ;;  %v7326_v28 = vpop.f32.mrb[21].mxu0  ;;  %7484 = vmatmul.mubr.msk.f32.gmra.mrb[126].mxu0 %vm347_vm1, %v316_v26 }
 0x111   : > { %7486 = vmatprep.mubr.msk.f32.mxu0 %vm9379_vm0, %v15629_v4  ;;  %v9353_v28 = vld [vmem:[%s15617_s3 + $0x38] sm:$0xff]  }
 0x112   : > { %7900 = vmatpush1.bf16.msra.mxu1 %v9353_v28  ;;  %4650 = vmatpush1.bf16.msra.mxu0 %v9353_v28 }
 0x113   : > { %v9724_v30 = vpop.f32.mrb[22].mxu0  ;;  %7885 = vmatprep.subr.bf16.mxu1 %v15631_v43  ;;  %4651 = vmatprep.subr.bf16.mxu0 %v15631_v43 }
 0x114   : > { %15884 = vst [vmem:[#allocation3_spill] sm:$0xff] %v9724_v30  ;;  %v7329_v31 = vpop.f32.mrb[23].mxu0  ;;  %7487 = vmatmul.mubr.msk.f32.gmra.mrb[128].mxu0 %vm347_vm1, %v317_v29 }
 0x115   : > { %7489 = vmatprep.mubr.msk.f32.mxu0 %vm9379_vm0, %v15629_v4 }
 0x117   : > { %v9730_v33 = vpop.f32.mrb[24].mxu0 }
 0x118   : > { %15885 = vst [vmem:[#allocation4_spill] sm:$0xff] %v9730_v33  ;;  %v7332_v34 = vpop.f32.mrb[25].mxu0  ;;  %7490 = vmatmul.mubr.msk.f32.gmra.mrb[130].mxu0 %vm347_vm1, %v318_v32 }
 0x119   : > { %7492 = vmatprep.mubr.msk.f32.mxu0 %vm9379_vm0, %v15629_v4 }
 0x11b   : > { %v9736_v36 = vpop.f32.mrb[26].mxu0 }
 0x11c   : > { %15886 = vst [vmem:[#allocation5_spill] sm:$0xff] %v9736_v36  ;;  %v7335_v37 = vpop.f32.mrb[27].mxu0  ;;  %7493 = vmatmul.mubr.msk.f32.gmra.mrb[132].mxu0 %vm347_vm1, %v319_v35 }
 0x11d   : > { %7495 = vmatprep.mubr.msk.f32.mxu0 %vm9379_vm0, %v15629_v4  ;;  %v329_v37 = vld [vmem:[%s9443_s30 + $0x260] sm:$0xff] }
 0x11f   : > { %v9742_v39 = vpop.f32.mrb[28].mxu0 }
 0x120   : > { %15887 = vst [vmem:[#allocation6_spill] sm:$0xff] %v9742_v39  ;;  %v7338_v40 = vpop.f32.mrb[29].mxu0  ;;  %7496 = vmatmul.mubr.msk.f32.gmra.mrb[134].mxu0 %vm347_vm1, %v320_v38 }
 0x121   : > { %7498 = vmatprep.mubr.msk.f32.mxu0 %vm9379_vm0, %v15629_v4 }
 0x123   : > { %v9753_v44 = vpop.f32.mrb[30].mxu0 }
 0x124   : > { %15888 = vst [vmem:[#allocation7_spill] sm:$0xff] %v9753_v44  ;;  %v7341_v45 = vpop.f32.mrb[31].mxu0  ;;  %7499 = vmatmul.mubr.msk.f32.gmra.mrb[136].mxu0 %vm347_vm1, %v321_v41 }
 0x125   : > { %7501 = vmatprep.mubr.msk.f32.mxu0 %vm9379_vm0, %v15629_v4 }
 0x127   : > { %v9764_v48 = vpop.f32.mrb[32].mxu0 }
 0x128   : > { %15889 = vst [vmem:[#allocation8_spill] sm:$0xff] %v9764_v48  ;;  %v7344_v49 = vpop.f32.mrb[33].mxu0  ;;  %7502 = vmatmul.mubr.msk.f32.gmra.mrb[138].mxu0 %vm347_vm1, %v322_v46  ;;  %v10009_v46 = vld [vmem:[%s15617_s3 + $0x60] sm:$0xff]  }
 0x129   : > { %7504 = vmatprep.mubr.msk.f32.mxu0 %vm9379_vm0, %v15629_v4 }
 0x12b   : > { %v9775_v52 = vpop.f32.mrb[34].mxu0 }
 0x12c   : > { %15890 = vst [vmem:[#allocation9_spill] sm:$0xff] %v9775_v52  ;;  %v7347_v53 = vpop.f32.mrb[35].mxu0  ;;  %7505 = vmatmul.mubr.msk.f32.gmra.mrb[140].mxu0 %vm347_vm1, %v323_v50 }
 0x12d   : > { %7507 = vmatprep.mubr.msk.f32.mxu0 %vm9379_vm0, %v15629_v4 }
 0x12f   : > { %v9786_v56 = vpop.f32.mrb[36].mxu0 }
 0x130   : > { %15891 = vst [vmem:[#allocation10_spill] sm:$0xff] %v9786_v56  ;;  %v7350_v57 = vpop.f32.mrb[37].mxu0  ;;  %7508 = vmatmul.mubr.msk.f32.gmra.mrb[142].mxu0 %vm347_vm1, %v324_v54  ;;  %v9354_v54 = vld [vmem:[%s15617_s3 + $0x40] sm:$0xff]  }
 0x131   : > { %7510 = vmatprep.mubr.msk.f32.mxu0 %vm9379_vm0, %v15629_v4  ;;  %v675_v57 = vadd.f32 %v9809_v5, %v9664_v62  ;;  %7901 = vmatpush1.bf16.msra.mxu1 %v9354_v54 }
 0x132   : > { %4652 = vmatpush1.bf16.msra.mxu0 %v9354_v54  ;;  %7886 = vmatprep.subr.bf16.mxu1 %v15631_v43 }
 0x133   : > { %v764_v61 = vpop.f32.mrb[38].mxu0  ;;  %4653 = vmatprep.subr.bf16.mxu0 %v15631_v43 }
 0x134   : > { %v7353_v63 = vpop.f32.mrb[39].mxu0  ;;  %7511 = vmatmul.mubr.msk.f32.gmra.mrb[144].mxu0 %vm347_vm1, %v325_v58  ;;  %v765_v8 = vadd.f32 %v9809_v5, %v764_v61  ;;  %v680_v58 = vadd.f32 %v9809_v5, %v9670_v1 }
 0x135   : > { %7513 = vmatprep.mubr.msk.f32.mxu0 %vm9379_vm0, %v15629_v4 }
 0x136   : > { %v9821_v17 = vmax.f32 %v765_v8, 0.0 }
 0x137   : > { %v769_v7 = vpop.f32.mrb[40].mxu0 }
 0x138   : > { %v770_v10 = vadd.f32 %v9809_v5, %v769_v7  ;;  %v7356_v11 = vpop.f32.mrb[41].mxu0  ;;  %7514 = vmatmul.mubr.msk.f32.gmra.mrb[146].mxu0 %vm347_vm1, %v326_v0  ;;  %15893 = vst [vmem:[#allocation12_spill] sm:$0xff] %v9821_v17  ;;  %v15623_v34 = vrot.slane %v9821_v17, 2 }
 0x139   : > { %7516 = vmatprep.mubr.msk.f32.mxu0 %vm9379_vm0, %v15629_v4  ;;  %v9355_v11 = vld [vmem:[%s15617_s3 + $0x48] sm:$0xff]  }
 0x13a   : > { %v9819_v14 = vmax.f32 %v770_v10, 0.0  ;;  %7902 = vmatpush1.bf16.msra.mxu1 %v9355_v11  ;;  %4654 = vmatpush1.bf16.msra.mxu0 %v9355_v11 }
 0x13b   : > { %v774_v16 = vpop.f32.mrb[42].mxu0  ;;  %7887 = vmatprep.subr.bf16.mxu1 %v15631_v43  ;;  %4655 = vmatprep.subr.bf16.mxu0 %v15631_v43 }
 0x13c   : > { %15892 = vst [vmem:[#allocation11_spill] sm:$0xff] %v9819_v14  ;;  %v775_v19 = vadd.f32 %v9809_v5, %v774_v16  ;;  %v7359_v20 = vpop.f32.mrb[43].mxu0  ;;  %7517 = vmatmul.mubr.msk.f32.gmra.mrb[148].mxu0 %vm347_vm1, %v327_v13  ;;  %v1686_v26 = vrot.slane %v9819_v14, 2  ;;  %v15621_v51 = vrot.slane %v9819_v14, 1  ;;  %v9897_v13 = vmax.f32 %v670_v55, 0.0 }
 0x13d   : > { %7519 = vmatprep.mubr.msk.f32.mxu0 %vm9379_vm0, %v15629_v4  ;;  %v9899_v16 = vmax.f32 %v675_v57, 0.0 }
 0x13e   : > { %v9831_v25 = vmax.f32 %v775_v19, 0.0  ;;  %v9851_v40 = vsel %vm1646_vm2, %v15623_v34, %v1686_v26  ;;  %15900 = vst [vmem:[#allocation19_spill] sm:$0xff] %v9897_v13  ;;  %v9901_v19 = vmax.f32 %v680_v58, 0.0  ;;  %v332_v58 = vld [vmem:[%s9443_s30 + $0x278] sm:$0xff] }
 0x13f   : > { %v779_v29 = vpop.f32.mrb[44].mxu0  ;;  %15896 = vst [vmem:[#allocation15_spill] sm:$0xff] %v9851_v40  ;;  %15901 = vst [vmem:[#allocation20_spill] sm:$0xff] %v9899_v16  ;;  %v1258_v54 = vrot.slane %v9899_v16, 1 }
 0x140   : > { %15894 = vst [vmem:[#allocation13_spill] sm:$0xff] %v9831_v25  ;;  %v780_v31 = vadd.f32 %v9809_v5, %v779_v29  ;;  %v7362_v32 = vpop.f32.mrb[45].mxu0  ;;  %v1688_v35 = vrot.slane %v9831_v25, 2  ;;  %7520 = vmatmul.mubr.msk.f32.gmra.mrb[150].mxu0 %vm347_vm1, %v328_v23  ;;  %v1298_v42 = vrot.slane %v9831_v25, 1  ;;  %15902 = vst [vmem:[#allocation21_spill] sm:$0xff] %v9901_v19  ;;  %v15628_v55 = vrot.slane %v9901_v19, 1 }
 0x141   : > { %7522 = vmatprep.mubr.msk.f32.mxu0 %vm9379_vm0, %v15629_v4 }
 0x142   : > { %v9846_v38 = vmax.f32 %v780_v31, 0.0  ;;  %v9854_v41 = vsel %vm1646_vm2, %v1686_v26, %v1688_v35  ;;  %v1299_v59 = vsel %vm1256_vm3, %v15621_v51, %v1298_v42 }
 0x143   : > { %15897 = vst [vmem:[#allocation16_spill] sm:$0xff] %v9854_v41  ;;  %v784_v45 = vpop.f32.mrb[46].mxu0 }
 0x144   : > { %15895 = vst [vmem:[#allocation14_spill] sm:$0xff] %v9846_v38  ;;  %v785_v47 = vadd.f32 %v9809_v5, %v784_v45  ;;  %v7365_v49 = vpop.f32.mrb[47].mxu0  ;;  %v1690_v50 = vrot.slane %v9846_v38, 2  ;;  %v1300_v53 = vrot.slane %v9846_v38, 1  ;;  %7523 = vmatmul.mubr.msk.f32.gmra.mrb[152].mxu0 %vm347_vm1, %v329_v37  ;;  %v15622_v32 = vrot.slane %v9846_v38, 4 }
 0x145   : > { %7525 = vmatprep.mubr.msk.f32.mxu0 %vm9379_vm0, %v15629_v4  ;;  %v9356_v49 = vld [vmem:[%s15617_s3 + $0x50] sm:$0xff]  }
 0x146   : > { %v9878_v61 = vmax.f32 %v785_v47, 0.0  ;;  %v9881_v63 = vsel %vm1646_vm2, %v1688_v35, %v1690_v50  ;;  %v1301_v0 = vsel %vm1256_vm3, %v1298_v42, %v1300_v53  ;;  %7903 = vmatpush1.bf16.msra.mxu1 %v9356_v49  ;;  %4656 = vmatpush1.bf16.msra.mxu0 %v9356_v49 }
 0x147   : > { %15899 = vst [vmem:[#allocation18_spill] sm:$0xff] %v9881_v63  ;;  %v789_v62 = vpop.f32.mrb[48].mxu0  ;;  %v8181_v1 = vpack.i.bf16 %v9881_v63, %v9854_v41  ;;  %v8176_v3 = vpack.i.bf16 %v1301_v0, %v1299_v59  ;;  %7888 = vmatprep.subr.bf16.mxu1 %v15631_v43  ;;  %4657 = vmatprep.subr.bf16.mxu0 %v15631_v43 }
 0x148   : > { %15898 = vst [vmem:[#allocation17_spill] sm:$0xff] %v9878_v61  ;;  %v790_v7 = vadd.f32 %v9809_v5, %v789_v62  ;;  %v7368_v8 = vpop.f32.mrb[49].mxu0  ;;  %v1692_v10 = vrot.slane %v9878_v61, 2  ;;  %7526 = vmatmul.mubr.msk.f32.gmra.mrb[154].mxu0 %vm347_vm1, %v330_v60  ;;  %v1302_v20 = vrot.slane %v9878_v61, 1  ;;  %v2556_v28 = vrot.slane %v9878_v61, 4 }
 0x149   : > { %8182 = vrot.lane.b32.xlu1 %v8181_v1, %s9382_s8  ;;  %8177 = vrot.lane.b32.xlu0 %v8176_v3, %s9383_s9  ;;  %v685_v1 = vadd.f32 %v9809_v5, %v9676_v6  ;;  %v9962_v6 = vld [vmem:[%s15617_s3 + $0x58] sm:$0xff]  }
 0x14a   : > { %v9907_v23 = vmax.f32 %v790_v7, 0.0  ;;  %v9910_v26 = vsel %vm1646_vm2, %v1690_v50, %v1692_v10  ;;  %7528 = vmatprep.mubr.msk.f32.mxu0 %vm9379_vm0, %v15629_v4  ;;  %v1257_v50 = vrot.slane %v9897_v13, 1  ;;  %v1303_v57 = vsel %vm1256_vm3, %v1300_v53, %v1302_v20  ;;  %7904 = vmatpush1.bf16.msra.mxu1 %v9962_v6 }
 0x14b   : > { %15904 = vst [vmem:[#allocation23_spill] sm:$0xff] %v9910_v26  ;;  %v794_v31 = vpop.f32.mrb[50].mxu0  ;;  %v9943_v0 = vsel %vm2516_vm4, %v15622_v32, %v2556_v28  ;;  %v15627_v53 = vrot.slane %v9901_v19, 2  ;;  %7889 = vmatprep.subr.bf16.mxu1 %v15631_v43  ;;  %4658 = vmatpush1.bf16.msra.mxu0 %v9962_v6  ;;  %v15925_v6 = vrot.slane %v9901_v19, 2 }
 0x14c   : > { %15903 = vst [vmem:[#allocation22_spill] sm:$0xff] %v9907_v23  ;;  %v795_v35 = vadd.f32 %v9809_v5, %v794_v31  ;;  %v7371_v37 = vpop.f32.mrb[51].mxu0  ;;  %v1304_v42 = vrot.slane %v9907_v23, 1  ;;  %v1694_v45 = vrot.slane %v9907_v23, 2  ;;  %v2558_v47 = vrot.slane %v9907_v23, 4  ;;  %7529 = vmatmul.mubr.msk.f32.gmra.mrb[156].mxu0 %vm347_vm1, %v331_v22  ;;  %15906 = vst [vmem:[#allocation25_spill] sm:$0xff] %v9943_v0 }
 0x14d   : > { %7531 = vmatprep.mubr.msk.f32.mxu0 %vm9379_vm0, %v15629_v4  ;;  %v1648_v37 = vrot.slane %v9899_v16, 2 }
 0x14e   : > { %v9935_v60 = vmax.f32 %v795_v35, 0.0  ;;  %v1305_v59 = vsel %vm1256_vm3, %v1302_v20, %v1304_v42  ;;  %v9946_v62 = vsel %vm2516_vm4, %v2556_v28, %v2558_v47  ;;  %v1695_v22 = vsel %vm1646_vm2, %v1692_v10, %v1694_v45  ;;  %v333_v10 = vld [vmem:[%s9443_s30 + $0x280] sm:$0xff]  ;;  %7905 = vmatpush1.bf16.msra.mxu1 %v10009_v46 }
 0x14f   : > { %15907 = vst [vmem:[#allocation26_spill] sm:$0xff] %v9946_v62  ;;  %v799_v3 = vpop.f32.mrb[52].mxu0  ;;  %v8186_v7 = vpack.i.bf16 %v1305_v59, %v1303_v57  ;;  %v1647_v35 = vrot.slane %v9897_v13, 2  ;;  %v690_v57 = vadd.f32 %v9809_v5, %v9682_v9  ;;  %v9984_v9 = vsel %vm1256_vm3, %v1258_v54, %v15628_v55  ;;  %7890 = vmatprep.subr.bf16.mxu1 %v15631_v43 }
 0x150   : > { %15905 = vst [vmem:[#allocation24_spill] sm:$0xff] %v9935_v60  ;;  %v800_v11 = vadd.f32 %v9809_v5, %v799_v3  ;;  %v7374_v20 = vpop.f32.mrb[53].mxu0  ;;  %v2560_v28 = vrot.slane %v9935_v60, 4  ;;  %v1696_v31 = vrot.slane %v9935_v60, 2  ;;  %7532 = vmatmul.mubr.msk.f32.gmra.mrb[158].mxu0 %vm347_vm1, %v332_v58  ;;  %v9979_v3 = vsel %vm1256_vm3, %v1257_v50, %v1258_v54  ;;  %15911 = vst [vmem:[#allocation30_spill] sm:$0xff] %v9984_v9 }
 0x151   : > { %8187 = vrot.lane.b32.xlu1 %v8186_v7, %s9383_s9  ;;  %7534 = vmatprep.mubr.msk.f32.mxu0 %vm9379_vm0, %v15629_v4  ;;  %15910 = vst [vmem:[#allocation29_spill] sm:$0xff] %v9979_v3  ;;  %v9986_v7 = vmax.f32 %v685_v1, 0.0  ;;  %v9995_v50 = vsel %vm1646_vm2, %v1648_v37, %v15627_v53  ;;  %v1306_v32 = vrot.slane %v9935_v60, 1  ;;  %v10088_v53 = vld [vmem:[%s15617_s3 + $0x70] sm:$0xff]  }
 0x152   : > { %v9972_v59 = vmax.f32 %v800_v11, 0.0  ;;  %v9975_v58 = vsel %vm2516_vm4, %v2558_v47, %v2560_v28  ;;  %v8191_v11 = vpack.i.bf16 %v1695_v22, %v9910_v26  ;;  %15913 = vst [vmem:[#allocation32_spill] sm:$0xff] %v9995_v50  ;;  %v10001_v49 = vsel %vm1646_vm2, %v1694_v45, %v1696_v31 }
 0x153   : > { %15909 = vst [vmem:[#allocation28_spill] sm:$0xff] %v9975_v58  ;;  %15912 = vst [vmem:[#allocation31_spill] sm:$0xff] %v9986_v7  ;;  %v804_v20 = vpop.f32.mrb[54].mxu0  ;;  %v8196_v47 = vpack.i.bf16 %v9975_v58, %v9946_v62  ;;  %v15930_v58 = vmov 0.0  }
 0x154   : > { %15908 = vst [vmem:[#allocation27_spill] sm:$0xff] %v9972_v59  ;;  %v805_v54 = vadd.f32 %v9809_v5, %v804_v20  ;;  %v7377_v29 = vpop.f32.mrb[55].mxu0  ;;  %v15626_v1 = vrot.slane %v9972_v59, 1  ;;  %v2562_v8 = vrot.slane %v9972_v59, 4  ;;  %7535 = vmatmul.mubr.msk.f32.gmra.mrb[160].mxu0 %vm347_vm1, %v333_v10  ;;  %v10012_v20 = vmax.f32 %v690_v57, 0.0 }
 0x155   : > { %8192 = vrot.lane.b32.xlu1 %v8191_v11, %s9382_s8  ;;  %8197 = vrot.lane.b32.xlu0 %v8196_v47, %s9383_s9  ;;  %v334_v29 = vld [vmem:[%s9443_s30 + $0x288] sm:$0xff]  ;;  %v10020_v10 = vsel %vm1646_vm2, %v1647_v35, %v1648_v37  ;;  %v8201_v35 = vpack.i.bf16 %v10001_v49, %v1695_v22  ;;  %v2517_v47 = vrot.slane %v9986_v7, 4  ;;  %v1698_v22 = vrot.slane %v9972_v59, 2 }
 0x156   : > { %15914 = vst [vmem:[#allocation33_spill] sm:$0xff] %v10012_v20  ;;  %15915 = vst [vmem:[#allocation34_spill] sm:$0xff] %v10020_v10  ;;  %v10022_v51 = vmax.f32 %v805_v54, 0.0  ;;  %v10026_v34 = vsel %vm2516_vm4, %v2560_v28, %v2562_v8  ;;  %7537 = vmatprep.mubr.msk.f32.mxu0 %vm9379_vm0, %v15629_v4  ;;  %v1652_v28 = vrot.slane %v9986_v7, 2  ;;  %v1309_v57 = vsel %vm1256_vm3, %v1306_v32, %v15626_v1 }
 0x157   : > { %15917 = vst [vmem:[#allocation36_spill] sm:$0xff] %v10026_v34  ;;  %v809_v11 = vpop.f32.mrb[56].mxu0  ;;  %v695_v37 = vadd.f32 %v9809_v5, %v9688_v12  ;;  %v1307_v12 = vsel %vm1256_vm3, %v1304_v42, %v1306_v32 }
 0x158   : > { %15916 = vst [vmem:[#allocation35_spill] sm:$0xff] %v10022_v51  ;;  %v810_v54 = vadd.f32 %v9809_v5, %v809_v11  ;;  %v7380_v45 = vpop.f32.mrb[57].mxu0  ;;  %v15633_v2 = vrot.slane %v10022_v51, 4  ;;  %7538 = vmatmul.mubr.msk.f32.gmra.mrb[162].mxu0 %vm347_vm1, %v334_v29  ;;  %v10055_v11 = vld [vmem:[%s15617_s3 + $0x68] sm:$0xff]   ;;  %v1262_v29 = vrot.slane %v9986_v7, 1  ;;  %v8206_v43 = vpack.i.bf16 %v1309_v57, %v1307_v12 }
 0x159   : > { %8202 = vrot.lane.b32.xlu1 %v8201_v35, %s9384_s16  ;;  %7540 = vmatprep.mubr.msk.f32.mxu0 %vm9379_vm0, %v15629_v4  ;;  %v335_v45 = vld [vmem:[%s9443_s30 + $0x290] sm:$0xff]  ;;  %v3193_v4 = vrot.slane %v10022_v51, 5  ;;  %v15919_v12 = vmov 0   ;;  %v10090_v32 = vmax.f32 %v695_v37, 0.0  ;;  %v10108_v37 = vsel %vm1646_vm2, %v15925_v6, %v1652_v28 }
 0x15a   : > { %v10060_v55 = vmax.f32 %v810_v54, 0.0  ;;  %v10068_v35 = vsel %vm2516_vm4, %v2562_v8, %v15633_v2  ;;  %7906 = vmatpush1.bf16.msra.mxu1 %v10055_v11  ;;  %v1699_v2 = vsel %vm1646_vm2, %v1696_v31, %v1698_v22  ;;  %v336_v31 = vld [vmem:[%s9443_s30 + $0x298] sm:$0xff]  ;;  %15926 = vst [vmem:[#allocation41_spill] sm:$0xff] %v10108_v37  ;;  %4659 = vmatprep.subr.bf16.mxu0 %v15919_v12 }
 0x15b   : > { %v814_v1 = vpop.f32.mrb[58].mxu0  ;;  %v8216_v54 = vpack.i.bf16 %v10068_v35, %v10026_v34  ;;  %7891 = vmatprep.subr.bf16.mxu1 %v15919_v12  ;;  %15920 = vst [vmem:[#allocation38_spill] sm:$0xff] %v10090_v32  ;;  %v8211_v6 = vpack.i.bf16 %v1699_v2, %v10001_v49  ;;  %v15933_v34 = vrot.slane %v10022_v51, 2  ;;  %v15934_v49 = vrot.slane %v10012_v20, 4  ;;  %4660 = vmatpush1.bf16.msra.mxu0 %v10009_v46 }
 0x15c   : > { %15918 = vst [vmem:[#allocation37_spill] sm:$0xff] %v10060_v55  ;;  %v815_v42 = vadd.f32 %v9809_v5, %v814_v1  ;;  %v7383_v8 = vpop.f32.mrb[59].mxu0  ;;  %7541 = vmatmul.mubr.msk.f32.gmra.mrb[164].mxu0 %vm347_vm1, %v335_v45  ;;  %v15921_v1 = vrot.slane %v10012_v20, 2  ;;  %v15923_v45 = vrot.slane %v9901_v19, 1  ;;  %v15929_v16 = vrot.slane %v10060_v55, 5  ;;  %4661 = vmatprep.subr.bf16.mxu0 %v15919_v12 }
 0x15d   : > { %8207 = vrot.lane.b32.xlu1 %v8206_v43, %s9383_s9  ;;  %8217 = vrot.lane.b32.xlu0 %v8216_v54, %s9383_s9  ;;  %v15928_v43 = vrot.slane %v9972_v59, 5  ;;  %v2566_v7 = vrot.slane %v10060_v55, 4  ;;  %v10135_v63 = vsel %vm1646_vm2, %v1698_v22, %v15933_v34  ;;  %v337_v34 = vld [vmem:[%s9443_s30 + $0x2a0] sm:$0xf]  ;;  %v1656_v22 = vrot.slane %v10090_v32, 2  ;;  %s8160_s30 = smul.u32 72, %s16618_s22 }
 0x15e   : > { %v10098_v8 = vsel %vm1646_vm2, %v1652_v28, %v15921_v1  ;;  %v10103_v57 = vsel %vm1256_vm3, %v15923_v45, %v1262_v29  ;;  %v10110_v13 = vmax.f32 %v815_v42, 0.0  ;;  %v3196_v1 = vsel %vm3151_vm5, %v3193_v4, %v15929_v16  ;;  %7543 = vmatprep.mubr.msk.f32.mxu0 %vm9379_vm0, %v15930_v58  ;;  %7907 = vmatpush1.bf16.msra.mxu1 %v10088_v53 }
 0x15f   : > { %15922 = vst [vmem:[#allocation39_spill] sm:$0xff] %v10098_v8  ;;  %15924 = vst [vmem:[#allocation40_spill] sm:$0xff] %v10103_v57  ;;  %v3194_v54 = vsel %vm3151_vm5, %v15928_v43, %v3193_v4  ;;  %v700_v28 = vadd.f32 %v9809_v5, %v9694_v15  ;;  %v819_v42 = vpop.f32.mrb[60].mxu0  ;;  %v15931_v43 = vrot.slane %v10012_v20, 1  ;;  %7892 = vmatprep.subr.bf16.mxu1 %v15919_v12  ;;  %v1702_v40 = vrot.slane %v10060_v55, 2  ;;  %s15568_s27 = scalar_lea.vmem %s15620_s6, %s8160_s30 }
 0x160   : > { %15927 = vst [vmem:[#allocation42_spill] sm:$0xff] %v10110_v13  ;;  %v8231_v45 = vpack.i.bf16 %v3196_v1, %v3194_v54  ;;  %v820_v16 = vadd.f32 %v9809_v5, %v819_v42  ;;  %v7386_v19 = vpop.f32.mrb[61].mxu0  ;;  %v2568_v15 = vrot.slane %v10110_v13, 4  ;;  %7544 = vmatmul.mubr.msk.f32.gmra.mrb[166].mxu0 %vm347_vm1, %v336_v31  ;;  %v10143_v54 = vsel %vm2516_vm4, %v2517_v47, %v15934_v49 }
 0x161   : > { %v10129_v4 = vsel %vm1256_vm3, %v1262_v29, %v15931_v43  ;;  %15935 = vst [vmem:[#allocation44_spill] sm:$0xff] %v10143_v54  ;;  %v705_v29 = vadd.f32 %v9809_v5, %v9700_v18  ;;  %8212 = vrot.lane.b32.xlu1 %v8211_v6, %s9382_s8  ;;  %v10153_v19 = vld [vmem:[%s15617_s3 + $0x78] sm:$0xff]   ;;  %v15937_v18 = vrot.slane %v10022_v51, 4  ;;  %7546 = vmatprep.mubr.msk.f32.mxu0 %vm9379_vm0, %v15930_v58  ;;  %v10169_v43 = vmax.f32 %v700_v28, 0.0 }
 0x162   : > { %15932 = vst [vmem:[#allocation43_spill] sm:$0xff] %v10129_v4  ;;  %8232 = vrot.lane.b32.xlu0 %v8231_v45, %s9384_s16  ;;  %v10158_v1 = vmax.f32 %v820_v16, 0.0  ;;  %v2569_v6 = vsel %vm2516_vm4, %v2566_v7, %v2568_v15  ;;  %v8221_v16 = vpack.i.bf16 %v10135_v63, %v1699_v2  ;;  %7908 = vmatpush1.bf16.msra.mxu1 %v10153_v19  ;;  %v15940_v28 = vrot.slane %v10012_v20, 2 }
 0x163   : > { %v2567_v42 = vsel %vm2516_vm4, %v15937_v18, %v2566_v7  ;;  %15938 = vst [vmem:[#allocation46_spill] sm:$0xff] %v10169_v43  ;;  %v824_v49 = vpop.f32.mrb[62].mxu0  ;;  %7549 = vmatprep.subr.bf16.mxu1 %v15930_v58  ;;  %v10181_v2 = vmax.f32 %v705_v29, 0.0  ;;  %v15943_v18 = vrot.slane %v10012_v20, 4  ;;  %v15946_v29 = vrot.slane %v10012_v20, 1  ;;  %4662 = vmatpush1.bf16.msra.mxu0 %v10055_v11 }
 0x164   : > { %15936 = vst [vmem:[#allocation45_spill] sm:$0xff] %v10158_v1  ;;  %v8246_v47 = vpack.i.bf16 %v2569_v6, %v2567_v42  ;;  %v825_v7 = vadd.f32 %v9809_v5, %v824_v49  ;;  %v7389_v31 = vpop.f32.mrb[63].mxu0  ;;  %v2570_v26 = vrot.slane %v10158_v1, 4  ;;  %7547 = vmatmul.mubr.msk.f32.gmra.mrb[168].mxu0 %vm347_vm1, %v337_v34  ;;  %v15942_v49 = vrot.slane %v10090_v32, 4  ;;  %4663 = vmatprep.subr.bf16.mxu0 %v15919_v12 }
 0x165   : > { %15939 = vst [vmem:[#allocation47_spill] sm:$0xff] %v10181_v2  ;;  %8222 = vrot.lane.b32.xlu1 %v8221_v16, %s9384_s16  ;;  %v10188_v31 = vsel %vm1646_vm2, %v15940_v28, %v1656_v22  ;;  %v15945_v34 = vrot.slane %v10090_v32, 1  ;;  %v1310_v28 = vrot.slane %v10022_v51, 1  ;;  %v3197_v62 = vrot.slane %v10110_v13, 5 }
 0x166   : > { %8247 = vrot.lane.b32.xlu0 %v8246_v47, %s9383_s9  ;;  %15941 = vst [vmem:[#allocation48_spill] sm:$0xff] %v10188_v31  ;;  %v10195_v46 = vsel %vm2516_vm4, %v15943_v18, %v15942_v49  ;;  %v10204_v47 = vmax.f32 %v825_v7, 0.0  ;;  %v2571_v45 = vsel %vm2516_vm4, %v2568_v15, %v2570_v26  ;;  %v8226_v18 = vpack.i.bf16 %v2567_v42, %v10068_v35 }
 0x167   : > { %15944 = vst [vmem:[#allocation49_spill] sm:$0xff] %v10195_v46  ;;  %v10202_v16 = vsel %vm1256_vm3, %v15946_v29, %v15945_v34  ;;  %v829_v0 = vpop.f32.mrb[64].mxu0  ;;  %v8256_v49 = vpack.i.bf16 %v2571_v45, %v2569_v6  ;;  %v1658_v20 = vrot.slane %v10169_v43, 2  ;;  %v15949_v15 = vrot.slane %v10060_v55, 1  ;;  %4664 = vmatpush1.bf16.msra.mxu0 %v10088_v53 }
 0x168   : > { %15947 = vst [vmem:[#allocation50_spill] sm:$0xff] %v10202_v16  ;;  %15948 = vst [vmem:[#allocation51_spill] sm:$0xff] %v10204_v47  ;;  %v830_v7 = vadd.f32 %v9809_v5, %v829_v0  ;;  %v7392_v34 = vpop.f32.mrb[65].mxu0  ;;  %v15950_v41 = vrot.slane %v10158_v1, 5  ;;  %v2572_v35 = vrot.slane %v10204_v47, 4  ;;  %v2522_v42 = vrot.slane %v10169_v43, 4  ;;  %4665 = vmatprep.subr.bf16.mxu0 %v15919_v12 }
 0x169   : > { %v1313_v29 = vsel %vm1256_vm3, %v1310_v28, %v15949_v15  ;;  %8227 = vrot.lane.b32.xlu1 %v8226_v18, %s9382_s8  ;;  %v15953_v18 = vrot.slane %v10060_v55, 5  ;;  %v15653_v56 = vrot.slane %v10181_v2, 2  ;;  %v15656_v11 = vrot.slane %v10110_v13, 2 }
 0x16a   : > { %v3200_v17 = vsel %vm3151_vm5, %v3197_v62, %v15950_v41  ;;  %8257 = vrot.lane.b32.xlu0 %v8256_v49, %s9382_s8  ;;  %v10231_v34 = vmax.f32 %v830_v7, 0.0  ;;  %v15952_v41 = vrot.slane %v9972_v59, 1  ;;  %v10242_v44 = vsel %vm1646_vm2, %v1656_v22, %v1658_v20 }
 0x16b   : > { %v3198_v49 = vsel %vm3151_vm5, %v15953_v18, %v3197_v62  ;;  %v834_v0 = vpop.f32.mrb[66].mxu0  ;;  %15954 = vst [vmem:[#allocation53_spill] sm:$0xff] %v10242_v44  ;;  %v2573_v62 = vsel %vm2516_vm4, %v2570_v26, %v2572_v35  ;;  %v15654_v53 = vrot.slane %v10181_v2, 4  ;;  %v3152_v22 = vrot.slane %v10169_v43, 5  ;;  %4666 = vmatpush1.bf16.msra.mxu0 %v10153_v19 }
 0x16c   : > { %15951 = vst [vmem:[#allocation52_spill] sm:$0xff] %v10231_v34  ;;  %v1311_v15 = vsel %vm1256_vm3, %v15952_v41, %v1310_v28  ;;  %v8261_v48 = vpack.i.bf16 %v3200_v17, %v3198_v49  ;;  %v835_v7 = vadd.f32 %v9809_v5, %v834_v0  ;;  %v7395_v6 = vpop.f32.mrb[67].mxu0  ;;  %v15955_v28 = vrot.slane %v10022_v51, 2 }
 0x16d   : > { %v8236_v52 = vpack.i.bf16 %v1313_v29, %v1311_v15  ;;  %v15655_v18 = vrot.slane %v10231_v34, 4  ;;  %v710_v17 = vadd.f32 %v9809_v5, %v9706_v21  ;;  %v15956_v29 = vrot.slane %v10090_v32, 4 }
 0x16e   : > { %v1703_v41 = vsel %vm1646_vm2, %v15955_v28, %v1702_v40  ;;  %8262 = vrot.lane.b32.xlu0 %v8261_v48, %s9384_s16  ;;  %v3153_v26 = vrot.slane %v10181_v2, 5  ;;  %v10267_v12 = vsel %vm1646_vm2, %v1658_v20, %v15653_v56  ;;  %v15959_v21 = vrot.slane %v10169_v43, 1 }
 0x16f   : > { %8237 = vrot.lane.b32.xlu1 %v8236_v52, %s9383_s9  ;;  %v10261_v0 = vsel %vm2516_vm4, %v15956_v29, %v2522_v42  ;;  %15958 = vst [vmem:[#allocation55_spill] sm:$0xff] %v10267_v12  ;;  %v15960_v48 = vrot.slane %v10090_v32, 1  ;;  %v839_v15 = vpop.f32.mrb[68].mxu0  ;;  %v8241_v49 = vpack.i.bf16 %v1703_v41, %v10135_v63  ;;  %v8276_v28 = vpack.i.bf16 %v2573_v62, %v2571_v45 }
 0x170   : > { %15957 = vst [vmem:[#allocation54_spill] sm:$0xff] %v10261_v0  ;;  %v10282_v29 = vsel %vm1646_vm2, %v1702_v40, %v15656_v11  ;;  %v15657_v20 = vrot.slane %v10158_v1, 1  ;;  %v10286_v56 = vmax.f32 %v835_v7, 0.0  ;;  %v10292_v6 = vsel %vm2516_vm4, %v2572_v35, %v15655_v18 }
 0x171   : > { %v10274_v52 = vsel %vm1256_vm3, %v15960_v48, %v15959_v21  ;;  %v840_v21 = vadd.f32 %v9809_v5, %v839_v15  ;;  %v7398_v48 = vpop.f32.mrb[69].mxu0  ;;  %v15658_v63 = vrot.slane %v10231_v34, 5  ;;  %v15963_v45 = vmov 0.0|0.0  }
 0x172   : > { %15961 = vst [vmem:[#allocation56_spill] sm:$0xff] %v10274_v52  ;;  %15962 = vst [vmem:[#allocation57_spill] sm:$0xff] %v10286_v56  ;;  %7761 = vmatprep.subr.bf16.mxu0 %v15963_v45  ;;  %v10296_v40 = vmax.f32 %v710_v17, 0.0  ;;  %8277 = vrot.lane.b32.xlu0 %v8276_v28, %s9383_s9  ;;  %v10303_v19 = vsel %vm2516_vm4, %v2522_v42, %v15654_v53  ;;  %v1314_v15 = vrot.slane %v10110_v13, 1  ;;  %v3201_v17 = vrot.slane %v10204_v47, 5 }
 0x173   : > { %8242 = vrot.lane.b32.xlu1 %v8241_v49, %s9382_s8  ;;  %15965 = vst [vmem:[#allocation59_spill] sm:$0xff] %v10303_v19  ;;  %v10311_v48 = vsel %vm3151_vm5, %v3152_v22, %v3153_v26  ;;  %v10317_v28 = vadd.f32 %v9809_v5, %v9712_v24  ;;  %v844_v42 = vpop.f32.mrb[70].mxu0  ;;  %v8251_v53 = vpack.i.bf16 %v10282_v29, %v1703_v41  ;;  %v1706_v7 = vrot.slane %v10158_v1, 2 }
 0x174   : > { %15964 = vst [vmem:[#allocation58_spill] sm:$0xff] %v10296_v40  ;;  %15966 = vst [vmem:[#allocation60_spill] sm:$0xff] %v10311_v48  ;;  %v8286_v35 = vpack.i.bf16 %v10292_v6, %v2573_v62  ;;  %v10322_v18 = vmax.f32 %v840_v21, 0.0  ;;  %v7401_v11 = vpop.f32.mrb[71].mxu0  ;;  %v1317_v22 = vsel %vm1256_vm3, %v1314_v15, %v15657_v20  ;;  %v3204_v49 = vsel %vm3151_vm5, %v3201_v17, %v15658_v63 }
 0x175   : > { %v2576_v24 = vrot.slane %v10286_v56, 4  ;;  %v15968_v20 = vrot.slane %v10060_v55, 1  ;;  %v15969_v63 = vrot.slane %v10158_v1, 5  ;;  %v1708_v62 = vrot.slane %v10204_v47, 2 }
 0x176   : > { %15967 = vst [vmem:[#allocation61_spill] sm:$0xff] %v10322_v18  ;;  %8287 = vrot.lane.b32.xlu0 %v8286_v35, %s9382_s8  ;;  %v2322_v35 = vrot.slane %v9907_v23, 3  ;;  %v15667_v11 = vrot.slane %v9878_v61, 3  ;;  %v845_v21 = vadd.f32 %v9809_v5, %v844_v42  ;;  %v15970_v39 = vrot.slane %v10110_v13, 2 }
 0x177   : > { %8252 = vrot.lane.b32.xlu1 %v8251_v53, %s9384_s16  ;;  %v1315_v45 = vsel %vm1256_vm3, %v15968_v20, %v1314_v15  ;;  %v3202_v32 = vsel %vm3151_vm5, %v15969_v63, %v3201_v17  ;;  %v2324_v53 = vrot.slane %v9935_v60, 3  ;;  %v849_v16 = vpop.f32.mrb[72].mxu0  ;;  %v15971_v15 = vrot.slane %v10231_v34, 4 }
 0x178   : > { %v8266_v41 = vpack.i.bf16 %v1317_v22, %v1315_v45  ;;  %v8291_v52 = vpack.i.bf16 %v3204_v49, %v3202_v32  ;;  %v1707_v20 = vsel %vm1646_vm2, %v15970_v39, %v1706_v7  ;;  %v7404_v17 = vpop.f32.mrb[73].mxu0  ;;  %v2578_v44 = vrot.slane %v10322_v18, 4 }
 0x179   : > { %v2577_v63 = vsel %vm2516_vm4, %v15971_v15, %v2576_v24  ;;  %v2326_v32 = vrot.slane %v9972_v59, 3  ;;  %v15972_v45 = vrot.slane %v10296_v40, 4  ;;  %v15973_v49 = vrot.slane %v10181_v2, 4 }
 0x17a   : > { %8292 = vrot.lane.b32.xlu0 %v8291_v52, %s9384_s16  ;;  %v15975_v39 = vrot.slane %v10296_v40, 5  ;;  %v15977_v15 = vrot.slane %v10296_v40, 2  ;;  %v2328_v17 = vrot.slane %v10022_v51, 3  ;;  %v10381_v37 = vsel %vm2280_vm6, %v15667_v11, %v2322_v35 }
 0x17b   : > { %8267 = vrot.lane.b32.xlu1 %v8266_v41, %s9383_s9  ;;  %v10363_v42 = vsel %vm2516_vm4, %v15973_v49, %v15972_v45  ;;  %v15978_v41 = vrot.slane %v10181_v2, 2  ;;  %v10384_v45 = vsel %vm2280_vm6, %v2322_v35, %v2324_v53  ;;  %v15981_v49 = vrot.slane %v10181_v2, 1  ;;  %v854_v36 = vpop.f32.mrb[74].mxu0 }
 0x17c   : > { %15974 = vst [vmem:[#allocation62_spill] sm:$0xff] %v10363_v42  ;;  %v10368_v22 = vsel %vm3151_vm5, %v3153_v26, %v15975_v39  ;;  %v15980_v26 = vrot.slane %v10296_v40, 1  ;;  %v10396_v57 = vsel %vm1646_vm2, %v1706_v7, %v1708_v62  ;;  %v1320_v11 = vrot.slane %v10231_v34, 1  ;;  %v7407_v46 = vpop.f32.mrb[75].mxu0 }
 0x17d   : > { %15976 = vst [vmem:[#allocation63_spill] sm:$0xff] %v10368_v22  ;;  %v10375_v52 = vsel %vm1646_vm2, %v15978_v41, %v15977_v15  ;;  %v8271_v15 = vpack.i.bf16 %v1707_v20, %v10282_v29  ;;  %v8306_v41 = vpack.i.bf16 %v2577_v63, %v10292_v6  ;;  %v10399_v4 = vmax.f32 %v845_v21, 0.0 }
 0x17e   : > { %15979 = vst [vmem:[#allocation64_spill] sm:$0xff] %v10375_v52  ;;  %v10391_v39 = vsel %vm1256_vm3, %v15981_v49, %v15980_v26  ;;  %v850_v35 = vadd.f32 %v9809_v5, %v849_v16  ;;  %v10403_v54 = vsel %vm2516_vm4, %v2576_v24, %v2578_v44  ;;  %v1318_v6 = vrot.slane %v10204_v47, 1 }
 0x17f   : > { %15982 = vst [vmem:[#allocation65_spill] sm:$0xff] %v10391_v39  ;;  %15983 = vst [vmem:[#allocation66_spill] sm:$0xff] %v10399_v4  ;;  %8272 = vrot.lane.b32.xlu1 %v8271_v15, %s9382_s8  ;;  %8307 = vrot.lane.b32.xlu0 %v8306_v41, %s9383_s9  ;;  %v10410_v29 = vsel %vm2280_vm6, %v2324_v53, %v2326_v32  ;;  %v2330_v7 = vrot.slane %v10060_v55, 3  ;;  %v2332_v21 = vrot.slane %v10110_v13, 3  ;;  %v3205_v16 = vrot.slane %v10286_v56, 5  ;;  %v859_v26 = vpop.f32.mrb[76].mxu0 }
 0x180   : > { %v1710_v24 = vrot.slane %v10231_v34, 2  ;;  %v10417_v46 = vsel %vm2280_vm6, %v2326_v32, %v2328_v17  ;;  %v2334_v49 = vrot.slane %v10158_v1, 3  ;;  %v8281_v15 = vpack.i.bf16 %v10396_v57, %v1707_v20  ;;  %v7410_v50 = vpop.f32.mrb[77].mxu0 }
 0x181   : > { %v8316_v41 = vpack.i.bf16 %v10403_v54, %v2577_v63  ;;  %v1321_v53 = vsel %vm1256_vm3, %v1318_v6, %v1320_v11  ;;  %v2336_v8 = vrot.slane %v10204_v47, 3  ;;  %v10424_v31 = vmax.f32 %v850_v35, 0.0 }
 0x182   : > { %v15985_v33 = vrot.slane %v10322_v18, 5  ;;  %v2580_v32 = vrot.slane %v10399_v4, 4  ;;  %v1712_v3 = vrot.slane %v10286_v56, 2  ;;  %v15986_v20 = vrot.slane %v10158_v1, 1 }
 0x183   : > { %15984 = vst [vmem:[#allocation67_spill] sm:$0xff] %v10424_v31  ;;  %8282 = vrot.lane.b32.xlu1 %v8281_v15, %s9384_s16  ;;  %8317 = vrot.lane.b32.xlu0 %v8316_v41, %s9382_s8  ;;  %v10437_v35 = vsel %vm2280_vm6, %v2328_v17, %v2330_v7  ;;  %v10440_v9 = vsel %vm2280_vm6, %v2330_v7, %v2332_v21  ;;  %v15989_v50 = vrot.slane %v10231_v34, 5  ;;  %v1322_v41 = vrot.slane %v10286_v56, 1 }
 0x184   : > { %v3208_v10 = vsel %vm3151_vm5, %v3205_v16, %v15985_v33  ;;  %v1319_v63 = vsel %vm1256_vm3, %v15986_v20, %v1318_v6  ;;  %15987 = vst [vmem:[#allocation68_spill] sm:$0xff] %v10437_v35  ;;  %15988 = vst [vmem:[#allocation69_spill] sm:$0xff] %v10440_v9  ;;  %v2338_v33 = vrot.slane %v10231_v34, 3  ;;  %v1711_v15 = vsel %vm1646_vm2, %v1708_v62, %v1710_v24  ;;  %v864_v20 = vpop.f32.mrb[78].mxu0 }
 0x185   : > { %v3206_v30 = vsel %vm3151_vm5, %v15989_v50, %v3205_v16  ;;  %v1324_v39 = vrot.slane %v10322_v18, 1  ;;  %v8296_v40 = vpack.i.bf16 %v1321_v53, %v1319_v63  ;;  %v10450_v17 = vsel %vm2280_vm6, %v2332_v21, %v2334_v49  ;;  %v7413_v50 = vpop.f32.mrb[79].mxu0 }
 0x186   : > { %v8321_v6 = vpack.i.bf16 %v3208_v10, %v3206_v30  ;;  %15990 = vst [vmem:[#allocation70_spill] sm:$0xff] %v10450_v17  ;;  %v10453_v7 = vsel %vm2280_vm6, %v2334_v49, %v2336_v8  ;;  %v855_v52 = vadd.f32 %v9809_v5, %v854_v36  ;;  %v2581_v12 = vsel %vm2516_vm4, %v2578_v44, %v2580_v32 }
 0x187   : > { %15991 = vst [vmem:[#allocation71_spill] sm:$0xff] %v10453_v7  ;;  %v10458_v16 = vsel %vm1646_vm2, %v1710_v24, %v1712_v3  ;;  %v2582_v62 = vrot.slane %v10424_v31, 4  ;;  %8297 = vrot.lane.b32.xlu1 %v8296_v40, %s9383_s9  ;;  %v8301_v30 = vpack.i.bf16 %v1711_v15, %v10396_v57  ;;  %v1714_v10 = vrot.slane %v10322_v18, 2 }
 0x188   : > { %8322 = vrot.lane.b32.xlu0 %v8321_v6, %s9384_s16  ;;  %v10466_v21 = vsel %vm2280_vm6, %v2336_v8, %v2338_v33  ;;  %v2340_v36 = vrot.slane %v10286_v56, 3  ;;  %v1323_v44 = vsel %vm1256_vm3, %v1320_v11, %v1322_v41  ;;  %v1325_v24 = vsel %vm1256_vm3, %v1322_v41, %v1324_v39  ;;  %v869_v6 = vpop.f32.mrb[80].mxu0 }
 0x189   : > { %15992 = vst [vmem:[#allocation72_spill] sm:$0xff] %v10466_v21  ;;  %v3209_v49 = vrot.slane %v10399_v4, 5  ;;  %v1716_v53 = vrot.slane %v10399_v4, 2  ;;  %v860_v40 = vadd.f32 %v9809_v5, %v859_v26  ;;  %v8336_v63 = vpack.i.bf16 %v2581_v12, %v10403_v54  ;;  %v7416_v11 = vpop.f32.mrb[81].mxu0 }
 0x18a   : > { %v8311_v57 = vpack.i.bf16 %v10458_v16, %v1711_v15  ;;  %v3211_v8 = vrot.slane %v10424_v31, 5  ;;  %v10477_v50 = vmax.f32 %v855_v52, 0.0  ;;  %v10480_v22 = vsel %vm2516_vm4, %v2580_v32, %v2582_v62 }
 0x18b   : > { %v1326_v41 = vrot.slane %v10399_v4, 1  ;;  %v2342_v48 = vrot.slane %v10322_v18, 3  ;;  %8302 = vrot.lane.b32.xlu1 %v8301_v30, %s9382_s8  ;;  %v8326_v54 = vpack.i.bf16 %v1325_v24, %v1323_v44  ;;  %v10487_v26 = vsel %vm1646_vm2, %v1712_v3, %v1714_v10  ;;  %v874_v2 = vpop.f32.mrb[82].mxu0 }
 0x18c   : > { %15993 = vst [vmem:[#allocation73_spill] sm:$0xff] %v10477_v50  ;;  %8337 = vrot.lane.b32.xlu0 %v8336_v63, %s9383_s9  ;;  %v1328_v15 = vrot.slane %v10424_v31, 1  ;;  %v10491_v52 = vsel %vm2280_vm6, %v2338_v33, %v2340_v36  ;;  %v15995_v32 = vrot.slane %v10322_v18, 5  ;;  %v10497_v43 = vsel %vm1646_vm2, %v1714_v10, %v1716_v53  ;;  %v7419_v10 = vpop.f32.mrb[83].mxu0 }
 0x18d   : > { %15994 = vst [vmem:[#allocation74_spill] sm:$0xff] %v10491_v52  ;;  %v1718_v30 = vrot.slane %v10424_v31, 2  ;;  %v2344_v63 = vrot.slane %v10399_v4, 3  ;;  %v10501_v44 = vmax.f32 %v860_v40, 0.0  ;;  %v865_v3 = vadd.f32 %v9809_v5, %v864_v20 }
 0x18e   : > { %v3210_v11 = vsel %vm3151_vm5, %v15995_v32, %v3209_v49  ;;  %v8346_v24 = vpack.i.bf16 %v10480_v22, %v2581_v12  ;;  %v3212_v33 = vsel %vm3151_vm5, %v3209_v49, %v3211_v8  ;;  %v8331_v0 = vpack.i.bf16 %v10487_v26, %v10458_v16 }
 0x18f   : > { %15996 = vst [vmem:[#allocation75_spill] sm:$0xff] %v10501_v44  ;;  %v2584_v32 = vrot.slane %v10477_v50, 4  ;;  %v10510_v42 = vsel %vm1256_vm3, %v1324_v39, %v1326_v41  ;;  %v10513_v19 = vsel %vm2280_vm6, %v2340_v36, %v2342_v48  ;;  %8312 = vrot.lane.b32.xlu1 %v8311_v57, %s9384_s16  ;;  %v870_v12 = vadd.f32 %v9809_v5, %v869_v6 }
 0x190   : > { %15997 = vst [vmem:[#allocation76_spill] sm:$0xff] %v10513_v19  ;;  %8347 = vrot.lane.b32.xlu0 %v8346_v24, %s9382_s8  ;;  %v8341_v20 = vpack.i.bf16 %v10497_v43, %v10487_v26  ;;  %v10521_v16 = vsel %vm1256_vm3, %v1326_v41, %v1328_v15  ;;  %v1720_v49 = vrot.slane %v10477_v50, 2  ;;  %v8351_v40 = vpack.i.bf16 %v3212_v33, %v3210_v11  ;;  %v879_v24 = vpop.f32.mrb[84].mxu0 }
 0x191   : > { %v3213_v39 = vrot.slane %v10477_v50, 5  ;;  %v10526_v36 = vsel %vm2280_vm6, %v2342_v48, %v2344_v63  ;;  %v2346_v57 = vrot.slane %v10424_v31, 3  ;;  %v10529_v10 = vmax.f32 %v865_v3, 0.0  ;;  %v7422_v33 = vpop.f32.mrb[85].mxu0 }
 0x192   : > { %15998 = vst [vmem:[#allocation77_spill] sm:$0xff] %v10526_v36  ;;  %v2586_v6 = vrot.slane %v10501_v44, 4  ;;  %v10533_v26 = vsel %vm1646_vm2, %v1716_v53, %v1718_v30  ;;  %v1330_v41 = vrot.slane %v10477_v50, 1  ;;  %v2585_v27 = vsel %vm2516_vm4, %v2582_v62, %v2584_v32 }
 0x193   : > { %15999 = vst [vmem:[#allocation78_spill] sm:$0xff] %v10529_v10  ;;  %v3215_v48 = vrot.slane %v10501_v44, 5  ;;  %v2348_v31 = vrot.slane %v10477_v50, 3  ;;  %v10541_v3 = vmax.f32 %v870_v12, 0.0  ;;  %8327 = vrot.lane.b32.xlu1 %v8326_v54, %s9383_s9  ;;  %v10546_v53 = vsel %vm1646_vm2, %v1718_v30, %v1720_v49  ;;  %v884_v50 = vpop.f32.mrb[86].mxu0 }
 0x194   : > { %8352 = vrot.lane.b32.xlu0 %v8351_v40, %s9384_s16  ;;  %v1332_v18 = vrot.slane %v10501_v44, 1  ;;  %v1722_v62 = vrot.slane %v10501_v44, 2  ;;  %v875_v11 = vadd.f32 %v9809_v5, %v874_v2  ;;  %v3214_v4 = vsel %vm3151_vm5, %v3211_v8, %v3213_v39  ;;  %v7425_v8 = vpop.f32.mrb[87].mxu0 }
 0x195   : > { %16000 = vst [vmem:[#allocation79_spill] sm:$0xff] %v10541_v3  ;;  %v10555_v12 = vsel %vm2280_vm6, %v2344_v63, %v2346_v57  ;;  %v8366_v54 = vpack.i.bf16 %v2585_v27, %v10480_v22  ;;  %v10559_v40 = vsel %vm2516_vm4, %v2584_v32, %v2586_v6  ;;  %v2588_v30 = vrot.slane %v10529_v10, 4 }
 0x196   : > { %16001 = vst [vmem:[#allocation80_spill] sm:$0xff] %v10555_v12  ;;  %v10563_v34 = vsel %vm1256_vm3, %v1328_v15, %v1330_v41  ;;  %v3216_v5 = vsel %vm3151_vm5, %v3213_v39, %v3215_v48  ;;  %v1724_v63 = vrot.slane %v10529_v10, 2  ;;  %v10570_v33 = vsel %vm2280_vm6, %v2346_v57, %v2348_v31 }
 0x197   : > { %16002 = vst [vmem:[#allocation81_spill] sm:$0xff] %v10570_v33  ;;  %8332 = vrot.lane.b32.xlu1 %v8331_v0, %s9382_s8  ;;  %v2590_v22 = vrot.slane %v10541_v3, 4  ;;  %v10576_v15 = vsel %vm1256_vm3, %v1330_v41, %v1332_v18  ;;  %v10579_v32 = vsel %vm1646_vm2, %v1720_v49, %v1722_v62  ;;  %v2350_v39 = vrot.slane %v10501_v44, 3  ;;  %v10588_v0 = vld [vmem:[%s15616_s2] ss:$0 sm:$0xff]  ;;  %v889_v49 = vpop.f32.mrb[88].mxu0 }
 0x198   : > { %8367 = vrot.lane.b32.xlu0 %v8366_v54, %s9383_s9  ;;  %v10582_v8 = vmax.f32 %v875_v11, 0.0  ;;  %v8376_v2 = vpack.i.bf16 %v10559_v40, %v2585_v27  ;;  %v880_v57 = vadd.f32 %v10588_v0, %v879_v24  ;;  %v3217_v54 = vrot.slane %v10529_v10, 5  ;;  %v7428_v56 = vpop.f32.mrb[89].mxu0 }
 0x199   : > { %v8381_v41 = vpack.i.bf16 %v3216_v5, %v3214_v4  ;;  %v10593_v33 = vsel %vm2516_vm4, %v2586_v6, %v2588_v30  ;;  %v3219_v44 = vrot.slane %v10541_v3, 5  ;;  %v1334_v11 = vrot.slane %v10529_v10, 1 }
 0x19a   : > { %16003 = vst [vmem:[#allocation82_spill] sm:$0xff] %v10582_v8  ;;  %v10602_v24 = vsel %vm1646_vm2, %v1722_v62, %v1724_v63  ;;  %v2352_v4 = vrot.slane %v10529_v10, 3  ;;  %v10608_v6 = vsel %vm2516_vm4, %v2588_v30, %v2590_v22  ;;  %v1336_v5 = vrot.slane %v10541_v3, 1 }
 0x19b   : > { %8342 = vrot.lane.b32.xlu1 %v8341_v20, %s9384_s16  ;;  %v1726_v27 = vrot.slane %v10541_v3, 2  ;;  %v10613_v36 = vsel %vm2280_vm6, %v2348_v31, %v2350_v39  ;;  %v10615_v56 = vmax.f32 %v880_v57, 0.0  ;;  %v8396_v62 = vpack.i.bf16 %v10593_v33, %v10559_v40 }
 0x19c   : > { %8377 = vrot.lane.b32.xlu0 %v8376_v2, %s9382_s8  ;;  %16004 = vst [vmem:[#allocation83_spill] sm:$0xff] %v10613_v36  ;;  %v10620_v12 = vsel %vm3151_vm5, %v3215_v48, %v3217_v54  ;;  %v2592_v20 = vrot.slane %v10582_v8, 4  ;;  %v10624_v30 = vsel %vm3151_vm5, %v3217_v54, %v3219_v44  ;;  %v894_v2 = vpop.f32.mrb[90].mxu0  ;;  %v10629_v31 = vsel %vm1256_vm3, %v1332_v18, %v1334_v11 }
 0x19d   : > { %16005 = vst [vmem:[#allocation84_spill] sm:$0xff] %v10615_v56  ;;  %v1728_v57 = vrot.slane %v10582_v8, 2  ;;  %v885_v36 = vadd.f32 %v10588_v0, %v884_v50  ;;  %v8406_v48 = vpack.i.bf16 %v10608_v6, %v10593_v33  ;;  %v7431_v40 = vpop.f32.mrb[91].mxu0  ;;  %v10636_v19 = vsel %vm2280_vm6, %v2350_v39, %v2352_v4 }
 0x19e   : > { %16006 = vst [vmem:[#allocation85_spill] sm:$0xff] %v10636_v19  ;;  %v2354_v54 = vrot.slane %v10541_v3, 3  ;;  %v16007_v10 = vpack.i.bf16 %v10521_v16, %v10510_v42  ;;  %v890_v18 = vadd.f32 %v10588_v0, %v889_v49  ;;  %v10646_v50 = vsel %vm1256_vm3, %v1334_v11, %v1336_v5 }
 0x19f   : > { %v3221_v33 = vrot.slane %v10582_v8, 5  ;;  %v10650_v40 = vsel %vm1646_vm2, %v1724_v63, %v1726_v27  ;;  %v8411_v39 = vpack.i.bf16 %v10624_v30, %v10620_v12  ;;  %v10655_v3 = vsel %vm2516_vm4, %v2590_v22, %v2592_v20 }
 0x1a0   : > { %8357 = vrot.lane.b32.xlu1 %v16007_v10, %s9383_s9  ;;  %8382 = vrot.lane.b32.xlu0 %v8381_v41, %s9384_s16  ;;  %v2594_v42 = vrot.slane %v10615_v56, 4  ;;  %v1338_v16 = vrot.slane %v10582_v8, 1  ;;  %v899_v10 = vpop.f32.mrb[92].mxu0  ;;  %v3223_v41 = vrot.slane %v10615_v56, 5  ;;  %v10661_v49 = vsel %vm1646_vm2, %v1726_v27, %v1728_v57 }
 0x1a1   : > { %v1340_v11 = vrot.slane %v10615_v56, 1  ;;  %v2356_v63 = vrot.slane %v10582_v8, 3  ;;  %v10665_v19 = vmax.f32 %v885_v36, 0.0  ;;  %v7434_v30 = vpop.f32.mrb[93].mxu0  ;;  %v1730_v1 = vrot.slane %v10615_v56, 2 }
 0x1a2   : > { %v16009_v27 = vpack.i.bf16 %v10533_v26, %v10497_v43  ;;  %v10677_v47 = vmax.f32 %v890_v18, 0.0  ;;  %v8426_v36 = vpack.i.bf16 %v10655_v3, %v10608_v6  ;;  %v10682_v12 = vsel %vm3151_vm5, %v3219_v44, %v3221_v33 }
 0x1a3   : > { %16008 = vst [vmem:[#allocation86_spill] sm:$0xff] %v10665_v19  ;;  %v10685_v22 = vsel %vm2280_vm6, %v2352_v4, %v2354_v54  ;;  %v895_v30 = vadd.f32 %v10588_v0, %v894_v2  ;;  %v10689_v8 = vsel %vm2516_vm4, %v2592_v20, %v2594_v42  ;;  %v10697_v18 = vsel %vm3151_vm5, %v3221_v33, %v3223_v41  ;;  %v904_v6 = vpop.f32.mrb[94].mxu0 }
 0x1a4   : > { %8362 = vrot.lane.b32.xlu1 %v16009_v27, %s9382_s8  ;;  %8397 = vrot.lane.b32.xlu0 %v8396_v62, %s9383_s9  ;;  %16010 = vst [vmem:[#allocation87_spill] sm:$0xff] %v10677_v47  ;;  %16011 = vst [vmem:[#allocation88_spill] sm:$0xff] %v10685_v22  ;;  %v10694_v62 = vsel %vm1256_vm3, %v1336_v5, %v1338_v16  ;;  %v10700_v44 = vsel %vm1256_vm3, %v1338_v16, %v1340_v11  ;;  %v2358_v2 = vrot.slane %v10615_v56, 3  ;;  %v7437_v27 = vpop.f32.mrb[95].mxu0 }
 0x1a5   : > { %v10703_v4 = vsel %vm2280_vm6, %v2354_v54, %v2356_v63  ;;  %v2596_v20 = vrot.slane %v10665_v19, 4  ;;  %v3225_v43 = vrot.slane %v10665_v19, 5  ;;  %v10709_v5 = vsel %vm1646_vm2, %v1728_v57, %v1730_v1 }
 0x1a6   : > { %16012 = vst [vmem:[#allocation89_spill] sm:$0xff] %v10703_v4  ;;  %v1732_v33 = vrot.slane %v10665_v19, 2  ;;  %v16013_v16 = vpack.i.bf16 %v10546_v53, %v10533_v26  ;;  %v8436_v54 = vpack.i.bf16 %v10689_v8, %v10655_v3  ;;  %v2598_v56 = vrot.slane %v10677_v47, 4 }
 0x1a7   : > { %v3227_v27 = vrot.slane %v10677_v47, 5  ;;  %v1342_v4 = vrot.slane %v10665_v19, 1  ;;  %v10722_v57 = vmax.f32 %v895_v30, 0.0  ;;  %v900_v22 = vadd.f32 %v10588_v0, %v899_v10 }
 0x1a8   : > { %8372 = vrot.lane.b32.xlu1 %v16013_v16, %s9384_s16  ;;  %8407 = vrot.lane.b32.xlu0 %v8406_v48, %s9382_s8  ;;  %v1344_v26 = vrot.slane %v10677_v47, 1  ;;  %v909_v16 = vpop.f32.mrb[96].mxu0  ;;  %v10733_v21 = vsel %vm2280_vm6, %v2356_v63, %v2358_v2  ;;  %v2360_v30 = vrot.slane %v10665_v19, 3  ;;  %v10737_v55 = vsel %vm2516_vm4, %v2594_v42, %v2596_v20 }
 0x1a9   : > { %16014 = vst [vmem:[#allocation90_spill] sm:$0xff] %v10722_v57  ;;  %16015 = vst [vmem:[#allocation91_spill] sm:$0xff] %v10733_v21  ;;  %v10740_v10 = vsel %vm3151_vm5, %v3223_v41, %v3225_v43  ;;  %v7440_v52 = vpop.f32.mrb[97].mxu0  ;;  %v10743_v13 = vsel %vm1646_vm2, %v1730_v1, %v1732_v33  ;;  %v1734_v48 = vrot.slane %v10677_v47, 2  ;;  %v16016_v3 = vpack.i.bf16 %v10576_v15, %v10563_v34 }
 0x1aa   : > { %v10752_v63 = vsel %vm2516_vm4, %v2596_v20, %v2598_v56  ;;  %v10755_v42 = vsel %vm3151_vm5, %v3225_v43, %v3227_v27  ;;  %v10758_v52 = vsel %vm1256_vm3, %v1340_v11, %v1342_v4  ;;  %v10760_v1 = vmax.f32 %v900_v22, 0.0 }
 0x1ab   : > { %v905_v41 = vadd.f32 %v10588_v0, %v904_v6  ;;  %v2600_v19 = vrot.slane %v10722_v57, 4  ;;  %v10765_v34 = vsel %vm1256_vm3, %v1342_v4, %v1344_v26  ;;  %v1736_v20 = vrot.slane %v10722_v57, 2 }
 0x1ac   : > { %8387 = vrot.lane.b32.xlu1 %v16016_v3, %s9383_s9  ;;  %8412 = vrot.lane.b32.xlu0 %v8411_v39, %s9384_s16  ;;  %16017 = vst [vmem:[#allocation92_spill] sm:$0xff] %v10760_v1  ;;  %v914_v39 = vpop.f32.mrb[98].mxu0  ;;  %v10773_v11 = vsel %vm2280_vm6, %v2358_v2, %v2360_v30  ;;  %v910_v22 = vadd.f32 %v10588_v0, %v909_v16  ;;  %v3229_v3 = vrot.slane %v10722_v57, 5  ;;  %v2362_v21 = vrot.slane %v10677_v47, 3 }
 0x1ad   : > { %16018 = vst [vmem:[#allocation93_spill] sm:$0xff] %v10773_v11  ;;  %v7443_v6 = vpop.f32.mrb[99].mxu0  ;;  %v10778_v4 = vsel %vm1646_vm2, %v1732_v33, %v1734_v48  ;;  %v16019_v15 = vpack.i.bf16 %v10579_v32, %v10546_v53  ;;  %v1346_v33 = vrot.slane %v10722_v57, 1  ;;  %v10793_v43 = vmax.f32 %v905_v41, 0.0 }
 0x1ae   : > { %v10796_v47 = vsel %vm2516_vm4, %v2598_v56, %v2600_v19  ;;  %v2602_v53 = vrot.slane %v10760_v1, 4  ;;  %v10803_v16 = vsel %vm1646_vm2, %v1734_v48, %v1736_v20  ;;  %v1348_v6 = vrot.slane %v10760_v1, 1 }
 0x1af   : > { %16020 = vst [vmem:[#allocation94_spill] sm:$0xff] %v10793_v43  ;;  %v2364_v11 = vrot.slane %v10722_v57, 3  ;;  %v10807_v41 = vmax.f32 %v910_v22, 0.0  ;;  %v10810_v56 = vsel %vm3151_vm5, %v3227_v27, %v3229_v3  ;;  %v1738_v17 = vrot.slane %v10760_v1, 2 }
 0x1b0   : > { %8392 = vrot.lane.b32.xlu1 %v16019_v15, %s9382_s8  ;;  %8427 = vrot.lane.b32.xlu0 %v8426_v36, %s9383_s9  ;;  %v3231_v36 = vrot.slane %v10760_v1, 5  ;;  %v919_v15 = vpop.f32.mrb[100].mxu0  ;;  %v10814_v59 = vsel %vm2280_vm6, %v2360_v30, %v2362_v21  ;;  %v10817_v2 = vmax.f32 %v10317_v28, 0.0  ;;  %v16024_v48 = vpack.i.bf16 %v10602_v24, %v10579_v32 }
 0x1b1   : > { %16021 = vst [vmem:[#allocation95_spill] sm:$0xff] %v10807_v41  ;;  %v7446_v7 = vpop.f32.mrb[101].mxu0  ;;  %16022 = vst [vmem:[#allocation96_spill] sm:$0xff] %v10814_v59  ;;  %v10828_v22 = vsel %vm1256_vm3, %v1344_v26, %v1346_v33  ;;  %v10831_v30 = vsel %vm2516_vm4, %v2600_v19, %v2602_v53  ;;  %v10844_v26 = vsel %vm2280_vm6, %v2362_v21, %v2364_v11  ;;  %v2366_v19 = vrot.slane %v10760_v1, 3 }
 0x1b2   : > { %16023 = vst [vmem:[#allocation97_spill] sm:$0xff] %v10817_v2  ;;  %v915_v7 = vadd.f32 %v10588_v0, %v914_v39  ;;  %v10834_v28 = vsel %vm3151_vm5, %v3229_v3, %v3231_v36  ;;  %v2604_v2 = vrot.slane %v10793_v43, 4  ;;  %v1740_v39 = vrot.slane %v10793_v43, 2  ;;  %16025 = vst [vmem:[#allocation98_spill] sm:$0xff] %v10844_v26 }
 0x1b3   : > { %v920_v27 = vadd.f32 %v10588_v0, %v919_v15  ;;  %v2606_v3 = vrot.slane %v10807_v41, 4  ;;  %v3233_v59 = vrot.slane %v10793_v43, 5  ;;  %v10851_v32 = vsel %vm1646_vm2, %v1736_v20, %v1738_v17 }
 0x1b4   : > { %8402 = vrot.lane.b32.xlu1 %v16024_v48, %s9384_s16  ;;  %8437 = vrot.lane.b32.xlu0 %v8436_v54, %s9382_s8  ;;  %v924_v54 = vpop.f32.mrb[102].mxu0  ;;  %v10840_v48 = vsel %vm1256_vm3, %v1346_v33, %v1348_v6  ;;  %v16026_v33 = vpack.i.bf16 %v10646_v50, %v10629_v31  ;;  %v16027_v21 = vpack.i.bf16 %v10697_v18, %v10682_v12  ;;  %v10861_v1 = vmax.f32 %v915_v7, 0.0 }
 0x1b5   : > { %v7449_v57 = vpop.f32.mrb[103].mxu0  ;;  %v1350_v20 = vrot.slane %v10793_v43, 1  ;;  %v10869_v26 = vsel %vm2516_vm4, %v2602_v53, %v2604_v2  ;;  %v3235_v50 = vrot.slane %v10807_v41, 5  ;;  %v2368_v12 = vrot.slane %v10793_v43, 3 }
 0x1b6   : > { %16028 = vst [vmem:[#allocation99_spill] sm:$0xff] %v10861_v1  ;;  %v10882_v15 = vsel %vm2280_vm6, %v2364_v11, %v2366_v19  ;;  %v10884_v53 = vmax.f32 %v920_v27, 0.0  ;;  %v10887_v31 = vsel %vm2516_vm4, %v2604_v2, %v2606_v3  ;;  %v10890_v57 = vsel %vm3151_vm5, %v3231_v36, %v3233_v59 }
 0x1b7   : > { %v929_v18 = vpop.f32.mrb[104].mxu0  ;;  %16029 = vst [vmem:[#allocation100_spill] sm:$0xff] %v10882_v15  ;;  %v1742_v51 = vrot.slane %v10807_v41, 2  ;;  %v16032_v11 = vpack.i.bf16 %v10737_v55, %v10689_v8  ;;  %v925_v27 = vadd.f32 %v10588_v0, %v924_v54  ;;  %v2608_v36 = vrot.slane %v10861_v1, 4 }
 0x1b8   : > { %8417 = vrot.lane.b32.xlu1 %v16026_v33, %s9383_s9  ;;  %8442 = vrot.lane.b32.xlu0 %v16027_v21, %s9384_s16  ;;  %v10878_v33 = vsel %vm1646_vm2, %v1738_v17, %v1740_v39  ;;  %v1352_v21 = vrot.slane %v10807_v41, 1  ;;  %16030 = vst [vmem:[#allocation101_spill] sm:$0xff] %v10884_v53  ;;  %v7452_v43 = vpop.f32.mrb[105].mxu0  ;;  %v16031_v17 = vpack.i.bf16 %v10650_v40, %v10602_v24  ;;  %v2370_v8 = vrot.slane %v10807_v41, 3 }
 0x1b9   : > { %v10906_v43 = vsel %vm1256_vm3, %v1348_v6, %v1350_v20  ;;  %v10909_v7 = vsel %vm3151_vm5, %v3233_v59, %v3235_v50  ;;  %v3237_v6 = vrot.slane %v10861_v1, 5  ;;  %v1744_v2 = vrot.slane %v10861_v1, 2 }
 0x1ba   : > { %16033 = vst [vmem:[#allocation102_spill] sm:$0xff] %v10906_v43  ;;  %v10920_v54 = vsel %vm1256_vm3, %v1350_v20, %v1352_v21  ;;  %v2610_v15 = vrot.slane %v10884_v53, 4  ;;  %v1354_v41 = vrot.slane %v10861_v1, 1  ;;  %v16037_v20 = vpack.i.bf16 %v10661_v49, %v10650_v40 }
 0x1bb   : > { %16035 = vst [vmem:[#allocation104_spill] sm:$0xff] %v10920_v54  ;;  %v934_v59 = vpop.f32.mrb[106].mxu0  ;;  %v10941_v9 = vsel %vm2516_vm4, %v2606_v3, %v2608_v36  ;;  %v1746_v35 = vrot.slane %v10884_v53, 2  ;;  %v930_v58 = vadd.f32 %v10588_v0, %v929_v18  ;;  %v10959_v18 = vsel %vm1646_vm2, %v1742_v51, %v1744_v2 }
 0x1bc   : > { %8422 = vrot.lane.b32.xlu1 %v16031_v17, %s9382_s8  ;;  %8457 = vrot.lane.b32.xlu0 %v16032_v11, %s9383_s9  ;;  %v10914_v17 = vsel %vm2280_vm6, %v2366_v19, %v2368_v12  ;;  %v10927_v19 = vsel %vm1646_vm2, %v1740_v39, %v1742_v51  ;;  %v16038_v11 = vpack.i.bf16 %v10752_v63, %v10737_v55  ;;  %v7455_v24 = vpop.f32.mrb[107].mxu0  ;;  %v2372_v55 = vrot.slane %v10861_v1, 3  ;;  %v8178_v39 = vpop.permute.xlu0 %8177 }
 0x1bd   : > { %16034 = vst [vmem:[#allocation103_spill] sm:$0xff] %v10914_v17  ;;  %16036 = vst [vmem:[#allocation105_spill] sm:$0xff] %v10927_v19  ;;  %v10938_v17 = vmax.f32 %v925_v27, 0.0  ;;  %v10951_v27 = vpop.permute.xlu1 %8182  ;;  %v10954_v24 = vsel %vm3151_vm5, %v3235_v50, %v3237_v6  ;;  %v10962_v40 = vsel %vm2280_vm6, %v2368_v12, %v2370_v8  ;;  %v10967_v1 = vsel %vm2516_vm4, %v2608_v36, %v2610_v15 }
 0x1be   : > { %16040 = vst [vmem:[#allocation107_spill] sm:$0xff] %v10954_v24  ;;  %16041 = vst [vmem:[#allocation108_spill] sm:$0xff] %v10959_v18  ;;  %v16043_v43 = vrot.slane %v10884_v53, 5  ;;  %v16045_v51 = vpack.i.bf16 %v10700_v44, %v10694_v62  ;;  %v16046_v12 = vpack.i.bf16 %v10755_v42, %v10740_v10  ;;  %v935_v36 = vadd.f32 %v10588_v0, %v934_v59 }
 0x1bf   : > { %16039 = vst [vmem:[#allocation106_spill] sm:$0xff] %v10938_v17  ;;  %v939_v3 = vpop.f32.mrb[108].mxu0  ;;  %16042 = vst [vmem:[#allocation109_spill] sm:$0xff] %v10962_v40  ;;  %v1748_v44 = vrot.slane %v10938_v17, 2  ;;  %v11001_v10 = vsel %vm2280_vm6, %v2370_v8, %v2372_v55  ;;  %v8180_v42 = vunpack.i.h.bf16 %v8178_v39  ;;  %v8179_v59 = vunpack.i.l.bf16 %v8178_v39 }
 0x1c0   : > { %8432 = vrot.lane.b32.xlu1 %v16037_v20, %s9384_s16  ;;  %8467 = vrot.lane.b32.xlu0 %v16038_v11, %s9382_s8  ;;  %v10972_v50 = vsel %vm3151_vm5, %v3237_v6, %v16043_v43  ;;  %v7458_v54 = vpop.f32.mrb[109].mxu0  ;;  %v10975_v11 = vsel %vm1256_vm3, %v1352_v21, %v1354_v41  ;;  %v2612_v20 = vrot.slane %v10938_v17, 4  ;;  %v16047_v43 = vrot.slane %v10884_v53, 1  ;;  %16051 = vst [vmem:[#allocation114_spill] sm:$0xff] %v11001_v10 }
 0x1c1   : > { %16044 = vst [vmem:[#allocation110_spill] sm:$0xff] %v10975_v11  ;;  %v10993_v21 = vsel %vm1646_vm2, %v1744_v2, %v1746_v35  ;;  %v10995_v6 = vmax.f32 %v930_v58, 0.0  ;;  %v3241_v8 = vrot.slane %v10938_v17, 5  ;;  %v16052_v10 = vpack.i.bf16 %v10709_v5, %v10661_v49 }
 0x1c2   : > { %v10990_v54 = vsel %vm1256_vm3, %v1354_v41, %v16047_v43  ;;  %16049 = vst [vmem:[#allocation112_spill] sm:$0xff] %v10993_v21  ;;  %v16053_v41 = vpack.i.bf16 %v10796_v47, %v10752_v63  ;;  %v11023_v58 = vmax.f32 %v935_v36, 0.0  ;;  %v11027_v62 = vsel %vm2516_vm4, %v2610_v15, %v2612_v20 }
 0x1c3   : > { %16048 = vst [vmem:[#allocation111_spill] sm:$0xff] %v10990_v54  ;;  %16050 = vst [vmem:[#allocation113_spill] sm:$0xff] %v10995_v6  ;;  %v1358_v2 = vrot.slane %v10938_v17, 1  ;;  %v8185_v39 = vunpack.i.h.bf16 %v10951_v27  ;;  %v8184_v40 = vunpack.i.l.bf16 %v10951_v27  ;;  %v2614_v49 = vrot.slane %v10995_v6, 4 }
 0x1c4   : > { %8447 = vrot.lane.b32.xlu1 %v16045_v51, %s9383_s9  ;;  %8472 = vrot.lane.b32.xlu0 %v16046_v12, %s9384_s16  ;;  %v11003_v51 = vpop.permute.xlu1 %8187  ;;  %v944_v12 = vpop.f32.mrb[110].mxu0  ;;  %16054 = vst [vmem:[#allocation115_spill] sm:$0xff] %v11023_v58  ;;  %v3801_v63 = vsel %vm3779_vm7, %v9831_v25, %v8180_v42  ;;  %v3243_v15 = vrot.slane %v10995_v6, 5  ;;  %v16055_v27 = vrot.slane %v10884_v53, 5  ;;  %v16057_v18 = vrot.slane %v10884_v53, 3 }
 0x1c5   : > { %v7461_v43 = vpop.f32.mrb[111].mxu0  ;;  %v16059_v25 = vpack.i.bf16 %v10743_v13, %v10709_v5  ;;  %v8190_v21 = vunpack.i.h.bf16 %v11003_v51 }
 0x1c6   : > { %v940_v43 = vadd.f32 %v10588_v0, %v939_v3  ;;  %v3800_v3 = vsel %vm3779_vm7, %v9819_v14, %v8179_v59  ;;  %v11047_v54 = vsel %vm3151_vm5, %v16055_v27, %v3241_v8  ;;  %v11053_v42 = vsel %vm2280_vm6, %v2372_v55, %v16057_v18 }
 0x1c7   : > { %v949_v11 = vpop.f32.mrb[112].mxu0  ;;  %16056 = vst [vmem:[#allocation116_spill] sm:$0xff] %v11047_v54  ;;  %16058 = vst [vmem:[#allocation117_spill] sm:$0xff] %v11053_v42  ;;  %v16060_v14 = vpack.i.bf16 %v10831_v30, %v10796_v47  ;;  %v2616_v55 = vrot.slane %v11023_v58, 4  ;;  %v16062_v59 = vrot.slane %v10884_v53, 1  ;;  %v11074_v5 = vpop.permute.xlu0 %8197  ;;  %v945_v47 = vadd.f32 %v10588_v0, %v944_v12 }
 0x1c8   : > { %8452 = vrot.lane.b32.xlu1 %v16052_v10, %s9382_s8  ;;  %8487 = vrot.lane.b32.xlu0 %v16053_v41, %s9383_s9  ;;  %v11034_v10 = vsel %vm1646_vm2, %v1746_v35, %v1748_v44  ;;  %v11040_v36 = vpop.permute.xlu1 %8192  ;;  %v1360_v41 = vrot.slane %v10995_v6, 1  ;;  %v1750_v35 = vrot.slane %v10995_v6, 2  ;;  %v11064_v27 = vmax.f32 %v940_v43, 0.0  ;;  %v7464_v18 = vpop.f32.mrb[113].mxu0 }
 0x1c9   : > { %v11072_v42 = vsel %vm1256_vm3, %v16062_v59, %v1358_v2  ;;  %v11088_v18 = vsel %vm2516_vm4, %v2612_v20, %v2614_v49  ;;  %v11091_v59 = vsel %vm3151_vm5, %v3241_v8, %v3243_v15  ;;  %v1752_v43 = vrot.slane %v11023_v58, 2 }
 0x1ca   : > { %16061 = vst [vmem:[#allocation118_spill] sm:$0xff] %v11064_v27  ;;  %16063 = vst [vmem:[#allocation119_spill] sm:$0xff] %v11091_v59  ;;  %v1362_v20 = vrot.slane %v11023_v58, 1  ;;  %v8189_v8 = vunpack.i.l.bf16 %v11003_v51 }
 0x1cb   : > { %v954_v19 = vpop.f32.mrb[114].mxu0 }
 0x1cc   : > { %8462 = vrot.lane.b32.xlu1 %v16059_v25, %s9384_s16  ;;  %8497 = vrot.lane.b32.xlu0 %v16060_v14, %s9382_s8  ;;  %v11077_v25 = vsel %vm3858_vm8, %v3800_v3, %v8184_v40  ;;  %v11080_v14 = vsel %vm3858_vm8, %v3801_v63, %v8185_v39  ;;  %v11085_v6 = vpop.permute.xlu1 %8202  ;;  %v11094_v40 = vsel %vm1256_vm3, %v1358_v2, %v1360_v41  ;;  %v3245_v39 = vrot.slane %v11023_v58, 5  ;;  %v7467_v12 = vpop.f32.mrb[115].mxu0 }
 0x1cd   : > { %v950_v63 = vadd.f32 %v10588_v0, %v949_v11  ;;  %v11099_v3 = vsel %vm1646_vm2, %v1748_v44, %v1750_v35  ;;  %v16065_v2 = vpack.i.bf16 %v10765_v34, %v10758_v52  ;;  %v16066_v11 = vpack.i.bf16 %v10834_v28, %v10810_v56 }
 0x1ce   : > { %16064 = vst [vmem:[#allocation120_spill] sm:$0xff] %v11099_v3  ;;  %v11114_v44 = vsel %vm2516_vm4, %v2614_v49, %v2616_v55  ;;  %v2618_v12 = vrot.slane %v11064_v27, 4  ;;  %v11117_v58 = vmax.f32 %v945_v47, 0.0  ;;  %v3247_v52 = vrot.slane %v11064_v27, 5 }
 0x1cf   : > { %v11131_v28 = vsel %vm3151_vm5, %v3243_v15, %v3245_v39  ;;  %v16068_v47 = vrot.slane %v10938_v17, 3  ;;  %v11142_v51 = vmax.f32 %v950_v63, 0.0  ;;  %v959_v59 = vpop.f32.mrb[116].mxu0  ;;  %v11147_v56 = vsel %vm1646_vm2, %v1750_v35, %v1752_v43 }
 0x1d0   : > { %8477 = vrot.lane.b32.xlu1 %v16065_v2, %s9383_s9  ;;  %8502 = vrot.lane.b32.xlu0 %v16066_v11, %s9384_s16  ;;  %16067 = vst [vmem:[#allocation121_spill] sm:$0xff] %v11117_v58  ;;  %v11124_v34 = vpop.permute.xlu1 %8207  ;;  %v11126_v2 = vpop.permute.xlu0 %8217  ;;  %v16069_v11 = vrot.slane %v10884_v53, 3  ;;  %v11150_v15 = vsel %vm1256_vm3, %v1360_v41, %v1362_v20  ;;  %v3803_v49 = vsel %vm3779_vm7, %v9878_v61, %v8190_v21  ;;  %v8199_v21 = vunpack.i.l.bf16 %v11074_v5 }
 0x1d1   : > { %16071 = vst [vmem:[#allocation123_spill] sm:$0xff] %v11142_v51  ;;  %v3802_v53 = vsel %vm3779_vm7, %v9846_v38, %v8189_v8  ;;  %v16072_v63 = vpack.i.bf16 %v10778_v4, %v10743_v13  ;;  %v11165_v41 = vsel %vm2516_vm4, %v2616_v55, %v2618_v12  ;;  %v7470_v35 = vpop.f32.mrb[117].mxu0  ;;  %v2620_v8 = vrot.slane %v11117_v58, 4 }
 0x1d2   : > { %v11140_v24 = vsel %vm2280_vm6, %v16069_v11, %v16068_v47  ;;  %v16073_v47 = vpack.i.bf16 %v10869_v26, %v10831_v30  ;;  %v11169_v11 = vsel %vm3151_vm5, %v3245_v39, %v3247_v52  ;;  %v8205_v54 = vunpack.i.h.bf16 %v11085_v6 }
 0x1d3   : > { %16070 = vst [vmem:[#allocation122_spill] sm:$0xff] %v11140_v24  ;;  %v8204_v30 = vunpack.i.l.bf16 %v11085_v6  ;;  %v8195_v61 = vunpack.i.h.bf16 %v11040_v36  ;;  %v8194_v39 = vunpack.i.l.bf16 %v11040_v36  ;;  %v964_v38 = vpop.f32.mrb[118].mxu0  ;;  %v16074_v6 = vpack.i.bf16 %v10803_v16, %v10778_v4 }
 0x1d4   : > { %8482 = vrot.lane.b32.xlu1 %v16072_v63, %s9382_s8  ;;  %8517 = vrot.lane.b32.xlu0 %v16073_v47, %s9383_s9  ;;  %v8200_v63 = vunpack.i.h.bf16 %v11074_v5  ;;  %v11176_v47 = vpop.permute.xlu1 %8212  ;;  %v11178_v55 = vpop.permute.xlu0 %8232  ;;  %v16075_v24 = vpack.i.bf16 %v10887_v31, %v10869_v26  ;;  %v955_v35 = vadd.f32 %v10588_v0, %v954_v19  ;;  %v3249_v5 = vrot.slane %v11117_v58, 5 }
 0x1d5   : > { %v7473_v17 = vpop.f32.mrb[119].mxu0  ;;  %v4036_v4 = vsel %vm3779_vm7, %v10381_v37, %v8199_v21  ;;  %v16076_v26 = vrot.slane %v11064_v27, 1  ;;  %v15776_v19 = vrot.slane %v11142_v51, 5  ;;  %v11219_v37 = vsel %vm3937_vm9, %v11077_v25, %v8204_v30 }
 0x1d6   : > { %v4037_v17 = vsel %vm3779_vm7, %v10384_v45, %v8200_v63  ;;  %v11234_v13 = vsel %vm3858_vm8, %v3803_v49, %v8195_v61  ;;  %v960_v45 = vadd.f32 %v10588_v0, %v959_v59  ;;  %v16078_v25 = vrot.slane %v11142_v51, 4 }
 0x1d7   : > { %v11252_v61 = vmax.f32 %v955_v35, 0.0  ;;  %v11259_v49 = vsel %vm3151_vm5, %v3247_v52, %v3249_v5  ;;  %v8209_v30 = vunpack.i.l.bf16 %v11124_v34  ;;  %v8220_v35 = vunpack.i.h.bf16 %v11126_v2 }
 0x1d8   : > { %8492 = vrot.lane.b32.xlu1 %v16074_v6, %s9384_s16  ;;  %8527 = vrot.lane.b32.xlu0 %v16075_v24, %s9382_s8  ;;  %v11203_v6 = vsel %vm2516_vm4, %v2618_v12, %v2620_v8  ;;  %v11208_v24 = vsel %vm1256_vm3, %v1362_v20, %v16076_v26  ;;  %v11211_v36 = vpop.permute.xlu1 %8222  ;;  %v11213_v3 = vpop.permute.xlu0 %8247  ;;  %v11223_v12 = vsel %vm3937_vm9, %v11080_v14, %v8205_v54  ;;  %v16077_v20 = vrot.slane %v11064_v27, 2 }
 0x1d9   : > { %v11231_v26 = vsel %vm3858_vm8, %v3802_v53, %v8194_v39  ;;  %v11240_v63 = vsel %vm2516_vm4, %v2620_v8, %v16078_v25  ;;  %v11242_v54 = vpop.f32.mrb[120].mxu0  ;;  %v16079_v14 = vpack.i.bf16 %v10840_v48, %v10828_v22  ;;  %v16080_v53 = vpack.i.bf16 %v10909_v7, %v10890_v57  ;;  %16081 = vst [vmem:[#allocation124_spill] sm:$0xff] %v11252_v61 }
 0x1da   : > { %v11228_v21 = vsel %vm1646_vm2, %v1752_v43, %v16077_v20  ;;  %v7476_v8 = vpop.f32.mrb[121].mxu0  ;;  %v8210_v22 = vunpack.i.h.bf16 %v11124_v34  ;;  %v4280_v48 = vpack.c.bf16 %v11223_v12, %v11219_v37  ;;  %v11267_v57 = vsel %vm3151_vm5, %v3249_v5, %v15776_v19 }
 0x1db   : > { %v8219_v52 = vunpack.i.l.bf16 %v11126_v2  ;;  %v8235_v37 = vunpack.i.h.bf16 %v11178_v55  ;;  %v11277_v5 = vmax.f32 %v960_v45, 0.0  ;;  %v8234_v8 = vunpack.i.l.bf16 %v11178_v55 }
 0x1dc   : > { %8507 = vrot.lane.b32.xlu1 %v16079_v14, %s9383_s9  ;;  %8532 = vrot.lane.b32.xlu0 %v16080_v53, %s9384_s16  ;;  %v8228_v39 = vpop.permute.xlu1 %8227  ;;  %v8258_v20 = vpop.permute.xlu0 %8257  ;;  %v16083_v2 = vpack.i.bf16 %v10851_v32, %v10803_v16  ;;  %v16084_v59 = vpack.i.bf16 %v10941_v9, %v10887_v31  ;;  %v970_v19 = vadd.f32 %v10588_v0, %v11242_v54 }
 0x1dd   : > { %v8230_v12 = vunpack.i.h.bf16 %v8228_v39  ;;  %v8229_v14 = vunpack.i.l.bf16 %v8228_v39  ;;  %16082 = vst [vmem:[#allocation125_spill] sm:$0xff] %v11277_v5  ;;  %v11279_v53 = vpop.f32.mrb[122].mxu0  ;;  %v8260_v34 = vunpack.i.h.bf16 %v8258_v20  ;;  %v8259_v7 = vunpack.i.l.bf16 %v8258_v20 }
 0x1de   : > { %v965_v39 = vadd.f32 %v10588_v0, %v964_v38  ;;  %v7479_v45 = vpop.f32.mrb[123].mxu0  ;;  %v15775_v20 = vrot.slane %v11117_v58, 2  ;;  %v4038_v16 = vsel %vm3779_vm7, %v10410_v29, %v8219_v52  ;;  %v16085_v29 = vpack.i.bf16 %v10878_v33, %v10851_v32 }
 0x1df   : > { %v4114_v25 = vsel %vm3858_vm8, %v4036_v4, %v8229_v14  ;;  %v4115_v43 = vsel %vm3858_vm8, %v4037_v17, %v8230_v12  ;;  %v2624_v12 = vrot.slane %v11252_v61, 4  ;;  %v2626_v45 = vrot.slane %v11277_v5, 4  ;;  %v11306_v55 = vpop.f32.mrb[124].mxu0 }
 0x1e0   : > { %8512 = vrot.lane.b32.xlu1 %v16083_v2, %s9382_s8  ;;  %8547 = vrot.lane.b32.xlu0 %v16084_v59, %s9383_s9  ;;  %v4039_v2 = vsel %vm3779_vm7, %v10417_v46, %v8220_v35  ;;  %v8263_v59 = vpop.permute.xlu0 %8262  ;;  %v4192_v38 = vsel %vm3937_vm9, %v4114_v25, %v8234_v8  ;;  %v4193_v4 = vsel %vm3937_vm9, %v4115_v43, %v8235_v37  ;;  %v11318_v25 = vmax.f32 %v965_v39, 0.0  ;;  %v7482_v37 = vpop.f32.mrb[125].mxu0 }
 0x1e1   : > { %v11300_v31 = vpop.permute.xlu1 %8237  ;;  %v8265_v14 = vunpack.i.h.bf16 %v8263_v59  ;;  %v8264_v17 = vunpack.i.l.bf16 %v8263_v59  ;;  %v16086_v46 = vpack.i.bf16 %v10967_v1, %v10941_v9  ;;  %v4281_v35 = vpack.c.bf16 %v4193_v4, %v4192_v38  ;;  %v9362_v4 = vld [vmem:[%s15617_s3 + $0x80] sm:$0xff]  }
 0x1e2   : > { %v4116_v43 = vsel %vm3858_vm8, %v4038_v16, %v8259_v7  ;;  %v4117_v52 = vsel %vm3858_vm8, %v4039_v2, %v8260_v34  ;;  %16087 = vst [vmem:[#allocation126_spill] sm:$0xff] %v11318_v25  ;;  %v8214_v8 = vunpack.i.l.bf16 %v11176_v47  ;;  %v8215_v7 = vunpack.i.h.bf16 %v11176_v47 }
 0x1e3   : > { %v4194_v59 = vsel %vm3937_vm9, %v4116_v43, %v8264_v17  ;;  %v4195_v32 = vsel %vm3937_vm9, %v4117_v52, %v8265_v14  ;;  %v8225_v34 = vunpack.i.h.bf16 %v11211_v36  ;;  %v8224_v39 = vunpack.i.l.bf16 %v11211_v36  ;;  %4747 = vmatprep.mubr.bf16.mxu1 %v4281_v35  ;;  %v11349_v35 = vpop.f32.mrb[126].mxu0 }
 0x1e4   : > { %8522 = vrot.lane.b32.xlu1 %v16085_v29, %s9384_s16  ;;  %8557 = vrot.lane.b32.xlu0 %v16086_v46, %s9382_s8  ;;  %v16088_v29 = vrot.slane %v11064_v27, 2  ;;  %v11335_v2 = vpop.permute.xlu0 %8277  ;;  %v4284_v38 = vpack.c.bf16 %v4195_v32, %v4194_v59  ;;  %v3805_v14 = vsel %vm3779_vm7, %v9935_v60, %v8210_v22  ;;  %v16089_v47 = vrot.slane %v11142_v51, 4  ;;  %v16090_v22 = vld [vmem:[#allocation104_spill] sm:$0xff] }
 0x1e5   : > { %v11333_v16 = vpop.permute.xlu1 %8242  ;;  %4748 = vmatmul.mubr.bf16.vlgmr.msra.gmra.mrb[0].mxu1 %v4280_v48  ;;  %v1366_v36 = vrot.slane %v11117_v58, 1  ;;  %v15777_v46 = vrot.slane %v11142_v51, 1  ;;  %v3804_v43 = vsel %vm3779_vm7, %v9907_v23, %v8209_v30  ;;  %v8249_v52 = vunpack.i.l.bf16 %v11213_v3  ;;  %v16091_v48 = vld [vmem:[#allocation102_spill] sm:$0xff] }
 0x1e6   : > { %v11328_v9 = vsel %vm1646_vm2, %v16088_v29, %v15775_v20  ;;  %v11345_v17 = vsel %vm2516_vm4, %v16089_v47, %v2624_v12  ;;  %4755 = vmatprep.mubr.bf16.mxu1 %v4284_v38  ;;  %v16092_v37 = vpack.i.bf16 %v16090_v22, %v16091_v48  ;;  %v11359_v59 = vsel %vm2516_vm4, %v2624_v12, %v2626_v45  ;;  %v7485_v29 = vpop.f32.mrb[127].mxu0  ;;  %v16093_v20 = vld [vmem:[#allocation107_spill] sm:$0xff]  ;;  %v16101_v22 = vld [vmem:[#allocation69_spill] sm:$0xff] }
 0x1e7   : > { %v15778_v32 = vrot.slane %v11318_v25, 4  ;;  %v8250_v47 = vunpack.i.h.bf16 %v11213_v3  ;;  %v16094_v30 = vpack.i.bf16 %v10972_v50, %v16093_v20  ;;  %v3883_v38 = vsel %vm3858_vm8, %v3804_v43, %v8214_v8  ;;  %7550 = vmatpush3.bf16.msra.mxu1 %v9362_v4 }
 0x1e8   : > { %8537 = vrot.lane.b32.xlu1 %v16092_v37, %s9383_s9  ;;  %v8288_v48 = vpop.permute.xlu0 %8287  ;;  %v3960_v37 = vsel %vm3937_vm9, %v11231_v26, %v8224_v39  ;;  %v3961_v3 = vsel %vm3937_vm9, %v11234_v13, %v8225_v34  ;;  %v3884_v29 = vsel %vm3858_vm8, %v3805_v14, %v8215_v7  ;;  %v16095_v20 = vrot.slane %v11064_v27, 1  ;;  %v11392_v7 = vpop.f32.mrb[128].mxu0  ;;  %v16098_v39 = vld [vmem:[#allocation68_spill] sm:$0xff]  ;;  %v16123_v27 = vld [vmem:[#allocation71_spill] sm:$0xff] }
 0x1e9   : > { %8562 = vrot.lane.b32.xlu0 %v16094_v30, %s9384_s16  ;;  %v8253_v12 = vpop.permute.xlu1 %8252  ;;  %v11389_v26 = vsel %vm1256_vm3, %v1366_v36, %v15777_v46  ;;  %v3253_v13 = vrot.slane %v11252_v61, 5  ;;  %v16097_v34 = vmov 0.0   ;;  %v4040_v4 = vsel %vm3779_vm7, %v16098_v39, %v8249_v52  ;;  %v16099_v30 = vld [vmem:[#allocation105_spill] sm:$0xff]  ;;  %v7488_v54 = vpop.f32.mrb[129].mxu0 }
 0x1ea   : > { %v11384_v8 = vsel %vm1256_vm3, %v16095_v20, %v1366_v36  ;;  %7551 = vmatprep.subr.bf16.mxu1 %v16097_v34  ;;  %v8290_v14 = vunpack.i.h.bf16 %v8288_v48  ;;  %v8289_v43 = vunpack.i.l.bf16 %v8288_v48  ;;  %v16100_v20 = vpack.i.bf16 %v16099_v30, %v10878_v33 }
 0x1eb   : > { %16096 = vst [vmem:[#allocation104_spill] sm:$0xff] %v11384_v8  ;;  %v11404_v36 = vsel %vm2516_vm4, %v2626_v45, %v15778_v32  ;;  %v4041_v50 = vsel %vm3779_vm7, %v16101_v22, %v8250_v47  ;;  %v16102_v52 = vpack.i.bf16 %v11027_v62, %v10967_v1  ;;  %v4283_v48 = vpack.c.bf16 %v3961_v3, %v3960_v37  ;;  %v11424_v3 = vpop.f32.mrb[130].mxu0  ;;  %v16104_v32 = vld [vmem:[#allocation108_spill] sm:$0xff] }
 0x1ec   : > { %8542 = vrot.lane.b32.xlu1 %v16100_v20, %s9382_s8  ;;  %v11412_v39 = vmax.f32 %v970_v19, 0.0  ;;  %v8255_v20 = vunpack.i.h.bf16 %v8253_v12  ;;  %v8254_v46 = vunpack.i.l.bf16 %v8253_v12  ;;  %v8293_v45 = vpop.permute.xlu0 %8292  ;;  %v975_v54 = vadd.f32 %v10588_v0, %v11279_v53  ;;  %v7491_v47 = vpop.f32.mrb[131].mxu0 }
 0x1ed   : > { %8577 = vrot.lane.b32.xlu0 %v16102_v52, %s9383_s9  ;;  %v11415_v34 = vpop.permute.xlu1 %8267  ;;  %4756 = vmatmul.mubr.bf16.gmra.mrb[4].mxu1 %v4283_v48  ;;  %v8295_v22 = vunpack.i.h.bf16 %v8293_v45  ;;  %v8294_v1 = vunpack.i.l.bf16 %v8293_v45  ;;  %v1758_v37 = vrot.slane %v11142_v51, 2  ;;  %v8240_v12 = vunpack.i.h.bf16 %v11300_v31 }
 0x1ee   : > { %16103 = vst [vmem:[#allocation102_spill] sm:$0xff] %v11412_v39  ;;  %v8239_v52 = vunpack.i.l.bf16 %v11300_v31  ;;  %v16105_v53 = vpack.i.bf16 %v16104_v32, %v16099_v30  ;;  %v4118_v48 = vsel %vm3858_vm8, %v4040_v4, %v8289_v43  ;;  %v4119_v45 = vsel %vm3858_vm8, %v4041_v50, %v8290_v14 }
 0x1ef   : > { %v16106_v19 = vpack.i.bf16 %v11088_v18, %v11027_v62  ;;  %v4196_v33 = vsel %vm3937_vm9, %v4118_v48, %v8294_v1  ;;  %v4197_v60 = vsel %vm3937_vm9, %v4119_v45, %v8295_v22  ;;  %v16107_v31 = vrot.slane %v11142_v51, 5  ;;  %v11466_v45 = vpop.f32.mrb[132].mxu0 }
 0x1f0   : > { %8552 = vrot.lane.b32.xlu1 %v16105_v53, %s9384_s16  ;;  %v16109_v30 = vrot.slane %v11277_v5, 5  ;;  %v4287_v62 = vpack.c.bf16 %v4197_v60, %v4196_v33  ;;  %v3962_v43 = vsel %vm3937_vm9, %v3883_v38, %v8254_v46  ;;  %v3963_v47 = vsel %vm3937_vm9, %v3884_v29, %v8255_v20  ;;  %v16112_v60 = vld [vmem:[#allocation35_spill] sm:$0xff]  ;;  %v16115_v33 = vld [vmem:[#allocation110_spill] sm:$0xff] }
 0x1f1   : > { %8587 = vrot.lane.b32.xlu0 %v16106_v19, %s9382_s8  ;;  %v11443_v23 = vsel %vm3151_vm5, %v16107_v31, %v3253_v13  ;;  %v11450_v50 = vpop.permute.xlu1 %8272  ;;  %v11452_v14 = vpop.permute.xlu0 %8307  ;;  %v980_v22 = vadd.f32 %v10588_v0, %v11306_v55  ;;  %v8280_v1 = vunpack.i.h.bf16 %v11335_v2  ;;  %v8279_v19 = vunpack.i.l.bf16 %v11335_v2  ;;  %v16113_v38 = vld [vmem:[#allocation27_spill] sm:$0xff] }
 0x1f2   : > { %16108 = vst [vmem:[#allocation107_spill] sm:$0xff] %v11443_v23  ;;  %v11448_v4 = vsel %vm3151_vm5, %v3253_v13, %v16109_v30  ;;  %v16111_v53 = vrot.slane %v11117_v58, 2  ;;  %v3807_v46 = vsel %vm3779_vm7, %v16112_v60, %v8240_v12  ;;  %v3806_v29 = vsel %vm3779_vm7, %v16113_v38, %v8239_v52  ;;  %4763 = vmatprep.mubr.bf16.mxu1 %v4287_v62  ;;  %v16114_v55 = vld [vmem:[#allocation111_spill] sm:$0xff]  ;;  %v7494_v30 = vpop.f32.mrb[133].mxu0  ;;  %v16119_v60 = vld [vmem:[#allocation116_spill] sm:$0xff] }
 0x1f3   : > { %16110 = vst [vmem:[#allocation68_spill] sm:$0xff] %v11448_v4  ;;  %v16116_v2 = vpack.i.bf16 %v16114_v55, %v16115_v33  ;;  %v11476_v20 = vmax.f32 %v975_v54, 0.0  ;;  %v8244_v48 = vunpack.i.l.bf16 %v11333_v16  ;;  %v16118_v12 = vld [vmem:[#allocation119_spill] sm:$0xff]  ;;  %v4286_v62 = vpack.c.bf16 %v3963_v47, %v3962_v43 }
 0x1f4   : > { %v11463_v13 = vsel %vm1646_vm2, %v16111_v53, %v1758_v37  ;;  %v8245_v53 = vunpack.i.h.bf16 %v11333_v16  ;;  %v16120_v52 = vpack.i.bf16 %v16118_v12, %v16119_v60  ;;  %v11487_v54 = vmax.f32 %v980_v22, 0.0  ;;  %v16122_v16 = vld [vmem:[#allocation70_spill] sm:$0xff]  ;;  %v11504_v12 = vpop.f32.mrb[134].mxu0 }
 0x1f5   : > { %8567 = vrot.lane.b32.xlu1 %v16116_v2, %s9383_s9  ;;  %16117 = vst [vmem:[#allocation105_spill] sm:$0xff] %v11476_v20  ;;  %v8283_v55 = vpop.permute.xlu1 %8282  ;;  %v8318_v33 = vpop.permute.xlu0 %8317  ;;  %v1370_v30 = vrot.slane %v11252_v61, 1  ;;  %v4042_v58 = vsel %vm3779_vm7, %v16122_v16, %v8279_v19  ;;  %v4043_v60 = vsel %vm3779_vm7, %v16123_v27, %v8280_v1  ;;  %4764 = vmatmul.mubr.bf16.gmra.mrb[8].mxu1 %v4286_v62  ;;  %v16124_v47 = vrot.slane %v11252_v61, 2  ;;  %v16125_v19 = vld [vmem:[#allocation112_spill] sm:$0xff] }
 0x1f6   : > { %8592 = vrot.lane.b32.xlu0 %v16120_v52, %s9384_s16  ;;  %16121 = vst [vmem:[#allocation69_spill] sm:$0xff] %v11487_v54  ;;  %v985_v43 = vadd.f32 %v10588_v0, %v11349_v35  ;;  %v8285_v52 = vunpack.i.h.bf16 %v8283_v55  ;;  %v8284_v2 = vunpack.i.l.bf16 %v8283_v55  ;;  %v8320_v31 = vunpack.i.h.bf16 %v8318_v33  ;;  %v7497_v27 = vpop.f32.mrb[135].mxu0 }
 0x1f7   : > { %v11502_v22 = vsel %vm1646_vm2, %v1758_v37, %v16124_v47  ;;  %v8319_v38 = vunpack.i.l.bf16 %v8318_v33  ;;  %v16126_v16 = vpack.i.bf16 %v16125_v19, %v16104_v32  ;;  %v16127_v0 = vpack.i.bf16 %v11114_v44, %v11088_v18  ;;  %v11529_v18 = vld [vmem:[%s15616_s2] ss:$0 sm:$0xff]  ;;  %v11546_v4 = vpop.f32.mrb[136].mxu0 }
 0x1f8   : > { %v3885_v35 = vsel %vm3858_vm8, %v3806_v29, %v8244_v48  ;;  %v3886_v37 = vsel %vm3858_vm8, %v3807_v46, %v8245_v53  ;;  %v16128_v1 = vrot.slane %v11412_v39, 4  ;;  %v16129_v62 = vrot.slane %v11318_v25, 4 }
 0x1f9   : > { %8572 = vrot.lane.b32.xlu1 %v16126_v16, %s9382_s8  ;;  %v3257_v32 = vrot.slane %v11318_v25, 5  ;;  %v11524_v33 = vpop.permute.xlu1 %8297  ;;  %v990_v48 = vadd.f32 %v11529_v18, %v11392_v7  ;;  %v16130_v46 = vrot.slane %v11142_v51, 1  ;;  %v16131_v53 = vrot.slane %v11277_v5, 1  ;;  %v7500_v51 = vpop.f32.mrb[137].mxu0 }
 0x1fa   : > { %8607 = vrot.lane.b32.xlu0 %v16127_v0, %s9383_s9  ;;  %v11521_v55 = vsel %vm2516_vm4, %v16129_v62, %v16128_v1  ;;  %v8323_v47 = vpop.permute.xlu0 %8322  ;;  %v8270_v0 = vunpack.i.h.bf16 %v11415_v34  ;;  %v8269_v1 = vunpack.i.l.bf16 %v11415_v34  ;;  %v16132_v7 = vpack.i.bf16 %v11034_v10, %v16125_v19 }
 0x1fb   : > { %v11536_v29 = vsel %vm1256_vm3, %v16130_v46, %v1370_v30  ;;  %v11541_v16 = vsel %vm1256_vm3, %v1370_v30, %v16131_v53  ;;  %v8325_v62 = vunpack.i.h.bf16 %v8323_v47  ;;  %v8324_v23 = vunpack.i.l.bf16 %v8323_v47 }
 0x1fc   : > { %v4120_v46 = vsel %vm3858_vm8, %v4042_v58, %v8319_v38  ;;  %v4121_v30 = vsel %vm3858_vm8, %v4043_v60, %v8320_v31  ;;  %v3964_v53 = vsel %vm3937_vm9, %v3885_v35, %v8284_v2  ;;  %v3965_v27 = vsel %vm3937_vm9, %v3886_v37, %v8285_v52 }
 0x1fd   : > { %8582 = vrot.lane.b32.xlu1 %v16132_v7, %s9384_s16  ;;  %v16133_v34 = vpack.i.bf16 %v11165_v41, %v11114_v44  ;;  %v4198_v47 = vsel %vm3937_vm9, %v4120_v46, %v8324_v23  ;;  %v4199_v8 = vsel %vm3937_vm9, %v4121_v30, %v8325_v62  ;;  %v16134_v19 = vrot.slane %v11277_v5, 5  ;;  %v11569_v2 = vpop.permute.xlu1 %8302  ;;  %v11582_v46 = vpop.f32.mrb[138].mxu0 }
 0x1fe   : > { %v1762_v38 = vrot.slane %v11277_v5, 2  ;;  %v8275_v31 = vunpack.i.h.bf16 %v11450_v50  ;;  %v11571_v51 = vpop.permute.xlu0 %8337  ;;  %v4290_v60 = vpack.c.bf16 %v4199_v8, %v4198_v47  ;;  %v16136_v44 = vrot.slane %v11412_v39, 5  ;;  %v16141_v47 = vld [vmem:[#allocation37_spill] sm:$0xff] }
 0x1ff   : > { %8617 = vrot.lane.b32.xlu0 %v16133_v34, %s9382_s8  ;;  %v11565_v58 = vsel %vm3151_vm5, %v16134_v19, %v3257_v32  ;;  %v2632_v52 = vrot.slane %v11476_v20, 4  ;;  %v8274_v35 = vunpack.i.l.bf16 %v11450_v50  ;;  %v8310_v37 = vunpack.i.h.bf16 %v11452_v14 }
 0x200   : > { %16135 = vst [vmem:[#allocation108_spill] sm:$0xff] %v11565_v58  ;;  %v11576_v23 = vsel %vm3151_vm5, %v3257_v32, %v16136_v44  ;;  %v8309_v62 = vunpack.i.l.bf16 %v11452_v14  ;;  %v4289_v7 = vpack.c.bf16 %v3965_v27, %v3964_v53  ;;  %4771 = vmatprep.mubr.bf16.mxu1 %v4290_v60  ;;  %v16137_v8 = vpack.i.bf16 %v11094_v40, %v11072_v42  ;;  %v7503_v14 = vpop.f32.mrb[139].mxu0  ;;  %v16140_v27 = vld [vmem:[#allocation42_spill] sm:$0xff] }
 0x201   : > { %v11588_v30 = vmax.f32 %v985_v43, 0.0  ;;  %v11594_v34 = vmax.f32 %v990_v48, 0.0  ;;  %v3809_v53 = vsel %vm3779_vm7, %v16140_v27, %v8270_v0  ;;  %v3808_v19 = vsel %vm3779_vm7, %v16141_v47, %v8269_v1  ;;  %v8313_v48 = vpop.permute.xlu1 %8312  ;;  %v11626_v32 = vpop.f32.mrb[140].mxu0 }
 0x202   : > { %8597 = vrot.lane.b32.xlu1 %v16137_v8, %s9383_s9  ;;  %v16142_v42 = vpack.i.bf16 %v11169_v11, %v11131_v28  ;;  %4772 = vmatmul.mubr.bf16.gmra.mrb[12].mxu1 %v4289_v7  ;;  %v8348_v60 = vpop.permute.xlu0 %8347  ;;  %v16143_v0 = vrot.slane %v11252_v61, 2  ;;  %v16144_v8 = vrot.slane %v11412_v39, 4  ;;  %v16145_v7 = vld [vmem:[#allocation72_spill] sm:$0xff]  ;;  %v3887_v44 = vsel %vm3858_vm8, %v3808_v19, %v8274_v35  ;;  %v7506_v61 = vpop.f32.mrb[141].mxu0 }
 0x203   : > { %16138 = vst [vmem:[#allocation111_spill] sm:$0xff] %v11588_v30  ;;  %16139 = vst [vmem:[#allocation110_spill] sm:$0xff] %v11594_v34  ;;  %v4044_v14 = vsel %vm3779_vm7, %v16145_v7, %v8309_v62  ;;  %v3888_v50 = vsel %vm3858_vm8, %v3809_v53, %v8275_v31  ;;  %v8314_v43 = vunpack.i.l.bf16 %v8313_v48  ;;  %v8350_v27 = vunpack.i.h.bf16 %v8348_v60 }
 0x204   : > { %8622 = vrot.lane.b32.xlu0 %v16142_v42, %s9384_s16  ;;  %v11612_v1 = vsel %vm1646_vm2, %v16143_v0, %v1762_v38  ;;  %v11617_v28 = vsel %vm2516_vm4, %v16144_v8, %v2632_v52  ;;  %v16146_v42 = vld [vmem:[#allocation74_spill] sm:$0xff]  ;;  %v8315_v0 = vunpack.i.h.bf16 %v8313_v48  ;;  %v8349_v47 = vunpack.i.l.bf16 %v8348_v60  ;;  %v16147_v8 = vld [vmem:[#allocation120_spill] sm:$0xff] }
 0x205   : > { %v4045_v40 = vsel %vm3779_vm7, %v16146_v42, %v8310_v37  ;;  %v16148_v11 = vpack.i.bf16 %v16147_v8, %v11034_v10  ;;  %v16149_v37 = vpack.i.bf16 %v11203_v6, %v11165_v41  ;;  %v995_v31 = vadd.f32 %v11529_v18, %v11424_v3  ;;  %v11645_v10 = vpop.permute.xlu1 %8327 }
 0x206   : > { %v16150_v35 = vrot.slane %v11318_v25, 2  ;;  %v1374_v53 = vrot.slane %v11318_v25, 1  ;;  %v8353_v61 = vpop.permute.xlu0 %8352  ;;  %v16151_v48 = vrot.slane %v11487_v54, 4  ;;  %v1000_v3 = vadd.f32 %v11529_v18, %v11466_v45 }
 0x207   : > { %8602 = vrot.lane.b32.xlu1 %v16148_v11, %s9382_s8  ;;  %v3261_v60 = vrot.slane %v11476_v20, 5  ;;  %v8300_v11 = vunpack.i.h.bf16 %v11524_v33  ;;  %v8299_v7 = vunpack.i.l.bf16 %v11524_v33  ;;  %v8355_v42 = vunpack.i.h.bf16 %v8353_v61 }
 0x208   : > { %8637 = vrot.lane.b32.xlu0 %v16149_v37, %s9383_s9  ;;  %v11641_v62 = vsel %vm1646_vm2, %v1762_v38, %v16150_v35  ;;  %v11650_v41 = vsel %vm2516_vm4, %v2632_v52, %v16151_v48  ;;  %v8354_v37 = vunpack.i.l.bf16 %v8353_v61  ;;  %v11658_v35 = vpop.f32.mrb[142].mxu0  ;;  %v16153_v52 = vpack.i.bf16 %v11147_v56, %v16147_v8 }
 0x209   : > { %16152 = vst [vmem:[#allocation119_spill] sm:$0xff] %v11658_v35  ;;  %v4122_v48 = vsel %vm3858_vm8, %v4044_v14, %v8349_v47  ;;  %v4123_v45 = vsel %vm3858_vm8, %v4045_v40, %v8350_v27  ;;  %v3966_v19 = vsel %vm3937_vm9, %v3887_v44, %v8314_v43  ;;  %v3967_v38 = vsel %vm3937_vm9, %v3888_v50, %v8315_v0  ;;  %v7509_v58 = vpop.f32.mrb[143].mxu0  ;;  %v11685_v50 = vpop.permute.xlu1 %8332 }
 0x20a   : > { %v16154_v33 = vpack.i.bf16 %v11240_v63, %v11203_v6  ;;  %v4200_v61 = vsel %vm3937_vm9, %v4122_v48, %v8354_v37  ;;  %v4201_v35 = vsel %vm3937_vm9, %v4123_v45, %v8355_v42  ;;  %v16155_v8 = vrot.slane %v11277_v5, 1  ;;  %v11687_v6 = vpop.permute.xlu0 %8367  ;;  %v11702_v45 = vpop.f32.mrb[144].mxu0 }
 0x20b   : > { %8612 = vrot.lane.b32.xlu1 %v16153_v52, %s9384_s16  ;;  %v16156_v27 = vrot.slane %v11412_v39, 1  ;;  %v8340_v58 = vunpack.i.h.bf16 %v11571_v51  ;;  %v4293_v43 = vpack.c.bf16 %v4201_v35, %v4200_v61  ;;  %v16157_v44 = vrot.slane %v11412_v39, 5 }
 0x20c   : > { %8647 = vrot.lane.b32.xlu0 %v16154_v33, %s9382_s8  ;;  %v11677_v47 = vsel %vm1256_vm3, %v16155_v8, %v1374_v53  ;;  %v16158_v0 = vrot.slane %v11487_v54, 5  ;;  %v4292_v37 = vpack.c.bf16 %v3967_v38, %v3966_v19  ;;  %v1766_v52 = vrot.slane %v11412_v39, 2  ;;  %v7512_v38 = vpop.f32.mrb[145].mxu0 }
 0x20d   : > { %v11682_v40 = vsel %vm1256_vm3, %v1374_v53, %v16156_v27  ;;  %v11692_v14 = vsel %vm3151_vm5, %v16157_v44, %v3261_v60  ;;  %v8339_v53 = vunpack.i.l.bf16 %v11571_v51  ;;  %v15795_v48 = vrot.slane %v11588_v30, 4  ;;  %4779 = vmatprep.mubr.bf16.mxu1 %v4293_v43  ;;  %v16164_v44 = vld [vmem:[#allocation45_spill] sm:$0xff]  ;;  %v11750_v19 = vpop.f32.mrb[146].mxu0 }
 0x20e   : > { %v11697_v42 = vsel %vm3151_vm5, %v3261_v60, %v16158_v0  ;;  %v16159_v35 = vpack.i.bf16 %v11208_v24, %v11150_v15  ;;  %v11712_v51 = vmax.f32 %v995_v31, 0.0  ;;  %v8305_v61 = vunpack.i.h.bf16 %v11569_v2  ;;  %4780 = vmatmul.mubr.bf16.gmra.mrb[16].mxu1 %v4292_v37  ;;  %v16163_v31 = vld [vmem:[#allocation51_spill] sm:$0xff]  ;;  %v8378_v38 = vpop.permute.xlu0 %8377 }
 0x20f   : > { %v8304_v8 = vunpack.i.l.bf16 %v11569_v2  ;;  %v16161_v15 = vpack.i.bf16 %v11267_v57, %v11259_v49  ;;  %v11724_v27 = vmax.f32 %v1000_v3, 0.0  ;;  %v3811_v43 = vsel %vm3779_vm7, %v16163_v31, %v8300_v11  ;;  %v16165_v57 = vld [vmem:[#allocation76_spill] sm:$0xff] }
 0x210   : > { %8627 = vrot.lane.b32.xlu1 %v16159_v35, %s9383_s9  ;;  %16160 = vst [vmem:[#allocation116_spill] sm:$0xff] %v11712_v51  ;;  %v3810_v0 = vsel %vm3779_vm7, %v16164_v44, %v8299_v7  ;;  %v8343_v35 = vpop.permute.xlu1 %8342  ;;  %v4046_v37 = vsel %vm3779_vm7, %v16165_v57, %v8339_v53  ;;  %v16167_v24 = vrot.slane %v11318_v25, 2  ;;  %v16168_v7 = vrot.slane %v11487_v54, 4 }
 0x211   : > { %8652 = vrot.lane.b32.xlu0 %v16161_v15, %s9384_s16  ;;  %16162 = vst [vmem:[#allocation70_spill] sm:$0xff] %v11724_v27  ;;  %v16166_v15 = vld [vmem:[#allocation77_spill] sm:$0xff]  ;;  %v8345_v49 = vunpack.i.h.bf16 %v8343_v35  ;;  %v8344_v60 = vunpack.i.l.bf16 %v8343_v35  ;;  %v8380_v53 = vunpack.i.h.bf16 %v8378_v38  ;;  %v8379_v57 = vunpack.i.l.bf16 %v8378_v38 }
 0x212   : > { %v4047_v3 = vsel %vm3779_vm7, %v16166_v15, %v8340_v58  ;;  %v11741_v11 = vsel %vm1646_vm2, %v16167_v24, %v1766_v52  ;;  %v11748_v2 = vsel %vm2516_vm4, %v16168_v7, %v15795_v48  ;;  %v16169_v58 = vpack.i.bf16 %v11228_v21, %v11147_v56  ;;  %v7515_v24 = vpop.f32.mrb[147].mxu0  ;;  %v8383_v31 = vpop.permute.xlu0 %8382 }
 0x213   : > { %v16170_v15 = vpack.i.bf16 %v11345_v17, %v11240_v63  ;;  %v3889_v7 = vsel %vm3858_vm8, %v3810_v0, %v8304_v8  ;;  %v3890_v33 = vsel %vm3858_vm8, %v3811_v43, %v8305_v61  ;;  %v1005_v35 = vadd.f32 %v11529_v18, %v11504_v12  ;;  %v11776_v24 = vpop.f32.mrb[148].mxu0 }
 0x214   : > { %8632 = vrot.lane.b32.xlu1 %v16169_v58, %s9382_s8  ;;  %v11765_v48 = vpop.permute.xlu1 %8357  ;;  %v1010_v8 = vadd.f32 %v11529_v18, %v11546_v4  ;;  %v8385_v61 = vunpack.i.h.bf16 %v8383_v31  ;;  %v8384_v43 = vunpack.i.l.bf16 %v8383_v31  ;;  %v1378_v12 = vrot.slane %v11476_v20, 1  ;;  %v7518_v31 = vpop.f32.mrb[149].mxu0 }
 0x215   : > { %8667 = vrot.lane.b32.xlu0 %v16170_v15, %s9383_s9  ;;  %v16171_v15 = vpack.i.bf16 %v11328_v9, %v11228_v21  ;;  %v4124_v58 = vsel %vm3858_vm8, %v4046_v37, %v8379_v57  ;;  %v4125_v56 = vsel %vm3858_vm8, %v4047_v3, %v8380_v53  ;;  %v3968_v63 = vsel %vm3937_vm9, %v3889_v7, %v8344_v60 }
 0x216   : > { %v3969_v4 = vsel %vm3937_vm9, %v3890_v33, %v8345_v49  ;;  %v16172_v0 = vpack.i.bf16 %v11359_v59, %v11345_v17  ;;  %v4202_v38 = vsel %vm3937_vm9, %v4124_v58, %v8384_v43  ;;  %v4203_v44 = vsel %vm3937_vm9, %v4125_v56, %v8385_v61  ;;  %v11803_v53 = vpop.permute.xlu0 %8397 }
 0x217   : > { %v11792_v21 = vmax.f32 %v1005_v35, 0.0  ;;  %v16174_v37 = vrot.slane %v11476_v20, 2  ;;  %v8330_v60 = vunpack.i.h.bf16 %v11645_v10  ;;  %v8329_v33 = vunpack.i.l.bf16 %v11645_v10  ;;  %v11815_v10 = vpop.f32.mrb[150].mxu0 }
 0x218   : > { %8642 = vrot.lane.b32.xlu1 %v16171_v15, %s9384_s16  ;;  %v11801_v49 = vpop.permute.xlu1 %8362  ;;  %v4296_v17 = vpack.c.bf16 %v4203_v44, %v4202_v38  ;;  %v16175_v57 = vrot.slane %v11594_v34, 4  ;;  %v16176_v7 = vrot.slane %v11588_v30, 4  ;;  %v8334_v56 = vunpack.i.l.bf16 %v11685_v50  ;;  %16177 = vst [vmem:[#allocation112_spill] sm:$0xff] %v11815_v10  ;;  %v16178_v44 = vld [vmem:[#allocation104_spill] sm:$0xff] }
 0x219   : > { %8677 = vrot.lane.b32.xlu0 %v16172_v0, %s9382_s8  ;;  %16173 = vst [vmem:[#allocation71_spill] sm:$0xff] %v11792_v21  ;;  %v11797_v3 = vsel %vm1646_vm2, %v1766_v52, %v16174_v37  ;;  %v8370_v52 = vunpack.i.h.bf16 %v11687_v6  ;;  %v8369_v58 = vunpack.i.l.bf16 %v11687_v6  ;;  %v4295_v61 = vpack.c.bf16 %v3969_v4, %v3968_v63  ;;  %v7521_v4 = vpop.f32.mrb[151].mxu0 }
 0x21a   : > { %v11810_v35 = vsel %vm2516_vm4, %v16176_v7, %v16175_v57  ;;  %4787 = vmatprep.mubr.bf16.mxu1 %v4296_v17  ;;  %v16179_v38 = vpack.i.bf16 %v11389_v26, %v16178_v44  ;;  %v11823_v0 = vmax.f32 %v1010_v8, 0.0  ;;  %v16181_v15 = vrot.slane %v11412_v39, 1  ;;  %v16183_v26 = vld [vmem:[#allocation68_spill] sm:$0xff]  ;;  %v16184_v17 = vld [vmem:[#allocation107_spill] sm:$0xff] }
 0x21b   : > { %v16182_v6 = vrot.slane %v11487_v54, 1  ;;  %v8335_v37 = vunpack.i.h.bf16 %v11685_v50  ;;  %v16185_v57 = vpack.i.bf16 %v16183_v26, %v16184_v17  ;;  %4788 = vmatmul.mubr.bf16.gmra.mrb[20].mxu1 %v4295_v61  ;;  %v3265_v8 = vrot.slane %v11588_v30, 5  ;;  %v8408_v50 = vpop.permute.xlu0 %8407  ;;  %v16188_v61 = vld [vmem:[#allocation80_spill] sm:$0xff] }
 0x21c   : > { %8657 = vrot.lane.b32.xlu1 %v16179_v38, %s9383_s9  ;;  %16180 = vst [vmem:[#allocation72_spill] sm:$0xff] %v11823_v0  ;;  %v11828_v31 = vsel %vm1256_vm3, %v16181_v15, %v1378_v12  ;;  %v1770_v44 = vrot.slane %v11487_v54, 2  ;;  %v16186_v38 = vld [vmem:[#allocation57_spill] sm:$0xff]  ;;  %v8373_v4 = vpop.permute.xlu1 %8372  ;;  %v2640_v26 = vrot.slane %v11712_v51, 4  ;;  %v4048_v17 = vsel %vm3779_vm7, %v16188_v61, %v8369_v58 }
 0x21d   : > { %v11833_v63 = vsel %vm1256_vm3, %v1378_v12, %v16182_v6  ;;  %8682 = vrot.lane.b32.xlu0 %v16185_v57, %s9384_s16  ;;  %v3813_v15 = vsel %vm3779_vm7, %v16186_v38, %v8330_v60  ;;  %v16187_v12 = vld [vmem:[#allocation52_spill] sm:$0xff]  ;;  %v16189_v57 = vld [vmem:[#allocation81_spill] sm:$0xff]  ;;  %v11857_v38 = vpop.f32.mrb[152].mxu0  ;;  %v8410_v25 = vunpack.i.h.bf16 %v8408_v50  ;;  %v8409_v5 = vunpack.i.l.bf16 %v8408_v50 }
 0x21e   : > { %v3812_v6 = vsel %vm3779_vm7, %v16187_v12, %v8329_v33  ;;  %v4049_v7 = vsel %vm3779_vm7, %v16189_v57, %v8370_v52  ;;  %16190 = vst [vmem:[#allocation74_spill] sm:$0xff] %v11857_v38  ;;  %v8375_v33 = vunpack.i.h.bf16 %v8373_v4  ;;  %v8374_v12 = vunpack.i.l.bf16 %v8373_v4  ;;  %v7524_v58 = vpop.f32.mrb[153].mxu0 }
 0x21f   : > { %v3891_v39 = vsel %vm3858_vm8, %v3812_v6, %v8334_v56  ;;  %v16191_v43 = vpack.i.bf16 %v11463_v13, %v11328_v9  ;;  %v16192_v52 = vpack.i.bf16 %v11404_v36, %v11359_v59  ;;  %v3892_v56 = vsel %vm3858_vm8, %v3813_v15, %v8335_v37  ;;  %v8413_v37 = vpop.permute.xlu0 %8412 }
 0x220   : > { %v16193_v6 = vrot.slane %v11487_v54, 5  ;;  %v16194_v4 = vrot.slane %v11594_v34, 5  ;;  %v16195_v9 = vrot.slane %v11476_v20, 2  ;;  %v8360_v59 = vunpack.i.h.bf16 %v11765_v48  ;;  %v11884_v57 = vpop.permute.xlu1 %8387  ;;  %v11896_v20 = vpop.f32.mrb[154].mxu0 }
 0x221   : > { %8662 = vrot.lane.b32.xlu1 %v16191_v43, %s9382_s8  ;;  %8697 = vrot.lane.b32.xlu0 %v16192_v52, %s9383_s9  ;;  %v16196_v15 = vrot.slane %v11594_v34, 4  ;;  %v1015_v52 = vadd.f32 %v11529_v18, %v11582_v46  ;;  %16197 = vst [vmem:[#allocation120_spill] sm:$0xff] %v11896_v20  ;;  %v16198_v38 = vpack.i.bf16 %v11502_v22, %v11463_v13 }
 0x222   : > { %v11871_v61 = vsel %vm3151_vm5, %v16193_v6, %v3265_v8  ;;  %v11876_v50 = vsel %vm3151_vm5, %v3265_v8, %v16194_v4  ;;  %v11881_v43 = vsel %vm1646_vm2, %v16195_v9, %v1770_v44  ;;  %v8359_v6 = vunpack.i.l.bf16 %v11765_v48  ;;  %v7527_v48 = vpop.f32.mrb[155].mxu0 }
 0x223   : > { %v11889_v58 = vsel %vm2516_vm4, %v16196_v15, %v2640_v26  ;;  %v8415_v4 = vunpack.i.h.bf16 %v8413_v37  ;;  %v8414_v9 = vunpack.i.l.bf16 %v8413_v37  ;;  %v4126_v15 = vsel %vm3858_vm8, %v4048_v17, %v8409_v5 }
 0x224   : > { %v4127_v10 = vsel %vm3858_vm8, %v4049_v7, %v8410_v25  ;;  %v3970_v46 = vsel %vm3937_vm9, %v3891_v39, %v8374_v12  ;;  %v3971_v8 = vsel %vm3937_vm9, %v3892_v56, %v8375_v33  ;;  %v16199_v37 = vpack.i.bf16 %v11521_v55, %v11404_v36  ;;  %v11916_v25 = vpop.permute.xlu1 %8392  ;;  %v11918_v39 = vpop.permute.xlu0 %8427 }
 0x225   : > { %8672 = vrot.lane.b32.xlu1 %v16198_v38, %s9384_s16  ;;  %v4204_v60 = vsel %vm3937_vm9, %v4126_v15, %v8414_v9  ;;  %v4205_v20 = vsel %vm3937_vm9, %v4127_v10, %v8415_v4  ;;  %v16200_v36 = vrot.slane %v11588_v30, 2  ;;  %v11929_v10 = vadd.f32 %v11529_v18, %v11626_v32  ;;  %v16202_v15 = vld [vmem:[#allocation61_spill] sm:$0xff] }
 0x226   : > { %8707 = vrot.lane.b32.xlu0 %v16199_v37, %s9382_s8  ;;  %v4299_v7 = vpack.c.bf16 %v4205_v20, %v4204_v60  ;;  %v8400_v17 = vunpack.i.h.bf16 %v11803_v53  ;;  %v8399_v33 = vunpack.i.l.bf16 %v11803_v53  ;;  %v4298_v56 = vpack.c.bf16 %v3971_v8, %v3970_v46  ;;  %v11934_v20 = vpop.f32.mrb[156].mxu0  ;;  %v16201_v60 = vld [vmem:[#allocation66_spill] sm:$0xff] }
 0x227   : > { %v11925_v12 = vsel %vm1646_vm2, %v1770_v44, %v16200_v36  ;;  %v1382_v4 = vrot.slane %v11588_v30, 1  ;;  %v3815_v9 = vsel %vm3779_vm7, %v16201_v60, %v8360_v59  ;;  %v3814_v44 = vsel %vm3779_vm7, %v16202_v15, %v8359_v6  ;;  %v7530_v46 = vpop.f32.mrb[157].mxu0  ;;  %v16206_v6 = vld [vmem:[#allocation108_spill] sm:$0xff] }
 0x228   : > { %4795 = vmatprep.mubr.bf16.mxu1 %v4299_v7  ;;  %v16203_v32 = vpack.i.bf16 %v11541_v16, %v11536_v29  ;;  %v11944_v48 = vmax.f32 %v1015_v52, 0.0  ;;  %v16205_v53 = vrot.slane %v11724_v27, 4  ;;  %v8365_v37 = vunpack.i.h.bf16 %v11801_v49  ;;  %v8403_v52 = vpop.permute.xlu1 %8402  ;;  %v8438_v36 = vpop.permute.xlu0 %8437  ;;  %v16208_v46 = vld [vmem:[#allocation83_spill] sm:$0xff] }
 0x229   : > { %v8364_v59 = vunpack.i.l.bf16 %v11801_v49  ;;  %v16207_v7 = vpack.i.bf16 %v11576_v23, %v16206_v6  ;;  %4796 = vmatmul.mubr.bf16.gmra.mrb[24].mxu1 %v4298_v56  ;;  %v3269_v16 = vrot.slane %v11712_v51, 5  ;;  %v2644_v49 = vrot.slane %v11792_v21, 4  ;;  %v16209_v6 = vld [vmem:[#allocation85_spill] sm:$0xff] }
 0x22a   : > { %8687 = vrot.lane.b32.xlu1 %v16203_v32, %s9383_s9  ;;  %16204 = vst [vmem:[#allocation76_spill] sm:$0xff] %v11944_v48  ;;  %v11949_v8 = vsel %vm2516_vm4, %v2640_v26, %v16205_v53  ;;  %v1774_v53 = vrot.slane %v11594_v34, 2  ;;  %v4050_v23 = vsel %vm3779_vm7, %v16208_v46, %v8399_v33  ;;  %v4051_v56 = vsel %vm3779_vm7, %v16209_v6, %v8400_v17  ;;  %v11975_v26 = vpop.f32.mrb[158].mxu0 }
 0x22b   : > { %8712 = vrot.lane.b32.xlu0 %v16207_v7, %s9384_s16  ;;  %v16210_v38 = vrot.slane %v11487_v54, 1  ;;  %16211 = vst [vmem:[#allocation77_spill] sm:$0xff] %v11975_v26  ;;  %v8405_v13 = vunpack.i.h.bf16 %v8403_v52  ;;  %v8404_v32 = vunpack.i.l.bf16 %v8403_v52  ;;  %v8440_v29 = vunpack.i.h.bf16 %v8438_v36  ;;  %v7533_v17 = vpop.f32.mrb[159].mxu0 }
 0x22c   : > { %v8439_v60 = vunpack.i.l.bf16 %v8438_v36  ;;  %v16212_v33 = vpack.i.bf16 %v11612_v1, %v11502_v22  ;;  %v16213_v46 = vpack.i.bf16 %v11617_v28, %v11521_v55  ;;  %v3894_v6 = vsel %vm3858_vm8, %v3815_v9, %v8365_v37  ;;  %v11998_v17 = vpop.permute.xlu1 %8417  ;;  %v8443_v55 = vpop.permute.xlu0 %8442 }
 0x22d   : > { %v11973_v5 = vsel %vm1256_vm3, %v16210_v38, %v1382_v4  ;;  %v3893_v38 = vsel %vm3858_vm8, %v3814_v44, %v8364_v59  ;;  %v16214_v7 = vrot.slane %v11594_v34, 1  ;;  %v16215_v36 = vrot.slane %v11594_v34, 5  ;;  %v12017_v26 = vpop.f32.mrb[160].mxu0 }
 0x22e   : > { %8692 = vrot.lane.b32.xlu1 %v16212_v33, %s9382_s8  ;;  %v8390_v33 = vunpack.i.h.bf16 %v11884_v57  ;;  %v16217_v9 = vrot.slane %v11588_v30, 2  ;;  %v16218_v37 = vrot.slane %v11724_v27, 4  ;;  %16219 = vst [vmem:[#allocation104_spill] sm:$0xff] %v12017_v26  ;;  %v3973_v30 = vsel %vm3937_vm9, %v3894_v6, %v8405_v13 }
 0x22f   : > { %8727 = vrot.lane.b32.xlu0 %v16213_v46, %s9383_s9  ;;  %v11990_v52 = vsel %vm1256_vm3, %v1382_v4, %v16214_v7  ;;  %v11995_v22 = vsel %vm3151_vm5, %v16215_v36, %v3269_v16  ;;  %v16216_v46 = vrot.slane %v11724_v27, 5  ;;  %v8445_v7 = vunpack.i.h.bf16 %v8443_v55 }
 0x230   : > { %v12008_v4 = vsel %vm1646_vm2, %v16217_v9, %v1774_v53  ;;  %v12013_v59 = vsel %vm2516_vm4, %v16218_v37, %v2644_v49  ;;  %v8444_v36 = vunpack.i.l.bf16 %v8443_v55  ;;  %v4129_v9 = vsel %vm3858_vm8, %v4051_v56, %v8440_v29  ;;  %v7536_v55 = vpop.f32.mrb[161].mxu0  ;;  %v12036_v29 = vpop.permute.xlu1 %8422 }
 0x231   : > { %v12003_v44 = vsel %vm3151_vm5, %v3269_v16, %v16216_v46  ;;  %v16220_v16 = vpack.i.bf16 %v11641_v62, %v11612_v1  ;;  %v4128_v46 = vsel %vm3858_vm8, %v4050_v23, %v8439_v60  ;;  %v3972_v37 = vsel %vm3937_vm9, %v3893_v38, %v8404_v32  ;;  %v12038_v32 = vpop.permute.xlu0 %8457  ;;  %v16233_v23 = vld [vmem:[#allocation88_spill] sm:$0xff] }
 0x232   : > { %v8389_v15 = vunpack.i.l.bf16 %v11884_v57  ;;  %v16221_v54 = vpack.i.bf16 %v11650_v41, %v11617_v28  ;;  %v4206_v26 = vsel %vm3937_vm9, %v4128_v46, %v8444_v36  ;;  %v4207_v1 = vsel %vm3937_vm9, %v4129_v9, %v8445_v7  ;;  %v16224_v36 = vld [vmem:[#allocation73_spill] sm:$0xff] }
 0x233   : > { %8702 = vrot.lane.b32.xlu1 %v16220_v16, %s9384_s16  ;;  %v16222_v16 = vld [vmem:[#allocation119_spill] sm:$0xff]  ;;  %v4302_v13 = vpack.c.bf16 %v4207_v1, %v4206_v26  ;;  %v4301_v28 = vpack.c.bf16 %v3973_v30, %v3972_v37  ;;  %v16223_v56 = vrot.slane %v11712_v51, 2  ;;  %v1386_v6 = vrot.slane %v11712_v51, 1  ;;  %v12053_v26 = vpop.f32.mrb[162].mxu0  ;;  %v16234_v57 = vld [vmem:[#allocation89_spill] sm:$0xff] }
 0x234   : > { %8737 = vrot.lane.b32.xlu0 %v16221_v54, %s9382_s8  ;;  %v1025_v60 = vadd.f32 %v11529_v18, %v16222_v16  ;;  %v15808_v7 = vrot.slane %v11724_v27, 1  ;;  %v3817_v46 = vsel %vm3779_vm7, %v16224_v36, %v8390_v33  ;;  %v16225_v9 = vpack.i.bf16 %v11682_v40, %v11677_v47  ;;  %v7539_v1 = vpop.f32.mrb[163].mxu0  ;;  %v16228_v16 = vld [vmem:[#allocation67_spill] sm:$0xff] }
 0x235   : > { %v12049_v38 = vsel %vm1646_vm2, %v1774_v53, %v16223_v56  ;;  %4803 = vmatprep.mubr.bf16.mxu1 %v4302_v13  ;;  %v12062_v30 = vmax.f32 %v11929_v10, 0.0  ;;  %v16227_v37 = vrot.slane %v11823_v0, 4  ;;  %v3816_v33 = vsel %vm3779_vm7, %v16228_v16, %v8389_v15 }
 0x236   : > { %v8430_v13 = vunpack.i.h.bf16 %v11918_v39  ;;  %v8429_v47 = vunpack.i.l.bf16 %v11918_v39  ;;  %v16229_v40 = vpack.i.bf16 %v11697_v42, %v11692_v14  ;;  %4804 = vmatmul.mubr.bf16.gmra.mrb[28].mxu1 %v4301_v28  ;;  %v12079_v10 = vmax.f32 %v1025_v60, 0.0  ;;  %v12100_v28 = vpop.f32.mrb[164].mxu0 }
 0x237   : > { %8717 = vrot.lane.b32.xlu1 %v16225_v9, %s9383_s9  ;;  %16226 = vst [vmem:[#allocation68_spill] sm:$0xff] %v12062_v30  ;;  %v12069_v55 = vsel %vm2516_vm4, %v2644_v49, %v16227_v37  ;;  %v8395_v56 = vunpack.i.h.bf16 %v11916_v25  ;;  %v8394_v49 = vunpack.i.l.bf16 %v11916_v25  ;;  %v8433_v9 = vpop.permute.xlu1 %8432  ;;  %v8468_v37 = vpop.permute.xlu0 %8467  ;;  %v3273_v1 = vrot.slane %v11792_v21, 5 }
 0x238   : > { %8742 = vrot.lane.b32.xlu0 %v16229_v40, %s9384_s16  ;;  %16230 = vst [vmem:[#allocation107_spill] sm:$0xff] %v12079_v10  ;;  %v1030_v14 = vadd.f32 %v11529_v18, %v11702_v45  ;;  %v16231_v42 = vrot.slane %v11594_v34, 1  ;;  %v12098_v25 = vsel %vm1256_vm3, %v1386_v6, %v15808_v7  ;;  %v8435_v40 = vunpack.i.h.bf16 %v8433_v9  ;;  %v7542_v39 = vpop.f32.mrb[165].mxu0 }
 0x239   : > { %v8434_v15 = vunpack.i.l.bf16 %v8433_v9  ;;  %v8470_v53 = vunpack.i.h.bf16 %v8468_v37  ;;  %v8469_v54 = vunpack.i.l.bf16 %v8468_v37  ;;  %v16232_v45 = vpack.i.bf16 %v11741_v11, %v11641_v62  ;;  %v12129_v16 = vpop.f32.mrb[166].mxu0 }
 0x23a   : > { %v12093_v60 = vsel %vm1256_vm3, %v16231_v42, %v1386_v6  ;;  %v4052_v42 = vsel %vm3779_vm7, %v16233_v23, %v8429_v47  ;;  %v4053_v36 = vsel %vm3779_vm7, %v16234_v57, %v8430_v13  ;;  %v16235_v6 = vpack.i.bf16 %v11748_v2, %v11650_v41  ;;  %16237 = vst [vmem:[#allocation80_spill] sm:$0xff] %v12129_v16  ;;  %v7545_v34 = vpop.f32.mrb[167].mxu0 }
 0x23b   : > { %8722 = vrot.lane.b32.xlu1 %v16232_v45, %s9382_s8  ;;  %v1778_v37 = vrot.slane %v11724_v27, 2  ;;  %v12116_v7 = vpop.permute.xlu1 %8447  ;;  %v8473_v62 = vpop.permute.xlu0 %8472  ;;  %v3895_v39 = vsel %vm3858_vm8, %v3816_v33, %v8394_v49  ;;  %v3896_v45 = vsel %vm3858_vm8, %v3817_v46, %v8395_v56  ;;  %v16236_v23 = vrot.slane %v11724_v27, 5 }
 0x23c   : > { %8757 = vrot.lane.b32.xlu0 %v16235_v6, %s9383_s9  ;;  %v2648_v13 = vrot.slane %v11944_v48, 4  ;;  %v8420_v41 = vunpack.i.h.bf16 %v11998_v17  ;;  %v8475_v47 = vunpack.i.h.bf16 %v8473_v62  ;;  %v8474_v6 = vunpack.i.l.bf16 %v8473_v62 }
 0x23d   : > { %v12123_v57 = vsel %vm3151_vm5, %v16236_v23, %v3273_v1  ;;  %v16238_v46 = vpack.i.bf16 %v11797_v3, %v11741_v11  ;;  %v4130_v33 = vsel %vm3858_vm8, %v4052_v42, %v8469_v54  ;;  %v4131_v56 = vsel %vm3858_vm8, %v4053_v36, %v8470_v53 }
 0x23e   : > { %v3974_v49 = vsel %vm3937_vm9, %v3895_v39, %v8434_v15  ;;  %v3975_v23 = vsel %vm3937_vm9, %v3896_v45, %v8435_v40  ;;  %v16239_v62 = vpack.i.bf16 %v11810_v35, %v11748_v2  ;;  %v4208_v9 = vsel %vm3937_vm9, %v4130_v33, %v8474_v6  ;;  %v16243_v33 = vld [vmem:[#allocation78_spill] sm:$0xff] }
 0x23f   : > { %8732 = vrot.lane.b32.xlu1 %v16238_v46, %s9384_s16  ;;  %v4209_v16 = vsel %vm3937_vm9, %v4131_v56, %v8475_v47  ;;  %v16240_v11 = vrot.slane %v11823_v0, 5  ;;  %v16241_v36 = vrot.slane %v11712_v51, 2  ;;  %v8419_v34 = vunpack.i.l.bf16 %v11998_v17  ;;  %v12156_v15 = vpop.permute.xlu1 %8452  ;;  %v12158_v2 = vpop.permute.xlu0 %8487 }
 0x240   : > { %8767 = vrot.lane.b32.xlu0 %v16239_v62, %s9382_s8  ;;  %v4305_v40 = vpack.c.bf16 %v4209_v16, %v4208_v9  ;;  %v16242_v42 = vrot.slane %v11823_v0, 4  ;;  %v8460_v45 = vunpack.i.h.bf16 %v12038_v32  ;;  %v8459_v47 = vunpack.i.l.bf16 %v12038_v32  ;;  %v12170_v46 = vpop.f32.mrb[168].mxu0 }
 0x241   : > { %v12148_v54 = vsel %vm3151_vm5, %v3273_v1, %v16240_v11  ;;  %v12153_v53 = vsel %vm1646_vm2, %v16241_v36, %v1778_v37  ;;  %v1035_v1 = vadd.f32 %v11529_v18, %v11750_v19  ;;  %v4304_v6 = vpack.c.bf16 %v3975_v23, %v3974_v49  ;;  %v7548_v49 = vpop.f32.mrb[169].mxu0 }
 0x242   : > { %v12163_v39 = vsel %vm2516_vm4, %v16242_v42, %v2648_v13  ;;  %v15811_v17 = vrot.slane %v11792_v21, 2  ;;  %v3819_v16 = vsel %vm3779_vm7, %v16243_v33, %v8420_v41  ;;  %4811 = vmatprep.mubr.bf16.mxu1 %v4305_v40  ;;  %v16244_v9 = vpack.i.bf16 %v11833_v63, %v11828_v31  ;;  %v16249_v49 = vld [vmem:[#allocation91_spill] sm:$0xff] }
 0x243   : > { %v12178_v56 = vmax.f32 %v1030_v14, 0.0  ;;  %v8425_v23 = vunpack.i.h.bf16 %v12036_v29  ;;  %v8424_v62 = vunpack.i.l.bf16 %v12036_v29  ;;  %v16246_v41 = vpack.i.bf16 %v11876_v50, %v11871_v61  ;;  %4812 = vmatmul.mubr.bf16.gmra.mrb[32].mxu1 %v4304_v6  ;;  %v16247_v14 = vld [vmem:[#allocation75_spill] sm:$0xff]  ;;  %v8463_v36 = vpop.permute.xlu1 %8462  ;;  %v8498_v40 = vpop.permute.xlu0 %8497  ;;  %v16250_v50 = vld [vmem:[#allocation93_spill] sm:$0xff] }
 0x244   : > { %8747 = vrot.lane.b32.xlu1 %v16244_v9, %s9383_s9  ;;  %v2650_v31 = vrot.slane %v12062_v30, 4  ;;  %v1390_v63 = vrot.slane %v11792_v21, 1  ;;  %v3818_v11 = vsel %vm3779_vm7, %v16247_v14, %v8419_v34  ;;  %v12196_v9 = vmax.f32 %v1035_v1, 0.0 }
 0x245   : > { %16245 = vst [vmem:[#allocation81_spill] sm:$0xff] %v12178_v56  ;;  %8772 = vrot.lane.b32.xlu0 %v16246_v41, %s9384_s16  ;;  %v4054_v61 = vsel %vm3779_vm7, %v16249_v49, %v8459_v47  ;;  %v4055_v6 = vsel %vm3779_vm7, %v16250_v50, %v8460_v45  ;;  %v12206_v41 = vsel %vm1646_vm2, %v1778_v37, %v15811_v17  ;;  %v8465_v32 = vunpack.i.h.bf16 %v8463_v36 }
 0x246   : > { %16248 = vst [vmem:[#allocation108_spill] sm:$0xff] %v12196_v9  ;;  %v1040_v34 = vadd.f32 %v11529_v18, %v11776_v24  ;;  %v8464_v42 = vunpack.i.l.bf16 %v8463_v36  ;;  %v8500_v1 = vunpack.i.h.bf16 %v8498_v40  ;;  %v8499_v19 = vunpack.i.l.bf16 %v8498_v40 }
 0x247   : > { %v16251_v29 = vpack.i.bf16 %v11881_v43, %v11797_v3  ;;  %v16252_v45 = vpack.i.bf16 %v11889_v58, %v11810_v35  ;;  %v3897_v37 = vsel %vm3858_vm8, %v3818_v11, %v8424_v62  ;;  %v3898_v47 = vsel %vm3858_vm8, %v3819_v16, %v8425_v23  ;;  %v8503_v49 = vpop.permute.xlu0 %8502 }
 0x248   : > { %v12221_v24 = vsel %vm2516_vm4, %v2648_v13, %v2650_v31  ;;  %v16253_v36 = vrot.slane %v11724_v27, 1  ;;  %v8450_v3 = vunpack.i.h.bf16 %v12116_v7  ;;  %v16254_v35 = vrot.slane %v11823_v0, 1 }
 0x249   : > { %8752 = vrot.lane.b32.xlu1 %v16251_v29, %s9382_s8  ;;  %8787 = vrot.lane.b32.xlu0 %v16252_v45, %s9383_s9  ;;  %v12229_v29 = vpop.permute.xlu1 %8477  ;;  %v3277_v16 = vrot.slane %v11944_v48, 5  ;;  %v8505_v23 = vunpack.i.h.bf16 %v8503_v49  ;;  %v8504_v62 = vunpack.i.l.bf16 %v8503_v49  ;;  %v1782_v11 = vrot.slane %v11823_v0, 2  ;;  %v9363_v49 = vld [vmem:[%s15617_s3 + $0x88] sm:$0xff]  }
 0x24a   : > { %v12226_v40 = vsel %vm1256_vm3, %v16253_v36, %v1390_v63  ;;  %v12234_v50 = vsel %vm1256_vm3, %v1390_v63, %v16254_v35  ;;  %v2652_v45 = vrot.slane %v12079_v10, 4  ;;  %v16255_v36 = vpack.i.bf16 %v11925_v12, %v11881_v43  ;;  %7552 = vmatpush3.bf16.msra.mxu1 %v9363_v49 }
 0x24b   : > { %v4132_v17 = vsel %vm3858_vm8, %v4054_v61, %v8499_v19  ;;  %v4133_v63 = vsel %vm3858_vm8, %v4055_v6, %v8500_v1  ;;  %v3976_v35 = vsel %vm3937_vm9, %v3897_v37, %v8464_v42  ;;  %v3977_v33 = vsel %vm3937_vm9, %v3898_v47, %v8465_v32  ;;  %v12264_v6 = vpop.permute.xlu0 %8517  ;;  %v16267_v19 = vld [vmem:[#allocation96_spill] sm:$0xff] }
 0x24c   : > { %v16256_v13 = vpack.i.bf16 %v11949_v8, %v11889_v58  ;;  %v4210_v43 = vsel %vm3937_vm9, %v4132_v17, %v8504_v62  ;;  %v8449_v32 = vunpack.i.l.bf16 %v12116_v7  ;;  %v16257_v17 = vrot.slane %v11823_v0, 5 }
 0x24d   : > { %8762 = vrot.lane.b32.xlu1 %v16255_v36, %s9384_s16  ;;  %v4211_v36 = vsel %vm3937_vm9, %v4133_v63, %v8505_v23  ;;  %v12262_v61 = vpop.permute.xlu1 %8482  ;;  %v8489_v47 = vunpack.i.l.bf16 %v12158_v2  ;;  %v16258_v23 = vrot.slane %v12062_v30, 5  ;;  %v15812_v62 = vrot.slane %v11944_v48, 2  ;;  %v16259_v63 = vld [vmem:[#allocation82_spill] sm:$0xff] }
 0x24e   : > { %8797 = vrot.lane.b32.xlu0 %v16256_v13, %s9382_s8  ;;  %v4308_v1 = vpack.c.bf16 %v4211_v36, %v4210_v43  ;;  %v12271_v37 = vsel %vm3151_vm5, %v16257_v17, %v3277_v16  ;;  %v4307_v13 = vpack.c.bf16 %v3977_v33, %v3976_v35  ;;  %v3821_v43 = vsel %vm3779_vm7, %v16259_v63, %v8450_v3 }
 0x24f   : > { %v12277_v7 = vsel %vm3151_vm5, %v3277_v16, %v16258_v23  ;;  %v16260_v36 = vpack.i.bf16 %v11990_v52, %v11973_v5  ;;  %v12286_v49 = vmax.f32 %v1040_v34, 0.0  ;;  %v16262_v33 = vrot.slane %v11792_v21, 2  ;;  %v16264_v52 = vld [vmem:[#allocation112_spill] sm:$0xff]  ;;  %v16265_v23 = vld [vmem:[#allocation79_spill] sm:$0xff] }
 0x250   : > { %4819 = vmatprep.mubr.bf16.mxu1 %v4308_v1  ;;  %v12294_v16 = vsel %vm2516_vm4, %v2650_v31, %v2652_v45  ;;  %v8455_v17 = vunpack.i.h.bf16 %v12156_v15  ;;  %v8454_v3 = vunpack.i.l.bf16 %v12156_v15  ;;  %v8490_v1 = vunpack.i.h.bf16 %v12158_v2  ;;  %v16266_v2 = vld [vmem:[#allocation113_spill] sm:$0xff] }
 0x251   : > { %8777 = vrot.lane.b32.xlu1 %v16260_v36, %s9383_s9  ;;  %16261 = vst [vmem:[#allocation83_spill] sm:$0xff] %v12286_v49  ;;  %v12291_v35 = vsel %vm1646_vm2, %v16262_v33, %v1782_v11  ;;  %v16263_v5 = vpack.i.bf16 %v12003_v44, %v11995_v22  ;;  %4820 = vmatmul.mubr.bf16.gmra.mrb[36].mxu1 %v4307_v13  ;;  %v8493_v31 = vpop.permute.xlu1 %8492  ;;  %v8528_v33 = vpop.permute.xlu0 %8527  ;;  %v2378_v42 = vrot.slane %v16266_v2, 3  ;;  %v8480_v21 = vunpack.i.h.bf16 %v12229_v29 }
 0x252   : > { %v1045_v34 = vadd.f32 %v11529_v18, %v16264_v52  ;;  %v3820_v36 = vsel %vm3779_vm7, %v16265_v23, %v8449_v32  ;;  %v4056_v22 = vsel %vm3779_vm7, %v16267_v19, %v8489_v47  ;;  %v12320_v32 = vsel %vm1646_vm2, %v1782_v11, %v15812_v62  ;;  %v16269_v19 = vld [vmem:[#allocation98_spill] sm:$0xff] }
 0x253   : > { %8802 = vrot.lane.b32.xlu0 %v16263_v5, %s9384_s16  ;;  %v8495_v5 = vunpack.i.h.bf16 %v8493_v31  ;;  %v8494_v52 = vunpack.i.l.bf16 %v8493_v31  ;;  %v8530_v58 = vunpack.i.h.bf16 %v8528_v33  ;;  %v8529_v15 = vunpack.i.l.bf16 %v8528_v33 }
 0x254   : > { %v16268_v63 = vpack.i.bf16 %v12008_v4, %v11925_v12  ;;  %v4057_v47 = vsel %vm3779_vm7, %v16269_v19, %v8490_v1  ;;  %v16270_v13 = vpack.i.bf16 %v12013_v59, %v11949_v8  ;;  %v3899_v11 = vsel %vm3858_vm8, %v3820_v36, %v8454_v3  ;;  %v16273_v19 = vld [vmem:[#allocation106_spill] sm:$0xff] }
 0x255   : > { %v3900_v44 = vsel %vm3858_vm8, %v3821_v43, %v8455_v17  ;;  %v12334_v31 = vmax.f32 %v1045_v34, 0.0  ;;  %v12336_v33 = vpop.permute.xlu1 %8507  ;;  %v8533_v62 = vpop.permute.xlu0 %8532  ;;  %v16274_v8 = vrot.slane %v16273_v19, 3  ;;  %v1394_v43 = vrot.slane %v11944_v48, 1  ;;  %v16275_v34 = vld [vmem:[#allocation115_spill] sm:$0xff] }
 0x256   : > { %8782 = vrot.lane.b32.xlu1 %v16268_v63, %s9382_s8  ;;  %v16272_v63 = vrot.slane %v12178_v56, 4  ;;  %v8535_v17 = vunpack.i.h.bf16 %v8533_v62  ;;  %v8534_v3 = vunpack.i.l.bf16 %v8533_v62  ;;  %v15816_v23 = vrot.slane %v12062_v30, 1 }
 0x257   : > { %8817 = vrot.lane.b32.xlu0 %v16270_v13, %s9383_s9  ;;  %16271 = vst [vmem:[#allocation85_spill] sm:$0xff] %v12334_v31  ;;  %v12348_v13 = vsel %vm2280_vm6, %v16274_v8, %v2378_v42  ;;  %v16276_v12 = vpack.i.bf16 %v12049_v38, %v12008_v4  ;;  %v3978_v8 = vsel %vm3937_vm9, %v3899_v11, %v8494_v52  ;;  %v8519_v11 = vunpack.i.l.bf16 %v12264_v6 }
 0x258   : > { %v12343_v1 = vsel %vm2516_vm4, %v2652_v45, %v16272_v63  ;;  %v4134_v45 = vsel %vm3858_vm8, %v4056_v22, %v8529_v15  ;;  %v4135_v63 = vsel %vm3858_vm8, %v4057_v47, %v8530_v58  ;;  %v3979_v14 = vsel %vm3937_vm9, %v3900_v44, %v8495_v5 }
 0x259   : > { %v16277_v62 = vpack.i.bf16 %v12069_v55, %v12013_v59  ;;  %v4212_v36 = vsel %vm3937_vm9, %v4134_v45, %v8534_v3  ;;  %v4213_v4 = vsel %vm3937_vm9, %v4135_v63, %v8535_v17  ;;  %v8479_v58 = vunpack.i.l.bf16 %v12229_v29  ;;  %v12371_v22 = vpop.permute.xlu1 %8512  ;;  %v12373_v52 = vpop.permute.xlu0 %8547 }
 0x25a   : > { %8792 = vrot.lane.b32.xlu1 %v16276_v12, %s9384_s16  ;;  %v16278_v12 = vld [vmem:[#allocation74_spill] sm:$0xff]  ;;  %v4311_v44 = vpack.c.bf16 %v4213_v4, %v4212_v36  ;;  %v16279_v5 = vrot.slane %v11823_v0, 1  ;;  %v3281_v59 = vrot.slane %v12079_v10, 5  ;;  %v4310_v17 = vpack.c.bf16 %v3979_v14, %v3978_v8 }
 0x25b   : > { %8827 = vrot.lane.b32.xlu0 %v16277_v62, %s9382_s8  ;;  %v1050_v15 = vadd.f32 %v11529_v18, %v16278_v12  ;;  %v15815_v3 = vrot.slane %v12178_v56, 5  ;;  %v1786_v18 = vrot.slane %v12062_v30, 2  ;;  %v8520_v29 = vunpack.i.h.bf16 %v12264_v6  ;;  %v16281_v8 = vld [vmem:[#allocation86_spill] sm:$0xff]  ;;  %v16285_v12 = vld [vmem:[#allocation84_spill] sm:$0xff] }
 0x25c   : > { %v12378_v47 = vsel %vm1256_vm3, %v16279_v5, %v1394_v43  ;;  %4827 = vmatprep.mubr.bf16.mxu1 %v4311_v44  ;;  %v16280_v36 = vpack.i.bf16 %v12098_v25, %v12093_v60  ;;  %v12392_v45 = vsel %vm1256_vm3, %v1394_v43, %v15816_v23  ;;  %v2656_v63 = vrot.slane %v12196_v9, 4  ;;  %v16289_v60 = vld [vmem:[#allocation103_spill] sm:$0xff] }
 0x25d   : > { %v15817_v14 = vrot.slane %v12079_v10, 2  ;;  %v3823_v62 = vsel %vm3779_vm7, %v16281_v8, %v8480_v21  ;;  %v16282_v6 = vpack.i.bf16 %v12148_v54, %v12123_v57  ;;  %4828 = vmatmul.mubr.bf16.gmra.mrb[40].mxu1 %v4310_v17  ;;  %v16283_v25 = vrot.slane %v16275_v34, 3  ;;  %v8523_v57 = vpop.permute.xlu1 %8522  ;;  %v8558_v54 = vpop.permute.xlu0 %8557 }
 0x25e   : > { %8807 = vrot.lane.b32.xlu1 %v16280_v36, %s9383_s9  ;;  %v12409_v4 = vmax.f32 %v1050_v15, 0.0  ;;  %v3822_v44 = vsel %vm3779_vm7, %v16285_v12, %v8479_v58  ;;  %v8485_v21 = vunpack.i.h.bf16 %v12262_v61  ;;  %v8484_v5 = vunpack.i.l.bf16 %v12262_v61 }
 0x25f   : > { %8832 = vrot.lane.b32.xlu0 %v16282_v6, %s9384_s16  ;;  %v12407_v43 = vsel %vm2280_vm6, %v2378_v42, %v16283_v25  ;;  %v16286_v17 = vrot.slane %v12062_v30, 5  ;;  %v16287_v6 = vld [vmem:[#allocation100_spill] sm:$0xff]  ;;  %v12427_v58 = vsel %vm3151_vm5, %v3281_v59, %v15815_v3  ;;  %v16288_v61 = vrot.slane %v11944_v48, 2 }
 0x260   : > { %16284 = vst [vmem:[#allocation119_spill] sm:$0xff] %v12409_v4  ;;  %v4058_v42 = vsel %vm3779_vm7, %v16287_v6, %v8519_v11  ;;  %v16290_v11 = vpack.i.bf16 %v12153_v53, %v12049_v38  ;;  %v16291_v6 = vrot.slane %v12178_v56, 4  ;;  %v8525_v3 = vunpack.i.h.bf16 %v8523_v57 }
 0x261   : > { %v12418_v36 = vsel %vm3151_vm5, %v16286_v17, %v3281_v59  ;;  %v12432_v25 = vsel %vm1646_vm2, %v16288_v61, %v1786_v18  ;;  %v4059_v17 = vsel %vm3779_vm7, %v16289_v60, %v8520_v29  ;;  %v12448_v59 = vsel %vm1646_vm2, %v1786_v18, %v15817_v14  ;;  %v8563_v61 = vpop.permute.xlu0 %8562 }
 0x262   : > { %8812 = vrot.lane.b32.xlu1 %v16290_v11, %s9382_s8  ;;  %v12443_v15 = vsel %vm2516_vm4, %v16291_v6, %v2656_v63  ;;  %v8524_v23 = vunpack.i.l.bf16 %v8523_v57  ;;  %v8560_v29 = vunpack.i.h.bf16 %v8558_v54  ;;  %v8559_v60 = vunpack.i.l.bf16 %v8558_v54  ;;  %v12455_v11 = vpop.permute.xlu1 %8537 }
 0x263   : > { %v16292_v38 = vpack.i.bf16 %v12163_v39, %v12069_v55  ;;  %v3901_v6 = vsel %vm3858_vm8, %v3822_v44, %v8484_v5  ;;  %v3902_v8 = vsel %vm3858_vm8, %v3823_v62, %v8485_v21  ;;  %v8510_v57 = vunpack.i.h.bf16 %v12336_v33  ;;  %v12470_v44 = vld [vmem:[%s15616_s2] ss:$0 sm:$0xff]  ;;  %v16293_v62 = vld [vmem:[#allocation120_spill] sm:$0xff] }
 0x264   : > { %v8509_v54 = vunpack.i.l.bf16 %v12336_v33  ;;  %v1055_v21 = vadd.f32 %v12470_v44, %v16293_v62  ;;  %v8565_v5 = vunpack.i.h.bf16 %v8563_v61  ;;  %v16294_v14 = vpack.i.bf16 %v12206_v41, %v12153_v53 }
 0x265   : > { %8847 = vrot.lane.b32.xlu0 %v16292_v38, %s9383_s9  ;;  %v8564_v38 = vunpack.i.l.bf16 %v8563_v61  ;;  %v16295_v55 = vrot.slane %v12286_v49, 4  ;;  %v16296_v12 = vpack.i.bf16 %v12221_v24, %v12163_v39  ;;  %v4136_v61 = vsel %vm3858_vm8, %v4058_v42, %v8559_v60  ;;  %v12499_v39 = vpop.permute.xlu0 %8577 }
 0x266   : > { %8822 = vrot.lane.b32.xlu1 %v16294_v14, %s9384_s16  ;;  %v4137_v62 = vsel %vm3858_vm8, %v4059_v17, %v8560_v29  ;;  %v3980_v53 = vsel %vm3937_vm9, %v3901_v6, %v8524_v23  ;;  %v3981_v14 = vsel %vm3937_vm9, %v3902_v8, %v8525_v3  ;;  %v12493_v48 = vpop.permute.xlu1 %8542  ;;  %v1398_v27 = vrot.slane %v12079_v10, 1  ;;  %v16299_v6 = vld [vmem:[#allocation121_spill] sm:$0xff] }
 0x267   : > { %v12483_v18 = vsel %vm2516_vm4, %v2656_v63, %v16295_v55  ;;  %v4214_v33 = vsel %vm3937_vm9, %v4136_v61, %v8564_v38  ;;  %v4215_v63 = vsel %vm3937_vm9, %v4137_v62, %v8565_v5  ;;  %v16297_v55 = vld [vmem:[#allocation118_spill] sm:$0xff]  ;;  %v15824_v42 = vrot.slane %v12178_v56, 1  ;;  %v16301_v61 = vld [vmem:[#allocation87_spill] sm:$0xff] }
 0x268   : > { %v2382_v0 = vrot.slane %v16297_v55, 3  ;;  %v3285_v17 = vrot.slane %v12196_v9, 5  ;;  %v15825_v23 = vrot.slane %v12286_v49, 5  ;;  %v8550_v3 = vunpack.i.h.bf16 %v12373_v52  ;;  %v16300_v38 = vld [vmem:[#allocation90_spill] sm:$0xff] }
 0x269   : > { %8857 = vrot.lane.b32.xlu0 %v16296_v12, %s9382_s8  ;;  %v4314_v12 = vpack.c.bf16 %v4215_v63, %v4214_v33  ;;  %v8549_v8 = vunpack.i.l.bf16 %v12373_v52  ;;  %v16298_v29 = vpack.i.bf16 %v12234_v50, %v12226_v40  ;;  %v4313_v60 = vpack.c.bf16 %v3981_v14, %v3980_v53  ;;  %v16308_v40 = vld [vmem:[#allocation114_spill] sm:$0xff] }
 0x26a   : > { %v3825_v33 = vsel %vm3779_vm7, %v16300_v38, %v8510_v57  ;;  %v3824_v62 = vsel %vm3779_vm7, %v16301_v61, %v8509_v54  ;;  %v16302_v63 = vpack.i.bf16 %v12277_v7, %v12271_v37  ;;  %v12519_v52 = vmax.f32 %v1055_v21, 0.0  ;;  %v8553_v57 = vpop.permute.xlu1 %8552  ;;  %v8588_v7 = vpop.permute.xlu0 %8587 }
 0x26b   : > { %8837 = vrot.lane.b32.xlu1 %v16298_v29, %s9383_s9  ;;  %4835 = vmatprep.mubr.bf16.mxu1 %v4314_v12  ;;  %v8515_v50 = vunpack.i.h.bf16 %v12371_v22  ;;  %v8514_v53 = vunpack.i.l.bf16 %v12371_v22  ;;  %v16304_v14 = vrot.slane %v16275_v34, 3  ;;  %v16305_v12 = vrot.slane %v12062_v30, 1  ;;  %v16315_v30 = vld [vmem:[#allocation77_spill] sm:$0xff] }
 0x26c   : > { %16303 = vst [vmem:[#allocation88_spill] sm:$0xff] %v12519_v52  ;;  %4836 = vmatmul.mubr.bf16.gmra.mrb[44].mxu1 %v4313_v60  ;;  %v12538_v21 = vsel %vm1256_vm3, %v1398_v27, %v15824_v42  ;;  %v16306_v22 = vrot.slane %v12178_v56, 5  ;;  %v12548_v60 = vsel %vm3151_vm5, %v3285_v17, %v15825_v23  ;;  %v4061_v5 = vsel %vm3779_vm7, %v16308_v40, %v8550_v3 }
 0x26d   : > { %8862 = vrot.lane.b32.xlu0 %v16302_v63, %s9384_s16  ;;  %v12528_v54 = vsel %vm2280_vm6, %v16304_v14, %v2382_v0  ;;  %v12533_v37 = vsel %vm1256_vm3, %v16305_v12, %v1398_v27  ;;  %v1790_v63 = vrot.slane %v12178_v56, 2  ;;  %v16307_v14 = vld [vmem:[#allocation109_spill] sm:$0xff]  ;;  %v16309_v27 = vpack.i.bf16 %v12291_v35, %v12206_v41 }
 0x26e   : > { %v12543_v29 = vsel %vm3151_vm5, %v16306_v22, %v3285_v17  ;;  %v4060_v12 = vsel %vm3779_vm7, %v16307_v14, %v8549_v8  ;;  %v16310_v22 = vrot.slane %v16299_v6, 3  ;;  %v1060_v17 = vadd.f32 %v12470_v44, %v11934_v20  ;;  %v12570_v40 = vpop.permute.xlu1 %8567 }
 0x26f   : > { %8842 = vrot.lane.b32.xlu1 %v16309_v27, %s9382_s8  ;;  %v8555_v23 = vunpack.i.h.bf16 %v8553_v57  ;;  %v8554_v38 = vunpack.i.l.bf16 %v8553_v57  ;;  %v8590_v61 = vunpack.i.h.bf16 %v8588_v7  ;;  %v8589_v8 = vunpack.i.l.bf16 %v8588_v7  ;;  %v8593_v7 = vpop.permute.xlu0 %8592 }
 0x270   : > { %v12562_v42 = vsel %vm2280_vm6, %v2382_v0, %v16310_v22  ;;  %v16311_v3 = vpack.i.bf16 %v12294_v16, %v12221_v24  ;;  %v3903_v41 = vsel %vm3858_vm8, %v3824_v62, %v8514_v53  ;;  %v3904_v14 = vsel %vm3858_vm8, %v3825_v33, %v8515_v50 }
 0x271   : > { %v8540_v57 = vunpack.i.h.bf16 %v12455_v11  ;;  %v16312_v27 = vrot.slane %v12079_v10, 2  ;;  %v2660_v22 = vrot.slane %v12334_v31, 4  ;;  %v8539_v33 = vunpack.i.l.bf16 %v12455_v11 }
 0x272   : > { %8877 = vrot.lane.b32.xlu0 %v16311_v3, %s9383_s9  ;;  %v8595_v50 = vunpack.i.h.bf16 %v8593_v7  ;;  %v8594_v53 = vunpack.i.l.bf16 %v8593_v7  ;;  %v16313_v3 = vpack.i.bf16 %v12320_v32, %v12291_v35  ;;  %v4138_v0 = vsel %vm3858_vm8, %v4060_v12, %v8589_v8  ;;  %v12600_v10 = vpop.permute.xlu1 %8572 }
 0x273   : > { %v12582_v24 = vsel %vm1646_vm2, %v16312_v27, %v1790_v63  ;;  %v16314_v27 = vpack.i.bf16 %v12343_v1, %v12294_v16  ;;  %v4139_v62 = vsel %vm3858_vm8, %v4061_v5, %v8590_v61  ;;  %v3982_v11 = vsel %vm3937_vm9, %v3903_v41, %v8554_v38  ;;  %v12609_v8 = vpop.permute.xlu0 %8607 }
 0x274   : > { %8852 = vrot.lane.b32.xlu1 %v16313_v3, %s9384_s16  ;;  %v3983_v7 = vsel %vm3937_vm9, %v3904_v14, %v8555_v23  ;;  %v4216_v35 = vsel %vm3937_vm9, %v4138_v0, %v8594_v53  ;;  %v4217_v3 = vsel %vm3937_vm9, %v4139_v62, %v8595_v50  ;;  %v1065_v16 = vadd.f32 %v12470_v44, %v16315_v30  ;;  %v16319_v53 = vld [vmem:[#allocation94_spill] sm:$0xff] }
 0x275   : > { %v8544_v12 = vunpack.i.l.bf16 %v12493_v48  ;;  %v4317_v5 = vpack.c.bf16 %v4217_v3, %v4216_v35  ;;  %v16316_v38 = vrot.slane %v12286_v49, 4  ;;  %v16317_v61 = vrot.slane %v12196_v9, 2  ;;  %v16320_v35 = vld [vmem:[#allocation92_spill] sm:$0xff] }
 0x276   : > { %8887 = vrot.lane.b32.xlu0 %v16314_v27, %s9382_s8  ;;  %v8545_v14 = vunpack.i.h.bf16 %v12493_v48  ;;  %v8580_v0 = vunpack.i.h.bf16 %v12499_v39  ;;  %v8579_v30 = vunpack.i.l.bf16 %v12499_v39  ;;  %v16318_v62 = vpack.i.bf16 %v12392_v45, %v12378_v47  ;;  %v8583_v45 = vpop.permute.xlu1 %8582 }
 0x277   : > { %v12614_v23 = vsel %vm2516_vm4, %v16316_v38, %v2660_v22  ;;  %v12619_v41 = vsel %vm1646_vm2, %v1790_v63, %v16317_v61  ;;  %v4316_v50 = vpack.c.bf16 %v3983_v7, %v3982_v11  ;;  %v3827_v27 = vsel %vm3779_vm7, %v16319_v53, %v8540_v57  ;;  %4843 = vmatprep.mubr.bf16.mxu1 %v4317_v5  ;;  %v16324_v11 = vld [vmem:[#allocation123_spill] sm:$0xff]  ;;  %v16325_v7 = vld [vmem:[#allocation124_spill] sm:$0xff] }
 0x278   : > { %8867 = vrot.lane.b32.xlu1 %v16318_v62, %s9383_s9  ;;  %v3826_v3 = vsel %vm3779_vm7, %v16320_v35, %v8539_v33  ;;  %v16321_v48 = vpack.i.bf16 %v12427_v58, %v12418_v36  ;;  %v12636_v63 = vmax.f32 %v1060_v17, 0.0  ;;  %v16323_v39 = vrot.slane %v12409_v4, 4  ;;  %v8618_v36 = vpop.permute.xlu0 %8617  ;;  %v16327_v62 = vld [vmem:[#allocation117_spill] sm:$0xff] }
 0x279   : > { %4844 = vmatmul.mubr.bf16.gmra.mrb[48].mxu1 %v4316_v50  ;;  %v2386_v33 = vrot.slane %v16324_v11, 3  ;;  %v15830_v5 = vrot.slane %v16325_v7, 3  ;;  %v1402_v38 = vrot.slane %v12196_v9, 1  ;;  %v3905_v58 = vsel %vm3858_vm8, %v3826_v3, %v8544_v12 }
 0x27a   : > { %8892 = vrot.lane.b32.xlu0 %v16321_v48, %s9384_s16  ;;  %16322 = vst [vmem:[#allocation89_spill] sm:$0xff] %v12636_v63  ;;  %v12641_v47 = vsel %vm2516_vm4, %v2660_v22, %v16323_v39  ;;  %v12649_v17 = vmax.f32 %v1065_v16, 0.0  ;;  %v4062_v50 = vsel %vm3779_vm7, %v16327_v62, %v8579_v30  ;;  %v16328_v48 = vld [vmem:[#allocation122_spill] sm:$0xff]  ;;  %v16329_v57 = vpack.i.bf16 %v12432_v25, %v12320_v32 }
 0x27b   : > { %v4063_v39 = vsel %vm3779_vm7, %v16328_v48, %v8580_v0  ;;  %v3906_v12 = vsel %vm3858_vm8, %v3827_v27, %v8545_v14  ;;  %v8585_v3 = vunpack.i.h.bf16 %v8583_v45  ;;  %v8584_v22 = vunpack.i.l.bf16 %v8583_v45  ;;  %v12669_v0 = vpop.permute.xlu1 %8597  ;;  %v16332_v27 = vld [vmem:[#allocation104_spill] sm:$0xff] }
 0x27c   : > { %16326 = vst [vmem:[#allocation91_spill] sm:$0xff] %v12649_v17  ;;  %8872 = vrot.lane.b32.xlu1 %v16329_v57, %s9382_s8  ;;  %v8620_v20 = vunpack.i.h.bf16 %v8618_v36  ;;  %v8619_v61 = vunpack.i.l.bf16 %v8618_v36  ;;  %v16330_v30 = vpack.i.bf16 %v12443_v15, %v12343_v1  ;;  %v16331_v62 = vrot.slane %v16299_v6, 3  ;;  %v8623_v48 = vpop.permute.xlu0 %8622 }
 0x27d   : > { %v12679_v14 = vsel %vm2280_vm6, %v2386_v33, %v15830_v5  ;;  %v1070_v45 = vadd.f32 %v12470_v44, %v16332_v27  ;;  %v16333_v57 = vrot.slane %v12178_v56, 1  ;;  %v8570_v36 = vunpack.i.h.bf16 %v12570_v40 }
 0x27e   : > { %8907 = vrot.lane.b32.xlu0 %v16330_v30, %s9383_s9  ;;  %v12674_v32 = vsel %vm2280_vm6, %v16331_v62, %v2386_v33  ;;  %v16334_v30 = vrot.slane %v12286_v49, 1  ;;  %v3289_v16 = vrot.slane %v12334_v31, 5  ;;  %v8625_v5 = vunpack.i.h.bf16 %v8623_v48 }
 0x27f   : > { %v12686_v1 = vsel %vm1256_vm3, %v16333_v57, %v1402_v38  ;;  %v8624_v53 = vunpack.i.l.bf16 %v8623_v48  ;;  %v16335_v27 = vpack.i.bf16 %v12448_v59, %v12432_v25  ;;  %v1794_v57 = vrot.slane %v12286_v49, 2 }
 0x280   : > { %v12692_v62 = vsel %vm1256_vm3, %v1402_v38, %v16334_v30  ;;  %v2664_v35 = vrot.slane %v12519_v52, 4  ;;  %v16336_v38 = vpack.i.bf16 %v12483_v18, %v12443_v15  ;;  %v4140_v30 = vsel %vm3858_vm8, %v4062_v50, %v8619_v61  ;;  %v12718_v61 = vpop.permute.xlu0 %8637 }
 0x281   : > { %8882 = vrot.lane.b32.xlu1 %v16335_v27, %s9384_s16  ;;  %v4141_v33 = vsel %vm3858_vm8, %v4063_v39, %v8620_v20  ;;  %v3984_v48 = vsel %vm3937_vm9, %v3905_v58, %v8584_v22  ;;  %v3985_v56 = vsel %vm3937_vm9, %v3906_v12, %v8585_v3  ;;  %v8569_v25 = vunpack.i.l.bf16 %v12570_v40  ;;  %v12711_v27 = vpop.permute.xlu1 %8602  ;;  %v16341_v12 = vld [vmem:[#allocation99_spill] sm:$0xff] }
 0x282   : > { %8917 = vrot.lane.b32.xlu0 %v16336_v38, %s9382_s8  ;;  %v4218_v51 = vsel %vm3937_vm9, %v4140_v30, %v8624_v53  ;;  %v4219_v11 = vsel %vm3937_vm9, %v4141_v33, %v8625_v5  ;;  %v1075_v15 = vadd.f32 %v12470_v44, %v12053_v26  ;;  %v8574_v38 = vunpack.i.l.bf16 %v12600_v10  ;;  %v16345_v33 = vld [vmem:[#allocation95_spill] sm:$0xff] }
 0x283   : > { %v4320_v20 = vpack.c.bf16 %v4219_v11, %v4218_v51  ;;  %v16337_v58 = vrot.slane %v12286_v49, 5  ;;  %v16338_v40 = vrot.slane %v12409_v4, 5  ;;  %v8575_v53 = vunpack.i.h.bf16 %v12600_v10 }
 0x284   : > { %v16339_v26 = vpack.i.bf16 %v12538_v21, %v12533_v37  ;;  %v4319_v5 = vpack.c.bf16 %v3985_v56, %v3984_v48  ;;  %v16340_v51 = vrot.slane %v12196_v9, 2  ;;  %v1796_v39 = vrot.slane %v12334_v31, 2 }
 0x285   : > { %v12723_v22 = vsel %vm3151_vm5, %v16337_v58, %v3289_v16  ;;  %v12728_v50 = vsel %vm3151_vm5, %v3289_v16, %v16338_v40  ;;  %v3829_v3 = vsel %vm3779_vm7, %v16341_v12, %v8570_v36  ;;  %4851 = vmatprep.mubr.bf16.mxu1 %v4320_v20  ;;  %v16342_v10 = vpack.i.bf16 %v12548_v60, %v12543_v29  ;;  %v8613_v29 = vpop.permute.xlu1 %8612 }
 0x286   : > { %8897 = vrot.lane.b32.xlu1 %v16339_v26, %s9383_s9  ;;  %v12738_v11 = vsel %vm1646_vm2, %v16340_v51, %v1794_v57  ;;  %v12747_v16 = vmax.f32 %v1070_v45, 0.0  ;;  %v8926_v56 = vpack.i.bf16 %v12692_v62, %v12686_v1  ;;  %v16344_v37 = vrot.slane %v12409_v4, 4  ;;  %4852 = vmatmul.mubr.bf16.gmra.mrb[52].mxu1 %v4319_v5  ;;  %v8648_v45 = vpop.permute.xlu0 %8647 }
 0x287   : > { %8922 = vrot.lane.b32.xlu0 %v16342_v10, %s9384_s16  ;;  %v3828_v30 = vsel %vm3779_vm7, %v16345_v33, %v8569_v25  ;;  %v8610_v36 = vunpack.i.h.bf16 %v12609_v8  ;;  %v8609_v48 = vunpack.i.l.bf16 %v12609_v8  ;;  %v12760_v60 = vmax.f32 %v1075_v15, 0.0 }
 0x288   : > { %16343 = vst [vmem:[#allocation93_spill] sm:$0xff] %v12747_v16  ;;  %v12754_v21 = vsel %vm2516_vm4, %v16344_v37, %v2664_v35  ;;  %v8951_v1 = vpack.i.bf16 %v12728_v50, %v12723_v22  ;;  %v3907_v62 = vsel %vm3858_vm8, %v3828_v30, %v8574_v38  ;;  %v8931_v20 = vpack.i.bf16 %v12738_v11, %v12619_v41 }
 0x289   : > { %16346 = vst [vmem:[#allocation112_spill] sm:$0xff] %v12760_v60  ;;  %v2666_v58 = vrot.slane %v12636_v63, 4  ;;  %v16347_v25 = vpack.i.bf16 %v12582_v24, %v12448_v59  ;;  %v3908_v8 = vsel %vm3858_vm8, %v3829_v3, %v8575_v53  ;;  %v8966_v15 = vpack.i.bf16 %v12754_v21, %v12641_v47 }
 0x28a   : > { %v12778_v22 = vsel %vm1646_vm2, %v1794_v57, %v1796_v39  ;;  %v1080_v38 = vadd.f32 %v12470_v44, %v12100_v28  ;;  %v8615_v40 = vunpack.i.h.bf16 %v8613_v29  ;;  %v8614_v50 = vunpack.i.l.bf16 %v8613_v29  ;;  %v12790_v57 = vpop.permute.xlu1 %8627  ;;  %v8653_v30 = vpop.permute.xlu0 %8652 }
 0x28b   : > { %8902 = vrot.lane.b32.xlu1 %v16347_v25, %s9382_s8  ;;  %v8650_v26 = vunpack.i.h.bf16 %v8648_v45  ;;  %v8649_v5 = vunpack.i.l.bf16 %v8648_v45  ;;  %v16348_v59 = vpack.i.bf16 %v12614_v23, %v12483_v18  ;;  %v4064_v53 = vsel %vm3779_vm7, %v12348_v13, %v8609_v48 }
 0x28c   : > { %v4065_v51 = vsel %vm3779_vm7, %v12407_v43, %v8610_v36  ;;  %v8600_v10 = vunpack.i.h.bf16 %v12669_v0  ;;  %v8599_v37 = vunpack.i.l.bf16 %v12669_v0  ;;  %v8941_v18 = vpack.i.bf16 %v12778_v22, %v12738_v11 }
 0x28d   : > { %8937 = vrot.lane.b32.xlu0 %v16348_v59, %s9383_s9  ;;  %v12801_v13 = vsel %vm2516_vm4, %v2664_v35, %v2666_v58  ;;  %v8655_v43 = vunpack.i.h.bf16 %v8653_v30  ;;  %v8654_v36 = vunpack.i.l.bf16 %v8653_v30  ;;  %v16349_v48 = vpack.i.bf16 %v12619_v41, %v12582_v24 }
 0x28e   : > { %v12807_v29 = vmax.f32 %v1080_v38, 0.0  ;;  %v1406_v0 = vrot.slane %v12334_v31, 1  ;;  %v16351_v45 = vpack.i.bf16 %v12641_v47, %v12614_v23  ;;  %v4142_v25 = vsel %vm3858_vm8, %v4064_v53, %v8649_v5  ;;  %v12818_v28 = vpop.permute.xlu1 %8632 }
 0x28f   : > { %8912 = vrot.lane.b32.xlu1 %v16349_v48, %s9384_s16  ;;  %v4143_v35 = vsel %vm3858_vm8, %v4065_v51, %v8650_v26  ;;  %v3986_v59 = vsel %vm3937_vm9, %v3907_v62, %v8614_v50  ;;  %v3987_v30 = vsel %vm3937_vm9, %v3908_v8, %v8615_v40  ;;  %v4220_v24 = vsel %vm3937_vm9, %v4142_v25, %v8654_v36 }
 0x290   : > { %16350 = vst [vmem:[#allocation96_spill] sm:$0xff] %v12807_v29  ;;  %v4221_v38 = vsel %vm3937_vm9, %v4143_v35, %v8655_v43  ;;  %v15836_v48 = vrot.slane %v12409_v4, 1  ;;  %v3293_v3 = vrot.slane %v12519_v52, 5  ;;  %v8604_v23 = vunpack.i.l.bf16 %v12711_v27  ;;  %v16352_v43 = vld [vmem:[#allocation101_spill] sm:$0xff] }
 0x291   : > { %8947 = vrot.lane.b32.xlu0 %v16351_v45, %s9382_s8  ;;  %v12825_v45 = vpop.permute.xlu0 %8667  ;;  %v4323_v5 = vpack.c.bf16 %v4221_v38, %v4220_v24  ;;  %v8981_v62 = vpack.i.bf16 %v12801_v13, %v12754_v21  ;;  %v15835_v8 = vrot.slane %v12636_v63, 5  ;;  %v8640_v40 = vunpack.i.h.bf16 %v12718_v61 }
 0x292   : > { %v8639_v50 = vunpack.i.l.bf16 %v12718_v61  ;;  %v4322_v26 = vpack.c.bf16 %v3987_v30, %v3986_v59  ;;  %v1798_v53 = vrot.slane %v12409_v4, 2  ;;  %v3831_v51 = vsel %vm3779_vm7, %v16273_v19, %v8600_v10 }
 0x293   : > { %8927 = vrot.lane.b32.xlu1 %v8926_v56, %s9383_s9  ;;  %v3830_v36 = vsel %vm3779_vm7, %v16352_v43, %v8599_v37  ;;  %v8605_v25 = vunpack.i.h.bf16 %v12711_v27  ;;  %4859 = vmatprep.mubr.bf16.mxu1 %v4323_v5  ;;  %v16353_v35 = vrot.slane %v12286_v49, 1  ;;  %v8643_v56 = vpop.permute.xlu1 %8642  ;;  %v1409_v10 = vsel %vm1256_vm3, %v1406_v0, %v15836_v48 }
 0x294   : > { %4860 = vmatmul.mubr.bf16.gmra.mrb[56].mxu1 %v4322_v26  ;;  %v16354_v37 = vrot.slane %v12409_v4, 5  ;;  %v3296_v38 = vsel %vm3151_vm5, %v3293_v3, %v15835_v8  ;;  %v2668_v5 = vrot.slane %v12649_v17, 4  ;;  %v12857_v26 = vrot.slane %v12519_v52, 2 }
 0x295   : > { %8952 = vrot.lane.b32.xlu0 %v8951_v1, %s9384_s16  ;;  %v1407_v61 = vsel %vm1256_vm3, %v16353_v35, %v1406_v0  ;;  %v8630_v1 = vunpack.i.h.bf16 %v12790_v57  ;;  %v8678_v24 = vpop.permute.xlu0 %8677  ;;  %v4066_v35 = vsel %vm3779_vm7, %v12528_v54, %v8639_v50  ;;  %v4067_v0 = vsel %vm3779_vm7, %v12562_v42, %v8640_v40 }
 0x296   : > { %v3294_v27 = vsel %vm3151_vm5, %v16354_v37, %v3293_v3  ;;  %v3909_v37 = vsel %vm3858_vm8, %v3830_v36, %v8604_v23  ;;  %v12871_v3 = vsel %vm1646_vm2, %v1796_v39, %v1798_v53  ;;  %v8645_v30 = vunpack.i.h.bf16 %v8643_v56  ;;  %v16355_v36 = vld [vmem:[#allocation80_spill] sm:$0xff] }
 0x297   : > { %8932 = vrot.lane.b32.xlu1 %v8931_v20, %s9382_s8  ;;  %v8644_v8 = vunpack.i.l.bf16 %v8643_v56  ;;  %v8680_v48 = vunpack.i.h.bf16 %v8678_v24  ;;  %v8679_v59 = vunpack.i.l.bf16 %v8678_v24  ;;  %v8629_v42 = vunpack.i.l.bf16 %v12790_v57  ;;  %v12878_v54 = vpop.permute.xlu1 %8657 }
 0x298   : > { %v8956_v41 = vpack.i.bf16 %v1409_v10, %v1407_v61  ;;  %v8986_v20 = vpack.i.bf16 %v3296_v38, %v3294_v27  ;;  %v3910_v23 = vsel %vm3858_vm8, %v3831_v51, %v8605_v25  ;;  %v12883_v39 = vsel %vm3779_vm7, %v16275_v34, %v8630_v1  ;;  %v16395_v34 = vld [vmem:[#allocation30_spill] sm:$0xff] }
 0x299   : > { %8967 = vrot.lane.b32.xlu0 %v8966_v15, %s9383_s9  ;;  %v8683_v40 = vpop.permute.xlu0 %8682  ;;  %v8961_v50 = vpack.i.bf16 %v12871_v3, %v12778_v22  ;;  %v12890_v47 = vsel %vm2516_vm4, %v2666_v58, %v2668_v5  ;;  %v12894_v21 = vsel %vm1646_vm2, %v1798_v53, %v12857_v26  ;;  %v2670_v51 = vrot.slane %v12747_v16, 4 }
 0x29a   : > { %v8685_v15 = vunpack.i.h.bf16 %v8683_v40  ;;  %v8684_v57 = vunpack.i.l.bf16 %v8683_v40  ;;  %v1085_v25 = vadd.f32 %v12470_v44, %v16355_v36  ;;  %v4144_v58 = vsel %vm3858_vm8, %v4066_v35, %v8679_v59 }
 0x29b   : > { %8942 = vrot.lane.b32.xlu1 %v8941_v18, %s9384_s16  ;;  %v4145_v61 = vsel %vm3858_vm8, %v4067_v0, %v8680_v48  ;;  %v3988_v53 = vsel %vm3937_vm9, %v3909_v37, %v8644_v8  ;;  %v3989_v56 = vsel %vm3937_vm9, %v3910_v23, %v8645_v30  ;;  %v12908_v10 = vpop.permute.xlu1 %8662  ;;  %v1090_v18 = vadd.f32 %v12470_v44, %v12170_v46 }
 0x29c   : > { %v4222_v11 = vsel %vm3937_vm9, %v4144_v58, %v8684_v57  ;;  %v4223_v22 = vsel %vm3937_vm9, %v4145_v61, %v8685_v15  ;;  %v1410_v27 = vrot.slane %v12519_v52, 1  ;;  %v8669_v48 = vunpack.i.l.bf16 %v12825_v45 }
 0x29d   : > { %8982 = vrot.lane.b32.xlu0 %v8981_v62, %s9382_s8  ;;  %v3832_v62 = vsel %vm3779_vm7, %v16266_v2, %v8629_v42  ;;  %v12918_v59 = vpop.permute.xlu0 %8697  ;;  %v4326_v8 = vpack.c.bf16 %v4223_v22, %v4222_v11  ;;  %v8991_v30 = vpack.i.bf16 %v12890_v47, %v12801_v13  ;;  %v8670_v1 = vunpack.i.h.bf16 %v12825_v45 }
 0x29e   : > { %v4325_v24 = vpack.c.bf16 %v3989_v56, %v3988_v53  ;;  %v12925_v46 = vsel %vm2516_vm4, %v2668_v5, %v2670_v51  ;;  %v12927_v38 = vmax.f32 %v1085_v25, 0.0  ;;  %v8635_v35 = vunpack.i.h.bf16 %v12818_v28 }
 0x29f   : > { %8957 = vrot.lane.b32.xlu1 %v8956_v41, %s9383_s9  ;;  %v8634_v0 = vunpack.i.l.bf16 %v12818_v28  ;;  %4867 = vmatprep.mubr.bf16.mxu1 %v4326_v8  ;;  %v8971_v13 = vpack.i.bf16 %v12894_v21, %v12871_v3  ;;  %v16357_v45 = vrot.slane %v12807_v29, 4  ;;  %v16358_v37 = vrot.slane %v12760_v60, 4  ;;  %v8673_v5 = vpop.permute.xlu1 %8672 }
 0x2a0   : > { %16356 = vst [vmem:[#allocation98_spill] sm:$0xff] %v12927_v38  ;;  %4868 = vmatmul.mubr.bf16.gmra.mrb[60].mxu1 %v4325_v24  ;;  %v12941_v41 = vmax.f32 %v1090_v18, 0.0  ;;  %v16360_v23 = vrot.slane %v12409_v4, 1  ;;  %v4068_v15 = vsel %vm3779_vm7, %v12674_v32, %v8669_v48  ;;  %v9006_v36 = vpack.i.bf16 %v12925_v46, %v12890_v47 }
 0x2a1   : > { %8987 = vrot.lane.b32.xlu0 %v8986_v20, %s9384_s16  ;;  %v12939_v42 = vsel %vm2516_vm4, %v16358_v37, %v16357_v45  ;;  %v3297_v20 = vrot.slane %v12649_v17, 5  ;;  %v16361_v40 = vmov %v16358_v37  ;;  %v8708_v57 = vpop.permute.xlu0 %8707  ;;  %v3299_v25 = vrot.slane %v12747_v16, 5 }
 0x2a2   : > { %16359 = vst [vmem:[#allocation74_spill] sm:$0xff] %v12941_v41  ;;  %v1411_v28 = vsel %vm1256_vm3, %v16360_v23, %v1410_v27  ;;  %v12950_v3 = vsel %vm2516_vm4, %v2670_v51, %v16361_v40  ;;  %v4069_v61 = vsel %vm3779_vm7, %v12679_v14, %v8670_v1  ;;  %v8674_v53 = vunpack.i.l.bf16 %v8673_v5 }
 0x2a3   : > { %8962 = vrot.lane.b32.xlu1 %v8961_v50, %s9382_s8  ;;  %v2913_v51 = vrot.slane %v12927_v38, 4  ;;  %v3305_v56 = vrot.slane %v12927_v38, 5  ;;  %v8675_v32 = vunpack.i.h.bf16 %v8673_v5  ;;  %v8710_v11 = vunpack.i.h.bf16 %v8708_v57  ;;  %v12965_v18 = vpop.permute.xlu1 %8687  ;;  %v16403_v38 = vld [vmem:[#allocation32_spill] sm:$0xff] }
 0x2a4   : > { %v8709_v22 = vunpack.i.l.bf16 %v8708_v57  ;;  %v8976_v47 = vpack.i.bf16 %v1410_v27, %v1411_v28  ;;  %v2915_v48 = vrot.slane %v12941_v41, 4  ;;  %v3307_v8 = vrot.slane %v12941_v41, 5 }
 0x2a5   : > { %8992 = vrot.lane.b32.xlu0 %v8991_v30, %s9383_s9  ;;  %v16362_v14 = vrot.slane %v12636_v63, 5  ;;  %v3911_v1 = vsel %vm3858_vm8, %v3832_v62, %v8634_v0  ;;  %v8713_v24 = vpop.permute.xlu0 %8712  ;;  %v3300_v45 = vsel %vm3151_vm5, %v3297_v20, %v3299_v25  ;;  %v3912_v37 = vsel %vm3858_vm8, %v12883_v39, %v8635_v35 }
 0x2a6   : > { %v2039_v27 = vrot.slane %v12636_v63, 2  ;;  %v2041_v30 = vrot.slane %v12649_v17, 2  ;;  %v8715_v5 = vunpack.i.h.bf16 %v8713_v24  ;;  %v8714_v23 = vunpack.i.l.bf16 %v8713_v24 }
 0x2a7   : > { %v3298_v50 = vsel %vm3151_vm5, %v16362_v14, %v3297_v20  ;;  %8972 = vrot.lane.b32.xlu1 %v8971_v13, %s9384_s16  ;;  %v3990_v28 = vsel %vm3937_vm9, %v3911_v1, %v8674_v53  ;;  %v16363_v40 = vrot.slane %v12760_v60, 5  ;;  %v4146_v0 = vsel %vm3858_vm8, %v4068_v15, %v8709_v22  ;;  %v12996_v53 = vpop.permute.xlu1 %8692 }
 0x2a8   : > { %v4147_v39 = vsel %vm3858_vm8, %v4069_v61, %v8710_v11  ;;  %v3991_v35 = vsel %vm3937_vm9, %v3912_v37, %v8675_v32  ;;  %v16364_v20 = vrot.slane %v12807_v29, 5  ;;  %v2040_v11 = vsel %vm1646_vm2, %v12857_v26, %v2039_v27  ;;  %v16367_v37 = vld [vmem:[#allocation2_spill] sm:$0xff] }
 0x2a9   : > { %v12983_v62 = vsel %vm3151_vm5, %v3299_v25, %v16363_v40  ;;  %9007 = vrot.lane.b32.xlu0 %v9006_v36, %s9382_s8  ;;  %v16365_v57 = vmov %v16363_v40  ;;  %v4224_v25 = vsel %vm3937_vm9, %v4146_v0, %v8714_v23  ;;  %v4225_v14 = vsel %vm3937_vm9, %v4147_v39, %v8715_v5  ;;  %v13002_v61 = vpop.permute.xlu0 %8727  ;;  %v16370_v39 = vld [vmem:[#allocation126_spill] sm:$0xff] }
 0x2aa   : > { %v12994_v13 = vsel %vm3151_vm5, %v16365_v57, %v16364_v20  ;;  %v9011_v36 = vpack.i.bf16 %v3300_v45, %v3298_v50  ;;  %v4329_v32 = vpack.c.bf16 %v4225_v14, %v4224_v25  ;;  %v2042_v22 = vsel %vm1646_vm2, %v2039_v27, %v2041_v30  ;;  %v16369_v27 = vld [vmem:[#allocation125_spill] sm:$0xff] }
 0x2ab   : > { %v16366_v1 = vrot.slane %v12807_v29, 4  ;;  %v720_v50 = vadd.f32 %v12470_v44, %v16367_v37  ;;  %8977 = vrot.lane.b32.xlu1 %v8976_v47, %s9383_s9  ;;  %v4328_v45 = vpack.c.bf16 %v3991_v35, %v3990_v28  ;;  %v13018_v5 = vsel %vm2516_vm4, %v2913_v51, %v2915_v48  ;;  %v8703_v28 = vpop.permute.xlu1 %8702 }
 0x2ac   : > { %v16368_v23 = vmov %v16364_v20  ;;  %v2390_v0 = vrot.slane %v16369_v27, 3  ;;  %v15837_v20 = vrot.slane %v16370_v39, 3  ;;  %4875 = vmatprep.mubr.bf16.mxu1 %v4329_v32  ;;  %v13031_v47 = vsel %vm3151_vm5, %v3305_v56, %v3307_v8 }
 0x2ad   : > { %v13012_v24 = vsel %vm2516_vm4, %v16366_v1, %v2913_v51  ;;  %v13023_v40 = vsel %vm3151_vm5, %v16368_v23, %v3305_v56  ;;  %9012 = vrot.lane.b32.xlu0 %v9011_v36, %s9384_s16  ;;  %v8660_v51 = vunpack.i.h.bf16 %v12878_v54  ;;  %v8659_v48 = vunpack.i.l.bf16 %v12878_v54  ;;  %4876 = vmatmul.mubr.bf16.gmra.mrb[64].mxu1 %v4328_v45  ;;  %v8738_v32 = vpop.permute.xlu0 %8737 }
 0x2ae   : > { %v8996_v35 = vpack.i.bf16 %v2042_v22, %v2040_v11  ;;  %v8700_v14 = vunpack.i.h.bf16 %v12918_v59  ;;  %v8699_v36 = vunpack.i.l.bf16 %v12918_v59  ;;  %v9016_v1 = vpack.i.bf16 %v12950_v3, %v12925_v46  ;;  %v16371_v11 = vld [vmem:[#allocation97_spill] sm:$0xff] }
 0x2af   : > { %v2043_v56 = vrot.slane %v12747_v16, 2  ;;  %v8665_v8 = vunpack.i.h.bf16 %v12908_v10  ;;  %v8664_v54 = vunpack.i.l.bf16 %v12908_v10  ;;  %v8705_v45 = vunpack.i.h.bf16 %v8703_v28 }
 0x2b0   : > { %8997 = vrot.lane.b32.xlu1 %v8996_v35, %s9384_s16  ;;  %v8704_v23 = vunpack.i.l.bf16 %v8703_v28  ;;  %v8740_v25 = vunpack.i.h.bf16 %v8738_v32  ;;  %v8739_v59 = vunpack.i.l.bf16 %v8738_v32  ;;  %v3835_v46 = vsel %vm3779_vm7, %v16299_v6, %v8660_v51  ;;  %v13056_v35 = vpop.permute.xlu1 %8717 }
 0x2b1   : > { %9017 = vrot.lane.b32.xlu0 %v9016_v1, %s9383_s9  ;;  %v16372_v57 = vrot.slane %v16325_v7, 3  ;;  %v2393_v10 = vsel %vm2280_vm6, %v2390_v0, %v15837_v20  ;;  %v9001_v28 = vpack.i.bf16 %v12857_v26, %v12894_v21  ;;  %v3834_v32 = vsel %vm3779_vm7, %v16297_v55, %v8659_v48  ;;  %v8743_v37 = vpop.permute.xlu0 %8742 }
 0x2b2   : > { %v4071_v51 = vsel %vm3779_vm7, %v2393_v10, %v8700_v14  ;;  %v8745_v22 = vunpack.i.h.bf16 %v8743_v37  ;;  %v8744_v58 = vunpack.i.l.bf16 %v8743_v37  ;;  %v3914_v26 = vsel %vm3858_vm8, %v3835_v46, %v8665_v8 }
 0x2b3   : > { %v2391_v15 = vsel %vm2280_vm6, %v16372_v57, %v2390_v0  ;;  %v2044_v57 = vsel %vm1646_vm2, %v2041_v30, %v2043_v56  ;;  %v3913_v0 = vsel %vm3858_vm8, %v3834_v32, %v8664_v54  ;;  %v16373_v21 = vpack.i.bf16 %v12939_v42, %v12950_v3  ;;  %v16374_v3 = vld [vmem:[#allocation59_spill] sm:$0xff] }
 0x2b4   : > { %v4070_v1 = vsel %vm3779_vm7, %v2391_v15, %v8699_v36  ;;  %9002 = vrot.lane.b32.xlu1 %v9001_v28, %s9382_s8  ;;  %v4149_v48 = vsel %vm3858_vm8, %v4071_v51, %v8740_v25  ;;  %v3992_v14 = vsel %vm3937_vm9, %v3913_v0, %v8704_v23  ;;  %v3993_v30 = vsel %vm3937_vm9, %v3914_v26, %v8705_v45  ;;  %v13080_v37 = vpop.permute.xlu1 %8722  ;;  %v16376_v25 = vld [vmem:[#allocation54_spill] sm:$0xff]  ;;  %v16377_v32 = vld [vmem:[#allocation47_spill] sm:$0xff]  ;;  %v16394_v28 = vld [vmem:[#allocation105_spill] sm:$0xff] }
 0x2b5   : > { %9022 = vrot.lane.b32.xlu0 %v16373_v21, %s9382_s8  ;;  %v4148_v15 = vsel %vm3858_vm8, %v4070_v1, %v8739_v59  ;;  %v13078_v36 = vmax.f32 %v720_v50, 0.0  ;;  %v4227_v8 = vsel %vm3937_vm9, %v4149_v48, %v8745_v22  ;;  %v9041_v46 = vpack.i.bf16 %v2043_v56, %v2044_v57  ;;  %v13084_v10 = vpop.permute.xlu0 %8757  ;;  %v16375_v59 = vld [vmem:[#allocation62_spill] sm:$0xff]  ;;  %v16381_v56 = vld [vmem:[#allocation60_spill] sm:$0xff]  ;;  %v16382_v22 = vld [vmem:[#allocation63_spill] sm:$0xff] }
 0x2b6   : > { %v4226_v54 = vsel %vm3937_vm9, %v4148_v15, %v8744_v58  ;;  %v16378_v45 = vrot.slane %v16377_v32, 1  ;;  %v16379_v50 = vld [vmem:[#allocation46_spill] sm:$0xff]  ;;  %v4331_v58 = vpack.c.bf16 %v3993_v30, %v3992_v14  ;;  %v16383_v26 = vld [vmem:[#allocation55_spill] sm:$0xff]  ;;  %v16384_v21 = vld [vmem:[#allocation64_spill] sm:$0xff]  ;;  %v16385_v48 = vpack.i.bf16 %v12994_v13, %v12983_v62 }
 0x2b7   : > { %v4332_v42 = vpack.c.bf16 %v4227_v8, %v4226_v54  ;;  %v16380_v1 = vrot.slane %v16379_v50, 1  ;;  %v16386_v54 = vrot.slane %v16371_v11, 4  ;;  %v16387_v8 = vld [vmem:[#allocation58_spill] sm:$0xff]  ;;  %v16389_v30 = vrot.slane %v16371_v11, 2  ;;  %v16392_v13 = vld [vmem:[#allocation3_spill] sm:$0xff]  ;;  %v16432_v50 = vld [vmem:[#allocation5_spill] sm:$0xff] }
 0x2b8   : > { %9042 = vrot.lane.b32.xlu1 %v9041_v46, %s9384_s16  ;;  %v16390_v46 = vrot.slane %v16387_v8, 2  ;;  %v1274_v62 = vrot.slane %v16371_v11, 1  ;;  %v16393_v23 = vld [vmem:[#allocation102_spill] sm:$0xff]  ;;  %v8690_v20 = vunpack.i.h.bf16 %v12965_v18  ;;  %v8729_v15 = vunpack.i.l.bf16 %v13002_v61  ;;  %v16402_v0 = vld [vmem:[#allocation123_spill] sm:$0xff] }
 0x2b9   : > { %v13095_v51 = vsel %vm1256_vm3, %v16380_v1, %v16378_v45  ;;  %4883 = vmatprep.mubr.bf16.mxu1 %v4332_v42  ;;  %9027 = vrot.lane.b32.xlu0 %v16385_v48, %s9384_s16  ;;  %v16388_v45 = vrot.slane %v16387_v8, 4  ;;  %v16391_v42 = vld [vmem:[#allocation65_spill] sm:$0xff]  ;;  %v725_v48 = vadd.f32 %v12470_v44, %v16392_v13  ;;  %v2394_v57 = vrot.slane %v16393_v23, 3  ;;  %v8768_v6 = vpop.permute.xlu0 %8767 }
 0x2ba   : > { %v13119_v1 = vsel %vm1646_vm2, %v16390_v46, %v16389_v30  ;;  %4884 = vmatmul.mubr.bf16.gmra.mrb[68].mxu1 %v4331_v58  ;;  %v8689_v30 = vunpack.i.l.bf16 %v12965_v18  ;;  %v8730_v46 = vunpack.i.h.bf16 %v13002_v61  ;;  %v8695_v55 = vunpack.i.h.bf16 %v12996_v53 }
 0x2bb   : > { %v13112_v14 = vsel %vm2516_vm4, %v16388_v45, %v16386_v54  ;;  %v8733_v45 = vpop.permute.xlu1 %8732  ;;  %v8694_v13 = vunpack.i.l.bf16 %v12996_v53  ;;  %v16396_v54 = vld [vmem:[#allocation29_spill] sm:$0xff]  ;;  %v8770_v43 = vunpack.i.h.bf16 %v8768_v6  ;;  %v8769_v12 = vunpack.i.l.bf16 %v8768_v6 }
 0x2bc   : > { %v16397_v58 = vpack.i.bf16 %v16395_v34, %v16396_v54  ;;  %v8735_v19 = vunpack.i.h.bf16 %v8733_v45  ;;  %v8734_v18 = vunpack.i.l.bf16 %v8733_v45  ;;  %v16398_v61 = vpack.i.bf16 %v13018_v5, %v13012_v24 }
 0x2bd   : > { %v13145_v33 = vmax.f32 %v725_v48, 0.0  ;;  %v16400_v53 = vrot.slane %v16370_v39, 3  ;;  %v16401_v54 = vrot.slane %v16394_v28, 3  ;;  %v3837_v6 = vsel %vm3779_vm7, %v16325_v7, %v8690_v20 }
 0x2be   : > { %9052 = vrot.lane.b32.xlu1 %v16397_v58, %s9383_s9  ;;  %9032 = vrot.lane.b32.xlu0 %v16398_v61, %s9382_s8  ;;  %v3836_v24 = vsel %vm3779_vm7, %v16402_v0, %v8689_v30  ;;  %v8773_v61 = vpop.permute.xlu0 %8772  ;;  %v3916_v29 = vsel %vm3858_vm8, %v3837_v6, %v8695_v55  ;;  %v16406_v20 = vpack.i.bf16 %v13031_v47, %v13023_v40  ;;  %v16407_v55 = vrot.slane %v13078_v36, 4 }
 0x2bf   : > { %16399 = vst [vmem:[#allocation100_spill] sm:$0xff] %v13145_v33  ;;  %v2395_v34 = vsel %vm2280_vm6, %v16400_v53, %v2394_v57  ;;  %v2397_v58 = vsel %vm2280_vm6, %v2394_v57, %v16401_v54  ;;  %v13153_v2 = vpop.permute.xlu1 %8747  ;;  %v8775_v53 = vunpack.i.h.bf16 %v8773_v61  ;;  %v8774_v41 = vunpack.i.l.bf16 %v8773_v61  ;;  %v16404_v57 = vld [vmem:[#allocation34_spill] sm:$0xff]  ;;  %v16413_v61 = vld [vmem:[#allocation48_spill] sm:$0xff] }
 0x2c0   : > { %v4072_v5 = vsel %vm3779_vm7, %v2395_v34, %v8729_v15  ;;  %v4073_v48 = vsel %vm3779_vm7, %v2397_v58, %v8730_v46  ;;  %v16405_v54 = vpack.i.bf16 %v16403_v38, %v16404_v57  ;;  %v3915_v45 = vsel %vm3858_vm8, %v3836_v24, %v8694_v13 }
 0x2c1   : > { %v4150_v15 = vsel %vm3858_vm8, %v4072_v5, %v8769_v12  ;;  %v4151_v30 = vsel %vm3858_vm8, %v4073_v48, %v8770_v43  ;;  %v3994_v46 = vsel %vm3937_vm9, %v3915_v45, %v8734_v18  ;;  %v3995_v34 = vsel %vm3937_vm9, %v3916_v29, %v8735_v19  ;;  %v16412_v5 = vld [vmem:[#allocation4_spill] sm:$0xff]  ;;  %v16425_v18 = vld [vmem:[#allocation111_spill] sm:$0xff] }
 0x2c2   : > { %9062 = vrot.lane.b32.xlu1 %v16405_v54, %s9382_s8  ;;  %9037 = vrot.lane.b32.xlu0 %v16406_v20, %s9384_s16  ;;  %v4228_v38 = vsel %vm3937_vm9, %v4150_v15, %v8774_v41  ;;  %v4229_v13 = vsel %vm3937_vm9, %v4151_v30, %v8775_v53  ;;  %v16408_v6 = vrot.slane %v16371_v11, 4  ;;  %v16409_v12 = vrot.slane %v16371_v11, 5  ;;  %v13194_v19 = vpop.permute.xlu0 %8787  ;;  %v16414_v53 = vld [vmem:[#allocation39_spill] sm:$0xff] }
 0x2c3   : > { %v13176_v58 = vpop.permute.xlu1 %8752  ;;  %v16410_v43 = vrot.slane %v16387_v8, 5  ;;  %v4335_v29 = vpack.c.bf16 %v4229_v13, %v4228_v38  ;;  %v16411_v45 = vrot.slane %v16387_v8, 1  ;;  %v730_v48 = vadd.f32 %v12470_v44, %v16412_v5  ;;  %v16418_v13 = vld [vmem:[#allocation49_spill] sm:$0xff] }
 0x2c4   : > { %v13185_v40 = vsel %vm2516_vm4, %v16408_v6, %v16407_v55  ;;  %v16415_v57 = vpack.i.bf16 %v16413_v61, %v16414_v53  ;;  %v4334_v54 = vpack.c.bf16 %v3995_v34, %v3994_v46  ;;  %v16416_v20 = vrot.slane %v13078_v36, 5  ;;  %v16419_v55 = vld [vmem:[#allocation44_spill] sm:$0xff] }
 0x2c5   : > { %v13192_v47 = vsel %vm3151_vm5, %v16410_v43, %v16409_v12  ;;  %v13203_v24 = vsel %vm1256_vm3, %v16411_v45, %v1274_v62  ;;  %v16417_v15 = vmov %v16409_v12  ;;  %4891 = vmatprep.mubr.bf16.mxu1 %v4335_v29  ;;  %v16420_v6 = vpack.i.bf16 %v16418_v13, %v16419_v55 }
 0x2c6   : > { %9072 = vrot.lane.b32.xlu1 %v16415_v57, %s9384_s16  ;;  %v13216_v30 = vsel %vm3151_vm5, %v16417_v15, %v16416_v20  ;;  %v16421_v46 = vrot.slane %v13078_v36, 2  ;;  %v16422_v34 = vrot.slane %v16371_v11, 2  ;;  %v16423_v45 = vrot.slane %v13078_v36, 1  ;;  %4892 = vmatmul.mubr.bf16.gmra.mrb[72].mxu1 %v4334_v54  ;;  %v16426_v54 = vld [vmem:[#allocation43_spill] sm:$0xff]  ;;  %v16427_v15 = vld [vmem:[#allocation40_spill] sm:$0xff] }
 0x2c7   : > { %9047 = vrot.lane.b32.xlu0 %v16420_v6, %s9383_s9  ;;  %v8720_v29 = vunpack.i.h.bf16 %v13056_v35  ;;  %v8719_v57 = vunpack.i.l.bf16 %v13056_v35  ;;  %v8763_v20 = vpop.permute.xlu1 %8762  ;;  %v8725_v55 = vunpack.i.h.bf16 %v13080_v37  ;;  %v8724_v6 = vunpack.i.l.bf16 %v13080_v37 }
 0x2c8   : > { %v13230_v43 = vsel %vm1646_vm2, %v16422_v34, %v16421_v46  ;;  %v13235_v5 = vsel %vm1256_vm3, %v1274_v62, %v16423_v45  ;;  %v16424_v46 = vld [vmem:[#allocation69_spill] sm:$0xff]  ;;  %v8798_v62 = vpop.permute.xlu0 %8797  ;;  %v13245_v45 = vmax.f32 %v730_v48, 0.0  ;;  %v8760_v12 = vunpack.i.h.bf16 %v13084_v10 }
 0x2c9   : > { %v2398_v34 = vrot.slane %v16424_v46, 3  ;;  %v8759_v35 = vunpack.i.l.bf16 %v13084_v10  ;;  %v16428_v38 = vpack.i.bf16 %v16426_v54, %v16427_v15  ;;  %v16429_v13 = vrot.slane %v13145_v33, 4 }
 0x2ca   : > { %v16430_v37 = vrot.slane %v13078_v36, 4  ;;  %v8765_v41 = vunpack.i.h.bf16 %v8763_v20  ;;  %v8764_v0 = vunpack.i.l.bf16 %v8763_v20  ;;  %v8800_v48 = vunpack.i.h.bf16 %v8798_v62 }
 0x2cb   : > { %9082 = vrot.lane.b32.xlu1 %v16428_v38, %s9383_s9  ;;  %v8799_v11 = vunpack.i.l.bf16 %v8798_v62  ;;  %v16431_v10 = vpack.i.bf16 %v16375_v59, %v16374_v3  ;;  %v735_v15 = vadd.f32 %v12470_v44, %v16432_v50  ;;  %v3839_v38 = vsel %vm3779_vm7, %v16370_v39, %v8720_v29 }
 0x2cc   : > { %v13258_v7 = vsel %vm2516_vm4, %v16430_v37, %v16429_v13  ;;  %v3838_v54 = vsel %vm3779_vm7, %v16369_v27, %v8719_v57  ;;  %v13270_v13 = vpop.permute.xlu1 %8777  ;;  %v16433_v20 = vrot.slane %v13145_v33, 2  ;;  %v16434_v62 = vrot.slane %v13078_v36, 2  ;;  %v8803_v29 = vpop.permute.xlu0 %8802 }
 0x2cd   : > { %9057 = vrot.lane.b32.xlu0 %v16431_v10, %s9382_s8  ;;  %v16435_v10 = vrot.slane %v16394_v28, 3  ;;  %v16436_v44 = vrot.slane %v16425_v18, 3  ;;  %v3917_v57 = vsel %vm3858_vm8, %v3838_v54, %v8724_v6  ;;  %v3918_v39 = vsel %vm3858_vm8, %v3839_v38, %v8725_v55 }
 0x2ce   : > { %v13277_v37 = vsel %vm1646_vm2, %v16434_v62, %v16433_v20  ;;  %v8805_v16 = vunpack.i.h.bf16 %v8803_v29  ;;  %v8804_v20 = vunpack.i.l.bf16 %v8803_v29  ;;  %v16437_v62 = vld [vmem:[#allocation41_spill] sm:$0xff]  ;;  %v15856_v54 = vrot.slane %v13245_v45, 5 }
 0x2cf   : > { %v2399_v32 = vsel %vm2280_vm6, %v16435_v10, %v2398_v34  ;;  %v2401_v50 = vsel %vm2280_vm6, %v2398_v34, %v16436_v44  ;;  %v16438_v60 = vpack.i.bf16 %v16414_v53, %v16437_v62  ;;  %v16439_v34 = vpack.i.bf16 %v16382_v22, %v16381_v56 }
 0x2d0   : > { %v4074_v27 = vsel %vm3779_vm7, %v2399_v32, %v8759_v35  ;;  %v4075_v8 = vsel %vm3779_vm7, %v2401_v50, %v8760_v12  ;;  %v3996_v32 = vsel %vm3937_vm9, %v3917_v57, %v8764_v0  ;;  %v3997_v12 = vsel %vm3937_vm9, %v3918_v39, %v8765_v41  ;;  %v13301_v35 = vpop.permute.xlu1 %8782  ;;  %v13307_v56 = vpop.permute.xlu0 %8817  ;;  %v16440_v0 = vld [vmem:[#allocation53_spill] sm:$0xff] }
 0x2d1   : > { %9092 = vrot.lane.b32.xlu1 %v16438_v60, %s9382_s8  ;;  %9067 = vrot.lane.b32.xlu0 %v16439_v34, %s9384_s16  ;;  %v4152_v6 = vsel %vm3858_vm8, %v4074_v27, %v8799_v11  ;;  %v4153_v55 = vsel %vm3858_vm8, %v4075_v8, %v8800_v48  ;;  %v15857_v60 = vrot.slane %v13245_v45, 4  ;;  %v9096_v27 = vpack.i.bf16 %v13216_v30, %v13192_v47 }
 0x2d2   : > { %v4230_v38 = vsel %vm3937_vm9, %v4152_v6, %v8804_v20  ;;  %v4231_v53 = vsel %vm3937_vm9, %v4153_v55, %v8805_v16  ;;  %v16441_v16 = vpack.i.bf16 %v16383_v26, %v16440_v0  ;;  %v4337_v8 = vpack.c.bf16 %v3997_v12, %v3996_v32  ;;  %v16447_v12 = vld [vmem:[#allocation110_spill] sm:$0xff] }
 0x2d3   : > { %v4338_v22 = vpack.c.bf16 %v4231_v53, %v4230_v38  ;;  %v16442_v41 = vrot.slane %v13145_v33, 5  ;;  %v16443_v48 = vrot.slane %v13078_v36, 5  ;;  %v15858_v47 = vrot.slane %v13245_v45, 2  ;;  %v16448_v53 = vld [vmem:[#allocation116_spill] sm:$0xff] }
 0x2d4   : > { %v1278_v30 = vrot.slane %v13145_v33, 1  ;;  %v13328_v44 = vmax.f32 %v735_v15, 0.0  ;;  %v16444_v50 = vpack.i.bf16 %v16374_v3, %v16376_v25  ;;  %v8750_v62 = vunpack.i.h.bf16 %v13153_v2  ;;  %v8793_v15 = vpop.permute.xlu1 %8792 }
 0x2d5   : > { %9102 = vrot.lane.b32.xlu1 %v16441_v16, %s9384_s16  ;;  %v13324_v10 = vsel %vm3151_vm5, %v16443_v48, %v16442_v41  ;;  %4899 = vmatprep.mubr.bf16.mxu1 %v4338_v22  ;;  %v8749_v34 = vunpack.i.l.bf16 %v13153_v2  ;;  %v16445_v6 = vrot.slane %v13145_v33, 4  ;;  %v16446_v25 = vmov %v16442_v41  ;;  %v8828_v16 = vpop.permute.xlu0 %8827  ;;  %v16449_v41 = vld [vmem:[#allocation6_spill] sm:$0xff] }
 0x2d6   : > { %9077 = vrot.lane.b32.xlu0 %v16444_v50, %s9383_s9  ;;  %4900 = vmatmul.mubr.bf16.gmra.mrb[76].mxu1 %v4337_v8  ;;  %v13353_v55 = vsel %vm3151_vm5, %v16446_v25, %v15856_v54  ;;  %v8755_v32 = vunpack.i.h.bf16 %v13176_v58  ;;  %v8754_v2 = vunpack.i.l.bf16 %v13176_v58  ;;  %v2402_v38 = vrot.slane %v16447_v12, 3  ;;  %v13362_v8 = vld [vmem:[%s15616_s2] ss:$0 sm:$0xff]  ;;  %v16450_v25 = vld [vmem:[#allocation56_spill] sm:$0xff] }
 0x2d7   : > { %v13346_v3 = vsel %vm2516_vm4, %v16445_v6, %v15857_v60  ;;  %v2404_v22 = vrot.slane %v16448_v53, 3  ;;  %v740_v48 = vadd.f32 %v13362_v8, %v16449_v41  ;;  %v8790_v50 = vunpack.i.h.bf16 %v13194_v19  ;;  %v16451_v58 = vld [vmem:[#allocation50_spill] sm:$0xff] }
 0x2d8   : > { %v8789_v6 = vunpack.i.l.bf16 %v13194_v19  ;;  %v16452_v39 = vpack.i.bf16 %v16450_v25, %v16451_v58  ;;  %v16453_v11 = vrot.slane %v13145_v33, 2  ;;  %v8795_v29 = vunpack.i.h.bf16 %v8793_v15  ;;  %v13387_v58 = vpop.permute.xlu1 %8807 }
 0x2d9   : > { %v8794_v54 = vunpack.i.l.bf16 %v8793_v15  ;;  %v8830_v60 = vunpack.i.h.bf16 %v8828_v16  ;;  %v8829_v41 = vunpack.i.l.bf16 %v8828_v16  ;;  %v16454_v19 = vpack.i.bf16 %v13185_v40, %v13112_v14  ;;  %v8833_v20 = vpop.permute.xlu0 %8832 }
 0x2da   : > { %9112 = vrot.lane.b32.xlu1 %v16452_v39, %s9383_s9  ;;  %v13377_v57 = vsel %vm1646_vm2, %v16453_v11, %v15858_v47  ;;  %v3841_v25 = vsel %vm3779_vm7, %v16394_v28, %v8750_v62  ;;  %v3840_v39 = vsel %vm3779_vm7, %v16393_v23, %v8749_v34  ;;  %v16455_v15 = vrot.slane %v16425_v18, 3 }
 0x2db   : > { %9087 = vrot.lane.b32.xlu0 %v16454_v19, %s9382_s8  ;;  %v2405_v19 = vsel %vm2280_vm6, %v2402_v38, %v2404_v22  ;;  %v3919_v62 = vsel %vm3858_vm8, %v3840_v39, %v8754_v2  ;;  %v3920_v28 = vsel %vm3858_vm8, %v3841_v25, %v8755_v32  ;;  %v8835_v11 = vunpack.i.h.bf16 %v8833_v20 }
 0x2dc   : > { %v2403_v16 = vsel %vm2280_vm6, %v16455_v15, %v2402_v38  ;;  %v4077_v23 = vsel %vm3779_vm7, %v2405_v19, %v8790_v50  ;;  %v8834_v33 = vunpack.i.l.bf16 %v8833_v20  ;;  %v16456_v47 = vpack.i.bf16 %v16440_v0, %v16413_v61  ;;  %v13412_v50 = vpop.permute.xlu1 %8812 }
 0x2dd   : > { %v4076_v34 = vsel %vm3779_vm7, %v2403_v16, %v8789_v6  ;;  %v4155_v15 = vsel %vm3858_vm8, %v4077_v23, %v8830_v60  ;;  %v3998_v2 = vsel %vm3937_vm9, %v3919_v62, %v8794_v54  ;;  %v3999_v32 = vsel %vm3937_vm9, %v3920_v28, %v8795_v29  ;;  %v13421_v0 = vpop.permute.xlu0 %8847 }
 0x2de   : > { %9122 = vrot.lane.b32.xlu1 %v16456_v47, %s9382_s8  ;;  %v4154_v38 = vsel %vm3858_vm8, %v4076_v34, %v8829_v41  ;;  %v13410_v6 = vmax.f32 %v740_v48, 0.0  ;;  %v4233_v25 = vsel %vm3937_vm9, %v4155_v15, %v8835_v11  ;;  %v16457_v61 = vrot.slane %v13245_v45, 1  ;;  %v16459_v47 = vld [vmem:[#allocation7_spill] sm:$0xff] }
 0x2df   : > { %9097 = vrot.lane.b32.xlu0 %v9096_v27, %s9384_s16  ;;  %v4232_v20 = vsel %vm3937_vm9, %v4154_v38, %v8834_v33  ;;  %v9116_v60 = vpack.i.bf16 %v13346_v3, %v13258_v7  ;;  %v9126_v28 = vpack.i.bf16 %v13353_v55, %v13324_v10  ;;  %v16458_v54 = vrot.slane %v13078_v36, 1 }
 0x2e0   : > { %v13419_v27 = vsel %vm1256_vm3, %v1278_v30, %v16457_v61  ;;  %v4341_v23 = vpack.c.bf16 %v4233_v25, %v4232_v20  ;;  %v745_v29 = vadd.f32 %v13362_v8, %v16459_v47  ;;  %v16460_v48 = vpack.i.bf16 %v13119_v1, %v16384_v21  ;;  %v16467_v47 = vld [vmem:[#allocation71_spill] sm:$0xff] }
 0x2e1   : > { %v13430_v33 = vsel %vm1256_vm3, %v16458_v54, %v1278_v30  ;;  %v4340_v41 = vpack.c.bf16 %v3999_v32, %v3998_v2  ;;  %v3165_v39 = vrot.slane %v13328_v44, 5  ;;  %v16461_v10 = vpack.i.bf16 %v13112_v14, %v16375_v59  ;;  %v8823_v2 = vpop.permute.xlu1 %8822  ;;  %v16469_v59 = vld [vmem:[#allocation8_spill] sm:$0xff] }
 0x2e2   : > { %9132 = vrot.lane.b32.xlu1 %v16460_v48, %s9384_s16  ;;  %4907 = vmatprep.mubr.bf16.mxu1 %v4341_v23  ;;  %v16462_v30 = vrot.slane %v13328_v44, 4  ;;  %v16463_v55 = vrot.slane %v13245_v45, 4  ;;  %v16464_v19 = vrot.slane %v13328_v44, 2  ;;  %v16465_v62 = vrot.slane %v13245_v45, 2  ;;  %v16466_v23 = vld [vmem:[#allocation70_spill] sm:$0xff] }
 0x2e3   : > { %9107 = vrot.lane.b32.xlu0 %v16461_v10, %s9383_s9  ;;  %v8780_v14 = vunpack.i.h.bf16 %v13270_v13  ;;  %v8779_v15 = vunpack.i.l.bf16 %v13270_v13  ;;  %4908 = vmatmul.mubr.bf16.gmra.mrb[80].mxu1 %v4340_v41  ;;  %v15864_v32 = vrot.slane %v13410_v6, 4  ;;  %v8785_v25 = vunpack.i.h.bf16 %v13301_v35  ;;  %v8858_v10 = vpop.permute.xlu0 %8857 }
 0x2e4   : > { %v13450_v16 = vsel %vm2516_vm4, %v16463_v55, %v16462_v30  ;;  %v13457_v34 = vsel %vm1646_vm2, %v16465_v62, %v16464_v19  ;;  %v8784_v61 = vunpack.i.l.bf16 %v13301_v35  ;;  %v2406_v54 = vrot.slane %v16466_v23, 3 }
 0x2e5   : > { %v13470_v30 = vmax.f32 %v745_v29, 0.0  ;;  %v8820_v55 = vunpack.i.h.bf16 %v13307_v56  ;;  %v8819_v13 = vunpack.i.l.bf16 %v13307_v56  ;;  %v16468_v41 = vpack.i.bf16 %v16391_v42, %v13095_v51  ;;  %v13486_v48 = vpop.permute.xlu1 %8837 }
 0x2e6   : > { %v8825_v62 = vunpack.i.h.bf16 %v8823_v2  ;;  %v8824_v35 = vunpack.i.l.bf16 %v8823_v2  ;;  %v8860_v11 = vunpack.i.h.bf16 %v8858_v10  ;;  %v8859_v38 = vunpack.i.l.bf16 %v8858_v10 }
 0x2e7   : > { %9142 = vrot.lane.b32.xlu1 %v16468_v41, %s9383_s9  ;;  %9117 = vrot.lane.b32.xlu0 %v9116_v60, %s9382_s8  ;;  %v750_v29 = vadd.f32 %v13362_v8, %v16469_v59  ;;  %v3843_v20 = vsel %vm3779_vm7, %v16425_v18, %v8780_v14  ;;  %v3842_v56 = vsel %vm3779_vm7, %v16424_v46, %v8779_v15  ;;  %v16470_v51 = vrot.slane %v13328_v44, 4  ;;  %v8863_v2 = vpop.permute.xlu0 %8862 }
 0x2e8   : > { %v2407_v60 = vsel %vm2280_vm6, %v2404_v22, %v2406_v54  ;;  %v16471_v59 = vrot.slane %v16467_v47, 3  ;;  %v3921_v15 = vsel %vm3858_vm8, %v3842_v56, %v8784_v61  ;;  %v3922_v10 = vsel %vm3858_vm8, %v3843_v20, %v8785_v25 }
 0x2e9   : > { %v13493_v42 = vsel %vm2516_vm4, %v16470_v51, %v15864_v32  ;;  %v4078_v41 = vsel %vm3779_vm7, %v2407_v60, %v8819_v13  ;;  %v8865_v18 = vunpack.i.h.bf16 %v8863_v2  ;;  %v8864_v51 = vunpack.i.l.bf16 %v8863_v2 }
 0x2ea   : > { %v2409_v14 = vsel %vm2280_vm6, %v2406_v54, %v16471_v59  ;;  %v16472_v32 = vpack.i.bf16 %v16384_v21, %v16383_v26  ;;  %v4156_v22 = vsel %vm3858_vm8, %v4078_v41, %v8859_v38  ;;  %v4000_v61 = vsel %vm3937_vm9, %v3921_v15, %v8824_v35 }
 0x2eb   : > { %v4079_v19 = vsel %vm3779_vm7, %v2409_v14, %v8820_v55  ;;  %9127 = vrot.lane.b32.xlu0 %v9126_v28, %s9384_s16  ;;  %v4001_v20 = vsel %vm3937_vm9, %v3922_v10, %v8825_v62  ;;  %v13514_v25 = vmax.f32 %v750_v29, 0.0  ;;  %v13516_v55 = vpop.permute.xlu1 %8842  ;;  %v4234_v13 = vsel %vm3937_vm9, %v4156_v22, %v8864_v51  ;;  %v13523_v28 = vpop.permute.xlu0 %8877 }
 0x2ec   : > { %9152 = vrot.lane.b32.xlu1 %v16472_v32, %s9382_s8  ;;  %v4157_v54 = vsel %vm3858_vm8, %v4079_v19, %v8860_v11  ;;  %v16473_v26 = vrot.slane %v13410_v6, 5  ;;  %v16474_v11 = vrot.slane %v13245_v45, 5  ;;  %v4343_v35 = vpack.c.bf16 %v4001_v20, %v4000_v61  ;;  %v16481_v61 = vld [vmem:[#allocation9_spill] sm:$0xff] }
 0x2ed   : > { %v4235_v56 = vsel %vm3937_vm9, %v4157_v54, %v8865_v18  ;;  %v16475_v18 = vpack.i.bf16 %v13277_v37, %v13230_v43  ;;  %v9146_v29 = vpack.i.bf16 %v13493_v42, %v13450_v16  ;;  %v16476_v59 = vrot.slane %v13328_v44, 1 }
 0x2ee   : > { %v3168_v21 = vsel %vm3151_vm5, %v3165_v39, %v16473_v26  ;;  %v4344_v38 = vpack.c.bf16 %v4235_v56, %v4234_v13  ;;  %v3166_v32 = vsel %vm3151_vm5, %v16474_v11, %v3165_v39  ;;  %v16477_v39 = vrot.slane %v13245_v45, 1 }
 0x2ef   : > { %v16478_v2 = vpack.i.bf16 %v13258_v7, %v13185_v40  ;;  %v9156_v15 = vpack.i.bf16 %v3168_v21, %v3166_v32  ;;  %v2540_v10 = vrot.slane %v13470_v30, 4  ;;  %v3169_v41 = vrot.slane %v13470_v30, 5  ;;  %v8853_v40 = vpop.permute.xlu1 %8852  ;;  %v16483_v32 = vld [vmem:[#allocation76_spill] sm:$0xff] }
 0x2f0   : > { %9162 = vrot.lane.b32.xlu1 %v16475_v18, %s9384_s16  ;;  %v13544_v14 = vsel %vm1256_vm3, %v16477_v39, %v16476_v59  ;;  %4915 = vmatprep.mubr.bf16.mxu1 %v4344_v38  ;;  %v16479_v51 = vrot.slane %v13410_v6, 1  ;;  %v16480_v22 = vmov %v16476_v59  ;;  %v755_v20 = vadd.f32 %v13362_v8, %v16481_v61  ;;  %v16482_v38 = vld [vmem:[#allocation72_spill] sm:$0xff]  ;;  %v8888_v59 = vpop.permute.xlu0 %8887 }
 0x2f1   : > { %9137 = vrot.lane.b32.xlu0 %v16478_v2, %s9383_s9  ;;  %v8810_v13 = vunpack.i.h.bf16 %v13387_v58  ;;  %v8809_v7 = vunpack.i.l.bf16 %v13387_v58  ;;  %4916 = vmatmul.mubr.bf16.gmra.mrb[84].mxu1 %v4343_v35  ;;  %v15865_v56 = vrot.slane %v13514_v25, 4  ;;  %v8815_v26 = vunpack.i.h.bf16 %v13412_v50 }
 0x2f2   : > { %v13557_v54 = vsel %vm1256_vm3, %v16480_v22, %v16479_v51  ;;  %v8814_v21 = vunpack.i.l.bf16 %v13412_v50  ;;  %v2410_v11 = vrot.slane %v16482_v38, 3  ;;  %v2412_v18 = vrot.slane %v16483_v32, 3 }
 0x2f3   : > { %v8850_v39 = vunpack.i.h.bf16 %v13421_v0  ;;  %v8849_v2 = vunpack.i.l.bf16 %v13421_v0  ;;  %v16484_v58 = vpack.i.bf16 %v13235_v5, %v13203_v24  ;;  %v8855_v22 = vunpack.i.h.bf16 %v8853_v40  ;;  %v13583_v24 = vpop.permute.xlu1 %8867 }
 0x2f4   : > { %v8854_v50 = vunpack.i.l.bf16 %v8853_v40  ;;  %v8890_v61 = vunpack.i.h.bf16 %v8888_v59  ;;  %v8889_v62 = vunpack.i.l.bf16 %v8888_v59  ;;  %v13577_v19 = vmax.f32 %v755_v20, 0.0  ;;  %v8893_v20 = vpop.permute.xlu0 %8892 }
 0x2f5   : > { %9172 = vrot.lane.b32.xlu1 %v16484_v58, %s9383_s9  ;;  %9147 = vrot.lane.b32.xlu0 %v9146_v29, %s9382_s8  ;;  %v3845_v0 = vsel %vm3779_vm7, %v16448_v53, %v8810_v13  ;;  %v3844_v60 = vsel %vm3779_vm7, %v16447_v12, %v8809_v7  ;;  %v13588_v5 = vsel %vm2516_vm4, %v2540_v10, %v15865_v56  ;;  %v16485_v40 = vrot.slane %v16467_v47, 3 }
 0x2f6   : > { %v2413_v29 = vsel %vm2280_vm6, %v2410_v11, %v2412_v18  ;;  %v3923_v13 = vsel %vm3858_vm8, %v3844_v60, %v8814_v21  ;;  %v3924_v7 = vsel %vm3858_vm8, %v3845_v0, %v8815_v26  ;;  %v8895_v35 = vunpack.i.h.bf16 %v8893_v20  ;;  %v16487_v21 = vld [vmem:[#allocation10_spill] sm:$0xff] }
 0x2f7   : > { %v2411_v59 = vsel %vm2280_vm6, %v16485_v40, %v2410_v11  ;;  %v4081_v51 = vsel %vm3779_vm7, %v2413_v29, %v8850_v39  ;;  %v8894_v56 = vunpack.i.l.bf16 %v8893_v20  ;;  %v16486_v53 = vpack.i.bf16 %v13230_v43, %v13119_v1 }
 0x2f8   : > { %v4080_v58 = vsel %vm3779_vm7, %v2411_v59, %v8849_v2  ;;  %v4159_v40 = vsel %vm3858_vm8, %v4081_v51, %v8890_v61  ;;  %v4002_v60 = vsel %vm3937_vm9, %v3923_v13, %v8854_v50  ;;  %v4003_v26 = vsel %vm3937_vm9, %v3924_v7, %v8855_v22  ;;  %v13611_v2 = vpop.permute.xlu1 %8872 }
 0x2f9   : > { %9182 = vrot.lane.b32.xlu1 %v16486_v53, %s9382_s8  ;;  %v4158_v11 = vsel %vm3858_vm8, %v4080_v58, %v8889_v62  ;;  %9157 = vrot.lane.b32.xlu0 %v9156_v15, %s9384_s16  ;;  %v760_v39 = vadd.f32 %v13362_v8, %v16487_v21  ;;  %v4237_v1 = vsel %vm3937_vm9, %v4159_v40, %v8895_v35  ;;  %v16488_v43 = vrot.slane %v13514_v25, 5  ;;  %v13618_v62 = vpop.permute.xlu0 %8907 }
 0x2fa   : > { %v4236_v0 = vsel %vm3937_vm9, %v4158_v11, %v8894_v56  ;;  %v16489_v51 = vrot.slane %v13410_v6, 2  ;;  %v16490_v22 = vrot.slane %v13328_v44, 2  ;;  %v16491_v35 = vpack.i.bf16 %v13457_v34, %v13377_v57 }
 0x2fb   : > { %v3172_v53 = vsel %vm3151_vm5, %v3169_v41, %v16488_v43  ;;  %v4347_v15 = vpack.c.bf16 %v4237_v1, %v4236_v0  ;;  %v4346_v61 = vpack.c.bf16 %v4003_v26, %v4002_v60  ;;  %v16492_v59 = vrot.slane %v13410_v6, 4 }
 0x2fc   : > { %v13625_v50 = vsel %vm1646_vm2, %v16490_v22, %v16489_v51  ;;  %v16493_v20 = vrot.slane %v13410_v6, 5  ;;  %v16494_v7 = vrot.slane %v13470_v30, 2  ;;  %v16495_v58 = vmov %v16489_v51  ;;  %v8883_v43 = vpop.permute.xlu1 %8882  ;;  %v16497_v51 = vld [vmem:[#allocation68_spill] sm:$0xff]  ;;  %v16498_v22 = vld [vmem:[#allocation107_spill] sm:$0xff] }
 0x2fd   : > { %9192 = vrot.lane.b32.xlu1 %v16491_v35, %s9384_s16  ;;  %v13637_v29 = vsel %vm2516_vm4, %v16492_v59, %v2540_v10  ;;  %4923 = vmatprep.mubr.bf16.mxu1 %v4347_v15  ;;  %v16496_v11 = vpack.i.bf16 %v13450_v16, %v13346_v3  ;;  %v13657_v21 = vmax.f32 %v760_v39, 0.0  ;;  %v8840_v0 = vunpack.i.h.bf16 %v13486_v48  ;;  %v8918_v59 = vpop.permute.xlu0 %8917 }
 0x2fe   : > { %v3170_v13 = vsel %vm3151_vm5, %v16493_v20, %v3169_v41  ;;  %v13647_v40 = vsel %vm1646_vm2, %v16495_v58, %v16494_v7  ;;  %v9176_v10 = vpack.i.bf16 %v13588_v5, %v13637_v29  ;;  %v8839_v1 = vunpack.i.l.bf16 %v13486_v48  ;;  %4924 = vmatmul.mubr.bf16.gmra.mrb[88].mxu1 %v4346_v61 }
 0x2ff   : > { %9167 = vrot.lane.b32.xlu0 %v16496_v11, %s9383_s9  ;;  %v9186_v60 = vpack.i.bf16 %v3172_v53, %v3170_v13  ;;  %v2544_v15 = vrot.slane %v13577_v19, 4  ;;  %v8845_v3 = vunpack.i.h.bf16 %v13516_v55  ;;  %v8844_v16 = vunpack.i.l.bf16 %v13516_v55 }
 0x300   : > { %v2414_v53 = vrot.slane %v16497_v51, 3  ;;  %v2416_v35 = vrot.slane %v16498_v22, 3  ;;  %v8880_v39 = vunpack.i.h.bf16 %v13523_v28  ;;  %v8879_v20 = vunpack.i.l.bf16 %v13523_v28  ;;  %v13679_v41 = vpop.permute.xlu1 %8897 }
 0x301   : > { %v16499_v48 = vpack.i.bf16 %v13419_v27, %v13430_v33  ;;  %v3173_v61 = vrot.slane %v13577_v19, 5  ;;  %v8885_v7 = vunpack.i.h.bf16 %v8883_v43  ;;  %v8884_v55 = vunpack.i.l.bf16 %v8883_v43 }
 0x302   : > { %v8920_v58 = vunpack.i.h.bf16 %v8918_v59  ;;  %v8919_v11 = vunpack.i.l.bf16 %v8918_v59  ;;  %v3847_v8 = vsel %vm3779_vm7, %v16467_v47, %v8840_v0  ;;  %v3846_v28 = vsel %vm3779_vm7, %v16466_v23, %v8839_v1  ;;  %v8923_v59 = vpop.permute.xlu0 %8922 }
 0x303   : > { %9202 = vrot.lane.b32.xlu1 %v16499_v48, %s9383_s9  ;;  %9177 = vrot.lane.b32.xlu0 %v9176_v10, %s9382_s8  ;;  %v15868_v27 = vrot.slane %v13657_v21, 4  ;;  %v15867_v33 = vrot.slane %v13657_v21, 5  ;;  %v3925_v48 = vsel %vm3858_vm8, %v3846_v28, %v8844_v16  ;;  %v3926_v43 = vsel %vm3858_vm8, %v3847_v8, %v8845_v3 }
 0x304   : > { %v2415_v10 = vsel %vm2280_vm6, %v2412_v18, %v2414_v53  ;;  %v2417_v0 = vsel %vm2280_vm6, %v2414_v53, %v2416_v35  ;;  %v8925_v26 = vunpack.i.h.bf16 %v8923_v59  ;;  %v8924_v56 = vunpack.i.l.bf16 %v8923_v59 }
 0x305   : > { %v4082_v1 = vsel %vm3779_vm7, %v2415_v10, %v8879_v20  ;;  %v4083_v13 = vsel %vm3779_vm7, %v2417_v0, %v8880_v39  ;;  %v16500_v16 = vpack.i.bf16 %v13377_v57, %v13277_v37  ;;  %v4004_v3 = vsel %vm3937_vm9, %v3925_v48, %v8884_v55  ;;  %v13702_v20 = vpop.permute.xlu1 %8902 }
 0x306   : > { %v4161_v8 = vsel %vm3858_vm8, %v4083_v13, %v8920_v58  ;;  %v4160_v18 = vsel %vm3858_vm8, %v4082_v1, %v8919_v11  ;;  %v4005_v53 = vsel %vm3937_vm9, %v3926_v43, %v8885_v7  ;;  %v9221_v37 = vpack.i.bf16 %v13647_v40, %v13625_v50  ;;  %v13710_v13 = vpop.permute.xlu0 %8937 }
 0x307   : > { %9212 = vrot.lane.b32.xlu1 %v16500_v16, %s9382_s8  ;;  %9187 = vrot.lane.b32.xlu0 %v9186_v60, %s9384_s16  ;;  %v4238_v39 = vsel %vm3937_vm9, %v4160_v18, %v8924_v56  ;;  %v4239_v28 = vsel %vm3937_vm9, %v4161_v8, %v8925_v26  ;;  %v9241_v57 = vpack.i.bf16 %v13625_v50, %v13457_v34  ;;  %v16501_v56 = vrot.slane %v13470_v30, 1 }
 0x308   : > { %v4350_v58 = vpack.c.bf16 %v4239_v28, %v4238_v39  ;;  %v9196_v60 = vpack.i.bf16 %v13637_v29, %v13493_v42  ;;  %v13717_v7 = vsel %vm2516_vm4, %v2544_v15, %v15868_v27  ;;  %v16502_v26 = vrot.slane %v13410_v6, 1 }
 0x309   : > { %v4349_v34 = vpack.c.bf16 %v4005_v53, %v4004_v3  ;;  %v16503_v50 = vrot.slane %v13514_v25, 4  ;;  %v16504_v42 = vrot.slane %v13514_v25, 2  ;;  %v16505_v29 = vrot.slane %v13470_v30, 2  ;;  %v8913_v28 = vpop.permute.xlu1 %8912  ;;  %v16513_v3 = vld [vmem:[#allocation12_spill] sm:$0xff] }
 0x30a   : > { %v13724_v55 = vsel %vm1256_vm3, %v16502_v26, %v16501_v56  ;;  %v16506_v43 = vrot.slane %v13514_v25, 1  ;;  %v16507_v10 = vmov %v16501_v56  ;;  %4931 = vmatprep.mubr.bf16.mxu1 %v4350_v58  ;;  %v3176_v1 = vsel %vm3151_vm5, %v3173_v61, %v15867_v33 }
 0x30b   : > { %9222 = vrot.lane.b32.xlu1 %v9221_v37, %s9384_s16  ;;  %v13730_v11 = vsel %vm2516_vm4, %v16503_v50, %v2544_v15  ;;  %v13737_v48 = vsel %vm1646_vm2, %v16505_v29, %v16504_v42  ;;  %9197 = vrot.lane.b32.xlu0 %v9196_v60, %s9383_s9  ;;  %v16508_v15 = vrot.slane %v13514_v25, 5  ;;  %v16509_v16 = vrot.slane %v13577_v19, 2  ;;  %v16511_v60 = vld [vmem:[#allocation81_spill] sm:$0xff]  ;;  %v8948_v50 = vpop.permute.xlu0 %8947 }
 0x30c   : > { %v13744_v0 = vsel %vm1256_vm3, %v16507_v10, %v16506_v43  ;;  %v16510_v8 = vmov %v16504_v42  ;;  %v8870_v53 = vunpack.i.h.bf16 %v13583_v24  ;;  %v8869_v39 = vunpack.i.l.bf16 %v13583_v24  ;;  %4932 = vmatmul.mubr.bf16.gmra.mrb[92].mxu1 %v4349_v34 }
 0x30d   : > { %v3174_v59 = vsel %vm3151_vm5, %v16508_v15, %v3173_v61  ;;  %v13758_v18 = vsel %vm1646_vm2, %v16510_v8, %v16509_v16  ;;  %v9206_v37 = vpack.i.bf16 %v13717_v7, %v13730_v11  ;;  %v8875_v61 = vunpack.i.h.bf16 %v13611_v2  ;;  %v13781_v33 = vpop.permute.xlu1 %8927 }
 0x30e   : > { %v8874_v58 = vunpack.i.l.bf16 %v13611_v2  ;;  %v2418_v56 = vrot.slane %v16511_v60, 3  ;;  %v2420_v26 = vrot.slane %v12196_v9, 3  ;;  %v8910_v42 = vunpack.i.h.bf16 %v13618_v62 }
 0x30f   : > { %v8909_v29 = vunpack.i.l.bf16 %v13618_v62  ;;  %v16512_v24 = vpack.i.bf16 %v13557_v54, %v13544_v14  ;;  %v9216_v34 = vpack.i.bf16 %v3176_v1, %v3174_v59  ;;  %v8915_v10 = vunpack.i.h.bf16 %v8913_v28  ;;  %9207 = vrot.lane.b32.xlu0 %v9206_v37, %s9382_s8  ;;  %v16514_v54 = vld [vmem:[#allocation11_spill] sm:$0xff] }
 0x310   : > { %v8914_v15 = vunpack.i.l.bf16 %v8913_v28  ;;  %v8950_v2 = vunpack.i.h.bf16 %v8948_v50  ;;  %v8949_v16 = vunpack.i.l.bf16 %v8948_v50  ;;  %v3849_v8 = vsel %vm3779_vm7, %v16483_v32, %v8870_v53  ;;  %v8953_v50 = vpop.permute.xlu0 %8952 }
 0x311   : > { %9232 = vrot.lane.b32.xlu1 %v16512_v24, %s9383_s9  ;;  %v3848_v62 = vsel %vm3779_vm7, %v16482_v38, %v8869_v39  ;;  %v2548_v14 = vrot.slane %v16513_v3, 4  ;;  %v15870_v59 = vrot.slane %v16514_v54, 4  ;;  %v3928_v28 = vsel %vm3858_vm8, %v3849_v8, %v8875_v61 }
 0x312   : > { %v3927_v1 = vsel %vm3858_vm8, %v3848_v62, %v8874_v58  ;;  %v2419_v37 = vsel %vm2280_vm6, %v2416_v35, %v2418_v56  ;;  %v2421_v53 = vsel %vm2280_vm6, %v2418_v56, %v2420_v26  ;;  %v8955_v43 = vunpack.i.h.bf16 %v8953_v50  ;;  %v13801_v56 = vpop.permute.xlu1 %8932 }
 0x313   : > { %v4084_v39 = vsel %vm3779_vm7, %v2419_v37, %v8909_v29  ;;  %v4085_v24 = vsel %vm3779_vm7, %v2421_v53, %v8910_v42  ;;  %v8954_v27 = vunpack.i.l.bf16 %v8953_v50  ;;  %9217 = vrot.lane.b32.xlu0 %v9216_v34, %s9384_s16  ;;  %v4006_v35 = vsel %vm3937_vm9, %v3927_v1, %v8914_v15 }
 0x314   : > { %v4163_v58 = vsel %vm3858_vm8, %v4085_v24, %v8950_v2  ;;  %v4162_v61 = vsel %vm3858_vm8, %v4084_v39, %v8949_v16  ;;  %v4007_v8 = vsel %vm3937_vm9, %v3928_v28, %v8915_v10  ;;  %v9251_v62 = vpack.i.bf16 %v13758_v18, %v13737_v48  ;;  %v13808_v2 = vpop.permute.xlu0 %8967 }
 0x315   : > { %9242 = vrot.lane.b32.xlu1 %v9241_v57, %s9382_s8  ;;  %v4240_v29 = vsel %vm3937_vm9, %v4162_v61, %v8954_v27  ;;  %v4241_v42 = vsel %vm3937_vm9, %v4163_v58, %v8955_v43  ;;  %v15869_v57 = vrot.slane %v16514_v54, 5  ;;  %v9226_v34 = vpack.i.bf16 %v13730_v11, %v13588_v5 }
 0x316   : > { %v4353_v16 = vpack.c.bf16 %v4241_v42, %v4240_v29  ;;  %v13815_v10 = vsel %vm2516_vm4, %v2548_v14, %v15870_v59  ;;  %v15871_v27 = vrot.slane %v13577_v19, 1  ;;  %v4352_v43 = vpack.c.bf16 %v4007_v8, %v4006_v35 }
 0x317   : > { %v9261_v15 = vpack.i.bf16 %v13744_v0, %v13724_v55  ;;  %v9271_v1 = vpack.i.bf16 %v13737_v48, %v13647_v40  ;;  %v3177_v28 = vrot.slane %v16513_v3, 5  ;;  %9227 = vrot.lane.b32.xlu0 %v9226_v34, %s9383_s9  ;;  %v16515_v5 = vrot.slane %v13657_v21, 4 }
 0x318   : > { %4939 = vmatprep.mubr.bf16.mxu1 %v4353_v16  ;;  %v16516_v37 = vrot.slane %v13657_v21, 2  ;;  %v16517_v53 = vrot.slane %v13577_v19, 2  ;;  %v16518_v55 = vrot.slane %v13657_v21, 1  ;;  %v8900_v48 = vunpack.i.h.bf16 %v13679_v41  ;;  %v8983_v29 = vpop.permute.xlu0 %8982 }
 0x319   : > { %9252 = vrot.lane.b32.xlu1 %v9251_v62, %s9384_s16  ;;  %v2549_v11 = vsel %vm2516_vm4, %v16515_v5, %v2548_v14  ;;  %v8899_v0 = vunpack.i.l.bf16 %v13679_v41  ;;  %4940 = vmatmul.mubr.bf16.gmra.mrb[96].mxu1 %v4352_v43  ;;  %v8943_v14 = vpop.permute.xlu1 %8942  ;;  %v3180_v24 = vsel %vm3151_vm5, %v3177_v28, %v15869_v57  ;;  %v8905_v58 = vunpack.i.h.bf16 %v13702_v20 }
 0x31a   : > { %v13833_v50 = vsel %vm1646_vm2, %v16517_v53, %v16516_v37  ;;  %v13840_v40 = vsel %vm1256_vm3, %v15871_v27, %v16518_v55  ;;  %v9236_v39 = vpack.i.bf16 %v13815_v10, %v2549_v11  ;;  %v8904_v61 = vunpack.i.l.bf16 %v13702_v20 }
 0x31b   : > { %v2422_v35 = vrot.slane %v12286_v49, 3  ;;  %v2424_v8 = vrot.slane %v12334_v31, 3  ;;  %v16519_v42 = vrot.slane %v16513_v3, 2  ;;  %v16520_v41 = vmov %v16516_v37 }
 0x31c   : > { %v8940_v16 = vunpack.i.h.bf16 %v13710_v13  ;;  %v8939_v34 = vunpack.i.l.bf16 %v13710_v13  ;;  %v16521_v20 = vrot.slane %v13657_v21, 5  ;;  %v8945_v5 = vunpack.i.h.bf16 %v8943_v14  ;;  %9237 = vrot.lane.b32.xlu0 %v9236_v39, %s9382_s8  ;;  %v8988_v39 = vpop.permute.xlu0 %8987 }
 0x31d   : > { %v13857_v62 = vsel %vm1646_vm2, %v16520_v41, %v16519_v42  ;;  %9262 = vrot.lane.b32.xlu1 %v9261_v15, %s9383_s9  ;;  %v8944_v37 = vunpack.i.l.bf16 %v8943_v14  ;;  %v8985_v53 = vunpack.i.h.bf16 %v8983_v29  ;;  %v8984_v55 = vunpack.i.l.bf16 %v8983_v29  ;;  %v13870_v57 = vpop.permute.xlu1 %8957  ;;  %v16522_v15 = vld [vmem:[#allocation13_spill] sm:$0xff] }
 0x31e   : > { %v3178_v43 = vsel %vm3151_vm5, %v16521_v20, %v3177_v28  ;;  %v3851_v42 = vsel %vm3779_vm7, %v16498_v22, %v8900_v48  ;;  %v3850_v41 = vsel %vm3779_vm7, %v16497_v51, %v8899_v0  ;;  %v2552_v59 = vrot.slane %v16522_v15, 4 }
 0x31f   : > { %v9246_v13 = vpack.i.bf16 %v3180_v24, %v3178_v43  ;;  %v3929_v27 = vsel %vm3858_vm8, %v3850_v41, %v8904_v61  ;;  %v3930_v28 = vsel %vm3858_vm8, %v3851_v42, %v8905_v58  ;;  %v2423_v14 = vsel %vm2280_vm6, %v2420_v26, %v2422_v35 }
 0x320   : > { %v2425_v48 = vsel %vm2280_vm6, %v2422_v35, %v2424_v8  ;;  %v4086_v0 = vsel %vm3779_vm7, %v2423_v14, %v8939_v34  ;;  %v8990_v24 = vunpack.i.h.bf16 %v8988_v39  ;;  %v8989_v20 = vunpack.i.l.bf16 %v8988_v39 }
 0x321   : > { %v4087_v29 = vsel %vm3779_vm7, %v2425_v48, %v8940_v16  ;;  %9272 = vrot.lane.b32.xlu1 %v9271_v1, %s9382_s8  ;;  %v4164_v58 = vsel %vm3858_vm8, %v4086_v0, %v8984_v55  ;;  %9247 = vrot.lane.b32.xlu0 %v9246_v13, %s9384_s16  ;;  %v4008_v26 = vsel %vm3937_vm9, %v3929_v27, %v8944_v37  ;;  %v13889_v35 = vpop.permute.xlu1 %8962  ;;  %v16523_v1 = vld [vmem:[#allocation14_spill] sm:$0xff]  ;;  %v16526_v14 = vrot.slane %v13514_v25, 1 }
 0x322   : > { %v4165_v61 = vsel %vm3858_vm8, %v4087_v29, %v8985_v53  ;;  %v4009_v43 = vsel %vm3937_vm9, %v3930_v28, %v8945_v5  ;;  %v4242_v34 = vsel %vm3937_vm9, %v4164_v58, %v8989_v20  ;;  %v9281_v42 = vpack.i.bf16 %v13857_v62, %v13833_v50  ;;  %v13896_v53 = vpop.permute.xlu0 %8992 }
 0x323   : > { %v4243_v16 = vsel %vm3937_vm9, %v4165_v61, %v8990_v24  ;;  %v3183_v41 = vrot.slane %v16523_v1, 5  ;;  %v9256_v13 = vpack.i.bf16 %v2549_v11, %v13717_v7  ;;  %v16524_v27 = vrot.slane %v16523_v1, 4 }
 0x324   : > { %v4356_v55 = vpack.c.bf16 %v4243_v16, %v4242_v34  ;;  %v4355_v37 = vpack.c.bf16 %v4009_v43, %v4008_v26  ;;  %v16525_v28 = vrot.slane %v13577_v19, 1  ;;  %v3181_v39 = vrot.slane %v16522_v15, 5 }
 0x325   : > { %v13902_v5 = vsel %vm2516_vm4, %v2552_v59, %v16524_v27  ;;  %9282 = vrot.lane.b32.xlu1 %v9281_v42, %s9384_s16  ;;  %9257 = vrot.lane.b32.xlu0 %v9256_v13, %s9383_s9  ;;  %v16527_v11 = vrot.slane %v16514_v54, 4  ;;  %v8930_v29 = vunpack.i.h.bf16 %v13781_v33  ;;  %v8929_v24 = vunpack.i.l.bf16 %v13781_v33  ;;  %v8973_v20 = vpop.permute.xlu1 %8972 }
 0x326   : > { %v1291_v48 = vsel %vm1256_vm3, %v16526_v14, %v16525_v28  ;;  %4947 = vmatprep.mubr.bf16.mxu1 %v4356_v55  ;;  %v3184_v58 = vsel %vm3151_vm5, %v3181_v39, %v3183_v41  ;;  %v8935_v26 = vunpack.i.h.bf16 %v13801_v56  ;;  %v2426_v43 = vrot.slane %v12409_v4, 3  ;;  %v9008_v34 = vpop.permute.xlu0 %9007 }
 0x327   : > { %v9291_v7 = vpack.i.bf16 %v13840_v40, %v1291_v48  ;;  %v2553_v0 = vsel %vm2516_vm4, %v16527_v11, %v2552_v59  ;;  %4948 = vmatmul.mubr.bf16.gmra.mrb[100].mxu1 %v4355_v37  ;;  %v8934_v40 = vunpack.i.l.bf16 %v13801_v56  ;;  %v2428_v59 = vrot.slane %v12519_v52, 3 }
 0x328   : > { %v9266_v61 = vpack.i.bf16 %v13902_v5, %v2553_v0  ;;  %v8970_v16 = vunpack.i.h.bf16 %v13808_v2  ;;  %v8969_v33 = vunpack.i.l.bf16 %v13808_v2  ;;  %v9301_v42 = vpack.i.bf16 %v13833_v50, %v13758_v18 }
 0x329   : > { %9292 = vrot.lane.b32.xlu1 %v9291_v7, %s9383_s9  ;;  %v16528_v55 = vrot.slane %v16514_v54, 5  ;;  %v8975_v27 = vunpack.i.h.bf16 %v8973_v20  ;;  %v8974_v56 = vunpack.i.l.bf16 %v8973_v20  ;;  %v9010_v37 = vunpack.i.h.bf16 %v9008_v34  ;;  %v13939_v48 = vpop.permute.xlu1 %8977 }
 0x32a   : > { %v9009_v28 = vunpack.i.l.bf16 %v9008_v34  ;;  %9267 = vrot.lane.b32.xlu0 %v9266_v61, %s9382_s8  ;;  %v3853_v14 = vsel %vm3779_vm7, %v12196_v9, %v8930_v29  ;;  %v3852_v2 = vsel %vm3779_vm7, %v16511_v60, %v8929_v24  ;;  %v1294_v18 = vrot.slane %v16513_v3, 1  ;;  %v9013_v20 = vpop.permute.xlu0 %9012 }
 0x32b   : > { %v3182_v13 = vsel %vm3151_vm5, %v16528_v55, %v3181_v39  ;;  %v3931_v50 = vsel %vm3858_vm8, %v3852_v2, %v8934_v40  ;;  %v3932_v39 = vsel %vm3858_vm8, %v3853_v14, %v8935_v26  ;;  %v2427_v11 = vsel %vm2280_vm6, %v2424_v8, %v2426_v43 }
 0x32c   : > { %v9276_v7 = vpack.i.bf16 %v3184_v58, %v3182_v13  ;;  %v2429_v29 = vsel %vm2280_vm6, %v2426_v43, %v2428_v59  ;;  %v4088_v24 = vsel %vm3779_vm7, %v2427_v11, %v8969_v33  ;;  %v9015_v58 = vunpack.i.h.bf16 %v9013_v20  ;;  %v16534_v11 = vld [vmem:[#allocation17_spill] sm:$0xff] }
 0x32d   : > { %v4089_v61 = vsel %vm3779_vm7, %v2429_v29, %v8970_v16  ;;  %v9014_v34 = vunpack.i.l.bf16 %v9013_v20  ;;  %9302 = vrot.lane.b32.xlu1 %v9301_v42, %s9382_s8  ;;  %v4166_v26 = vsel %vm3858_vm8, %v4088_v24, %v9009_v28  ;;  %v4010_v8 = vsel %vm3937_vm9, %v3931_v50, %v8974_v56  ;;  %v8998_v43 = vpop.permute.xlu1 %8997  ;;  %v16529_v16 = vld [vmem:[#allocation22_spill] sm:$0xff]  ;;  %v16531_v56 = vld [vmem:[#allocation16_spill] sm:$0xff]  ;;  %v16532_v50 = vld [vmem:[#allocation15_spill] sm:$0xff] }
 0x32e   : > { %v4167_v40 = vsel %vm3858_vm8, %v4089_v61, %v9010_v37  ;;  %9277 = vrot.lane.b32.xlu0 %v9276_v7, %s9384_s16  ;;  %v4011_v55 = vsel %vm3937_vm9, %v3932_v39, %v8975_v27  ;;  %v15872_v14 = vrot.slane %v16529_v16, 5  ;;  %v13961_v2 = vpop.permute.xlu0 %9017  ;;  %v9286_v37 = vpack.i.bf16 %v2553_v0, %v13815_v10 }
 0x32f   : > { %v4244_v13 = vsel %vm3937_vm9, %v4166_v26, %v9014_v34  ;;  %v4245_v33 = vsel %vm3937_vm9, %v4167_v40, %v9015_v58  ;;  %v16530_v28 = vrot.slane %v16514_v54, 1  ;;  %v16533_v27 = vpack.i.bf16 %v16531_v56, %v16532_v50 }
 0x330   : > { %v4359_v42 = vpack.c.bf16 %v4245_v33, %v4244_v13  ;;  %v4358_v39 = vpack.c.bf16 %v4011_v55, %v4010_v8  ;;  %v3185_v29 = vrot.slane %v16534_v11, 5  ;;  %v9331_v20 = vpack.i.bf16 %v16532_v50, %v13857_v62  ;;  %v16537_v50 = vld [vmem:[#allocation26_spill] sm:$0xff] }
 0x331   : > { %v1297_v7 = vsel %vm1256_vm3, %v1294_v18, %v16530_v28  ;;  %9312 = vrot.lane.b32.xlu1 %v16533_v27, %s9384_s16  ;;  %v16535_v10 = vrot.slane %v13657_v21, 1  ;;  %v8960_v24 = vunpack.i.h.bf16 %v13870_v57  ;;  %v8959_v61 = vunpack.i.l.bf16 %v13870_v57  ;;  %v13980_v58 = vpop.permute.xlu1 %9002 }
 0x332   : > { %4955 = vmatprep.mubr.bf16.mxu1 %v4359_v42  ;;  %9287 = vrot.lane.b32.xlu0 %v9286_v37, %s9383_s9  ;;  %v3188_v40 = vsel %vm3151_vm5, %v3185_v29, %v15872_v14  ;;  %v8965_v62 = vunpack.i.h.bf16 %v13889_v35  ;;  %v8964_v26 = vunpack.i.l.bf16 %v13889_v35  ;;  %v2430_v8 = vrot.slane %v12636_v63, 3  ;;  %v9023_v55 = vpop.permute.xlu0 %9022  ;;  %v16536_v42 = vld [vmem:[#allocation25_spill] sm:$0xff] }
 0x333   : > { %v1295_v0 = vsel %vm1256_vm3, %v16535_v10, %v1294_v18  ;;  %4956 = vmatmul.mubr.bf16.gmra.mrb[104].mxu1 %v4358_v39  ;;  %v2432_v18 = vrot.slane %v12649_v17, 3  ;;  %v8995_v13 = vunpack.i.h.bf16 %v13896_v53  ;;  %v8994_v57 = vunpack.i.l.bf16 %v13896_v53  ;;  %v16539_v39 = vld [vmem:[#allocation112_spill] sm:$0xff] }
 0x334   : > { %v9321_v34 = vpack.i.bf16 %v1297_v7, %v1295_v0  ;;  %v3186_v33 = vsel %vm3151_vm5, %v3183_v41, %v3185_v29  ;;  %v9316_v37 = vpack.i.bf16 %v16536_v42, %v13902_v5  ;;  %v9000_v28 = vunpack.i.h.bf16 %v8998_v43 }
 0x335   : > { %v8999_v35 = vunpack.i.l.bf16 %v8998_v43  ;;  %v9025_v7 = vunpack.i.h.bf16 %v9023_v55  ;;  %v9024_v56 = vunpack.i.l.bf16 %v9023_v55  ;;  %v16538_v27 = vpack.i.bf16 %v16537_v50, %v16536_v42  ;;  %v9043_v29 = vpop.permute.xlu1 %9042 }
 0x336   : > { %9322 = vrot.lane.b32.xlu1 %v9321_v34, %s9383_s9  ;;  %v2436_v53 = vrot.slane %v16539_v39, 3  ;;  %v3855_v10 = vsel %vm3779_vm7, %v12334_v31, %v8960_v24  ;;  %v3854_v41 = vsel %vm3779_vm7, %v12286_v49, %v8959_v61  ;;  %v9306_v0 = vpack.i.bf16 %v3188_v40, %v3186_v33  ;;  %v9028_v42 = vpop.permute.xlu0 %9027 }
 0x337   : > { %9297 = vrot.lane.b32.xlu0 %v16538_v27, %s9382_s8  ;;  %v3933_v5 = vsel %vm3858_vm8, %v3854_v41, %v8964_v26  ;;  %v3934_v43 = vsel %vm3858_vm8, %v3855_v10, %v8965_v62  ;;  %v2431_v34 = vsel %vm2280_vm6, %v2428_v59, %v2430_v8  ;;  %v2433_v55 = vsel %vm2280_vm6, %v2430_v8, %v2432_v18  ;;  %v16540_v8 = vld [vmem:[#allocation93_spill] sm:$0xff] }
 0x338   : > { %v4090_v50 = vsel %vm3779_vm7, %v2431_v34, %v8994_v57  ;;  %v4091_v24 = vsel %vm3779_vm7, %v2433_v55, %v8995_v13  ;;  %v9030_v27 = vunpack.i.h.bf16 %v9028_v42  ;;  %v9029_v14 = vunpack.i.l.bf16 %v9028_v42  ;;  %v16544_v55 = vld [vmem:[#allocation24_spill] sm:$0xff] }
 0x339   : > { %v4169_v61 = vsel %vm3858_vm8, %v4091_v24, %v9025_v7  ;;  %v4168_v40 = vsel %vm3858_vm8, %v4090_v50, %v9024_v56  ;;  %v4012_v62 = vsel %vm3937_vm9, %v3933_v5, %v8999_v35  ;;  %v4013_v59 = vsel %vm3937_vm9, %v3934_v43, %v9000_v28  ;;  %v14022_v33 = vpop.permute.xlu1 %9052  ;;  %v16541_v5 = vld [vmem:[#allocation23_spill] sm:$0xff]  ;;  %v16542_v43 = vld [vmem:[#allocation18_spill] sm:$0xff] }
 0x33a   : > { %9332 = vrot.lane.b32.xlu1 %v9331_v20, %s9382_s8  ;;  %v8980_v26 = vunpack.i.h.bf16 %v13939_v48  ;;  %v2434_v57 = vrot.slane %v16540_v8, 3  ;;  %v4246_v13 = vsel %vm3937_vm9, %v4168_v40, %v9029_v14  ;;  %v4247_v20 = vsel %vm3937_vm9, %v4169_v61, %v9030_v27  ;;  %v9033_v41 = vpop.permute.xlu0 %9032  ;;  %v16545_v40 = vld [vmem:[#allocation27_spill] sm:$0xff] }
 0x33b   : > { %9307 = vrot.lane.b32.xlu0 %v9306_v0, %s9384_s16  ;;  %v8979_v7 = vunpack.i.l.bf16 %v13939_v48  ;;  %v9020_v56 = vunpack.i.h.bf16 %v13961_v2  ;;  %v9019_v10 = vunpack.i.l.bf16 %v13961_v2  ;;  %v4362_v35 = vpack.c.bf16 %v4247_v20, %v4246_v13 }
 0x33c   : > { %v9005_v28 = vunpack.i.h.bf16 %v13980_v58  ;;  %v9004_v0 = vunpack.i.l.bf16 %v13980_v58  ;;  %v16543_v34 = vpack.i.bf16 %v16541_v5, %v16542_v43  ;;  %v4361_v14 = vpack.c.bf16 %v4013_v59, %v4012_v62 }
 0x33d   : > { %v3189_v42 = vrot.slane %v16544_v55, 5  ;;  %v9045_v50 = vunpack.i.h.bf16 %v9043_v29  ;;  %v9044_v48 = vunpack.i.l.bf16 %v9043_v29  ;;  %v9035_v24 = vunpack.i.h.bf16 %v9033_v41  ;;  %4963 = vmatprep.mubr.bf16.mxu1 %v4362_v35  ;;  %v9063_v58 = vpop.permute.xlu1 %9062 }
 0x33e   : > { %9342 = vrot.lane.b32.xlu1 %v16543_v34, %s9384_s16  ;;  %v9034_v27 = vunpack.i.l.bf16 %v9033_v41  ;;  %v2435_v2 = vsel %vm2280_vm6, %v2432_v18, %v2434_v57  ;;  %v2437_v61 = vsel %vm2280_vm6, %v2434_v57, %v2436_v53  ;;  %4964 = vmatmul.mubr.bf16.gmra.mrb[108].mxu1 %v4361_v14  ;;  %v16546_v13 = vrot.slane %v16545_v40, 5  ;;  %v9038_v41 = vpop.permute.xlu0 %9037  ;;  %v16548_v34 = vld [vmem:[#allocation28_spill] sm:$0xff] }
 0x33f   : > { %9317 = vrot.lane.b32.xlu0 %v9316_v37, %s9383_s9  ;;  %v3857_v62 = vsel %vm3779_vm7, %v12519_v52, %v8980_v26  ;;  %v3856_v29 = vsel %vm3779_vm7, %v12409_v4, %v8979_v7  ;;  %v4092_v59 = vsel %vm3779_vm7, %v2435_v2, %v9019_v10  ;;  %v4093_v37 = vsel %vm3779_vm7, %v2437_v61, %v9020_v56  ;;  %v16547_v26 = vld [vmem:[#allocation36_spill] sm:$0xff]  ;;  %v16551_v61 = vld [vmem:[#allocation33_spill] sm:$0xff] }
 0x340   : > { %v3192_v20 = vsel %vm3151_vm5, %v3189_v42, %v16546_v13  ;;  %v3936_v18 = vsel %vm3858_vm8, %v3857_v62, %v9005_v28  ;;  %v3935_v53 = vsel %vm3858_vm8, %v3856_v29, %v9004_v0  ;;  %v9040_v57 = vunpack.i.h.bf16 %v9038_v41 }
 0x341   : > { %v9039_v35 = vunpack.i.l.bf16 %v9038_v41  ;;  %v4171_v5 = vsel %vm3858_vm8, %v4093_v37, %v9035_v24  ;;  %v4170_v43 = vsel %vm3858_vm8, %v4092_v59, %v9034_v27  ;;  %v16549_v14 = vpack.i.bf16 %v16547_v26, %v16548_v34  ;;  %v9073_v10 = vpop.permute.xlu1 %9072  ;;  %v16552_v37 = vld [vmem:[#allocation58_spill] sm:$0xff] }
 0x342   : > { %v4014_v7 = vsel %vm3937_vm9, %v3935_v53, %v9044_v48  ;;  %v4015_v56 = vsel %vm3937_vm9, %v3936_v18, %v9045_v50  ;;  %v16550_v28 = vrot.slane %v16529_v16, 5  ;;  %v4249_v24 = vsel %vm3937_vm9, %v4171_v5, %v9040_v57  ;;  %v9048_v13 = vpop.permute.xlu0 %9047  ;;  %v16553_v48 = vld [vmem:[#allocation31_spill] sm:$0xff]  ;;  %v16554_v18 = vld [vmem:[#allocation38_spill] sm:$0xff] }
 0x343   : > { %9327 = vrot.lane.b32.xlu0 %v16549_v14, %s9382_s8  ;;  %v4248_v2 = vsel %vm3937_vm9, %v4170_v43, %v9039_v35  ;;  %v2282_v27 = vrot.slane %v16551_v61, 3  ;;  %v4364_v59 = vpack.c.bf16 %v4015_v56, %v4014_v7  ;;  %v15878_v41 = vrot.slane %v16552_v37, 6  ;;  %v16555_v5 = vld [vmem:[#allocation47_spill] sm:$0xff] }
 0x344   : > { %v3190_v0 = vsel %vm3151_vm5, %v16550_v28, %v3189_v42  ;;  %v4365_v29 = vpack.c.bf16 %v4249_v24, %v4248_v2  ;;  %v2281_v53 = vrot.slane %v16553_v48, 3  ;;  %v9055_v50 = vunpack.i.h.bf16 %v14022_v33  ;;  %v16559_v35 = vld [vmem:[#allocation19_spill] sm:$0xff] }
 0x345   : > { %v9336_v62 = vpack.i.bf16 %v3192_v20, %v3190_v0  ;;  %v9054_v42 = vunpack.i.l.bf16 %v14022_v33  ;;  %v14070_v57 = vpop.permute.xlu1 %9082  ;;  %v3545_v20 = vrot.slane %v16555_v5, 6  ;;  %v9065_v43 = vunpack.i.h.bf16 %v9063_v58  ;;  %v16557_v0 = vld [vmem:[#allocation46_spill] sm:$0xff] }
 0x346   : > { %4971 = vmatprep.mubr.bf16.mxu1 %v4365_v29  ;;  %v9064_v26 = vunpack.i.l.bf16 %v9063_v58  ;;  %v2283_v34 = vsel %vm2280_vm6, %v2281_v53, %v2282_v27  ;;  %v9058_v14 = vpop.permute.xlu0 %9057  ;;  %v16556_v7 = vmov 0.0   ;;  %v9050_v56 = vunpack.i.h.bf16 %v9048_v13  ;;  %v16558_v58 = vld [vmem:[#allocation20_spill] sm:$0xff] }
 0x347   : > { %9337 = vrot.lane.b32.xlu0 %v9336_v62, %s9384_s16  ;;  %4972 = vmatmul.mubr.bf16.gmra.mrb[112].mxu1 %v4364_v59  ;;  %v9049_v28 = vunpack.i.l.bf16 %v9048_v13  ;;  %v3544_v33 = vrot.slane %v16557_v0, 6  ;;  %v3548_v2 = vsel %vm3543_vm10, %v3545_v20, %v15878_v41  ;;  %v9075_v24 = vunpack.i.h.bf16 %v9073_v10 }
 0x348   : > { %7553 = vmatprep.mubr.msk.bf16.mxu1 %vm9379_vm0, %v16556_v7  ;;  %v9074_v62 = vunpack.i.l.bf16 %v9073_v10  ;;  %v9060_v29 = vunpack.i.h.bf16 %v9058_v14  ;;  %v9059_v59 = vunpack.i.l.bf16 %v9058_v14  ;;  %v3781_v53 = vsel %vm3779_vm7, %v16558_v58, %v9055_v50 }
 0x349   : > { %v3780_v17 = vsel %vm3779_vm7, %v16559_v35, %v9054_v42  ;;  %v16560_v63 = vrot.slane %v16554_v18, 3  ;;  %v9093_v52 = vpop.permute.xlu1 %9092  ;;  %v3546_v4 = vsel %vm3543_vm10, %v3544_v33, %v3545_v20  ;;  %v3860_v41 = vsel %vm3858_vm8, %v3781_v53, %v9065_v43 }
 0x34a   : > { %v3859_v31 = vsel %vm3858_vm8, %v3780_v17, %v9064_v26  ;;  %v9068_v10 = vpop.permute.xlu0 %9067  ;;  %v4252_v49 = vpack.c.bf16 %v3548_v2, %v3546_v4  ;;  %v15882_v14 = vrot.slane %v13078_v36, 6  ;;  %v4016_v58 = vsel %vm3779_vm7, %v2283_v34, %v9049_v28  ;;  %v16561_v34 = vld [vmem:[#allocation97_spill] sm:$0xff] }
 0x34b   : > { %v2285_v13 = vsel %vm2280_vm6, %v2282_v27, %v16560_v63  ;;  %v9070_v42 = vunpack.i.h.bf16 %v9068_v10  ;;  %v9069_v35 = vunpack.i.l.bf16 %v9068_v10  ;;  %v3938_v9 = vsel %vm3937_vm9, %v3859_v31, %v9074_v62 }
 0x34c   : > { %v4017_v50 = vsel %vm3779_vm7, %v2285_v13, %v9050_v56  ;;  %v3939_v63 = vsel %vm3937_vm9, %v3860_v41, %v9075_v24  ;;  %v4094_v27 = vsel %vm3858_vm8, %v4016_v58, %v9059_v59  ;;  %v3549_v31 = vrot.slane %v16561_v34, 6 }
 0x34d   : > { %v4095_v17 = vsel %vm3858_vm8, %v4017_v50, %v9060_v29  ;;  %v9103_v20 = vpop.permute.xlu1 %9102  ;;  %v4172_v4 = vsel %vm3937_vm9, %v4094_v27, %v9069_v35  ;;  %v4250_v28 = vpack.c.bf16 %v3939_v63, %v3938_v9  ;;  %v9084_v33 = vunpack.i.l.bf16 %v14070_v57 }
 0x34e   : > { %v4173_v43 = vsel %vm3937_vm9, %v4095_v17, %v9070_v42  ;;  %v9078_v26 = vpop.permute.xlu0 %9077  ;;  %v3552_v41 = vsel %vm3543_vm10, %v3549_v31, %v15882_v14  ;;  %v2286_v2 = vrot.slane %v16557_v0, 3  ;;  %v2288_v24 = vrot.slane %v16555_v5, 3 }
 0x34f   : > { %7554 = vmatmul.mubr.msk.bf16.vlgmr.msra.gmra.mrb[116].mxu1 %vm3779_vm7, %v4252_v49  ;;  %v4251_v56 = vpack.c.bf16 %v4173_v43, %v4172_v4  ;;  %v9085_v49 = vunpack.i.h.bf16 %v14070_v57  ;;  %v9095_v29 = vunpack.i.h.bf16 %v9093_v52  ;;  %v9094_v59 = vunpack.i.l.bf16 %v9093_v52  ;;  %v16563_v57 = vld [vmem:[#allocation100_spill] sm:$0xff]  ;;  %v16564_v52 = vld [vmem:[#allocation21_spill] sm:$0xff] }
 0x350   : > { %7557 = vmatprep.mubr.msk.bf16.mxu1 %vm9379_vm0, %v16556_v7  ;;  %v16562_v9 = vrot.slane %v16552_v37, 6  ;;  %v15881_v10 = vrot.slane %v13245_v45, 6  ;;  %v9080_v50 = vunpack.i.h.bf16 %v9078_v26  ;;  %v9079_v58 = vunpack.i.l.bf16 %v9078_v26 }
 0x351   : > { %4667 = vmatprep.mubr.bf16.mxu0 %v4251_v56  ;;  %v14110_v62 = vpop.permute.xlu1 %9112  ;;  %v3553_v35 = vrot.slane %v16563_v57, 6  ;;  %v9105_v63 = vunpack.i.h.bf16 %v9103_v20  ;;  %v9104_v27 = vunpack.i.l.bf16 %v9103_v20  ;;  %v3783_v43 = vsel %vm3779_vm7, %v16553_v48, %v9085_v49 }
 0x352   : > { %4668 = vmatmul.mubr.bf16.vlgmr.msra.gmra.mrb[172].mxu0 %v4250_v28  ;;  %v9088_v53 = vpop.permute.xlu0 %9087  ;;  %v3550_v13 = vsel %vm3543_vm10, %v16562_v9, %v3549_v31  ;;  %v3782_v56 = vsel %vm3779_vm7, %v16564_v52, %v9084_v33  ;;  %v16565_v28 = vrot.slane %v16554_v18, 3  ;;  %v3862_v9 = vsel %vm3858_vm8, %v3783_v43, %v9095_v29 }
 0x353   : > { %v4255_v42 = vpack.c.bf16 %v3552_v41, %v3550_v13  ;;  %v9090_v17 = vunpack.i.h.bf16 %v9088_v53  ;;  %v9089_v4 = vunpack.i.l.bf16 %v9088_v53  ;;  %v3861_v41 = vsel %vm3858_vm8, %v3782_v56, %v9094_v59 }
 0x354   : > { %v2287_v31 = vsel %vm2280_vm6, %v16565_v28, %v2286_v2  ;;  %v2289_v20 = vsel %vm2280_vm6, %v2286_v2, %v2288_v24  ;;  %v3556_v48 = vsel %vm3543_vm10, %v3553_v35, %v15881_v10  ;;  %v3940_v2 = vsel %vm3937_vm9, %v3861_v41, %v9104_v27 }
 0x355   : > { %v9123_v26 = vpop.permute.xlu1 %9122  ;;  %v4019_v49 = vsel %vm3779_vm7, %v2289_v20, %v9080_v50  ;;  %v4018_v33 = vsel %vm3779_vm7, %v2287_v31, %v9079_v58  ;;  %v3941_v43 = vsel %vm3937_vm9, %v3862_v9, %v9105_v63  ;;  %v16566_v50 = vrot.slane %v13078_v36, 6 }
 0x356   : > { %v9098_v53 = vpop.permute.xlu0 %9097  ;;  %v4096_v59 = vsel %vm3858_vm8, %v4018_v33, %v9089_v4  ;;  %v4097_v29 = vsel %vm3858_vm8, %v4019_v49, %v9090_v17  ;;  %v2290_v31 = vrot.slane %v16552_v37, 3  ;;  %v4253_v4 = vpack.c.bf16 %v3941_v43, %v3940_v2 }
 0x357   : > { %7558 = vmatmul.mubr.msk.bf16.gmra.mrb[120].mxu1 %vm3779_vm7, %v4255_v42  ;;  %v9100_v13 = vunpack.i.h.bf16 %v9098_v53  ;;  %v9099_v42 = vunpack.i.l.bf16 %v9098_v53  ;;  %v3554_v58 = vsel %vm3543_vm10, %v16566_v50, %v3553_v35  ;;  %v3559_v17 = vrot.slane %v13410_v6, 6 }
 0x358   : > { %7561 = vmatprep.mubr.msk.bf16.mxu1 %vm9379_vm0, %v16556_v7  ;;  %v4258_v20 = vpack.c.bf16 %v3556_v48, %v3554_v58  ;;  %v9115_v63 = vunpack.i.h.bf16 %v14110_v62  ;;  %v9114_v27 = vunpack.i.l.bf16 %v14110_v62  ;;  %v2292_v41 = vrot.slane %v16561_v34, 3 }
 0x359   : > { %v9133_v52 = vpop.permute.xlu1 %9132  ;;  %v4174_v56 = vsel %vm3937_vm9, %v4096_v59, %v9099_v42  ;;  %v4175_v28 = vsel %vm3937_vm9, %v4097_v29, %v9100_v13  ;;  %v3557_v35 = vrot.slane %v13328_v44, 6  ;;  %v9125_v53 = vunpack.i.h.bf16 %v9123_v26 }
 0x35a   : > { %v9108_v10 = vpop.permute.xlu0 %9107  ;;  %v4254_v14 = vpack.c.bf16 %v4175_v28, %v4174_v56  ;;  %v9124_v49 = vunpack.i.l.bf16 %v9123_v26  ;;  %v9135_v42 = vunpack.i.h.bf16 %v9133_v52  ;;  %v9134_v59 = vunpack.i.l.bf16 %v9133_v52 }
 0x35b   : > { %v9110_v48 = vunpack.i.h.bf16 %v9108_v10  ;;  %v9109_v13 = vunpack.i.l.bf16 %v9108_v10  ;;  %v3560_v62 = vsel %vm3543_vm10, %v3557_v35, %v3559_v17  ;;  %v3785_v43 = vsel %vm3779_vm7, %v16554_v18, %v9115_v63 }
 0x35c   : > { %4675 = vmatprep.mubr.bf16.mxu0 %v4254_v14  ;;  %v2291_v14 = vsel %vm2280_vm6, %v2288_v24, %v2290_v31  ;;  %v3784_v26 = vsel %vm3779_vm7, %v16551_v61, %v9114_v27  ;;  %v2293_v56 = vsel %vm2280_vm6, %v2290_v31, %v2292_v41  ;;  %v16567_v24 = vrot.slane %v13245_v45, 6 }
 0x35d   : > { %4676 = vmatmul.mubr.bf16.gmra.mrb[176].mxu0 %v4253_v4  ;;  %v14150_v9 = vpop.permute.xlu1 %9142  ;;  %v3863_v50 = vsel %vm3858_vm8, %v3784_v26, %v9124_v49  ;;  %v3864_v52 = vsel %vm3858_vm8, %v3785_v43, %v9125_v53  ;;  %v3563_v18 = vrot.slane %v13514_v25, 6  ;;  %v4020_v61 = vsel %vm3779_vm7, %v2291_v14, %v9109_v13 }
 0x35e   : > { %v9118_v33 = vpop.permute.xlu0 %9117  ;;  %v3558_v10 = vsel %vm3543_vm10, %v16567_v24, %v3557_v35  ;;  %v3942_v35 = vsel %vm3937_vm9, %v3863_v50, %v9134_v59  ;;  %v3943_v49 = vsel %vm3937_vm9, %v3864_v52, %v9135_v42  ;;  %v3561_v14 = vrot.slane %v13470_v30, 6 }
 0x35f   : > { %7562 = vmatmul.mubr.msk.bf16.gmra.mrb[124].mxu1 %vm3779_vm7, %v4258_v20  ;;  %v9120_v29 = vunpack.i.h.bf16 %v9118_v33  ;;  %v9119_v2 = vunpack.i.l.bf16 %v9118_v33  ;;  %v4261_v4 = vpack.c.bf16 %v3560_v62, %v3558_v10  ;;  %v4021_v20 = vsel %vm3779_vm7, %v2293_v56, %v9110_v48 }
 0x360   : > { %7565 = vmatprep.mubr.msk.bf16.mxu1 %vm9379_vm0, %v16556_v7  ;;  %v4256_v13 = vpack.c.bf16 %v3943_v49, %v3942_v35  ;;  %v3564_v42 = vsel %vm3543_vm10, %v3561_v14, %v3563_v18  ;;  %v9145_v59 = vunpack.i.h.bf16 %v14150_v9  ;;  %v2296_v56 = vrot.slane %v16563_v57, 3 }
 0x361   : > { %v9153_v28 = vpop.permute.xlu1 %9152  ;;  %v4098_v31 = vsel %vm3858_vm8, %v4020_v61, %v9119_v2  ;;  %v4099_v33 = vsel %vm3858_vm8, %v4021_v20, %v9120_v29  ;;  %v9144_v29 = vunpack.i.l.bf16 %v14150_v9  ;;  %v2294_v2 = vrot.slane %v13078_v36, 3 }
 0x362   : > { %v9128_v58 = vpop.permute.xlu0 %9127  ;;  %v9155_v10 = vunpack.i.h.bf16 %v9153_v28  ;;  %v9154_v50 = vunpack.i.l.bf16 %v9153_v28  ;;  %v3787_v49 = vsel %vm3779_vm7, %v16555_v5, %v9145_v59 }
 0x363   : > { %v9130_v63 = vunpack.i.h.bf16 %v9128_v58  ;;  %v9129_v27 = vunpack.i.l.bf16 %v9128_v58  ;;  %v3562_v58 = vsel %vm3543_vm10, %v3559_v17, %v3561_v14  ;;  %v3786_v28 = vsel %vm3779_vm7, %v16557_v0, %v9144_v29 }
 0x364   : > { %v2295_v17 = vsel %vm2280_vm6, %v2292_v41, %v2294_v2 }
 0x365   : > { %v9163_v53 = vpop.permute.xlu1 %9162  ;;  %v4176_v62 = vsel %vm3937_vm9, %v4098_v31, %v9129_v27  ;;  %v4177_v43 = vsel %vm3937_vm9, %v4099_v33, %v9130_v63  ;;  %v4264_v63 = vpack.c.bf16 %v3564_v42, %v3562_v58  ;;  %v3565_v27 = vrot.slane %v13577_v19, 6 }
 0x366   : > { %v9138_v48 = vpop.permute.xlu0 %9137  ;;  %v4257_v26 = vpack.c.bf16 %v4177_v43, %v4176_v62  ;;  %v9165_v9 = vunpack.i.h.bf16 %v9163_v53  ;;  %v9164_v31 = vunpack.i.l.bf16 %v9163_v53  ;;  %v3865_v43 = vsel %vm3858_vm8, %v3786_v28, %v9154_v50 }
 0x367   : > { %7566 = vmatmul.mubr.msk.bf16.gmra.mrb[128].mxu1 %vm3779_vm7, %v4261_v4  ;;  %v3567_v4 = vrot.slane %v13657_v21, 6  ;;  %v9140_v20 = vunpack.i.h.bf16 %v9138_v48  ;;  %v9139_v61 = vunpack.i.l.bf16 %v9138_v48  ;;  %v3866_v48 = vsel %vm3858_vm8, %v3787_v49, %v9155_v10 }
 0x368   : > { %7569 = vmatprep.mubr.msk.bf16.mxu1 %vm9379_vm0, %v16556_v7  ;;  %4683 = vmatprep.mubr.bf16.mxu0 %v4257_v26  ;;  %v2297_v53 = vsel %vm2280_vm6, %v2294_v2, %v2296_v56  ;;  %v3944_v29 = vsel %vm3937_vm9, %v3865_v43, %v9164_v31  ;;  %v3945_v2 = vsel %vm3937_vm9, %v3866_v48, %v9165_v9  ;;  %v2300_v28 = vrot.slane %v13328_v44, 3 }
 0x369   : > { %4684 = vmatmul.mubr.bf16.gmra.mrb[180].mxu0 %v4256_v13  ;;  %v14189_v24 = vpop.permute.xlu1 %9172  ;;  %v3568_v5 = vsel %vm3543_vm10, %v3565_v27, %v3567_v4  ;;  %v4023_v0 = vsel %vm3779_vm7, %v2297_v53, %v9140_v20  ;;  %v4022_v41 = vsel %vm3779_vm7, %v2295_v17, %v9139_v61  ;;  %v3566_v20 = vsel %vm3543_vm10, %v3563_v18, %v3565_v27 }
 0x36a   : > { %v9148_v52 = vpop.permute.xlu0 %9147  ;;  %v2298_v61 = vrot.slane %v13245_v45, 3  ;;  %v4267_v49 = vpack.c.bf16 %v3568_v5, %v3566_v20  ;;  %v9175_v9 = vunpack.i.h.bf16 %v14189_v24  ;;  %v9174_v31 = vunpack.i.l.bf16 %v14189_v24 }
 0x36b   : > { %v9150_v33 = vunpack.i.h.bf16 %v9148_v52  ;;  %v9149_v35 = vunpack.i.l.bf16 %v9148_v52  ;;  %v3569_v18 = vrot.slane %v16513_v3, 6 }
 0x36c   : > { %v2299_v53 = vsel %vm2280_vm6, %v2296_v56, %v2298_v61 }
 0x36d   : > { %v9183_v62 = vpop.permute.xlu1 %9182  ;;  %v4100_v42 = vsel %vm3858_vm8, %v4022_v41, %v9149_v35  ;;  %v4101_v59 = vsel %vm3858_vm8, %v4023_v0, %v9150_v33  ;;  %v4259_v35 = vpack.c.bf16 %v3945_v2, %v3944_v29  ;;  %v3571_v33 = vrot.slane %v16514_v54, 6 }
 0x36e   : > { %v9158_v26 = vpop.permute.xlu0 %9157  ;;  %v9185_v27 = vunpack.i.h.bf16 %v9183_v62  ;;  %v9184_v43 = vunpack.i.l.bf16 %v9183_v62  ;;  %v3788_v62 = vsel %vm3779_vm7, %v16552_v37, %v9174_v31  ;;  %v3570_v56 = vsel %vm3543_vm10, %v3567_v4, %v3569_v18 }
 0x36f   : > { %7570 = vmatmul.mubr.msk.bf16.gmra.mrb[132].mxu1 %vm3779_vm7, %v4264_v63  ;;  %v9160_v14 = vunpack.i.h.bf16 %v9158_v26  ;;  %v9159_v13 = vunpack.i.l.bf16 %v9158_v26  ;;  %v3572_v24 = vsel %vm3543_vm10, %v3569_v18, %v3571_v33 }
 0x370   : > { %7573 = vmatprep.mubr.msk.bf16.mxu1 %vm9379_vm0, %v16556_v7  ;;  %v3867_v2 = vsel %vm3858_vm8, %v3788_v62, %v9184_v43 }
 0x371   : > { %v9193_v10 = vpop.permute.xlu1 %9192  ;;  %v4178_v50 = vsel %vm3937_vm9, %v4100_v42, %v9159_v13  ;;  %v4179_v52 = vsel %vm3937_vm9, %v4101_v59, %v9160_v14  ;;  %v3789_v42 = vsel %vm3779_vm7, %v16561_v34, %v9175_v9  ;;  %v2301_v59 = vsel %vm2280_vm6, %v2298_v61, %v2300_v28 }
 0x372   : > { %v9168_v58 = vpop.permute.xlu0 %9167  ;;  %v4260_v63 = vpack.c.bf16 %v4179_v52, %v4178_v50  ;;  %v9195_v0 = vunpack.i.h.bf16 %v9193_v10  ;;  %v9194_v41 = vunpack.i.l.bf16 %v9193_v10  ;;  %v3868_v10 = vsel %vm3858_vm8, %v3789_v42, %v9185_v27 }
 0x373   : > { %v9170_v26 = vunpack.i.h.bf16 %v9168_v58  ;;  %v9169_v5 = vunpack.i.l.bf16 %v9168_v58  ;;  %v4270_v52 = vpack.c.bf16 %v3572_v24, %v3570_v56  ;;  %v3575_v34 = vrot.slane %v16523_v1, 6 }
 0x374   : > { %4691 = vmatprep.mubr.bf16.mxu0 %v4260_v63  ;;  %v3946_v4 = vsel %vm3937_vm9, %v3867_v2, %v9194_v41  ;;  %v2304_v41 = vrot.slane %v13470_v30, 3  ;;  %v3579_v56 = vrot.slane %v16529_v16, 6 }
 0x375   : > { %4692 = vmatmul.mubr.bf16.gmra.mrb[184].mxu0 %v4259_v35  ;;  %v14227_v17 = vpop.permute.xlu1 %9202  ;;  %v4025_v58 = vsel %vm3779_vm7, %v2301_v59, %v9170_v26  ;;  %v4024_v37 = vsel %vm3779_vm7, %v2299_v53, %v9169_v5 }
 0x376   : > { %v9178_v48 = vpop.permute.xlu0 %9177  ;;  %v9205_v5 = vunpack.i.h.bf16 %v14227_v17  ;;  %v9204_v24 = vunpack.i.l.bf16 %v14227_v17 }
 0x377   : > { %7574 = vmatmul.mubr.msk.bf16.gmra.mrb[136].mxu1 %vm3779_vm7, %v4267_v49  ;;  %v9180_v14 = vunpack.i.h.bf16 %v9178_v48  ;;  %v9179_v13 = vunpack.i.l.bf16 %v9178_v48  ;;  %v3947_v49 = vsel %vm3937_vm9, %v3868_v10, %v9195_v0  ;;  %v3573_v48 = vrot.slane %v16522_v15, 6 }
 0x378   : > { %7577 = vmatprep.mubr.msk.bf16.mxu1 %vm9379_vm0, %v16556_v7  ;;  %v4262_v53 = vpack.c.bf16 %v3947_v49, %v3946_v4  ;;  %v2302_v0 = vrot.slane %v13410_v6, 3 }
 0x379   : > { %v9213_v29 = vpop.permute.xlu1 %9212  ;;  %v4102_v61 = vsel %vm3858_vm8, %v4024_v37, %v9179_v13  ;;  %v4103_v35 = vsel %vm3858_vm8, %v4025_v58, %v9180_v14  ;;  %v3576_v26 = vsel %vm3543_vm10, %v3573_v48, %v3575_v34  ;;  %v3574_v59 = vsel %vm3543_vm10, %v3571_v33, %v3573_v48 }
 0x37a   : > { %v9188_v50 = vpop.permute.xlu0 %9187  ;;  %v9215_v13 = vunpack.i.h.bf16 %v9213_v29  ;;  %v9214_v42 = vunpack.i.l.bf16 %v9213_v29  ;;  %v3790_v29 = vsel %vm3779_vm7, %v13078_v36, %v9204_v24  ;;  %v2303_v33 = vsel %vm2280_vm6, %v2300_v28, %v2302_v0 }
 0x37b   : > { %v9190_v63 = vunpack.i.h.bf16 %v9188_v50  ;;  %v9189_v20 = vunpack.i.l.bf16 %v9188_v50  ;;  %v4273_v50 = vpack.c.bf16 %v3576_v26, %v3574_v59  ;;  %v2305_v49 = vsel %vm2280_vm6, %v2302_v0, %v2304_v41 }
 0x37d   : > { %v9223_v9 = vpop.permute.xlu1 %9222  ;;  %v4180_v31 = vsel %vm3937_vm9, %v4102_v61, %v9189_v20  ;;  %v4181_v18 = vsel %vm3937_vm9, %v4103_v35, %v9190_v63  ;;  %v3791_v20 = vsel %vm3779_vm7, %v16563_v57, %v9205_v5  ;;  %v3869_v35 = vsel %vm3858_vm8, %v3790_v29, %v9214_v42 }
 0x37e   : > { %v9198_v27 = vpop.permute.xlu0 %9197  ;;  %v4263_v43 = vpack.c.bf16 %v4181_v18, %v4180_v31  ;;  %v9225_v17 = vunpack.i.h.bf16 %v9223_v9  ;;  %v9224_v58 = vunpack.i.l.bf16 %v9223_v9  ;;  %v3870_v4 = vsel %vm3858_vm8, %v3791_v20, %v9215_v13 }
 0x37f   : > { %7578 = vmatmul.mubr.msk.bf16.gmra.mrb[140].mxu1 %vm3779_vm7, %v4270_v52  ;;  %v9200_v2 = vunpack.i.h.bf16 %v9198_v27  ;;  %v9199_v10 = vunpack.i.l.bf16 %v9198_v27  ;;  %v3577_v52 = vrot.slane %v16534_v11, 6 }
 0x380   : > { %7581 = vmatprep.mubr.msk.bf16.mxu1 %vm9379_vm0, %v16556_v7  ;;  %4699 = vmatprep.mubr.bf16.mxu0 %v4263_v43  ;;  %v3948_v48 = vsel %vm3937_vm9, %v3869_v35, %v9224_v58  ;;  %v2308_v58 = vrot.slane %v13577_v19, 3 }
 0x381   : > { %4700 = vmatmul.mubr.bf16.gmra.mrb[188].mxu0 %v4262_v53  ;;  %v3580_v36 = vsel %vm3543_vm10, %v3577_v52, %v3579_v56  ;;  %v4027_v57 = vsel %vm3779_vm7, %v2305_v49, %v9200_v2  ;;  %v4026_v28 = vsel %vm3779_vm7, %v2303_v33, %v9199_v10  ;;  %v3949_v53 = vsel %vm3937_vm9, %v3870_v4, %v9225_v17 }
 0x382   : > { %v9208_v62 = vpop.permute.xlu0 %9207  ;;  %v3578_v42 = vsel %vm3543_vm10, %v3575_v34, %v3577_v52  ;;  %v4265_v59 = vpack.c.bf16 %v3949_v53, %v3948_v48  ;;  %v3583_v10 = vrot.slane %v16545_v40, 6  ;;  %v3581_v34 = vrot.slane %v16544_v55, 6 }
 0x383   : > { %v14266_v14 = vpop.permute.xlu1 %9232  ;;  %v9210_v37 = vunpack.i.h.bf16 %v9208_v62  ;;  %v9209_v63 = vunpack.i.l.bf16 %v9208_v62  ;;  %v2306_v62 = vrot.slane %v13514_v25, 3  ;;  %v4276_v2 = vpack.c.bf16 %v3580_v36, %v3578_v42 }
 0x384   : > { %v9234_v17 = vunpack.i.l.bf16 %v14266_v14 }
 0x385   : > { %v4104_v27 = vsel %vm3858_vm8, %v4026_v28, %v9209_v63  ;;  %v4105_v43 = vsel %vm3858_vm8, %v4027_v57, %v9210_v37  ;;  %v2307_v40 = vsel %vm2280_vm6, %v2304_v41, %v2306_v62  ;;  %v3582_v41 = vsel %vm3543_vm10, %v3579_v56, %v3581_v34 }
 0x386   : > { %v9218_v9 = vpop.permute.xlu0 %9217  ;;  %v3792_v55 = vsel %vm3779_vm7, %v13245_v45, %v9234_v17 }
 0x387   : > { %7582 = vmatmul.mubr.msk.bf16.gmra.mrb[144].mxu1 %vm3779_vm7, %v4273_v50  ;;  %v9243_v61 = vpop.permute.xlu1 %9242  ;;  %v9220_v31 = vunpack.i.h.bf16 %v9218_v9  ;;  %v9219_v18 = vunpack.i.l.bf16 %v9218_v9  ;;  %v9235_v50 = vunpack.i.h.bf16 %v14266_v14  ;;  %v3584_v14 = vsel %vm3543_vm10, %v3581_v34, %v3583_v10 }
 0x388   : > { %7585 = vmatprep.mubr.msk.bf16.mxu1 %vm9379_vm0, %v16556_v7  ;;  %v9245_v52 = vunpack.i.h.bf16 %v9243_v61  ;;  %v9244_v63 = vunpack.i.l.bf16 %v9243_v61  ;;  %v2309_v61 = vsel %vm2280_vm6, %v2306_v62, %v2308_v58 }
 0x389   : > { %v4182_v5 = vsel %vm3937_vm9, %v4104_v27, %v9219_v18  ;;  %v4183_v24 = vsel %vm3937_vm9, %v4105_v43, %v9220_v31  ;;  %v3793_v36 = vsel %vm3779_vm7, %v13328_v44, %v9235_v50  ;;  %v4279_v27 = vpack.c.bf16 %v3584_v14, %v3582_v41  ;;  %v16568_v43 = vld [vmem:[#allocation37_spill] sm:$0xff]  ;;  %v16569_v50 = vld [vmem:[#allocation35_spill] sm:$0xff] }
 0x38a   : > { %v9228_v0 = vpop.permute.xlu0 %9227  ;;  %v4266_v13 = vpack.c.bf16 %v4183_v24, %v4182_v5  ;;  %v3871_v28 = vsel %vm3858_vm8, %v3792_v55, %v9244_v63  ;;  %v3872_v31 = vsel %vm3858_vm8, %v3793_v36, %v9245_v52  ;;  %v3587_v48 = vrot.slane %v16568_v43, 6 }
 0x38b   : > { %v9253_v26 = vpop.permute.xlu1 %9252  ;;  %v9230_v29 = vunpack.i.h.bf16 %v9228_v0  ;;  %v9229_v33 = vunpack.i.l.bf16 %v9228_v0  ;;  %v3585_v17 = vrot.slane %v16569_v50, 6 }
 0x38c   : > { %4707 = vmatprep.mubr.bf16.mxu0 %v4266_v13  ;;  %v9255_v35 = vunpack.i.h.bf16 %v9253_v26  ;;  %v9254_v4 = vunpack.i.l.bf16 %v9253_v26  ;;  %v2310_v13 = vrot.slane %v13657_v21, 3 }
 0x38d   : > { %4708 = vmatmul.mubr.bf16.gmra.mrb[192].mxu0 %v4265_v59  ;;  %v4029_v44 = vsel %vm3779_vm7, %v2309_v61, %v9230_v29  ;;  %v4028_v53 = vsel %vm3779_vm7, %v2307_v40, %v9229_v33  ;;  %v3588_v52 = vsel %vm3543_vm10, %v3585_v17, %v3587_v48  ;;  %v2312_v29 = vrot.slane %v16513_v3, 3 }
 0x38e   : > { %v9238_v20 = vpop.permute.xlu0 %9237  ;;  %v3950_v56 = vsel %vm3937_vm9, %v3871_v28, %v9254_v4  ;;  %v3951_v24 = vsel %vm3937_vm9, %v3872_v31, %v9255_v35  ;;  %v2311_v40 = vsel %vm2280_vm6, %v2308_v58, %v2310_v13  ;;  %v16571_v28 = vld [vmem:[#allocation42_spill] sm:$0xff] }
 0x38f   : > { %7586 = vmatmul.mubr.msk.bf16.gmra.mrb[148].mxu1 %vm3779_vm7, %v4276_v2  ;;  %v14304_v37 = vpop.permute.xlu1 %9262  ;;  %v9240_v49 = vunpack.i.h.bf16 %v9238_v20  ;;  %v9239_v9 = vunpack.i.l.bf16 %v9238_v20  ;;  %v4268_v34 = vpack.c.bf16 %v3951_v24, %v3950_v56  ;;  %v3589_v31 = vrot.slane %v16571_v28, 6 }
 0x390   : > { %7589 = vmatprep.mubr.msk.bf16.mxu1 %vm9379_vm0, %v16556_v7  ;;  %v9265_v63 = vunpack.i.h.bf16 %v14304_v37  ;;  %v9264_v20 = vunpack.i.l.bf16 %v14304_v37 }
 0x391   : > { %v4106_v5 = vsel %vm3858_vm8, %v4028_v53, %v9239_v9  ;;  %v4107_v16 = vsel %vm3858_vm8, %v4029_v44, %v9240_v49  ;;  %v3586_v49 = vsel %vm3543_vm10, %v3583_v10, %v3585_v17  ;;  %v16570_v9 = vld [vmem:[#allocation45_spill] sm:$0xff]  ;;  %v3693_v44 = vrot.slane %v16539_v39, 6 }
 0x392   : > { %v3591_v36 = vrot.slane %v16570_v9, 6  ;;  %v4282_v41 = vpack.c.bf16 %v3588_v52, %v3586_v49  ;;  %v3795_v53 = vsel %vm3779_vm7, %v13470_v30, %v9265_v63  ;;  %v2313_v10 = vsel %vm2280_vm6, %v2310_v13, %v2312_v29  ;;  %v16573_v49 = vld [vmem:[#allocation52_spill] sm:$0xff] }
 0x393   : > { %v9273_v57 = vpop.permute.xlu1 %9272  ;;  %v9248_v18 = vpop.permute.xlu0 %9247 }
 0x394   : > { %v9250_v45 = vunpack.i.h.bf16 %v9248_v18  ;;  %v9249_v26 = vunpack.i.l.bf16 %v9248_v18  ;;  %v9275_v14 = vunpack.i.h.bf16 %v9273_v57  ;;  %v9274_v35 = vunpack.i.l.bf16 %v9273_v57 }
 0x395   : > { %v3794_v57 = vsel %vm3779_vm7, %v13410_v6, %v9264_v20  ;;  %v3592_v6 = vsel %vm3543_vm10, %v3589_v31, %v3591_v36  ;;  %v3590_v20 = vsel %vm3543_vm10, %v3587_v48, %v3589_v31  ;;  %v2316_v31 = vrot.slane %v16522_v15, 3 }
 0x396   : > { %v4184_v42 = vsel %vm3937_vm9, %v4106_v5, %v9249_v26  ;;  %v4185_v62 = vsel %vm3937_vm9, %v4107_v16, %v9250_v45  ;;  %v16572_v26 = vld [vmem:[#allocation96_spill] sm:$0xff]  ;;  %v3873_v16 = vsel %vm3858_vm8, %v3794_v57, %v9274_v35  ;;  %v3874_v56 = vsel %vm3858_vm8, %v3795_v53, %v9275_v14 }
 0x397   : > { %7590 = vmatmul.mubr.msk.bf16.gmra.mrb[152].mxu1 %vm3779_vm7, %v4279_v27  ;;  %v9283_v0 = vpop.permute.xlu1 %9282  ;;  %v9258_v59 = vpop.permute.xlu0 %9257  ;;  %v4269_v2 = vpack.c.bf16 %v4185_v62, %v4184_v42  ;;  %v3695_v5 = vrot.slane %v16572_v26, 6  ;;  %v2314_v14 = vrot.slane %v16514_v54, 3 }
 0x398   : > { %7593 = vmatprep.mubr.msk.bf16.mxu1 %vm9379_vm0, %v16556_v7  ;;  %v9260_v55 = vunpack.i.h.bf16 %v9258_v59  ;;  %v9259_v61 = vunpack.i.l.bf16 %v9258_v59  ;;  %v9285_v37 = vunpack.i.h.bf16 %v9283_v0  ;;  %v9284_v18 = vunpack.i.l.bf16 %v9283_v0 }
 0x399   : > { %4715 = vmatprep.mubr.bf16.mxu0 %v4269_v2  ;;  %v14387_v43 = vsel %vm3543_vm10, %v3693_v44, %v3695_v5 }
 0x39a   : > { %4716 = vmatmul.mubr.bf16.gmra.mrb[196].mxu0 %v4268_v34  ;;  %v4031_v30 = vsel %vm3779_vm7, %v2313_v10, %v9260_v55  ;;  %v4030_v24 = vsel %vm3779_vm7, %v2311_v40, %v9259_v61  ;;  %v3952_v59 = vsel %vm3937_vm9, %v3873_v16, %v9284_v18  ;;  %v3953_v2 = vsel %vm3937_vm9, %v3874_v56, %v9285_v37  ;;  %v16574_v61 = vld [vmem:[#allocation98_spill] sm:$0xff]  ;;  %v16575_v18 = vld [vmem:[#allocation51_spill] sm:$0xff] }
 0x39b   : > { %v14342_v33 = vpop.permute.xlu1 %9292  ;;  %v3691_v40 = vrot.slane %v16540_v8, 6  ;;  %v4271_v35 = vpack.c.bf16 %v3953_v2, %v3952_v59  ;;  %v3595_v55 = vrot.slane %v16573_v49, 6 }
 0x39c   : > { %v9268_v4 = vpop.permute.xlu0 %9267  ;;  %v9295_v48 = vunpack.i.h.bf16 %v14342_v33  ;;  %v9294_v54 = vunpack.i.l.bf16 %v14342_v33 }
 0x39d   : > { %v9270_v58 = vunpack.i.h.bf16 %v9268_v4  ;;  %v9269_v27 = vunpack.i.l.bf16 %v9268_v4  ;;  %v4285_v4 = vpack.c.bf16 %v3592_v6, %v3590_v20  ;;  %v14382_v28 = vsel %vm3543_vm10, %v3691_v40, %v3693_v44 }
 0x39e   : > { %v4363_v33 = vpack.c.bf16 %v14387_v43, %v14382_v28  ;;  %v2315_v44 = vsel %vm2280_vm6, %v2312_v29, %v2314_v14 }
 0x39f   : > { %7594 = vmatmul.mubr.msk.bf16.gmra.mrb[0].mxu1 %vm3779_vm7, %v4282_v41  ;;  %v9303_v45 = vpop.permute.xlu1 %9302  ;;  %v4108_v42 = vsel %vm3858_vm8, %v4030_v24, %v9269_v27  ;;  %v4109_v62 = vsel %vm3858_vm8, %v4031_v30, %v9270_v58  ;;  %v3697_v41 = vrot.slane %v16574_v61, 6  ;;  %v3593_v58 = vrot.slane %v16575_v18, 6  ;;  %v16576_v27 = vld [vmem:[#allocation74_spill] sm:$0xff] }
 0x3a0   : > { %v9278_v39 = vpop.permute.xlu0 %9277  ;;  %7597 = vmatprep.mubr.msk.bf16.mxu1 %vm9379_vm0, %v16556_v7  ;;  %v3699_v53 = vrot.slane %v16576_v27, 6  ;;  %v9305_v57 = vunpack.i.h.bf16 %v9303_v45  ;;  %v9304_v10 = vunpack.i.l.bf16 %v9303_v45  ;;  %v3797_v45 = vsel %vm3779_vm7, %v13577_v19, %v9295_v48  ;;  %v16578_v48 = vld [vmem:[#allocation57_spill] sm:$0xff] }
 0x3a1   : > { %v9280_v0 = vunpack.i.h.bf16 %v9278_v39  ;;  %v9279_v13 = vunpack.i.l.bf16 %v9278_v39  ;;  %v3596_v6 = vsel %vm3543_vm10, %v3593_v58, %v3595_v55  ;;  %v3594_v29 = vsel %vm3543_vm10, %v3591_v36, %v3593_v58 }
 0x3a2   : > { %v3876_v2 = vsel %vm3858_vm8, %v3797_v45, %v9305_v57  ;;  %v2318_v57 = vrot.slane %v16523_v1, 3  ;;  %v16580_v45 = vld [vmem:[#allocation67_spill] sm:$0xff] }
 0x3a3   : > { %v9313_v50 = vpop.permute.xlu1 %9312  ;;  %v4186_v17 = vsel %vm3937_vm9, %v4108_v42, %v9279_v13  ;;  %v4187_v34 = vsel %vm3937_vm9, %v4109_v62, %v9280_v0  ;;  %v3796_v42 = vsel %vm3779_vm7, %v13514_v25, %v9294_v54  ;;  %v2317_v62 = vsel %vm2280_vm6, %v2314_v14, %v2316_v31 }
 0x3a4   : > { %v9288_v52 = vpop.permute.xlu0 %9287  ;;  %v4272_v63 = vpack.c.bf16 %v4187_v34, %v4186_v17  ;;  %v9315_v30 = vunpack.i.h.bf16 %v9313_v50  ;;  %v9314_v24 = vunpack.i.l.bf16 %v9313_v50  ;;  %v3875_v59 = vsel %vm3858_vm8, %v3796_v42, %v9304_v10  ;;  %v16577_v34 = vld [vmem:[#allocation61_spill] sm:$0xff] }
 0x3a5   : > { %v9290_v56 = vunpack.i.h.bf16 %v9288_v52  ;;  %v9289_v39 = vunpack.i.l.bf16 %v9288_v52  ;;  %v4288_v17 = vpack.c.bf16 %v3596_v6, %v3594_v29  ;;  %v3599_v52 = vrot.slane %v16577_v34, 6 }
 0x3a6   : > { %4723 = vmatprep.mubr.bf16.mxu0 %v4272_v63  ;;  %v3954_v36 = vsel %vm3937_vm9, %v3875_v59, %v9314_v24  ;;  %v3597_v54 = vrot.slane %v16578_v48, 6  ;;  %v3603_v42 = vrot.slane %v16580_v45, 6  ;;  %v16581_v34 = vrot.slane %v16534_v11, 3  ;;  %v16586_v45 = vld [vmem:[#allocation82_spill] sm:$0xff] }
 0x3a7   : > { %4724 = vmatmul.mubr.bf16.gmra.mrb[200].mxu0 %v4271_v35  ;;  %7598 = vmatmul.mubr.msk.bf16.gmra.mrb[4].mxu1 %vm3779_vm7, %v4285_v4  ;;  %v4033_v19 = vsel %vm3779_vm7, %v2317_v62, %v9290_v56  ;;  %v4032_v25 = vsel %vm3779_vm7, %v2315_v44, %v9289_v39  ;;  %v3955_v4 = vsel %vm3937_vm9, %v3876_v2, %v9315_v30 }
 0x3a8   : > { %v14393_v37 = vpop.permute.xlu1 %9322  ;;  %7601 = vmatprep.mubr.msk.bf16.mxu1 %vm9379_vm0, %v16556_v7  ;;  %v4274_v27 = vpack.c.bf16 %v3955_v4, %v3954_v36  ;;  %v3600_v10 = vsel %vm3543_vm10, %v3597_v54, %v3599_v52  ;;  %v14438_v44 = vsel %vm3543_vm10, %v3697_v41, %v3699_v53  ;;  %v3598_v30 = vsel %vm3543_vm10, %v3595_v55, %v3597_v54 }
 0x3a9   : > { %v9298_v16 = vpop.permute.xlu0 %9297  ;;  %v9325_v56 = vunpack.i.h.bf16 %v14393_v37  ;;  %v9324_v39 = vunpack.i.l.bf16 %v14393_v37  ;;  %v4291_v62 = vpack.c.bf16 %v3600_v10, %v3598_v30 }
 0x3aa   : > { %v9300_v0 = vunpack.i.h.bf16 %v9298_v16  ;;  %v9299_v13 = vunpack.i.l.bf16 %v9298_v16  ;;  %v14435_v16 = vsel %vm3543_vm10, %v3695_v5, %v3697_v41 }
 0x3ab   : > { %v4366_v1 = vpack.c.bf16 %v14438_v44, %v14435_v16  ;;  %v3799_v55 = vsel %vm3779_vm7, %v16513_v3, %v9325_v56 }
 0x3ac   : > { %v9333_v63 = vpop.permute.xlu1 %9332  ;;  %v4110_v14 = vsel %vm3858_vm8, %v4032_v25, %v9299_v13  ;;  %v4111_v9 = vsel %vm3858_vm8, %v4033_v19, %v9300_v0  ;;  %v16579_v13 = vld [vmem:[#allocation66_spill] sm:$0xff]  ;;  %v2321_v19 = vsel %vm2280_vm6, %v2318_v57, %v16581_v34 }
 0x3ad   : > { %v9308_v50 = vpop.permute.xlu0 %9307  ;;  %v9335_v24 = vunpack.i.h.bf16 %v9333_v63  ;;  %v9334_v0 = vunpack.i.l.bf16 %v9333_v63  ;;  %v3601_v5 = vrot.slane %v16579_v13, 6 }
 0x3ae   : > { %v9310_v20 = vunpack.i.h.bf16 %v9308_v50  ;;  %v9309_v35 = vunpack.i.l.bf16 %v9308_v50  ;;  %v3798_v50 = vsel %vm3779_vm7, %v13657_v21, %v9324_v39 }
 0x3af   : > { %7602 = vmatmul.mubr.msk.bf16.gmra.mrb[8].mxu1 %vm3779_vm7, %v4288_v17  ;;  %v2319_v17 = vsel %vm2280_vm6, %v2316_v31, %v2318_v57  ;;  %v3877_v25 = vsel %vm3858_vm8, %v3798_v50, %v9334_v0  ;;  %v3878_v63 = vsel %vm3858_vm8, %v3799_v55, %v9335_v24  ;;  %v3602_v21 = vsel %vm3543_vm10, %v3599_v52, %v3601_v5  ;;  %v16585_v24 = vld [vmem:[#allocation79_spill] sm:$0xff] }
 0x3b0   : > { %v4188_v49 = vsel %vm3937_vm9, %v4110_v14, %v9309_v35  ;;  %v4189_v61 = vsel %vm3937_vm9, %v4111_v9, %v9310_v20  ;;  %7605 = vmatprep.mubr.msk.bf16.mxu1 %vm9379_vm0, %v16556_v7  ;;  %v9343_v6 = vpop.permute.xlu1 %9342  ;;  %v3604_v3 = vsel %vm3543_vm10, %v3601_v5, %v3603_v42  ;;  %v3611_v0 = vrot.slane %v16585_v24, 6  ;;  %v16589_v55 = vld [vmem:[#allocation87_spill] sm:$0xff] }
 0x3b1   : > { %v9318_v18 = vpop.permute.xlu0 %9317  ;;  %v4275_v58 = vpack.c.bf16 %v4189_v61, %v4188_v49  ;;  %v9345_v29 = vunpack.i.h.bf16 %v9343_v6  ;;  %v9344_v59 = vunpack.i.l.bf16 %v9343_v6  ;;  %v4294_v54 = vpack.c.bf16 %v3604_v3, %v3602_v21  ;;  %v16584_v6 = vld [vmem:[#allocation78_spill] sm:$0xff] }
 0x3b2   : > { %v9320_v41 = vunpack.i.h.bf16 %v9318_v18  ;;  %v9319_v53 = vunpack.i.l.bf16 %v9318_v18  ;;  %v16582_v18 = vld [vmem:[#allocation73_spill] sm:$0xff]  ;;  %v3609_v30 = vrot.slane %v16584_v6, 6  ;;  %v3619_v50 = vrot.slane %v16589_v55, 6 }
 0x3b3   : > { %4731 = vmatprep.mubr.bf16.mxu0 %v4275_v58  ;;  %v3956_v36 = vsel %vm3937_vm9, %v3877_v25, %v9344_v59  ;;  %v3957_v4 = vsel %vm3937_vm9, %v3878_v63, %v9345_v29  ;;  %v3605_v58 = vrot.slane %v16582_v18, 6  ;;  %v16590_v25 = vld [vmem:[#allocation90_spill] sm:$0xff] }
 0x3b4   : > { %4732 = vmatmul.mubr.bf16.gmra.mrb[204].mxu0 %v4274_v27  ;;  %v4035_v15 = vsel %vm3779_vm7, %v2321_v19, %v9320_v41  ;;  %v4034_v11 = vsel %vm3779_vm7, %v2319_v17, %v9319_v53  ;;  %v4277_v48 = vpack.c.bf16 %v3957_v4, %v3956_v36  ;;  %v16583_v27 = vld [vmem:[#allocation75_spill] sm:$0xff]  ;;  %v3612_v13 = vsel %vm3543_vm10, %v3609_v30, %v3611_v0 }
 0x3b5   : > { %v9328_v26 = vpop.permute.xlu0 %9327  ;;  %v3607_v57 = vrot.slane %v16583_v27, 6  ;;  %v3606_v10 = vsel %vm3543_vm10, %v3603_v42, %v3605_v58  ;;  %v3613_v41 = vrot.slane %v16586_v45, 6  ;;  %v16587_v42 = vld [vmem:[#allocation84_spill] sm:$0xff]  ;;  %v3621_v63 = vrot.slane %v16590_v25, 6 }
 0x3b6   : > { %v9330_v37 = vunpack.i.h.bf16 %v9328_v26  ;;  %v9329_v2 = vunpack.i.l.bf16 %v9328_v26  ;;  %v3615_v53 = vrot.slane %v16587_v42, 6 }
 0x3b7   : > { %7606 = vmatmul.mubr.msk.bf16.gmra.mrb[12].mxu1 %vm3779_vm7, %v4291_v62  ;;  %v3608_v56 = vsel %vm3543_vm10, %v3605_v58, %v3607_v57  ;;  %v3610_v26 = vsel %vm3543_vm10, %v3607_v57, %v3609_v30  ;;  %v3614_v62 = vsel %vm3543_vm10, %v3611_v0, %v3613_v41  ;;  %v3622_v3 = vsel %vm3543_vm10, %v3619_v50, %v3621_v63  ;;  %v16596_v57 = vld [vmem:[#allocation106_spill] sm:$0xff]  ;;  %v16598_v0 = vld [vmem:[#allocation115_spill] sm:$0xff] }
 0x3b8   : > { %7609 = vmatprep.mubr.msk.bf16.mxu1 %vm9379_vm0, %v16556_v7  ;;  %v4112_v14 = vsel %vm3858_vm8, %v4034_v11, %v9329_v2  ;;  %v4113_v9 = vsel %vm3858_vm8, %v4035_v15, %v9330_v37  ;;  %v4297_v39 = vpack.c.bf16 %v3608_v56, %v3606_v10  ;;  %v4300_v5 = vpack.c.bf16 %v3612_v13, %v3610_v26  ;;  %v16588_v37 = vld [vmem:[#allocation86_spill] sm:$0xff]  ;;  %v16597_v56 = vld [vmem:[#allocation113_spill] sm:$0xff] }
 0x3b9   : > { %v9338_v20 = vpop.permute.xlu0 %9337  ;;  %v3616_v29 = vsel %vm3543_vm10, %v3613_v41, %v3615_v53  ;;  %v3617_v2 = vrot.slane %v16588_v37, 6  ;;  %v3633_v10 = vrot.slane %v16596_v57, 6  ;;  %v3637_v26 = vrot.slane %v16598_v0, 6  ;;  %v16599_v13 = vld [vmem:[#allocation118_spill] sm:$0xff]  ;;  %v16607_v57 = vld [vmem:[#allocation111_spill] sm:$0xff] }
 0x3ba   : > { %v9340_v31 = vunpack.i.h.bf16 %v9338_v20  ;;  %v9339_v35 = vunpack.i.l.bf16 %v9338_v20  ;;  %v4303_v59 = vpack.c.bf16 %v3616_v29, %v3614_v62  ;;  %v16591_v20 = vld [vmem:[#allocation92_spill] sm:$0xff]  ;;  %v16601_v29 = vld [vmem:[#allocation123_spill] sm:$0xff] }
 0x3bb   : > { %v3618_v17 = vsel %vm3543_vm10, %v3615_v53, %v3617_v2  ;;  %v3620_v34 = vsel %vm3543_vm10, %v3617_v2, %v3619_v50  ;;  %v3623_v21 = vrot.slane %v16591_v20, 6  ;;  %v16600_v53 = vld [vmem:[#allocation121_spill] sm:$0xff]  ;;  %v16602_v50 = vld [vmem:[#allocation124_spill] sm:$0xff] }
 0x3bc   : > { %v4190_v49 = vsel %vm3937_vm9, %v4112_v14, %v9339_v35  ;;  %v4191_v52 = vsel %vm3937_vm9, %v4113_v9, %v9340_v31  ;;  %v4306_v19 = vpack.c.bf16 %v3620_v34, %v3618_v17  ;;  %v16592_v31 = vld [vmem:[#allocation94_spill] sm:$0xff]  ;;  %v16593_v14 = vld [vmem:[#allocation95_spill] sm:$0xff]  ;;  %v3641_v62 = vrot.slane %v16600_v53, 6  ;;  %v16603_v34 = vld [vmem:[#allocation125_spill] sm:$0xff] }
 0x3bd   : > { %v4278_v61 = vpack.c.bf16 %v4191_v52, %v4190_v49  ;;  %v3624_v15 = vsel %vm3543_vm10, %v3621_v63, %v3623_v21  ;;  %v3625_v35 = vrot.slane %v16592_v31, 6  ;;  %v3627_v9 = vrot.slane %v16593_v14, 6  ;;  %v16594_v52 = vld [vmem:[#allocation99_spill] sm:$0xff] }
 0x3be   : > { %v4309_v11 = vpack.c.bf16 %v3624_v15, %v3622_v3  ;;  %v3645_v17 = vrot.slane %v16602_v50, 6  ;;  %v16605_v15 = vld [vmem:[#allocation102_spill] sm:$0xff] }
 0x3bf   : > { %4739 = vmatprep.mubr.bf16.mxu0 %v4278_v61  ;;  %7610 = vmatmul.mubr.msk.bf16.gmra.mrb[16].mxu1 %vm3779_vm7, %v4294_v54  ;;  %v3626_v36 = vsel %vm3543_vm10, %v3623_v21, %v3625_v35  ;;  %v3628_v4 = vsel %vm3543_vm10, %v3625_v35, %v3627_v9  ;;  %v3629_v61 = vrot.slane %v16594_v52, 6  ;;  %v16604_v21 = vld [vmem:[#allocation126_spill] sm:$0xff] }
 0x3c0   : > { %4740 = vmatmul.mubr.bf16.gmra.mrb[208].mxu0 %v4277_v48  ;;  %7613 = vmatprep.mubr.msk.bf16.mxu1 %vm9379_vm0, %v16556_v7  ;;  %v4312_v49 = vpack.c.bf16 %v3628_v4, %v3626_v36  ;;  %v16595_v48 = vld [vmem:[#allocation101_spill] sm:$0xff]  ;;  %v3649_v3 = vrot.slane %v16604_v21, 6  ;;  %v3655_v4 = vrot.slane %v16424_v46, 6 }
 0x3c1   : > { %v3631_v54 = vrot.slane %v16595_v48, 6  ;;  %v3630_v18 = vsel %vm3543_vm10, %v3627_v9, %v3629_v61  ;;  %v16606_v9 = vld [vmem:[#allocation105_spill] sm:$0xff] }
 0x3c2   : > { %v3653_v36 = vrot.slane %v16606_v9, 6 }
 0x3c3   : > { %v3632_v58 = vsel %vm3543_vm10, %v3629_v61, %v3631_v54  ;;  %v3634_v6 = vsel %vm3543_vm10, %v3631_v54, %v3633_v10 }
 0x3c4   : > { %v4315_v27 = vpack.c.bf16 %v3632_v58, %v3630_v18  ;;  %v3656_v61 = vsel %vm3543_vm10, %v3653_v36, %v3655_v4  ;;  %v14566_v18 = vld [vmem:[%s15618_s4] ss:$0 sm:$0xff] }
 0x3c7   : > { %7614 = vmatmul.mubr.msk.bf16.gmra.mrb[20].mxu1 %vm3779_vm7, %v4297_v39  ;;  %v3635_v39 = vrot.slane %v16597_v56, 6  ;;  %v3659_v56 = vrot.slane %v16447_v12, 6 }
 0x3c8   : > { %7617 = vmatprep.mubr.msk.bf16.mxu1 %vm9379_vm0, %v16556_v7 }
 0x3c9   : > { %v3636_v30 = vsel %vm3543_vm10, %v3633_v10, %v3635_v39  ;;  %v3638_v45 = vsel %vm3543_vm10, %v3635_v39, %v3637_v26  ;;  %v3657_v10 = vrot.slane %v16607_v57, 6 }
 0x3ca   : > { %v4318_v24 = vpack.c.bf16 %v3636_v30, %v3634_v6 }
 0x3cf   : > { %7618 = vmatmul.mubr.msk.bf16.gmra.mrb[24].mxu1 %vm3779_vm7, %v4300_v5  ;;  %v3639_v5 = vrot.slane %v16599_v13, 6 }
 0x3d0   : > { %7621 = vmatprep.mubr.msk.bf16.mxu1 %vm9379_vm0, %v16556_v7 }
 0x3d1   : > { %v3640_v41 = vsel %vm3543_vm10, %v3637_v26, %v3639_v5  ;;  %v3642_v37 = vsel %vm3543_vm10, %v3639_v5, %v3641_v62  ;;  %v3658_v5 = vsel %vm3543_vm10, %v3655_v4, %v3657_v10 }
 0x3d2   : > { %v4321_v42 = vpack.c.bf16 %v3640_v41, %v3638_v45  ;;  %v3660_v45 = vsel %vm3543_vm10, %v3657_v10, %v3659_v56 }
 0x3d7   : > { %7622 = vmatmul.mubr.msk.bf16.gmra.mrb[28].mxu1 %vm3779_vm7, %v4303_v59  ;;  %v3643_v59 = vrot.slane %v16601_v29, 6 }
 0x3d8   : > { %7625 = vmatprep.mubr.msk.bf16.mxu1 %vm9379_vm0, %v16556_v7 }
 0x3d9   : > { %v3644_v2 = vsel %vm3543_vm10, %v3641_v62, %v3643_v59  ;;  %v3646_v25 = vsel %vm3543_vm10, %v3643_v59, %v3645_v17  ;;  %v4336_v59 = vpack.c.bf16 %v3660_v45, %v3658_v5  ;;  %v3671_v5 = vrot.slane %v16497_v51, 6 }
 0x3da   : > { %v4324_v55 = vpack.c.bf16 %v3644_v2, %v3642_v37  ;;  %v16608_v37 = vld [vmem:[#allocation116_spill] sm:$0xff] }
 0x3db   : > { %v3661_v2 = vrot.slane %v16608_v37, 6 }
 0x3df   : > { %7626 = vmatmul.mubr.msk.bf16.gmra.mrb[32].mxu1 %vm3779_vm7, %v4306_v19  ;;  %v3647_v19 = vrot.slane %v16603_v34, 6 }
 0x3e0   : > { %7629 = vmatprep.mubr.msk.bf16.mxu1 %vm9379_vm0, %v16556_v7 }
 0x3e1   : > { %v3648_v63 = vsel %vm3543_vm10, %v3645_v17, %v3647_v19  ;;  %v3650_v31 = vsel %vm3543_vm10, %v3647_v19, %v3649_v3 }
 0x3e2   : > { %v4327_v20 = vpack.c.bf16 %v3648_v63, %v3646_v25 }
 0x3e7   : > { %7630 = vmatmul.mubr.msk.bf16.gmra.mrb[36].mxu1 %vm3779_vm7, %v4309_v11  ;;  %v3651_v11 = vrot.slane %v16605_v15, 6 }
 0x3e8   : > { %7633 = vmatprep.mubr.msk.bf16.mxu1 %vm9379_vm0, %v16556_v7 }
 0x3e9   : > { %v3652_v35 = vsel %vm3543_vm10, %v3649_v3, %v3651_v11  ;;  %v3654_v52 = vsel %vm3543_vm10, %v3651_v11, %v3653_v36 }
 0x3ea   : > { %v4330_v14 = vpack.c.bf16 %v3652_v35, %v3650_v31 }
 0x3ef   : > { %7634 = vmatmul.mubr.msk.bf16.gmra.mrb[40].mxu1 %vm3779_vm7, %v4312_v49 }
 0x3f0   : > { %7637 = vmatprep.mubr.msk.bf16.mxu1 %vm9379_vm0, %v16556_v7 }
 0x3f7   : > { %7638 = vmatmul.mubr.msk.bf16.gmra.mrb[44].mxu1 %vm3779_vm7, %v4315_v27  ;;  %v4333_v27 = vpack.c.bf16 %v3656_v61, %v3654_v52  ;;  %v3667_v52 = vrot.slane %v16482_v38, 6 }
 0x3f8   : > { %7641 = vmatprep.mubr.msk.bf16.mxu1 %vm9379_vm0, %v16556_v7 }
 0x3ff   : > { %7642 = vmatmul.mubr.msk.bf16.gmra.mrb[48].mxu1 %vm3779_vm7, %v4318_v24 }
 0x400   : > { %7645 = vmatprep.mubr.msk.bf16.mxu1 %vm9379_vm0, %v16556_v7 }
 0x407   : > { %7646 = vmatmul.mubr.msk.bf16.gmra.mrb[52].mxu1 %vm3779_vm7, %v4321_v42 }
 0x408   : > { %7649 = vmatprep.mubr.msk.bf16.mxu1 %vm9379_vm0, %v16556_v7 }
 0x40f   : > { %7650 = vmatmul.mubr.msk.bf16.gmra.mrb[56].mxu1 %vm3779_vm7, %v4324_v55  ;;  %v3663_v55 = vrot.slane %v16466_v23, 6 }
 0x410   : > { %7653 = vmatprep.mubr.msk.bf16.mxu1 %vm9379_vm0, %v16556_v7 }
 0x411   : > { %v3664_v21 = vsel %vm3543_vm10, %v3661_v2, %v3663_v55 }
 0x417   : > { %7654 = vmatmul.mubr.msk.bf16.gmra.mrb[60].mxu1 %vm3779_vm7, %v4327_v20  ;;  %v3662_v20 = vsel %vm3543_vm10, %v3659_v56, %v3661_v2 }
 0x418   : > { %7657 = vmatprep.mubr.msk.bf16.mxu1 %vm9379_vm0, %v16556_v7  ;;  %v4339_v4 = vpack.c.bf16 %v3664_v21, %v3662_v20  ;;  %v3675_v20 = vrot.slane %v16511_v60, 6 }
 0x41f   : > { %7658 = vmatmul.mubr.msk.bf16.gmra.mrb[64].mxu1 %vm3779_vm7, %v4330_v14 }
 0x420   : > { %7661 = vmatprep.mubr.msk.bf16.mxu1 %vm9379_vm0, %v16556_v7 }
 0x422   : > { %v5014_v49 = vpop.f32.mrb[116].mxu1 }
 0x423   : > { %v7555_v48 = vpop.f32.mrb[117].mxu1 }
 0x424   : > { %v5017_v54 = vpop.f32.mrb[118].mxu1 }
 0x425   : > { %v7556_v58 = vpop.f32.mrb[119].mxu1  ;;  %v4669_v46 = vpop.f32.mrb[172].mxu0 }
 0x426   : > { %v4670_v39 = vadd.f32 %v14566_v18, %v4669_v46  ;;  %v4671_v6 = vpop.f32.mrb[173].mxu0 }
 0x427   : > { %7662 = vmatmul.mubr.msk.bf16.gmra.mrb[68].mxu1 %vm3779_vm7, %v4333_v27  ;;  %v4672_v30 = vpop.f32.mrb[174].mxu0 }
 0x428   : > { %7665 = vmatprep.mubr.msk.bf16.mxu1 %vm9379_vm0, %v16556_v7  ;;  %v5015_v24 = vadd.f32 %v5014_v49, %v4670_v39  ;;  %v4673_v0 = vadd.f32 %v14566_v18, %v4672_v30  ;;  %v4674_v26 = vpop.f32.mrb[175].mxu0  ;;  %v3665_v49 = vrot.slane %v16467_v47, 6 }
 0x42a   : > { %v5022_v13 = vpop.f32.mrb[120].mxu1  ;;  %v5325_v41 = vmax.f32 %v5015_v24, 0.0  ;;  %v5018_v12 = vadd.f32 %v5017_v54, %v4673_v0  ;;  %v3666_v46 = vsel %vm3543_vm10, %v3663_v55, %v3665_v49  ;;  %v3668_v57 = vsel %vm3543_vm10, %v3665_v49, %v3667_v52 }
 0x42b   : > { %v7559_v42 = vpop.f32.mrb[121].mxu1  ;;  %v4342_v24 = vpack.c.bf16 %v3668_v57, %v3666_v46 }
 0x42c   : > { %v5025_v53 = vpop.f32.mrb[122].mxu1  ;;  %v5326_v62 = vmax.f32 %v5018_v12, 0.0  ;;  %v5481_v50 = vrot.slane %v5325_v41, 1 }
 0x42d   : > { %v7560_v29 = vpop.f32.mrb[123].mxu1 }
 0x42e   : > { %v5482_v17 = vrot.slane %v5326_v62, 1 }
 0x42f   : > { %7666 = vmatmul.mubr.msk.bf16.gmra.mrb[72].mxu1 %vm3779_vm7, %v4336_v59 }
 0x430   : > { %7669 = vmatprep.mubr.msk.bf16.mxu1 %vm9379_vm0, %v16556_v7  ;;  %v5483_v34 = vsel %vm1256_vm3, %v5481_v50, %v5482_v17  ;;  %v4677_v25 = vpop.f32.mrb[176].mxu0 }
 0x431   : > { %v14583_v19 = vmax.f32 %v5325_v41, %v5483_v34  ;;  %v4678_v3 = vadd.f32 %v14566_v18, %v4677_v25  ;;  %v4679_v23 = vpop.f32.mrb[177].mxu0 }
 0x432   : > { %v5030_v63 = vpop.f32.mrb[124].mxu1  ;;  %v4680_v11 = vpop.f32.mrb[178].mxu0 }
 0x433   : > { %v7563_v15 = vpop.f32.mrb[125].mxu1  ;;  %v5023_v35 = vadd.f32 %v5022_v13, %v4678_v3  ;;  %v4681_v14 = vadd.f32 %v14566_v18, %v4680_v11  ;;  %v4682_v9 = vpop.f32.mrb[179].mxu0  ;;  %v3669_v13 = vrot.slane %v16483_v32, 6 }
 0x434   : > { %v5033_v31 = vpop.f32.mrb[126].mxu1 }
 0x435   : > { %v7564_v36 = vpop.f32.mrb[127].mxu1  ;;  %v5327_v61 = vmax.f32 %v5023_v35, 0.0  ;;  %v5026_v48 = vadd.f32 %v5025_v53, %v4681_v14  ;;  %v3670_v59 = vsel %vm3543_vm10, %v3667_v52, %v3669_v13  ;;  %v3672_v32 = vsel %vm3543_vm10, %v3669_v13, %v3671_v5 }
 0x436   : > { %v4345_v25 = vpack.c.bf16 %v3672_v32, %v3670_v59 }
 0x437   : > { %7670 = vmatmul.mubr.msk.bf16.gmra.mrb[76].mxu1 %vm3779_vm7, %v4339_v4  ;;  %v5484_v54 = vrot.slane %v5327_v61, 1  ;;  %v5328_v58 = vmax.f32 %v5026_v48, 0.0 }
 0x438   : > { %7673 = vmatprep.mubr.msk.bf16.mxu1 %vm9379_vm0, %v16556_v7 }
 0x439   : > { %v5485_v10 = vsel %vm1256_vm3, %v5482_v17, %v5484_v54  ;;  %v5486_v56 = vrot.slane %v5328_v58, 1 }
 0x43a   : > { %v5038_v27 = vpop.f32.mrb[128].mxu1  ;;  %v14597_v39 = vmax.f32 %v5326_v62, %v5485_v10  ;;  %v16609_v10 = vld [vmem:[#allocation108_spill] sm:$0xff] }
 0x43b   : > { %v7567_v47 = vpop.f32.mrb[129].mxu1  ;;  %v5487_v6 = vsel %vm1256_vm3, %v5484_v54, %v5486_v56 }
 0x43c   : > { %v5041_v38 = vpop.f32.mrb[130].mxu1  ;;  %v14600_v0 = vmax.f32 %v5327_v61, %v5487_v6  ;;  %v4685_v26 = vpop.f32.mrb[180].mxu0  ;;  %v16610_v47 = vld [vmem:[#allocation83_spill] sm:$0xff] }
 0x43d   : > { %v7568_v30 = vpop.f32.mrb[131].mxu1  ;;  %v4686_v45 = vadd.f32 %v14566_v18, %v4685_v26  ;;  %v4687_v41 = vpop.f32.mrb[181].mxu0  ;;  %v3679_v6 = vrot.slane %v16610_v47, 6 }
 0x43e   : > { %v4688_v12 = vpop.f32.mrb[182].mxu0 }
 0x43f   : > { %7674 = vmatmul.mubr.msk.bf16.gmra.mrb[80].mxu1 %vm3779_vm7, %v4342_v24  ;;  %v5031_v42 = vadd.f32 %v5030_v63, %v4686_v45  ;;  %v4689_v53 = vadd.f32 %v14566_v18, %v4688_v12  ;;  %v4690_v62 = vpop.f32.mrb[183].mxu0  ;;  %v3673_v63 = vrot.slane %v16498_v22, 6 }
 0x440   : > { %7677 = vmatprep.mubr.msk.bf16.mxu1 %vm9379_vm0, %v16556_v7 }
 0x441   : > { %v5329_v51 = vmax.f32 %v5031_v42, 0.0  ;;  %v5034_v37 = vadd.f32 %v5033_v31, %v4689_v53  ;;  %v3674_v22 = vsel %vm3543_vm10, %v3671_v5, %v3673_v63  ;;  %v3676_v60 = vsel %vm3543_vm10, %v3673_v63, %v3675_v20  ;;  %v16612_v63 = vld [vmem:[#allocation119_spill] sm:$0xff] }
 0x442   : > { %v14609_v29 = vpop.f32.mrb[132].mxu1  ;;  %v4348_v57 = vpack.c.bf16 %v3676_v60, %v3674_v22 }
 0x443   : > { %v7571_v2 = vpop.f32.mrb[133].mxu1  ;;  %v5488_v50 = vrot.slane %v5329_v51, 1  ;;  %v5330_v17 = vmax.f32 %v5034_v37, 0.0 }
 0x444   : > { %v14613_v55 = vpop.f32.mrb[134].mxu1 }
 0x445   : > { %v7572_v34 = vpop.f32.mrb[135].mxu1  ;;  %v5489_v21 = vsel %vm1256_vm3, %v5486_v56, %v5488_v50  ;;  %v5490_v3 = vrot.slane %v5330_v17, 1  ;;  %v3677_v56 = vrot.slane %v16609_v10, 6 }
 0x446   : > { %v14619_v23 = vmax.f32 %v5328_v58, %v5489_v21  ;;  %v16611_v34 = vld [vmem:[#allocation85_spill] sm:$0xff] }
 0x447   : > { %7678 = vmatmul.mubr.msk.bf16.gmra.mrb[84].mxu1 %vm3779_vm7, %v4345_v25  ;;  %v5491_v15 = vsel %vm1256_vm3, %v5488_v50, %v5490_v3  ;;  %v3678_v41 = vsel %vm3543_vm10, %v3675_v20, %v3677_v56  ;;  %v3680_v12 = vsel %vm3543_vm10, %v3677_v56, %v3679_v6  ;;  %v3681_v25 = vrot.slane %v16611_v34, 6 }
 0x448   : > { %7681 = vmatprep.mubr.msk.bf16.mxu1 %vm9379_vm0, %v16556_v7  ;;  %v14624_v11 = vmax.f32 %v5329_v51, %v5491_v15  ;;  %v4693_v31 = vpop.f32.mrb[184].mxu0  ;;  %v5867_v4 = vrot.slane %v14619_v23, 2  ;;  %v4351_v51 = vpack.c.bf16 %v3680_v12, %v3678_v41  ;;  %v3683_v20 = vrot.slane %v16612_v63, 6 }
 0x449   : > { %v4694_v14 = vadd.f32 %v14566_v18, %v4693_v31  ;;  %v4695_v9 = vpop.f32.mrb[185].mxu0  ;;  %v16615_v41 = vmov 0.0|0.0  }
 0x44a   : > { %v14626_v35 = vpop.f32.mrb[136].mxu1  ;;  %v5868_v49 = vrot.slane %v14624_v11, 2  ;;  %v4696_v52 = vpop.f32.mrb[186].mxu0 }
 0x44b   : > { %v7575_v36 = vpop.f32.mrb[137].mxu1  ;;  %v5039_v48 = vadd.f32 %v5038_v27, %v4694_v14  ;;  %v4697_v54 = vadd.f32 %v14566_v18, %v4696_v52  ;;  %v4698_v58 = vpop.f32.mrb[187].mxu0  ;;  %v3682_v52 = vsel %vm3543_vm10, %v3679_v6, %v3681_v25 }
 0x44c   : > { %v14633_v61 = vpop.f32.mrb[138].mxu1  ;;  %v5869_v30 = vsel %vm1646_vm2, %v5867_v4, %v5868_v49 }
 0x44d   : > { %v7576_v46 = vpop.f32.mrb[139].mxu1  ;;  %v5331_v24 = vmax.f32 %v5039_v48, 0.0  ;;  %v5042_v26 = vadd.f32 %v5041_v38, %v4697_v54  ;;  %v6091_v13 = vmax.f32 %v14583_v19, %v5869_v30  ;;  %v3684_v48 = vsel %vm3543_vm10, %v3681_v25, %v3683_v20 }
 0x44e   : > { %v4354_v30 = vpack.c.bf16 %v3684_v48, %v3682_v52 }
 0x44f   : > { %7682 = vmatmul.mubr.msk.bf16.gmra.mrb[88].mxu1 %vm3779_vm7, %v4348_v57  ;;  %v5492_v27 = vrot.slane %v5331_v24, 1  ;;  %v5332_v5 = vmax.f32 %v5042_v26, 0.0  ;;  %v16614_v26 = vld [vmem:[#allocation89_spill] sm:$0xff] }
 0x450   : > { %7685 = vmatprep.mubr.msk.bf16.mxu1 %vm9379_vm0, %v16556_v7 }
 0x451   : > { %v5493_v42 = vsel %vm1256_vm3, %v5490_v3, %v5492_v27  ;;  %v5494_v53 = vrot.slane %v5332_v5, 1 }
 0x452   : > { %v14643_v45 = vpop.f32.mrb[140].mxu1  ;;  %v14648_v38 = vmax.f32 %v5330_v17, %v5493_v42  ;;  %v6167_v17 = vld [vmem:[%s15619_s5 + $0x8] sm:$0xff] }
 0x453   : > { %v7579_v62 = vpop.f32.mrb[141].mxu1  ;;  %v5495_v19 = vsel %vm1256_vm3, %v5492_v27, %v5494_v53  ;;  %6378 = vmatprep.mubr.f32.mxu0 %v6167_v17  ;;  %v3687_v27 = vrot.slane %v16614_v26, 6 }
 0x454   : > { %v14650_v59 = vpop.f32.mrb[142].mxu1  ;;  %v5870_v37 = vrot.slane %v14648_v38, 2  ;;  %v14654_v2 = vmax.f32 %v5331_v24, %v5495_v19  ;;  %v4701_v50 = vpop.f32.mrb[188].mxu0  ;;  %v16613_v24 = vld [vmem:[#allocation88_spill] sm:$0xff] }
 0x455   : > { %v7580_v32 = vpop.f32.mrb[143].mxu1  ;;  %v4702_v21 = vadd.f32 %v14566_v18, %v4701_v50  ;;  %v4703_v3 = vpop.f32.mrb[189].mxu0  ;;  %v3685_v6 = vrot.slane %v16613_v24, 6 }
 0x456   : > { %v5872_v15 = vrot.slane %v14654_v2, 2  ;;  %v4704_v31 = vpop.f32.mrb[190].mxu0  ;;  %v5871_v22 = vsel %vm1646_vm2, %v5868_v49, %v5870_v37 }
 0x457   : > { %7686 = vmatmul.mubr.msk.bf16.gmra.mrb[92].mxu1 %vm3779_vm7, %v4351_v51  ;;  %v5047_v60 = vadd.f32 %v14609_v29, %v4702_v21  ;;  %v4705_v14 = vadd.f32 %v14566_v18, %v4704_v31  ;;  %v4706_v9 = vpop.f32.mrb[191].mxu0  ;;  %v6092_v36 = vmax.f32 %v14597_v39, %v5871_v22  ;;  %v3686_v51 = vsel %vm3543_vm10, %v3683_v20, %v3685_v6 }
 0x458   : > { %7689 = vmatprep.mubr.msk.bf16.mxu1 %vm9379_vm0, %v16556_v7  ;;  %v5873_v54 = vsel %vm1646_vm2, %v5870_v37, %v5872_v15 }
 0x459   : > { %v5333_v58 = vmax.f32 %v5047_v60, 0.0  ;;  %v5050_v49 = vadd.f32 %v14613_v55, %v4705_v14  ;;  %v7762_v57 = vpack.c.bf16 %v6092_v36, %v6091_v13  ;;  %v6093_v29 = vmax.f32 %v14600_v0, %v5873_v54  ;;  %v16616_v14 = vld [vmem:[#allocation91_spill] sm:$0xff] }
 0x45a   : > { %v14670_v4 = vpop.f32.mrb[144].mxu1  ;;  %v3689_v9 = vrot.slane %v16616_v14, 6 }
 0x45b   : > { %v7583_v46 = vpop.f32.mrb[145].mxu1  ;;  %v5496_v56 = vrot.slane %v5333_v58, 1  ;;  %v5334_v47 = vmax.f32 %v5050_v49, 0.0  ;;  %7763 = vmatpush1.bf16.msra.mxu0 %v7762_v57 }
 0x45c   : > { %v14677_v10 = vpop.f32.mrb[146].mxu1  ;;  %7764 = vmatprep.subr.bf16.mxu0 %v16615_v41  ;;  %v3692_v46 = vsel %vm3543_vm10, %v3689_v9, %v3691_v40 }
 0x45d   : > { %v7584_v39 = vpop.f32.mrb[147].mxu1  ;;  %v5497_v12 = vsel %vm1256_vm3, %v5494_v53, %v5496_v56  ;;  %v5498_v55 = vrot.slane %v5334_v47, 1  ;;  %v3688_v53 = vsel %vm3543_vm10, %v3685_v6, %v3687_v27 }
 0x45e   : > { %v14684_v13 = vmax.f32 %v5332_v5, %v5497_v12  ;;  %v4357_v20 = vpack.c.bf16 %v3688_v53, %v3686_v51 }
 0x45f   : > { %7690 = vmatmul.mubr.msk.bf16.gmra.mrb[96].mxu1 %vm3779_vm7, %v4354_v30  ;;  %v5499_v0 = vsel %vm1256_vm3, %v5496_v56, %v5498_v55 }
 0x460   : > { %7693 = vmatprep.mubr.msk.bf16.mxu1 %vm9379_vm0, %v16556_v7  ;;  %v5874_v42 = vrot.slane %v14684_v13, 2  ;;  %v14690_v62 = vmax.f32 %v5333_v58, %v5499_v0  ;;  %v4709_v19 = vpop.f32.mrb[192].mxu0 }
 0x461   : > { %v4710_v37 = vadd.f32 %v14566_v18, %v4709_v19  ;;  %v4711_v5 = vpop.f32.mrb[193].mxu0 }
 0x462   : > { %v14692_v32 = vpop.f32.mrb[148].mxu1  ;;  %v5876_v34 = vrot.slane %v14690_v62, 2  ;;  %v4712_v25 = vpop.f32.mrb[194].mxu0  ;;  %v5875_v17 = vsel %vm1646_vm2, %v5872_v15, %v5874_v42 }
 0x463   : > { %v7587_v50 = vpop.f32.mrb[149].mxu1  ;;  %v5055_v21 = vadd.f32 %v14626_v35, %v4710_v37  ;;  %v4713_v3 = vadd.f32 %v14566_v18, %v4712_v25  ;;  %v4714_v31 = vpop.f32.mrb[195].mxu0  ;;  %v6094_v60 = vmax.f32 %v14619_v23, %v5875_v17  ;;  %v3690_v23 = vsel %vm3543_vm10, %v3687_v27, %v3689_v9 }
 0x464   : > { %v14698_v63 = vpop.f32.mrb[150].mxu1  ;;  %v5877_v36 = vsel %vm1646_vm2, %v5874_v42, %v5876_v34  ;;  %v4360_v24 = vpack.c.bf16 %v3692_v46, %v3690_v23 }
 0x465   : > { %v7588_v22 = vpop.f32.mrb[151].mxu1  ;;  %v5335_v52 = vmax.f32 %v5055_v21, 0.0  ;;  %v5058_v48 = vadd.f32 %v14633_v61, %v4713_v3  ;;  %v7765_v54 = vpack.c.bf16 %v6094_v60, %v6093_v29  ;;  %v6095_v15 = vmax.f32 %v14624_v11, %v5877_v36 }
 0x467   : > { %7694 = vmatmul.mubr.msk.bf16.gmra.mrb[100].mxu1 %vm3779_vm7, %v4357_v20  ;;  %v5500_v35 = vrot.slane %v5335_v52, 1  ;;  %v5336_v58 = vmax.f32 %v5058_v48, 0.0  ;;  %7766 = vmatpush1.bf16.msra.mxu0 %v7765_v54 }
 0x468   : > { %7697 = vmatprep.mubr.msk.bf16.mxu1 %vm9379_vm0, %v16556_v7  ;;  %7767 = vmatprep.subr.bf16.mxu0 %v16615_v41 }
 0x469   : > { %v5501_v61 = vsel %vm1256_vm3, %v5498_v55, %v5500_v35  ;;  %v5502_v57 = vrot.slane %v5336_v58, 1 }
 0x46a   : > { %v14711_v49 = vpop.f32.mrb[152].mxu1  ;;  %v14719_v29 = vmax.f32 %v5334_v47, %v5501_v61 }
 0x46b   : > { %v7591_v11 = vpop.f32.mrb[153].mxu1  ;;  %v5503_v39 = vsel %vm1256_vm3, %v5500_v35, %v5502_v57 }
 0x46c   : > { %v14721_v56 = vpop.f32.mrb[154].mxu1  ;;  %v5878_v6 = vrot.slane %v14719_v29, 2  ;;  %v14725_v26 = vmax.f32 %v5335_v52, %v5503_v39 }
 0x46d   : > { %v7592_v30 = vpop.f32.mrb[155].mxu1  ;;  %v4717_v8 = vpop.f32.mrb[196].mxu0 }
 0x46e   : > { %v4718_v40 = vadd.f32 %v14566_v18, %v4717_v8  ;;  %v4719_v27 = vpop.f32.mrb[197].mxu0  ;;  %v5880_v12 = vrot.slane %v14725_v26, 2  ;;  %v5879_v55 = vsel %vm1646_vm2, %v5876_v34, %v5878_v6 }
 0x46f   : > { %7698 = vmatmul.mubr.msk.bf16.gmra.mrb[104].mxu1 %vm3779_vm7, %v4360_v24  ;;  %v4720_v47 = vpop.f32.mrb[198].mxu0  ;;  %v6096_v51 = vmax.f32 %v14648_v38, %v5879_v55 }
 0x470   : > { %7701 = vmatprep.mubr.msk.bf16.mxu1 %vm9379_vm0, %v16556_v7  ;;  %v5063_v0 = vadd.f32 %v14643_v45, %v4718_v40  ;;  %v4721_v42 = vadd.f32 %v14566_v18, %v4720_v47  ;;  %v4722_v19 = vpop.f32.mrb[199].mxu0  ;;  %v5881_v37 = vsel %vm1646_vm2, %v5878_v6, %v5880_v12 }
 0x471   : > { %v7768_v17 = vpack.c.bf16 %v6096_v51, %v6095_v15  ;;  %v6097_v3 = vmax.f32 %v14654_v2, %v5881_v37 }
 0x472   : > { %v5094_v53 = vpop.f32.mrb[0].mxu1  ;;  %v5337_v5 = vmax.f32 %v5063_v0, 0.0  ;;  %v14738_v50 = vadd.f32 %v14650_v59, %v4721_v42 }
 0x473   : > { %v7949_v25 = vadd.f32 %v14566_v18, %v5094_v53  ;;  %v7595_v34 = vpop.f32.mrb[1].mxu1  ;;  %7769 = vmatpush1.bf16.msra.mxu0 %v7768_v17 }
 0x474   : > { %v5097_v21 = vpop.f32.mrb[2].mxu1  ;;  %v5504_v45 = vrot.slane %v5337_v5, 1  ;;  %v5338_v31 = vmax.f32 %v14738_v50, 0.0  ;;  %7770 = vmatprep.subr.bf16.mxu0 %v16615_v41 }
 0x475   : > { %v5345_v22 = vmax.f32 %v7949_v25, 0.0  ;;  %v7950_v38 = vadd.f32 %v14566_v18, %v5097_v21  ;;  %v7596_v20 = vpop.f32.mrb[3].mxu1 }
 0x476   : > { %v5505_v59 = vsel %vm1256_vm3, %v5502_v57, %v5504_v45  ;;  %v5506_v60 = vrot.slane %v5338_v31, 1 }
 0x477   : > { %v5346_v14 = vmax.f32 %v7950_v38, 0.0  ;;  %7702 = vmatmul.mubr.msk.bf16.gmra.mrb[108].mxu1 %vm3779_vm7, %v4363_v33  ;;  %v14750_v2 = vmax.f32 %v5336_v58, %v5505_v59  ;;  %v14755_v36 = vrot.slane %v5345_v22, 1 }
 0x478   : > { %7705 = vmatprep.mubr.msk.bf16.mxu1 %vm9379_vm0, %v16556_v7  ;;  %v5507_v9 = vsel %vm1256_vm3, %v5504_v45, %v5506_v60 }
 0x479   : > { %v5522_v52 = vrot.slane %v5346_v14, 1  ;;  %v5882_v48 = vrot.slane %v14750_v2, 2  ;;  %v14758_v54 = vmax.f32 %v5337_v5, %v5507_v9 }
 0x47a   : > { %v4725_v15 = vpop.f32.mrb[200].mxu0  ;;  %v5102_v35 = vpop.f32.mrb[4].mxu1 }
 0x47b   : > { %v5523_v28 = vsel %vm1256_vm3, %v14755_v36, %v5522_v52  ;;  %v4726_v43 = vadd.f32 %v14566_v18, %v4725_v15  ;;  %v7951_v33 = vadd.f32 %v14566_v18, %v5102_v35  ;;  %v4727_v58 = vpop.f32.mrb[201].mxu0  ;;  %v7599_v7 = vpop.f32.mrb[5].mxu1  ;;  %v5884_v23 = vrot.slane %v14758_v54, 2 }
 0x47c   : > { %v14765_v46 = vmax.f32 %v5345_v22, %v5523_v28  ;;  %v4728_v61 = vpop.f32.mrb[202].mxu0  ;;  %v5105_v57 = vpop.f32.mrb[6].mxu1  ;;  %v5883_v11 = vsel %vm1646_vm2, %v5880_v12, %v5882_v48 }
 0x47d   : > { %v5071_v39 = vadd.f32 %v14670_v4, %v4726_v43  ;;  %v5347_v30 = vmax.f32 %v7951_v33, 0.0  ;;  %v4729_v24 = vadd.f32 %v14566_v18, %v4728_v61  ;;  %v7952_v6 = vadd.f32 %v14566_v18, %v5105_v57  ;;  %v4730_v8 = vpop.f32.mrb[203].mxu0  ;;  %v7600_v40 = vpop.f32.mrb[7].mxu1 }
 0x47e   : > { %v6098_v27 = vmax.f32 %v14684_v13, %v5883_v11  ;;  %v5885_v47 = vsel %vm1646_vm2, %v5882_v48, %v5884_v23  ;;  %v5900_v25 = vrot.slane %v14765_v46, 2 }
 0x47f   : > { %v5339_v55 = vmax.f32 %v5071_v39, 0.0  ;;  %v5524_v0 = vrot.slane %v5347_v30, 1  ;;  %v14774_v42 = vadd.f32 %v14677_v10, %v4729_v24  ;;  %v5348_v19 = vmax.f32 %v7952_v6, 0.0  ;;  %7706 = vmatmul.mubr.msk.bf16.gmra.mrb[112].mxu1 %vm3779_vm7, %v4366_v1 }
 0x480   : > { %v7771_v4 = vpack.c.bf16 %v6098_v27, %v6097_v3  ;;  %v6099_v12 = vmax.f32 %v14690_v62, %v5885_v47 }
 0x481   : > { %v5508_v51 = vrot.slane %v5339_v55, 1  ;;  %v5525_v53 = vsel %vm1256_vm3, %v5522_v52, %v5524_v0  ;;  %v5340_v13 = vmax.f32 %v14774_v42, 0.0  ;;  %v5526_v37 = vrot.slane %v5348_v19, 1 }
 0x482   : > { %v14783_v5 = vmax.f32 %v5346_v14, %v5525_v53  ;;  %7772 = vmatpush1.bf16.msra.mxu0 %v7771_v4  ;;  %v5110_v10 = vpop.f32.mrb[8].mxu1 }
 0x483   : > { %v5509_v50 = vsel %vm1256_vm3, %v5506_v60, %v5508_v51  ;;  %v5510_v16 = vrot.slane %v5340_v13, 1  ;;  %v5527_v44 = vsel %vm1256_vm3, %v5524_v0, %v5526_v37  ;;  %v7953_v1 = vadd.f32 %v14566_v18, %v5110_v10  ;;  %v7603_v62 = vpop.f32.mrb[9].mxu1  ;;  %7773 = vmatprep.subr.bf16.mxu0 %v16615_v41 }
 0x484   : > { %v14792_v34 = vmax.f32 %v5338_v31, %v5509_v50  ;;  %v5902_v17 = vrot.slane %v14783_v5, 2  ;;  %v14795_v21 = vmax.f32 %v5347_v30, %v5527_v44  ;;  %v5113_v3 = vpop.f32.mrb[10].mxu1 }
 0x485   : > { %v5511_v45 = vsel %vm1256_vm3, %v5508_v51, %v5510_v16  ;;  %v5349_v22 = vmax.f32 %v7953_v1, 0.0  ;;  %v7954_v38 = vadd.f32 %v14566_v18, %v5113_v3  ;;  %v7604_v20 = vpop.f32.mrb[11].mxu1 }
 0x486   : > { %v5886_v59 = vrot.slane %v14792_v34, 2  ;;  %v14800_v60 = vmax.f32 %v5339_v55, %v5511_v45  ;;  %v5904_v14 = vrot.slane %v14795_v21, 2  ;;  %v14806_v31 = vsel %vm1646_vm2, %v5900_v25, %v5902_v17 }
 0x487   : > { %v4733_v9 = vpop.f32.mrb[204].mxu0  ;;  %v5528_v52 = vrot.slane %v5349_v22, 1  ;;  %v5350_v48 = vmax.f32 %v7954_v38, 0.0 }
 0x488   : > { %v4734_v15 = vadd.f32 %v14566_v18, %v4733_v9  ;;  %v4735_v35 = vpop.f32.mrb[205].mxu0  ;;  %v5888_v28 = vrot.slane %v14800_v60, 2  ;;  %v5887_v33 = vsel %vm1646_vm2, %v5884_v23, %v5886_v59  ;;  %v14812_v58 = vsel %vm1646_vm2, %v5902_v17, %v5904_v14 }
 0x489   : > { %v4736_v43 = vpop.f32.mrb[206].mxu0  ;;  %v5529_v7 = vsel %vm1256_vm3, %v5526_v37, %v5528_v52  ;;  %v5530_v61 = vrot.slane %v5350_v48, 1  ;;  %v6100_v6 = vmax.f32 %v14719_v29, %v5887_v33 }
 0x48a   : > { %v5079_v57 = vadd.f32 %v14692_v32, %v4734_v15  ;;  %v4737_v11 = vadd.f32 %v14566_v18, %v4736_v43  ;;  %v4738_v39 = vpop.f32.mrb[207].mxu0  ;;  %v14817_v30 = vmax.f32 %v5348_v19, %v5529_v7  ;;  %v5118_v24 = vpop.f32.mrb[12].mxu1  ;;  %v5889_v8 = vsel %vm1646_vm2, %v5886_v59, %v5888_v28 }
 0x48b   : > { %v5531_v23 = vsel %vm1256_vm3, %v5528_v52, %v5530_v61  ;;  %v7955_v47 = vadd.f32 %v14566_v18, %v5118_v24  ;;  %v7607_v55 = vpop.f32.mrb[13].mxu1  ;;  %v7774_v4 = vpack.c.bf16 %v6100_v6, %v6099_v12  ;;  %v6101_v51 = vmax.f32 %v14725_v26, %v5889_v8 }
 0x48c   : > { %v5341_v40 = vmax.f32 %v5079_v57, 0.0  ;;  %v14823_v27 = vadd.f32 %v14698_v63, %v4737_v11  ;;  %v5906_v32 = vrot.slane %v14817_v30, 2  ;;  %v14827_v0 = vmax.f32 %v5349_v22, %v5531_v23  ;;  %v5121_v19 = vpop.f32.mrb[14].mxu1 }
 0x48d   : > { %v5351_v37 = vmax.f32 %v7955_v47, 0.0  ;;  %v7956_v10 = vadd.f32 %v14566_v18, %v5121_v19  ;;  %v7608_v50 = vpop.f32.mrb[15].mxu1  ;;  %7775 = vmatpush1.bf16.msra.mxu0 %v7774_v4 }
 0x48e   : > { %v5512_v29 = vrot.slane %v5341_v40, 1  ;;  %v5342_v53 = vmax.f32 %v14823_v27, 0.0  ;;  %v5908_v63 = vrot.slane %v14827_v0, 2  ;;  %v14834_v44 = vsel %vm1646_vm2, %v5904_v14, %v5906_v32  ;;  %7776 = vmatprep.subr.bf16.mxu0 %v16615_v41 }
 0x48f   : > { %v5532_v62 = vrot.slane %v5351_v37, 1  ;;  %v5352_v26 = vmax.f32 %v7956_v10, 0.0 }
 0x490   : > { %v5513_v1 = vsel %vm1256_vm3, %v5510_v16, %v5512_v29  ;;  %v5514_v12 = vrot.slane %v5342_v53, 1  ;;  %v5909_v3 = vsel %vm1646_vm2, %v5906_v32, %v5908_v63 }
 0x491   : > { %v14842_v17 = vmax.f32 %v5340_v13, %v5513_v1  ;;  %v5533_v22 = vsel %vm1256_vm3, %v5530_v61, %v5532_v62  ;;  %v5534_v38 = vrot.slane %v5352_v26, 1  ;;  %v6111_v16 = vmax.f32 %v14765_v46, %v5909_v3 }
 0x492   : > { %v5515_v45 = vsel %vm1256_vm3, %v5512_v29, %v5514_v12  ;;  %v14851_v14 = vmax.f32 %v5350_v48, %v5533_v22  ;;  %v5126_v52 = vpop.f32.mrb[16].mxu1 }
 0x493   : > { %v5890_v20 = vrot.slane %v14842_v17, 2  ;;  %v14849_v59 = vmax.f32 %v5341_v40, %v5515_v45  ;;  %v4741_v9 = vpop.f32.mrb[208].mxu0  ;;  %v5535_v42 = vsel %vm1256_vm3, %v5532_v62, %v5534_v38  ;;  %v7957_v15 = vadd.f32 %v14566_v18, %v5126_v52  ;;  %v7611_v43 = vpop.f32.mrb[17].mxu1 }
 0x494   : > { %v4742_v13 = vadd.f32 %v14566_v18, %v4741_v9  ;;  %v4743_v35 = vpop.f32.mrb[209].mxu0  ;;  %v5910_v7 = vrot.slane %v14851_v14, 2  ;;  %v14858_v61 = vmax.f32 %v5351_v37, %v5535_v42  ;;  %v5129_v11 = vpop.f32.mrb[18].mxu1 }
 0x495   : > { %v5892_v33 = vrot.slane %v14849_v59, 2  ;;  %v4744_v57 = vpop.f32.mrb[210].mxu0  ;;  %v5891_v48 = vsel %vm1646_vm2, %v5888_v28, %v5890_v20  ;;  %v5353_v24 = vmax.f32 %v7957_v15, 0.0  ;;  %v7958_v8 = vadd.f32 %v14566_v18, %v5129_v11  ;;  %v7612_v40 = vpop.f32.mrb[19].mxu1 }
 0x496   : > { %v5087_v39 = vadd.f32 %v14711_v49, %v4742_v13  ;;  %v4745_v6 = vadd.f32 %v14566_v18, %v4744_v57  ;;  %v4746_v23 = vpop.f32.mrb[211].mxu0  ;;  %v5912_v47 = vrot.slane %v14858_v61, 2  ;;  %v6102_v55 = vmax.f32 %v14750_v2, %v5891_v48 }
 0x497   : > { %v5893_v32 = vsel %vm1646_vm2, %v5890_v20, %v5892_v33  ;;  %v5911_v19 = vsel %vm1646_vm2, %v5908_v63, %v5910_v7  ;;  %v5536_v29 = vrot.slane %v5353_v24, 1  ;;  %v5354_v49 = vmax.f32 %v7958_v8, 0.0 }
 0x498   : > { %v5343_v4 = vmax.f32 %v5087_v39, 0.0  ;;  %v5090_v28 = vadd.f32 %v14721_v56, %v4745_v6  ;;  %v7777_v37 = vpack.c.bf16 %v6102_v55, %v6101_v51  ;;  %v6103_v10 = vmax.f32 %v14758_v54, %v5893_v32 }
 0x499   : > { %v6112_v50 = vmax.f32 %v14783_v5, %v5911_v19  ;;  %v14872_v1 = vsel %vm1646_vm2, %v5910_v7, %v5912_v47  ;;  %v5537_v2 = vsel %vm1256_vm3, %v5534_v38, %v5536_v29  ;;  %v5538_v45 = vrot.slane %v5354_v49, 1 }
 0x49a   : > { %v5516_v62 = vrot.slane %v5343_v4, 1  ;;  %v5344_v3 = vmax.f32 %v5090_v28, 0.0  ;;  %v14875_v22 = vmax.f32 %v5352_v26, %v5537_v2  ;;  %7778 = vmatpush1.bf16.msra.mxu0 %v7777_v37  ;;  %v5134_v63 = vpop.f32.mrb[20].mxu1  ;;  %v6113_v56 = vmax.f32 %v14795_v21, %v14872_v1 }
 0x49b   : > { %v14877_v20 = vpack.c.bf16 %v6112_v50, %v6111_v16  ;;  %v5539_v51 = vsel %vm1256_vm3, %v5536_v29, %v5538_v45  ;;  %v7959_v9 = vadd.f32 %v14566_v18, %v5134_v63  ;;  %v7615_v52 = vpop.f32.mrb[21].mxu1  ;;  %7779 = vmatprep.subr.bf16.mxu0 %v16615_v41 }
 0x49c   : > { %v5517_v54 = vsel %vm1256_vm3, %v5514_v12, %v5516_v62  ;;  %v5518_v5 = vrot.slane %v5344_v3, 1  ;;  %v5914_v38 = vrot.slane %v14875_v22, 2  ;;  %v14888_v16 = vmax.f32 %v5353_v24, %v5539_v51  ;;  %v5137_v42 = vpop.f32.mrb[22].mxu1 }
 0x49d   : > { %v5731_v26 = vmax.f32 %v5342_v53, %v5517_v54  ;;  %v5355_v13 = vmax.f32 %v7959_v9, 0.0  ;;  %v7960_v15 = vadd.f32 %v14566_v18, %v5137_v42  ;;  %v7616_v35 = vpop.f32.mrb[23].mxu1 }
 0x49e   : > { %v5519_v21 = vsel %vm1256_vm3, %v5516_v62, %v5518_v5  ;;  %v5521_v12 = vsel %vm1256_vm3, %v5518_v5, %v14755_v36  ;;  %v5916_v27 = vrot.slane %v14888_v16, 2  ;;  %v5915_v39 = vsel %vm1646_vm2, %v5912_v47, %v5914_v38 }
 0x49f   : > { %v5894_v43 = vrot.slane %v5731_v26, 2  ;;  %v5732_v7 = vmax.f32 %v5343_v4, %v5519_v21  ;;  %v5733_v57 = vmax.f32 %v5344_v3, %v5521_v12  ;;  %v5540_v53 = vrot.slane %v5355_v13, 1 }
 0x4a0   : > { %v5356_v11 = vmax.f32 %v7960_v15, 0.0  ;;  %v6108_v48 = vmax.f32 %v5731_v26, %v14806_v31  ;;  %v5917_v54 = vsel %vm1646_vm2, %v5914_v38, %v5916_v27 }
 0x4a1   : > { %v5896_v24 = vrot.slane %v5732_v7, 2  ;;  %v5898_v6 = vrot.slane %v5733_v57, 2  ;;  %v6110_v8 = vmax.f32 %v5733_v57, %v14834_v44  ;;  %v5895_v36 = vsel %vm1646_vm2, %v5892_v33, %v5894_v43 }
 0x4a2   : > { %v5541_v23 = vsel %vm1256_vm3, %v5538_v45, %v5540_v53  ;;  %v5542_v40 = vrot.slane %v5356_v11, 1  ;;  %v6104_v55 = vmax.f32 %v14792_v34, %v5895_v36  ;;  %v6109_v32 = vmax.f32 %v5732_v7, %v14812_v58  ;;  %v5142_v4 = vpop.f32.mrb[24].mxu1 }
 0x4a3   : > { %v14902_v19 = vmax.f32 %v5354_v49, %v5541_v23  ;;  %v5897_v31 = vsel %vm1646_vm2, %v5894_v43, %v5896_v24  ;;  %v5899_v47 = vsel %vm1646_vm2, %v5896_v24, %v5898_v6  ;;  %v5901_v44 = vsel %vm1646_vm2, %v5898_v6, %v5900_v25  ;;  %v7619_v28 = vpop.f32.mrb[25].mxu1 }
 0x4a4   : > { %v5543_v33 = vsel %vm1256_vm3, %v5540_v53, %v5542_v40  ;;  %v7961_v29 = vadd.f32 %v14566_v18, %v5142_v4  ;;  %v7780_v37 = vpack.c.bf16 %v6104_v55, %v6103_v10  ;;  %v6105_v34 = vmax.f32 %v14800_v60, %v5897_v31  ;;  %v5145_v50 = vpop.f32.mrb[26].mxu1 }
 0x4a5   : > { %v5918_v58 = vrot.slane %v14902_v19, 2  ;;  %v14913_v49 = vmax.f32 %v5355_v13, %v5543_v33  ;;  %v6106_v1 = vmax.f32 %v14842_v17, %v5899_v47  ;;  %v6107_v62 = vmax.f32 %v14849_v59, %v5901_v44  ;;  %v7620_v2 = vpop.f32.mrb[27].mxu1 }
 0x4a6   : > { %v5357_v46 = vmax.f32 %v7961_v29, 0.0  ;;  %v7962_v25 = vadd.f32 %v14566_v18, %v5145_v50  ;;  %7781 = vmatpush1.bf16.msra.mxu0 %v7780_v37  ;;  %v7789_v3 = vpack.c.bf16 %v6110_v8, %v6109_v32  ;;  %v6114_v45 = vmax.f32 %v14817_v30, %v5915_v39 }
 0x4a7   : > { %v5920_v10 = vrot.slane %v14913_v49, 2  ;;  %7782 = vmatprep.subr.bf16.mxu0 %v16615_v41  ;;  %v7783_v60 = vpack.c.bf16 %v6106_v1, %v6105_v34  ;;  %v7786_v63 = vpack.c.bf16 %v6108_v48, %v6107_v62  ;;  %v5919_v59 = vsel %vm1646_vm2, %v5916_v27, %v5918_v58 }
 0x4a8   : > { %v5544_v5 = vrot.slane %v5357_v46, 1  ;;  %v5358_v17 = vmax.f32 %v7962_v25, 0.0  ;;  %v7795_v51 = vpack.c.bf16 %v6114_v45, %v6113_v56  ;;  %v6115_v9 = vmax.f32 %v14827_v0, %v5917_v54 }
 0x4a9   : > { %v6116_v52 = vmax.f32 %v14851_v14, %v5919_v59  ;;  %v5921_v26 = vsel %vm1646_vm2, %v5918_v58, %v5920_v10 }
 0x4aa   : > { %v5545_v30 = vsel %vm1256_vm3, %v5542_v40, %v5544_v5  ;;  %v5546_v42 = vrot.slane %v5358_v17, 1  ;;  %7784 = vmatpush1.bf16.msra.mxu0 %v7783_v60  ;;  %v6117_v21 = vmax.f32 %v14858_v61, %v5921_v26  ;;  %v5150_v38 = vpop.f32.mrb[28].mxu1 }
 0x4ab   : > { %v14928_v12 = vmax.f32 %v5356_v11, %v5545_v30  ;;  %7785 = vmatprep.subr.bf16.mxu0 %v16615_v41  ;;  %v7798_v56 = vpack.c.bf16 %v6116_v52, %v6115_v9  ;;  %v7963_v0 = vadd.f32 %v14566_v18, %v5150_v38  ;;  %v7623_v15 = vpop.f32.mrb[29].mxu1 }
 0x4ac   : > { %v5547_v13 = vsel %vm1256_vm3, %v5544_v5, %v5546_v42  ;;  %v5153_v43 = vpop.f32.mrb[30].mxu1 }
 0x4ad   : > { %v5922_v14 = vrot.slane %v14928_v12, 2  ;;  %v14934_v35 = vmax.f32 %v5357_v46, %v5547_v13  ;;  %v5359_v7 = vmax.f32 %v7963_v0, 0.0  ;;  %v7964_v57 = vadd.f32 %v14566_v18, %v5153_v43  ;;  %v7624_v61 = vpop.f32.mrb[31].mxu1 }
 0x4ae   : > { %7787 = vmatpush1.bf16.msra.mxu0 %v7786_v63 }
 0x4af   : > { %v5924_v27 = vrot.slane %v14934_v35, 2  ;;  %7788 = vmatprep.subr.bf16.mxu0 %v16615_v41  ;;  %v5923_v53 = vsel %vm1646_vm2, %v5920_v10, %v5922_v14  ;;  %v5548_v11 = vrot.slane %v5359_v7, 1  ;;  %v5360_v48 = vmax.f32 %v7964_v57, 0.0 }
 0x4b0   : > { %v6118_v39 = vmax.f32 %v14875_v22, %v5923_v53 }
 0x4b1   : > { %v5925_v24 = vsel %vm1646_vm2, %v5922_v14, %v5924_v27  ;;  %v5549_v6 = vsel %vm1256_vm3, %v5546_v42, %v5548_v11  ;;  %v5550_v8 = vrot.slane %v5360_v48, 1 }
 0x4b2   : > { %7790 = vmatpush1.bf16.msra.mxu0 %v7789_v3  ;;  %v7801_v36 = vpack.c.bf16 %v6118_v39, %v6117_v21  ;;  %v6119_v23 = vmax.f32 %v14888_v16, %v5925_v24  ;;  %v14944_v40 = vmax.f32 %v5358_v17, %v5549_v6  ;;  %v5158_v55 = vpop.f32.mrb[32].mxu1 }
 0x4b3   : > { %7791 = vmatprep.subr.bf16.mxu0 %v16615_v41  ;;  %v5551_v32 = vsel %vm1256_vm3, %v5548_v11, %v5550_v8  ;;  %v7965_v4 = vadd.f32 %v14566_v18, %v5158_v55  ;;  %v7627_v31 = vpop.f32.mrb[33].mxu1 }
 0x4b4   : > { %v5926_v22 = vrot.slane %v14944_v40, 2  ;;  %v14950_v47 = vmax.f32 %v5359_v7, %v5551_v32  ;;  %v5161_v44 = vpop.f32.mrb[34].mxu1 }
 0x4b5   : > { %v5361_v33 = vmax.f32 %v7965_v4, 0.0  ;;  %v7966_v29 = vadd.f32 %v14566_v18, %v5161_v44  ;;  %v7628_v28 = vpop.f32.mrb[35].mxu1 }
 0x4b6   : > { %7793 = vmatpush1.bf16.msra.mxu0 %v14877_v20  ;;  %v5928_v16 = vrot.slane %v14950_v47, 2  ;;  %v5927_v37 = vsel %vm1646_vm2, %v5924_v27, %v5926_v22 }
 0x4b7   : > { %7794 = vmatprep.subr.bf16.mxu0 %v16615_v41  ;;  %v5552_v34 = vrot.slane %v5361_v33, 1  ;;  %v5362_v58 = vmax.f32 %v7966_v29, 0.0  ;;  %v6120_v50 = vmax.f32 %v14902_v19, %v5927_v37  ;;  %v14968_v19 = vld [vmem:[%s15618_s4] ss:$0 sm:$0xff] }
 0x4b8   : > { %v5929_v1 = vsel %vm1646_vm2, %v5926_v22, %v5928_v16 }
 0x4b9   : > { %v5553_v62 = vsel %vm1256_vm3, %v5550_v8, %v5552_v34  ;;  %v5554_v46 = vrot.slane %v5362_v58, 1  ;;  %v7804_v18 = vpack.c.bf16 %v6120_v50, %v6119_v23  ;;  %v6121_v25 = vmax.f32 %v14913_v49, %v5929_v1  ;;  %v6166_v23 = vld [vmem:[%s15619_s5] sm:$0xff] }
 0x4ba   : > { %7796 = vmatpush1.bf16.msra.mxu0 %v7795_v51  ;;  %v14961_v20 = vmax.f32 %v5360_v48, %v5553_v62  ;;  %v5166_v2 = vpop.f32.mrb[36].mxu1  ;;  %v6177_v62 = vld [vmem:[%s15619_s5 + $0x58] sm:$0xff] }
 0x4bb   : > { %7797 = vmatprep.subr.bf16.mxu0 %v16615_v41  ;;  %v5555_v3 = vsel %vm1256_vm3, %v5552_v34, %v5554_v46  ;;  %v7967_v45 = vadd.f32 %v14968_v19, %v5166_v2  ;;  %v7631_v10 = vpop.f32.mrb[37].mxu1 }
 0x4bc   : > { %v5930_v60 = vrot.slane %v14961_v20, 2  ;;  %v14972_v63 = vmax.f32 %v5361_v33, %v5555_v3  ;;  %v5169_v49 = vpop.f32.mrb[38].mxu1 }
 0x4bd   : > { %v5363_v54 = vmax.f32 %v7967_v45, 0.0  ;;  %v7968_v5 = vadd.f32 %v14968_v19, %v5169_v49  ;;  %v7632_v17 = vpop.f32.mrb[39].mxu1  ;;  %v6176_v49 = vld [vmem:[%s15619_s5 + $0x50] sm:$0xff] }
 0x4be   : > { %7799 = vmatpush1.bf16.msra.mxu0 %v7798_v56  ;;  %v5932_v51 = vrot.slane %v14972_v63, 2  ;;  %v5931_v59 = vsel %vm1646_vm2, %v5928_v16, %v5930_v60 }
 0x4bf   : > { %7800 = vmatprep.subr.bf16.mxu0 %v16615_v41  ;;  %v5556_v9 = vrot.slane %v5363_v54, 1  ;;  %v5364_v52 = vmax.f32 %v7968_v5, 0.0  ;;  %v6122_v26 = vmax.f32 %v14928_v12, %v5931_v59 }
 0x4c0   : > { %v5933_v30 = vsel %vm1646_vm2, %v5930_v60, %v5932_v51 }
 0x4c1   : > { %v5557_v42 = vsel %vm1256_vm3, %v5554_v46, %v5556_v9  ;;  %v5558_v21 = vrot.slane %v5364_v52, 1  ;;  %v7807_v38 = vpack.c.bf16 %v6122_v26, %v6121_v25  ;;  %v6123_v13 = vmax.f32 %v14934_v35, %v5933_v30 }
 0x4c2   : > { %7802 = vmatpush1.bf16.msra.mxu0 %v7801_v36  ;;  %v14982_v56 = vmax.f32 %v5362_v58, %v5557_v42  ;;  %v5174_v0 = vpop.f32.mrb[40].mxu1  ;;  %v6171_v58 = vld [vmem:[%s15619_s5 + $0x28] sm:$0xff] }
 0x4c3   : > { %7803 = vmatprep.subr.bf16.mxu0 %v16615_v41  ;;  %v5559_v15 = vsel %vm1256_vm3, %v5556_v9, %v5558_v21  ;;  %v7969_v14 = vadd.f32 %v14968_v19, %v5174_v0  ;;  %v7635_v43 = vpop.f32.mrb[41].mxu1  ;;  %v6187_v0 = vld [vmem:[%s15619_s5 + $0xa8] sm:$0xff] }
 0x4c4   : > { %v5934_v12 = vrot.slane %v14982_v56, 2  ;;  %v14988_v7 = vmax.f32 %v5363_v54, %v5559_v15  ;;  %v5177_v57 = vpop.f32.mrb[42].mxu1 }
 0x4c5   : > { %v5365_v61 = vmax.f32 %v7969_v14, 0.0  ;;  %v7970_v27 = vadd.f32 %v14968_v19, %v5177_v57  ;;  %v7636_v53 = vpop.f32.mrb[43].mxu1 }
 0x4c6   : > { %7805 = vmatpush1.bf16.msra.mxu0 %v7804_v18  ;;  %v5936_v35 = vrot.slane %v14988_v7, 2  ;;  %v5935_v11 = vsel %vm1646_vm2, %v5932_v51, %v5934_v12 }
 0x4c7   : > { %7806 = vmatprep.subr.bf16.mxu0 %v16615_v41  ;;  %v5560_v48 = vrot.slane %v5365_v61, 1  ;;  %v5366_v39 = vmax.f32 %v7970_v27, 0.0  ;;  %v6124_v24 = vmax.f32 %v14944_v40, %v5935_v11  ;;  %v6172_v40 = vld [vmem:[%s15619_s5 + $0x30] sm:$0xff] }
 0x4c8   : > { %v5937_v6 = vsel %vm1646_vm2, %v5934_v12, %v5936_v35 }
 0x4c9   : > { %v5561_v8 = vsel %vm1256_vm3, %v5558_v21, %v5560_v48  ;;  %v5562_v36 = vrot.slane %v5366_v39, 1  ;;  %v7810_v55 = vpack.c.bf16 %v6124_v24, %v6123_v13  ;;  %v6125_v32 = vmax.f32 %v14950_v47, %v5937_v6  ;;  %v6181_v21 = vld [vmem:[%s15619_s5 + $0x78] sm:$0xff] }
 0x4ca   : > { %7808 = vmatpush1.bf16.msra.mxu0 %v7807_v38  ;;  %v15001_v4 = vmax.f32 %v5364_v52, %v5561_v8  ;;  %v5182_v31 = vpop.f32.mrb[44].mxu1 }
 0x4cb   : > { %7809 = vmatprep.subr.bf16.mxu0 %v16615_v41  ;;  %v5563_v22 = vsel %vm1256_vm3, %v5560_v48, %v5562_v36  ;;  %v7971_v44 = vadd.f32 %v14968_v19, %v5182_v31  ;;  %v7639_v33 = vpop.f32.mrb[45].mxu1  ;;  %v6191_v31 = vld [vmem:[%s15619_s5 + $0xc8] sm:$0xff] }
 0x4cc   : > { %v5938_v29 = vrot.slane %v15001_v4, 2  ;;  %v15010_v28 = vmax.f32 %v5365_v61, %v5563_v22  ;;  %v5185_v16 = vpop.f32.mrb[46].mxu1 }
 0x4cd   : > { %6379 = vmatmul.mubr.f32.vlgmr.msra.gmra.mrb[170].mxu0 %v6166_v23  ;;  %v5367_v47 = vmax.f32 %v7971_v44, 0.0  ;;  %v7972_v37 = vadd.f32 %v14968_v19, %v5185_v16  ;;  %v7640_v34 = vpop.f32.mrb[47].mxu1  ;;  %v6197_v44 = vld [vmem:[%s15619_s5 + $0xf8] sm:$0xff] }
 0x4ce   : > { %7811 = vmatpush1.bf16.msra.mxu0 %v7810_v55  ;;  %6383 = vmatprep.mubr.f32.mxu0 %v6172_v40  ;;  %v5940_v50 = vrot.slane %v15010_v28, 2  ;;  %v5939_v1 = vsel %vm1646_vm2, %v5936_v35, %v5938_v29  ;;  %v6186_v35 = vld [vmem:[%s15619_s5 + $0xa0] sm:$0xff] }
 0x4cf   : > { %7812 = vmatprep.subr.bf16.mxu0 %v16615_v41  ;;  %v5564_v46 = vrot.slane %v5367_v47, 1  ;;  %v5368_v18 = vmax.f32 %v7972_v37, 0.0  ;;  %v6126_v25 = vmax.f32 %v14961_v20, %v5939_v1  ;;  %v6182_v20 = vld [vmem:[%s15619_s5 + $0x80] sm:$0xff]  ;;  %v6196_v1 = vld [vmem:[%s15619_s5 + $0xf0] sm:$0xff] }
 0x4d0   : > { %v5941_v2 = vsel %vm1646_vm2, %v5938_v29, %v5940_v50 }
 0x4d1   : > { %6384 = vmatmul.mubr.f32.gmra.mrb[212].mxu0 %v6171_v58  ;;  %v5565_v3 = vsel %vm1256_vm3, %v5562_v36, %v5564_v46  ;;  %v5566_v45 = vrot.slane %v5368_v18, 1  ;;  %v7813_v10 = vpack.c.bf16 %v6126_v25, %v6125_v32  ;;  %v6127_v60 = vmax.f32 %v14972_v63, %v5941_v2 }
 0x4d2   : > { %6388 = vmatprep.mubr.f32.mxu0 %v6177_v62  ;;  %v15029_v54 = vmax.f32 %v5366_v39, %v5565_v3  ;;  %v5190_v5 = vpop.f32.mrb[48].mxu1 }
 0x4d3   : > { %v5567_v17 = vsel %vm1256_vm3, %v5564_v46, %v5566_v45  ;;  %v7973_v51 = vadd.f32 %v14968_v19, %v5190_v5  ;;  %v7643_v59 = vpop.f32.mrb[49].mxu1  ;;  %7814 = vmatpush1.bf16.msra.mxu0 %v7813_v10  ;;  %v6201_v5 = vld [vmem:[%s15619_s5 + $0x118] sm:$0xff] }
 0x4d4   : > { %v5942_v63 = vrot.slane %v15029_v54, 2  ;;  %v15037_v9 = vmax.f32 %v5367_v47, %v5567_v17  ;;  %v5193_v52 = vpop.f32.mrb[50].mxu1  ;;  %7815 = vmatprep.subr.bf16.mxu0 %v16615_v41 }
 0x4d5   : > { %6389 = vmatmul.mubr.f32.gmra.mrb[214].mxu0 %v6176_v49  ;;  %v5369_v26 = vmax.f32 %v7973_v51, 0.0  ;;  %v7974_v30 = vadd.f32 %v14968_v19, %v5193_v52  ;;  %v7644_v42 = vpop.f32.mrb[51].mxu1  ;;  %v6207_v51 = vld [vmem:[%s15619_s5 + $0x148] sm:$0xff] }
 0x4d6   : > { %6393 = vmatprep.mubr.f32.mxu0 %v6182_v20  ;;  %v5944_v38 = vrot.slane %v15037_v9, 2  ;;  %v5943_v13 = vsel %vm1646_vm2, %v5940_v50, %v5942_v63 }
 0x4d7   : > { %v5568_v15 = vrot.slane %v5369_v26, 1  ;;  %v5370_v14 = vmax.f32 %v7974_v30, 0.0  ;;  %v6128_v43 = vmax.f32 %v14982_v56, %v5943_v13  ;;  %v6192_v56 = vld [vmem:[%s15619_s5 + $0xd0] sm:$0xff]  ;;  %v6206_v13 = vld [vmem:[%s15619_s5 + $0x140] sm:$0xff] }
 0x4d8   : > { %v5945_v12 = vsel %vm1646_vm2, %v5942_v63, %v5944_v38 }
 0x4d9   : > { %6394 = vmatmul.mubr.f32.gmra.mrb[216].mxu0 %v6181_v21  ;;  %v5569_v57 = vsel %vm1256_vm3, %v5566_v45, %v5568_v15  ;;  %v5570_v61 = vrot.slane %v5370_v14, 1  ;;  %v7816_v27 = vpack.c.bf16 %v6128_v43, %v6127_v60  ;;  %v6129_v53 = vmax.f32 %v14988_v7, %v5945_v12 }
 0x4da   : > { %6398 = vmatprep.mubr.f32.mxu0 %v6187_v0  ;;  %v15056_v11 = vmax.f32 %v5368_v18, %v5569_v57  ;;  %v5198_v48 = vpop.f32.mrb[52].mxu1 }
 0x4db   : > { %v5571_v39 = vsel %vm1256_vm3, %v5568_v15, %v5570_v61  ;;  %v7975_v24 = vadd.f32 %v14968_v19, %v5198_v48  ;;  %v7647_v6 = vpop.f32.mrb[53].mxu1  ;;  %7817 = vmatpush1.bf16.msra.mxu0 %v7816_v27  ;;  %v6211_v48 = vld [vmem:[%s15619_s5 + $0x168] sm:$0xff] }
 0x4dc   : > { %v5946_v7 = vrot.slane %v15056_v11, 2  ;;  %v15064_v8 = vmax.f32 %v5369_v26, %v5571_v39  ;;  %v5201_v36 = vpop.f32.mrb[54].mxu1  ;;  %7818 = vmatprep.subr.bf16.mxu0 %v16615_v41 }
 0x4dd   : > { %6399 = vmatmul.mubr.f32.gmra.mrb[218].mxu0 %v6186_v35  ;;  %v5371_v23 = vmax.f32 %v7975_v24, 0.0  ;;  %v7976_v55 = vadd.f32 %v14968_v19, %v5201_v36  ;;  %v7648_v32 = vpop.f32.mrb[55].mxu1  ;;  %v6217_v24 = vld [vmem:[%s15619_s5 + $0x198] sm:$0xff] }
 0x4de   : > { %6403 = vmatprep.mubr.f32.mxu0 %v6192_v56  ;;  %v5948_v40 = vrot.slane %v15064_v8, 2  ;;  %v5947_v22 = vsel %vm1646_vm2, %v5944_v38, %v5946_v7 }
 0x4df   : > { %v5572_v33 = vrot.slane %v5371_v23, 1  ;;  %v5372_v29 = vmax.f32 %v7976_v55, 0.0  ;;  %v6130_v16 = vmax.f32 %v15001_v4, %v5947_v22  ;;  %v6202_v4 = vld [vmem:[%s15619_s5 + $0x120] sm:$0xff]  ;;  %v6216_v22 = vld [vmem:[%s15619_s5 + $0x190] sm:$0xff] }
 0x4e0   : > { %v5949_v47 = vsel %vm1646_vm2, %v5946_v7, %v5948_v40 }
 0x4e1   : > { %6404 = vmatmul.mubr.f32.gmra.mrb[220].mxu0 %v6191_v31  ;;  %v5573_v37 = vsel %vm1256_vm3, %v5570_v61, %v5572_v33  ;;  %v5574_v34 = vrot.slane %v5372_v29, 1  ;;  %v7819_v58 = vpack.c.bf16 %v6130_v16, %v6129_v53  ;;  %v6131_v50 = vmax.f32 %v15010_v28, %v5949_v47 }
 0x4e2   : > { %6408 = vmatprep.mubr.f32.mxu0 %v6197_v44  ;;  %v15083_v62 = vmax.f32 %v5370_v14, %v5573_v37  ;;  %v5206_v46 = vpop.f32.mrb[56].mxu1 }
 0x4e3   : > { %v5575_v18 = vsel %vm1256_vm3, %v5572_v33, %v5574_v34  ;;  %v7977_v25 = vadd.f32 %v14968_v19, %v5206_v46  ;;  %v7651_v2 = vpop.f32.mrb[57].mxu1  ;;  %7820 = vmatpush1.bf16.msra.mxu0 %v7819_v58  ;;  %v6221_v46 = vld [vmem:[%s15619_s5 + $0x1b8] sm:$0xff] }
 0x4e4   : > { %v5950_v28 = vrot.slane %v15083_v62, 2  ;;  %v15091_v3 = vmax.f32 %v5371_v23, %v5575_v18  ;;  %v5209_v45 = vpop.f32.mrb[58].mxu1  ;;  %7821 = vmatprep.subr.bf16.mxu0 %v16615_v41 }
 0x4e5   : > { %6409 = vmatmul.mubr.f32.gmra.mrb[222].mxu0 %v6196_v1  ;;  %v5373_v10 = vmax.f32 %v7977_v25, 0.0  ;;  %v7978_v60 = vadd.f32 %v14968_v19, %v5209_v45  ;;  %v7652_v49 = vpop.f32.mrb[59].mxu1  ;;  %v6227_v25 = vld [vmem:[%s15619_s5 + $0x1e8] sm:$0xff] }
 0x4e6   : > { %6413 = vmatprep.mubr.f32.mxu0 %v6202_v4  ;;  %v5952_v20 = vrot.slane %v15091_v3, 2  ;;  %v5951_v17 = vsel %vm1646_vm2, %v5948_v40, %v5950_v28 }
 0x4e7   : > { %v5576_v59 = vrot.slane %v5373_v10, 1  ;;  %v5374_v63 = vmax.f32 %v7978_v60, 0.0  ;;  %v6132_v52 = vmax.f32 %v15029_v54, %v5951_v17  ;;  %v6212_v54 = vld [vmem:[%s15619_s5 + $0x170] sm:$0xff]  ;;  %v6226_v17 = vld [vmem:[%s15619_s5 + $0x1e0] sm:$0xff] }
 0x4e8   : > { %v5953_v26 = vsel %vm1646_vm2, %v5950_v28, %v5952_v20 }
 0x4e9   : > { %6414 = vmatmul.mubr.f32.gmra.mrb[224].mxu0 %v6201_v5  ;;  %v5577_v30 = vsel %vm1256_vm3, %v5574_v34, %v5576_v59  ;;  %v5578_v42 = vrot.slane %v5374_v63, 1  ;;  %v7822_v21 = vpack.c.bf16 %v6132_v52, %v6131_v50  ;;  %v6133_v38 = vmax.f32 %v15037_v9, %v5953_v26 }
 0x4ea   : > { %6418 = vmatprep.mubr.f32.mxu0 %v6207_v51  ;;  %v15110_v0 = vmax.f32 %v5372_v29, %v5577_v30  ;;  %v5214_v15 = vpop.f32.mrb[60].mxu1 }
 0x4eb   : > { %v5579_v14 = vsel %vm1256_vm3, %v5576_v59, %v5578_v42  ;;  %v7979_v43 = vadd.f32 %v14968_v19, %v5214_v15  ;;  %v7655_v12 = vpop.f32.mrb[61].mxu1  ;;  %7823 = vmatpush1.bf16.msra.mxu0 %v7822_v21  ;;  %v6231_v15 = vld [vmem:[%s15619_s5 + $0x208] sm:$0xff] }
 0x4ec   : > { %v5954_v9 = vrot.slane %v15110_v0, 2  ;;  %v15118_v57 = vmax.f32 %v5373_v10, %v5579_v14  ;;  %v5217_v61 = vpop.f32.mrb[62].mxu1  ;;  %7824 = vmatprep.subr.bf16.mxu0 %v16615_v41 }
 0x4ed   : > { %6419 = vmatmul.mubr.f32.gmra.mrb[226].mxu0 %v6206_v13  ;;  %v5375_v27 = vmax.f32 %v7979_v43, 0.0  ;;  %v7980_v53 = vadd.f32 %v14968_v19, %v5217_v61  ;;  %v7656_v35 = vpop.f32.mrb[63].mxu1  ;;  %v6237_v43 = vld [vmem:[%s15619_s5 + $0x238] sm:$0xff] }
 0x4ee   : > { %6423 = vmatprep.mubr.f32.mxu0 %v6212_v54  ;;  %v5956_v56 = vrot.slane %v15118_v57, 2  ;;  %v5955_v39 = vsel %vm1646_vm2, %v5952_v20, %v5954_v9 }
 0x4ef   : > { %v5580_v6 = vrot.slane %v5375_v27, 1  ;;  %v5376_v7 = vmax.f32 %v7980_v53, 0.0  ;;  %v6134_v36 = vmax.f32 %v15056_v11, %v5955_v39  ;;  %v6222_v11 = vld [vmem:[%s15619_s5 + $0x1c0] sm:$0xff]  ;;  %v6236_v39 = vld [vmem:[%s15619_s5 + $0x230] sm:$0xff] }
 0x4f0   : > { %v5957_v23 = vsel %vm1646_vm2, %v5954_v9, %v5956_v56 }
 0x4f1   : > { %6424 = vmatmul.mubr.f32.gmra.mrb[228].mxu0 %v6211_v48  ;;  %v5581_v55 = vsel %vm1256_vm3, %v5578_v42, %v5580_v6  ;;  %v5582_v32 = vrot.slane %v5376_v7, 1  ;;  %v7825_v31 = vpack.c.bf16 %v6134_v36, %v6133_v38  ;;  %v6135_v40 = vmax.f32 %v15064_v8, %v5957_v23 }
 0x4f2   : > { %6428 = vmatprep.mubr.f32.mxu0 %v6217_v24  ;;  %v15137_v44 = vmax.f32 %v5374_v63, %v5581_v55  ;;  %v5222_v33 = vpop.f32.mrb[64].mxu1 }
 0x4f3   : > { %v5583_v29 = vsel %vm1256_vm3, %v5580_v6, %v5582_v32  ;;  %v7981_v16 = vadd.f32 %v14968_v19, %v5222_v33  ;;  %v7659_v47 = vpop.f32.mrb[65].mxu1  ;;  %7826 = vmatpush1.bf16.msra.mxu0 %v7825_v31  ;;  %v6241_v33 = vld [vmem:[%s15619_s5 + $0x258] sm:$0xff] }
 0x4f4   : > { %v5958_v8 = vrot.slane %v15137_v44, 2  ;;  %v15145_v37 = vmax.f32 %v5375_v27, %v5583_v29  ;;  %v5225_v34 = vpop.f32.mrb[66].mxu1  ;;  %7827 = vmatprep.subr.bf16.mxu0 %v16615_v41 }
 0x4f5   : > { %6429 = vmatmul.mubr.f32.gmra.mrb[230].mxu0 %v6216_v22  ;;  %v5377_v58 = vmax.f32 %v7981_v16, 0.0  ;;  %v7982_v50 = vadd.f32 %v14968_v19, %v5225_v34  ;;  %v7660_v1 = vpop.f32.mrb[67].mxu1  ;;  %v6247_v16 = vld [vmem:[%s15619_s5 + $0x288] sm:$0xff] }
 0x4f6   : > { %6433 = vmatprep.mubr.f32.mxu0 %v6222_v11  ;;  %v5960_v4 = vrot.slane %v15145_v37, 2  ;;  %v5959_v18 = vsel %vm1646_vm2, %v5956_v56, %v5958_v8 }
 0x4f7   : > { %v5584_v2 = vrot.slane %v5377_v58, 1  ;;  %v5378_v28 = vmax.f32 %v7982_v50, 0.0  ;;  %v6136_v45 = vmax.f32 %v15083_v62, %v5959_v18  ;;  %v6232_v62 = vld [vmem:[%s15619_s5 + $0x210] sm:$0xff]  ;;  %v6246_v18 = vld [vmem:[%s15619_s5 + $0x280] sm:$0xff] }
 0x4f8   : > { %v5961_v10 = vsel %vm1646_vm2, %v5958_v8, %v5960_v4 }
 0x4f9   : > { %6434 = vmatmul.mubr.f32.gmra.mrb[232].mxu0 %v6221_v46  ;;  %v5585_v60 = vsel %vm1256_vm3, %v5582_v32, %v5584_v2  ;;  %v5586_v49 = vrot.slane %v5378_v28, 1  ;;  %v7828_v5 = vpack.c.bf16 %v6136_v45, %v6135_v40  ;;  %v6137_v20 = vmax.f32 %v15091_v3, %v5961_v10 }
 0x4fa   : > { %6438 = vmatprep.mubr.f32.mxu0 %v6227_v25  ;;  %v15164_v51 = vmax.f32 %v5376_v7, %v5585_v60  ;;  %v5230_v59 = vpop.f32.mrb[68].mxu1 }
 0x4fb   : > { %v5587_v63 = vsel %vm1256_vm3, %v5584_v2, %v5586_v49  ;;  %v7983_v52 = vadd.f32 %v14968_v19, %v5230_v59  ;;  %v7663_v26 = vpop.f32.mrb[69].mxu1  ;;  %7829 = vmatpush1.bf16.msra.mxu0 %v7828_v5  ;;  %v6251_v59 = vld [vmem:[%s15619_s5 + $0x2a8] sm:$0xff] }
 0x4fc   : > { %v5962_v3 = vrot.slane %v15164_v51, 2  ;;  %v15172_v30 = vmax.f32 %v5377_v58, %v5587_v63  ;;  %v5233_v42 = vpop.f32.mrb[70].mxu1  ;;  %7830 = vmatprep.subr.bf16.mxu0 %v16615_v41 }
 0x4fd   : > { %6439 = vmatmul.mubr.f32.gmra.mrb[234].mxu0 %v6226_v17  ;;  %v5379_v21 = vmax.f32 %v7983_v52, 0.0  ;;  %v7984_v38 = vadd.f32 %v14968_v19, %v5233_v42  ;;  %v7664_v13 = vpop.f32.mrb[71].mxu1  ;;  %v6169_v52 = vld [vmem:[%s15619_s5 + $0x18] sm:$0xff] }
 0x4fe   : > { %6443 = vmatprep.mubr.f32.mxu0 %v6232_v62  ;;  %v5964_v54 = vrot.slane %v15172_v30, 2  ;;  %v5963_v14 = vsel %vm1646_vm2, %v5960_v4, %v5962_v3 }
 0x4ff   : > { %v5588_v12 = vrot.slane %v5379_v21, 1  ;;  %v5380_v9 = vmax.f32 %v7984_v38, 0.0  ;;  %v6138_v61 = vmax.f32 %v15110_v0, %v5963_v14  ;;  %v6242_v0 = vld [vmem:[%s15619_s5 + $0x260] sm:$0xff] }
 0x500   : > { %v5965_v27 = vsel %vm1646_vm2, %v5962_v3, %v5964_v54 }
 0x501   : > { %6444 = vmatmul.mubr.f32.gmra.mrb[236].mxu0 %v6231_v15  ;;  %v5589_v53 = vsel %vm1256_vm3, %v5586_v49, %v5588_v12  ;;  %v5590_v35 = vrot.slane %v5380_v9, 1  ;;  %v7831_v48 = vpack.c.bf16 %v6138_v61, %v6137_v20  ;;  %v6139_v56 = vmax.f32 %v15118_v57, %v5965_v27 }
 0x502   : > { %6448 = vmatprep.mubr.f32.mxu0 %v6237_v43  ;;  %v15191_v24 = vmax.f32 %v5378_v28, %v5589_v53  ;;  %v5238_v6 = vpop.f32.mrb[72].mxu1 }
 0x503   : > { %v5591_v7 = vsel %vm1256_vm3, %v5588_v12, %v5590_v35  ;;  %v7985_v36 = vadd.f32 %v14968_v19, %v5238_v6  ;;  %v7667_v23 = vpop.f32.mrb[73].mxu1  ;;  %7832 = vmatpush1.bf16.msra.mxu0 %v7831_v48 }
 0x504   : > { %v5966_v57 = vrot.slane %v15191_v24, 2  ;;  %v15199_v55 = vmax.f32 %v5379_v21, %v5591_v7  ;;  %v5241_v32 = vpop.f32.mrb[74].mxu1  ;;  %7833 = vmatprep.subr.bf16.mxu0 %v16615_v41 }
 0x505   : > { %6449 = vmatmul.mubr.f32.gmra.mrb[238].mxu0 %v6236_v39  ;;  %v5381_v31 = vmax.f32 %v7985_v36, 0.0  ;;  %v7986_v40 = vadd.f32 %v14968_v19, %v5241_v32  ;;  %v7668_v22 = vpop.f32.mrb[75].mxu1 }
 0x506   : > { %6453 = vmatprep.mubr.f32.mxu0 %v6242_v0  ;;  %v5968_v11 = vrot.slane %v15199_v55, 2  ;;  %v5967_v29 = vsel %vm1646_vm2, %v5964_v54, %v5966_v57 }
 0x507   : > { %v5592_v47 = vrot.slane %v5381_v31, 1  ;;  %v5382_v8 = vmax.f32 %v7986_v40, 0.0  ;;  %v6140_v34 = vmax.f32 %v15137_v44, %v5967_v29  ;;  %v6252_v44 = vld [vmem:[%s15619_s5 + $0x2b0] sm:$0xff] }
 0x508   : > { %v5969_v58 = vsel %vm1646_vm2, %v5966_v57, %v5968_v11 }
 0x509   : > { %6454 = vmatmul.mubr.f32.gmra.mrb[240].mxu0 %v6241_v33  ;;  %v5593_v50 = vsel %vm1256_vm3, %v5590_v35, %v5592_v47  ;;  %v5594_v1 = vrot.slane %v5382_v8, 1  ;;  %v7834_v46 = vpack.c.bf16 %v6140_v34, %v6139_v56  ;;  %v6141_v4 = vmax.f32 %v15145_v37, %v5969_v58 }
 0x50a   : > { %6458 = vmatprep.mubr.f32.mxu0 %v6247_v16  ;;  %v15218_v25 = vmax.f32 %v5380_v9, %v5593_v50  ;;  %v5246_v2 = vpop.f32.mrb[76].mxu1 }
 0x50b   : > { %v5595_v28 = vsel %vm1256_vm3, %v5592_v47, %v5594_v1  ;;  %v7987_v45 = vadd.f32 %v14968_v19, %v5246_v2  ;;  %v7671_v10 = vpop.f32.mrb[77].mxu1  ;;  %7835 = vmatpush1.bf16.msra.mxu0 %v7834_v46 }
 0x50c   : > { %v5970_v37 = vrot.slane %v15218_v25, 2  ;;  %v15226_v60 = vmax.f32 %v5381_v31, %v5595_v28  ;;  %v5249_v49 = vpop.f32.mrb[78].mxu1  ;;  %7836 = vmatprep.subr.bf16.mxu0 %v16615_v41 }
 0x50d   : > { %6459 = vmatmul.mubr.f32.gmra.mrb[242].mxu0 %v6246_v18  ;;  %v5383_v5 = vmax.f32 %v7987_v45, 0.0  ;;  %v7988_v20 = vadd.f32 %v14968_v19, %v5249_v49  ;;  %v7672_v17 = vpop.f32.mrb[79].mxu1 }
 0x50e   : > { %6463 = vmatprep.mubr.f32.mxu0 %v6252_v44  ;;  %v5972_v62 = vrot.slane %v15226_v60, 2  ;;  %v5971_v63 = vsel %vm1646_vm2, %v5968_v11, %v5970_v37 }
 0x50f   : > { %v5596_v26 = vrot.slane %v5383_v5, 1  ;;  %v5384_v3 = vmax.f32 %v7988_v20, 0.0  ;;  %v6142_v42 = vmax.f32 %v15164_v51, %v5971_v63 }
 0x510   : > { %v5973_v21 = vsel %vm1646_vm2, %v5970_v37, %v5972_v62 }
 0x511   : > { %6464 = vmatmul.mubr.f32.gmra.mrb[244].mxu0 %v6251_v59  ;;  %v5597_v38 = vsel %vm1256_vm3, %v5594_v1, %v5596_v26  ;;  %v5598_v13 = vrot.slane %v5384_v3, 1  ;;  %v7837_v15 = vpack.c.bf16 %v6142_v42, %v6141_v4  ;;  %v6143_v54 = vmax.f32 %v15172_v30, %v5973_v21 }
 0x512   : > { %6533 = vmatprep.mubr.f32.mxu0 %v6169_v52  ;;  %v15242_v14 = vmax.f32 %v5382_v8, %v5597_v38  ;;  %v5254_v43 = vpop.f32.mrb[80].mxu1 }
 0x513   : > { %v5599_v12 = vsel %vm1256_vm3, %v5596_v26, %v5598_v13  ;;  %v7989_v9 = vadd.f32 %v14968_v19, %v5254_v43  ;;  %v7675_v61 = vpop.f32.mrb[81].mxu1  ;;  %7838 = vmatpush1.bf16.msra.mxu0 %v7837_v15 }
 0x514   : > { %v5974_v51 = vrot.slane %v15242_v14, 2  ;;  %v15247_v27 = vmax.f32 %v5383_v5, %v5599_v12  ;;  %v5257_v53 = vpop.f32.mrb[82].mxu1  ;;  %7839 = vmatprep.subr.bf16.mxu0 %v16615_v41 }
 0x515   : > { %v5385_v35 = vmax.f32 %v7989_v9, 0.0  ;;  %v7990_v30 = vadd.f32 %v14968_v19, %v5257_v53  ;;  %v7676_v48 = vpop.f32.mrb[83].mxu1 }
 0x516   : > { %v5976_v56 = vrot.slane %v15247_v27, 2  ;;  %v5975_v39 = vsel %vm1646_vm2, %v5972_v62, %v5974_v51 }
 0x517   : > { %v5600_v6 = vrot.slane %v5385_v35, 1  ;;  %v5386_v0 = vmax.f32 %v7990_v30, 0.0  ;;  %v6144_v7 = vmax.f32 %v15191_v24, %v5975_v39 }
 0x518   : > { %v5977_v36 = vsel %vm1646_vm2, %v5974_v51, %v5976_v56 }
 0x519   : > { %v5601_v23 = vsel %vm1256_vm3, %v5598_v13, %v5600_v6  ;;  %v5602_v57 = vrot.slane %v5386_v0, 1  ;;  %v7840_v32 = vpack.c.bf16 %v6144_v7, %v6143_v54  ;;  %v6145_v31 = vmax.f32 %v15199_v55, %v5977_v36 }
 0x51a   : > { %v15257_v40 = vmax.f32 %v5384_v3, %v5601_v23  ;;  %v5262_v22 = vpop.f32.mrb[84].mxu1 }
 0x51b   : > { %v5603_v33 = vsel %vm1256_vm3, %v5600_v6, %v5602_v57  ;;  %v7991_v11 = vadd.f32 %v14968_v19, %v5262_v22  ;;  %v7679_v29 = vpop.f32.mrb[85].mxu1  ;;  %7841 = vmatpush1.bf16.msra.mxu0 %v7840_v32 }
 0x51c   : > { %v5978_v16 = vrot.slane %v15257_v40, 2  ;;  %v15262_v24 = vmax.f32 %v5385_v35, %v5603_v33  ;;  %v5265_v47 = vpop.f32.mrb[86].mxu1  ;;  %7842 = vmatprep.subr.bf16.mxu0 %v16615_v41 }
 0x51d   : > { %v5387_v8 = vmax.f32 %v7991_v11, 0.0  ;;  %v7992_v34 = vadd.f32 %v14968_v19, %v5265_v47  ;;  %v7680_v55 = vpop.f32.mrb[87].mxu1 }
 0x51e   : > { %v5980_v58 = vrot.slane %v15262_v24, 2  ;;  %v5979_v50 = vsel %vm1646_vm2, %v5976_v56, %v5978_v16 }
 0x51f   : > { %v5604_v1 = vrot.slane %v5387_v8, 1  ;;  %v5388_v46 = vmax.f32 %v7992_v34, 0.0  ;;  %v6146_v4 = vmax.f32 %v15218_v25, %v5979_v50 }
 0x520   : > { %v5981_v18 = vsel %vm1646_vm2, %v5978_v16, %v5980_v58 }
 0x521   : > { %v5605_v2 = vsel %vm1256_vm3, %v5602_v57, %v5604_v1  ;;  %v5606_v44 = vrot.slane %v5388_v46, 1  ;;  %v7843_v28 = vpack.c.bf16 %v6146_v4, %v6145_v31  ;;  %v6147_v45 = vmax.f32 %v15226_v60, %v5981_v18 }
 0x522   : > { %v15272_v10 = vmax.f32 %v5386_v0, %v5605_v2  ;;  %v5270_v37 = vpop.f32.mrb[88].mxu1 }
 0x523   : > { %v5607_v49 = vsel %vm1256_vm3, %v5604_v1, %v5606_v44  ;;  %v7993_v5 = vadd.f32 %v14968_v19, %v5270_v37  ;;  %v7683_v20 = vpop.f32.mrb[89].mxu1  ;;  %7844 = vmatpush1.bf16.msra.mxu0 %v7843_v28 }
 0x524   : > { %v5982_v17 = vrot.slane %v15272_v10, 2  ;;  %v15277_v25 = vmax.f32 %v5387_v8, %v5607_v49  ;;  %v5273_v59 = vpop.f32.mrb[90].mxu1  ;;  %7845 = vmatprep.subr.bf16.mxu0 %v16615_v41 }
 0x525   : > { %v5389_v62 = vmax.f32 %v7993_v5, 0.0  ;;  %v7994_v63 = vadd.f32 %v14968_v19, %v5273_v59  ;;  %v7684_v60 = vpop.f32.mrb[91].mxu1 }
 0x526   : > { %v5984_v52 = vrot.slane %v15277_v25, 2  ;;  %v5983_v26 = vsel %vm1646_vm2, %v5980_v58, %v5982_v17 }
 0x527   : > { %v5608_v3 = vrot.slane %v5389_v62, 1  ;;  %v5390_v42 = vmax.f32 %v7994_v63, 0.0  ;;  %v6148_v21 = vmax.f32 %v15242_v14, %v5983_v26 }
 0x528   : > { %v5985_v38 = vsel %vm1646_vm2, %v5982_v17, %v5984_v52 }
 0x529   : > { %v5609_v13 = vsel %vm1256_vm3, %v5606_v44, %v5608_v3  ;;  %v5610_v15 = vrot.slane %v5390_v42, 1  ;;  %v7846_v54 = vpack.c.bf16 %v6148_v21, %v6147_v45  ;;  %v6149_v43 = vmax.f32 %v15247_v27, %v5985_v38 }
 0x52a   : > { %v15287_v12 = vmax.f32 %v5388_v46, %v5609_v13  ;;  %v5278_v9 = vpop.f32.mrb[92].mxu1 }
 0x52b   : > { %v5611_v61 = vsel %vm1256_vm3, %v5608_v3, %v5610_v15  ;;  %v7995_v51 = vadd.f32 %v14968_v19, %v5278_v9  ;;  %v7687_v53 = vpop.f32.mrb[93].mxu1  ;;  %7847 = vmatpush1.bf16.msra.mxu0 %v7846_v54 }
 0x52c   : > { %v5986_v35 = vrot.slane %v15287_v12, 2  ;;  %v15292_v14 = vmax.f32 %v5389_v62, %v5611_v61  ;;  %v5281_v30 = vpop.f32.mrb[94].mxu1  ;;  %7848 = vmatprep.subr.bf16.mxu0 %v16615_v41 }
 0x52d   : > { %v5391_v48 = vmax.f32 %v7995_v51, 0.0  ;;  %v7996_v56 = vadd.f32 %v14968_v19, %v5281_v30  ;;  %v7688_v27 = vpop.f32.mrb[95].mxu1 }
 0x52e   : > { %v5988_v39 = vrot.slane %v15292_v14, 2  ;;  %v5987_v6 = vsel %vm1646_vm2, %v5984_v52, %v5986_v35 }
 0x52f   : > { %v5612_v0 = vrot.slane %v5391_v48, 1  ;;  %v5392_v7 = vmax.f32 %v7996_v56, 0.0  ;;  %v6150_v36 = vmax.f32 %v15257_v40, %v5987_v6 }
 0x530   : > { %v5989_v23 = vsel %vm1646_vm2, %v5986_v35, %v5988_v39 }
 0x531   : > { %v5613_v57 = vsel %vm1256_vm3, %v5610_v15, %v5612_v0  ;;  %v5614_v32 = vrot.slane %v5392_v7, 1  ;;  %v7849_v31 = vpack.c.bf16 %v6150_v36, %v6149_v43  ;;  %v6151_v22 = vmax.f32 %v15262_v24, %v5989_v23 }
 0x532   : > { %v15302_v33 = vmax.f32 %v5390_v42, %v5613_v57  ;;  %v5286_v11 = vpop.f32.mrb[96].mxu1  ;;  %v6173_v57 = vld [vmem:[%s15619_s5 + $0x38] sm:$0xff] }
 0x533   : > { %v5615_v29 = vsel %vm1256_vm3, %v5612_v0, %v5614_v32  ;;  %v7997_v16 = vadd.f32 %v14968_v19, %v5286_v11  ;;  %v7691_v47 = vpop.f32.mrb[97].mxu1  ;;  %7850 = vmatpush1.bf16.msra.mxu0 %v7849_v31  ;;  %v6179_v31 = vld [vmem:[%s15619_s5 + $0x68] sm:$0xff] }
 0x534   : > { %v5990_v8 = vrot.slane %v15302_v33, 2  ;;  %v15307_v40 = vmax.f32 %v5391_v48, %v5615_v29  ;;  %v5289_v34 = vpop.f32.mrb[98].mxu1  ;;  %7851 = vmatprep.subr.bf16.mxu0 %v16615_v41 }
 0x535   : > { %v5393_v55 = vmax.f32 %v7997_v16, 0.0  ;;  %v7998_v58 = vadd.f32 %v14968_v19, %v5289_v34  ;;  %v7692_v24 = vpop.f32.mrb[99].mxu1 }
 0x536   : > { %v5992_v50 = vrot.slane %v15307_v40, 2  ;;  %v5991_v1 = vsel %vm1646_vm2, %v5988_v39, %v5990_v8  ;;  %v6178_v24 = vld [vmem:[%s15619_s5 + $0x60] sm:$0xff] }
 0x537   : > { %v5616_v46 = vrot.slane %v5393_v55, 1  ;;  %v5394_v4 = vmax.f32 %v7998_v58, 0.0  ;;  %v6152_v18 = vmax.f32 %v15272_v10, %v5991_v1 }
 0x538   : > { %v5993_v2 = vsel %vm1646_vm2, %v5990_v8, %v5992_v50 }
 0x539   : > { %v5617_v44 = vsel %vm1256_vm3, %v5614_v32, %v5616_v46  ;;  %v5618_v28 = vrot.slane %v5394_v4, 1  ;;  %v7852_v45 = vpack.c.bf16 %v6152_v18, %v6151_v22  ;;  %v6153_v37 = vmax.f32 %v15277_v25, %v5993_v2 }
 0x53a   : > { %v15317_v49 = vmax.f32 %v5392_v7, %v5617_v44  ;;  %v5294_v5 = vpop.f32.mrb[100].mxu1 }
 0x53b   : > { %v5619_v20 = vsel %vm1256_vm3, %v5616_v46, %v5618_v28  ;;  %v7999_v17 = vadd.f32 %v14968_v19, %v5294_v5  ;;  %v7695_v59 = vpop.f32.mrb[101].mxu1  ;;  %7853 = vmatpush1.bf16.msra.mxu0 %v7852_v45  ;;  %v6184_v46 = vld [vmem:[%s15619_s5 + $0x90] sm:$0xff]  ;;  %v6183_v5 = vld [vmem:[%s15619_s5 + $0x88] sm:$0xff] }
 0x53c   : > { %v5994_v62 = vrot.slane %v15317_v49, 2  ;;  %v15322_v10 = vmax.f32 %v5393_v55, %v5619_v20  ;;  %v5297_v63 = vpop.f32.mrb[102].mxu1  ;;  %7854 = vmatprep.subr.bf16.mxu0 %v16615_v41 }
 0x53d   : > { %v5395_v60 = vmax.f32 %v7999_v17, 0.0  ;;  %v8000_v52 = vadd.f32 %v14968_v19, %v5297_v63  ;;  %v7696_v25 = vpop.f32.mrb[103].mxu1  ;;  %v6189_v17 = vld [vmem:[%s15619_s5 + $0xb8] sm:$0xff] }
 0x53e   : > { %v5996_v26 = vrot.slane %v15322_v10, 2  ;;  %v5995_v3 = vsel %vm1646_vm2, %v5992_v50, %v5994_v62 }
 0x53f   : > { %v5620_v42 = vrot.slane %v5395_v60, 1  ;;  %v5396_v21 = vmax.f32 %v8000_v52, 0.0  ;;  %v6154_v38 = vmax.f32 %v15287_v12, %v5995_v3  ;;  %v6168_v12 = vld [vmem:[%s15619_s5 + $0x10] sm:$0xff] }
 0x540   : > { %v5997_v13 = vsel %vm1646_vm2, %v5994_v62, %v5996_v26 }
 0x541   : > { %v5621_v15 = vsel %vm1256_vm3, %v5618_v28, %v5620_v42  ;;  %v5622_v54 = vrot.slane %v5396_v21, 1  ;;  %v7855_v43 = vpack.c.bf16 %v6154_v38, %v6153_v37  ;;  %v6155_v41 = vmax.f32 %v15292_v14, %v5997_v13  ;;  %v6174_v14 = vld [vmem:[%s15619_s5 + $0x40] sm:$0xff] }
 0x542   : > { %v15332_v9 = vmax.f32 %v5394_v4, %v5621_v15  ;;  %v5302_v61 = vpop.f32.mrb[104].mxu1  ;;  %v6194_v15 = vld [vmem:[%s15619_s5 + $0xe0] sm:$0xff] }
 0x543   : > { %v5623_v51 = vsel %vm1256_vm3, %v5620_v42, %v5622_v54  ;;  %v8001_v53 = vadd.f32 %v14968_v19, %v5302_v61  ;;  %v7699_v35 = vpop.f32.mrb[105].mxu1  ;;  %7856 = vmatpush1.bf16.msra.mxu0 %v7855_v43 }
 0x544   : > { %v5998_v30 = vrot.slane %v15332_v9, 2  ;;  %v15340_v48 = vmax.f32 %v5395_v60, %v5623_v51  ;;  %v5305_v56 = vpop.f32.mrb[106].mxu1 }
 0x545   : > { %v5397_v27 = vmax.f32 %v8001_v53, 0.0  ;;  %v8002_v39 = vadd.f32 %v14968_v19, %v5305_v56  ;;  %v7700_v6 = vpop.f32.mrb[107].mxu1  ;;  %v6199_v56 = vld [vmem:[%s15619_s5 + $0x108] sm:$0xff] }
 0x546   : > { %v6000_v0 = vrot.slane %v15340_v48, 2  ;;  %6534 = vmatmul.mubr.f32.vlgmr.msra.gmra.mrb[170].mxu0 %v6168_v12  ;;  %v5999_v7 = vsel %vm1646_vm2, %v5996_v26, %v5998_v30  ;;  %v6193_v12 = vld [vmem:[%s15619_s5 + $0xd8] sm:$0xff] }
 0x547   : > { %v5624_v36 = vrot.slane %v5397_v27, 1  ;;  %v5398_v23 = vmax.f32 %v8002_v39, 0.0  ;;  %6538 = vmatprep.mubr.f32.mxu0 %v6174_v14  ;;  %v6156_v32 = vmax.f32 %v15302_v33, %v5999_v7 }
 0x548   : > { %v6001_v22 = vsel %vm1646_vm2, %v5998_v30, %v6000_v0 }
 0x549   : > { %v5625_v11 = vsel %vm1256_vm3, %v5622_v54, %v5624_v36  ;;  %v5626_v29 = vrot.slane %v5398_v23, 1  ;;  %v7857_v16 = vpack.c.bf16 %v6156_v32, %v6155_v41  ;;  %v6157_v47 = vmax.f32 %v15307_v40, %v6001_v22 }
 0x54a   : > { %v15358_v8 = vmax.f32 %v5396_v21, %v5625_v11  ;;  %v5310_v34 = vpop.f32.mrb[108].mxu1  ;;  %6539 = vmatmul.mubr.f32.gmra.mrb[212].mxu0 %v6173_v57  ;;  %v6188_v21 = vld [vmem:[%s15619_s5 + $0xb0] sm:$0xff] }
 0x54b   : > { %v5627_v55 = vsel %vm1256_vm3, %v5624_v36, %v5626_v29  ;;  %v8003_v33 = vadd.f32 %v14968_v19, %v5310_v34  ;;  %v7703_v58 = vpop.f32.mrb[109].mxu1  ;;  %7858 = vmatprep.subr.bf16.mxu0 %v7857_v16  ;;  %6543 = vmatprep.mubr.f32.mxu0 %v6179_v31  ;;  %v6204_v31 = vld [vmem:[%s15619_s5 + $0x130] sm:$0xff]  ;;  %v6209_v34 = vld [vmem:[%s15619_s5 + $0x158] sm:$0xff] }
 0x54c   : > { %v6002_v50 = vrot.slane %v15358_v8, 2  ;;  %v15366_v1 = vmax.f32 %v5397_v27, %v5627_v55  ;;  %v5313_v40 = vpop.f32.mrb[110].mxu1  ;;  %7860 = vmatpush3.bf16.msra.mxu0 %v7857_v16  ;;  %v6203_v16 = vld [vmem:[%s15619_s5 + $0x128] sm:$0xff] }
 0x54d   : > { %v5399_v4 = vmax.f32 %v8003_v33, 0.0  ;;  %v8004_v18 = vadd.f32 %v14968_v19, %v5313_v40  ;;  %v7704_v2 = vpop.f32.mrb[111].mxu1 }
 0x54e   : > { %v6004_v44 = vrot.slane %v15366_v1, 2  ;;  %6544 = vmatmul.mubr.f32.gmra.mrb[214].mxu0 %v6178_v24  ;;  %v6003_v28 = vsel %vm1646_vm2, %v6000_v0, %v6002_v50  ;;  %v6224_v2 = vld [vmem:[%s15619_s5 + $0x1d0] sm:$0xff] }
 0x54f   : > { %v5628_v45 = vrot.slane %v5399_v4, 1  ;;  %v5400_v37 = vmax.f32 %v8004_v18, 0.0  ;;  %6548 = vmatprep.mubr.f32.mxu0 %v6184_v46  ;;  %v6158_v20 = vmax.f32 %v15317_v49, %v6003_v28  ;;  %v9369_v49 = vld [vmem:[%s15618_s4] ss:$0 sm:$0xff]  ;;  %v6229_v28 = vld [vmem:[%s15619_s5 + $0x1f8] sm:$0xff] }
 0x550   : > { %v6005_v19 = vsel %vm1646_vm2, %v6002_v50, %v6004_v44  ;;  %v6214_v46 = vld [vmem:[%s15619_s5 + $0x180] sm:$0xff] }
 0x551   : > { %v5629_v59 = vsel %vm1256_vm3, %v5626_v29, %v5628_v45  ;;  %v5630_v62 = vrot.slane %v5400_v37, 1  ;;  %v7861_v63 = vpack.c.bf16 %v6158_v20, %v6157_v47  ;;  %v6159_v60 = vmax.f32 %v15322_v10, %v6005_v19  ;;  %v6218_v18 = vld [vmem:[%s15619_s5 + $0x1a0] sm:$0xff]  ;;  %v6239_v20 = vld [vmem:[%s15619_s5 + $0x248] sm:$0xff]  ;;  %v6244_v19 = vld [vmem:[%s15619_s5 + $0x270] sm:$0xff] }
 0x552   : > { %v5787_v52 = vmax.f32 %v5398_v23, %v5629_v59  ;;  %v5318_v25 = vpop.f32.mrb[112].mxu1  ;;  %6549 = vmatmul.mubr.f32.gmra.mrb[216].mxu0 %v6183_v5  ;;  %v6233_v5 = vld [vmem:[%s15619_s5 + $0x218] sm:$0xff]  ;;  %v6243_v59 = vld [vmem:[%s15619_s5 + $0x268] sm:$0xff] }
 0x553   : > { %v5631_v26 = vsel %vm1256_vm3, %v5628_v45, %v5630_v62  ;;  %v8005_v3 = vadd.f32 %v9369_v49, %v5318_v25  ;;  %v7707_v42 = vpop.f32.mrb[113].mxu1  ;;  %7862 = vmatprep.subr.bf16.mxu0 %v7861_v63  ;;  %6553 = vmatprep.mubr.f32.mxu0 %v6189_v17  ;;  %v6228_v45 = vld [vmem:[%s15619_s5 + $0x1f0] sm:$0xff]  ;;  %v6238_v17 = vld [vmem:[%s15619_s5 + $0x240] sm:$0xff] }
 0x554   : > { %v6006_v38 = vrot.slane %v5787_v52, 2  ;;  %v5321_v13 = vpop.f32.mrb[114].mxu1  ;;  %v5788_v10 = vmax.f32 %v5399_v4, %v5631_v26  ;;  %7864 = vmatpush3.bf16.msra.mxu0 %v7861_v63  ;;  %v6219_v4 = vld [vmem:[%s15619_s5 + $0x1a8] sm:$0xff]  ;;  %v6248_v63 = vld [vmem:[%s15619_s5 + $0x290] sm:$0xff]  ;;  %v6170_v25 = vld [vmem:[%s15619_s5 + $0x20] sm:$0xff] }
 0x555   : > { %v5401_v54 = vmax.f32 %v8005_v3, 0.0  ;;  %v8006_v43 = vadd.f32 %v9369_v49, %v5321_v13  ;;  %v7708_v41 = vpop.f32.mrb[115].mxu1  ;;  %v6175_v26 = vld [vmem:[%s15619_s5 + $0x48] sm:$0xff]  ;;  %v6180_v49 = vld [vmem:[%s15619_s5 + $0x70] sm:$0xff]  ;;  %v6185_v3 = vld [vmem:[%s15619_s5 + $0x98] sm:$0xff] }
 0x556   : > { %v6008_v61 = vrot.slane %v5788_v10, 2  ;;  %6554 = vmatmul.mubr.f32.gmra.mrb[218].mxu0 %v6188_v21  ;;  %v6007_v51 = vsel %vm1646_vm2, %v6004_v44, %v6006_v38  ;;  %v6223_v44 = vld [vmem:[%s15619_s5 + $0x1c8] sm:$0xff]  ;;  %v6190_v42 = vld [vmem:[%s15619_s5 + $0xc0] sm:$0xff]  ;;  %v6205_v13 = vld [vmem:[%s15619_s5 + $0x138] sm:$0xff] }
 0x557   : > { %v5632_v53 = vrot.slane %v5401_v54, 1  ;;  %v5402_v35 = vmax.f32 %v8006_v43, 0.0  ;;  %6558 = vmatprep.mubr.f32.mxu0 %v6194_v15  ;;  %v6160_v30 = vmax.f32 %v15332_v9, %v6007_v51  ;;  %v6198_v9 = vld [vmem:[%s15619_s5 + $0x100] sm:$0xff]  ;;  %v6195_v21 = vld [vmem:[%s15619_s5 + $0xe8] sm:$0xff]  ;;  %v6225_v43 = vld [vmem:[%s15619_s5 + $0x1d8] sm:$0xff] }
 0x558   : > { %v6009_v14 = vsel %vm1646_vm2, %v6006_v38, %v6008_v61  ;;  %v6200_v38 = vld [vmem:[%s15619_s5 + $0x110] sm:$0xff]  ;;  %v6215_v15 = vld [vmem:[%s15619_s5 + $0x188] sm:$0xff]  ;;  %v6230_v41 = vld [vmem:[%s15619_s5 + $0x200] sm:$0xff] }
 0x559   : > { %v5633_v27 = vsel %vm1256_vm3, %v5630_v62, %v5632_v53  ;;  %v5634_v39 = vrot.slane %v5402_v35, 1  ;;  %v7865_v6 = vpack.c.bf16 %v6160_v30, %v6159_v60  ;;  %v6161_v0 = vmax.f32 %v15340_v48, %v6009_v14  ;;  %v6249_v62 = vld [vmem:[%s15619_s5 + $0x298] sm:$0xff]  ;;  %v6254_v60 = vld [vmem:[%s15619_s5 + $0x2c0] sm:$0xff]  ;;  %v6240_v51 = vld [vmem:[%s15619_s5 + $0x250] sm:$0xff] }
 0x55a   : > { %v5789_v7 = vmax.f32 %v5400_v37, %v5633_v27  ;;  %6559 = vmatmul.mubr.f32.gmra.mrb[220].mxu0 %v6193_v12  ;;  %v6234_v37 = vld [vmem:[%s15619_s5 + $0x220] sm:$0xff]  ;;  %v6255_v12 = vld [vmem:[%s15619_s5 + $0x2c8] sm:$0xff] }
 0x55b   : > { %v5635_v36 = vsel %vm1256_vm3, %v5632_v53, %v5634_v39  ;;  %v5791_v23 = vmax.f32 %v5402_v35, %v5634_v39  ;;  %7866 = vmatprep.subr.bf16.mxu0 %v7865_v6  ;;  %6563 = vmatprep.mubr.f32.mxu0 %v6199_v56  ;;  %v6245_v53 = vld [vmem:[%s15619_s5 + $0x278] sm:$0xff]  ;;  %v6250_v35 = vld [vmem:[%s15619_s5 + $0x2a0] sm:$0xff] }
 0x55c   : > { %v6010_v57 = vrot.slane %v5789_v7, 2  ;;  %v5790_v32 = vmax.f32 %v5401_v54, %v5635_v36  ;;  %7868 = vmatpush3.bf16.msra.mxu0 %v7865_v6  ;;  %v6220_v54 = vld [vmem:[%s15619_s5 + $0x1b0] sm:$0xff] }
 0x55d   : > { %v6014_v22 = vrot.slane %v5791_v23, 2 }
 0x55e   : > { %v6012_v48 = vrot.slane %v5790_v32, 2  ;;  %6564 = vmatmul.mubr.f32.gmra.mrb[222].mxu0 %v6198_v9  ;;  %v6011_v11 = vsel %vm1646_vm2, %v6008_v61, %v6010_v57  ;;  %v6235_v61 = vld [vmem:[%s15619_s5 + $0x228] sm:$0xff] }
 0x55f   : > { %v6165_v29 = vmax.f32 %v5788_v10, %v6014_v22  ;;  %6568 = vmatprep.mubr.f32.mxu0 %v6204_v31  ;;  %v6162_v47 = vmax.f32 %v15358_v8, %v6011_v11  ;;  %v6208_v8 = vld [vmem:[%s15619_s5 + $0x150] sm:$0xff]  ;;  %v6210_v10 = vld [vmem:[%s15619_s5 + $0x160] sm:$0xff] }
 0x560   : > { %v6013_v55 = vsel %vm1646_vm2, %v6010_v57, %v6012_v48  ;;  %v6015_v33 = vsel %vm1646_vm2, %v6012_v48, %v6014_v22 }
 0x561   : > { %v7869_v58 = vpack.c.bf16 %v6162_v47, %v6161_v0  ;;  %v6163_v24 = vmax.f32 %v15366_v1, %v6013_v55  ;;  %v6164_v50 = vmax.f32 %v5787_v52, %v6015_v33  ;;  %v6213_v1 = vld [vmem:[%s15619_s5 + $0x178] sm:$0xff] }
 0x562   : > { %6569 = vmatmul.mubr.f32.gmra.mrb[224].mxu0 %v6203_v16  ;;  %v6253_v52 = vld [vmem:[%s15619_s5 + $0x2b8] sm:$0xff] }
 0x563   : > { %7870 = vmatprep.subr.bf16.mxu0 %v7869_v58  ;;  %6573 = vmatprep.mubr.f32.mxu0 %v6209_v34  ;;  %v7873_v40 = vpack.c.bf16 %v6164_v50, %v6163_v24 }
 0x564   : > { %7872 = vmatpush3.bf16.msra.mxu0 %v7869_v58 }
 0x565   : > { %7874 = vmatprep.subr.bf16.mxu0 %v7873_v40 }
 0x566   : > { %6574 = vmatmul.mubr.f32.gmra.mrb[226].mxu0 %v6208_v8 }
 0x567   : > { %6578 = vmatprep.mubr.f32.mxu0 %v6214_v46 }
 0x568   : > { %7876 = vmatpush3.bf16.msra.mxu0 %v7873_v40 }
 0x569   : > { %7729 = vmatprep.subr.msk.mxu0 %vm3151_vm5, %v6165_v29 }
 0x56a   : > { %6579 = vmatmul.mubr.f32.gmra.mrb[228].mxu0 %v6213_v1 }
 0x56b   : > { %6583 = vmatprep.mubr.f32.mxu0 %v6219_v4 }
 0x56c   : > { %7730 = vmatpush3.msk.msra.mxu0 %vm3151_vm5, %v6165_v29 }
 0x56e   : > { %6584 = vmatmul.mubr.f32.gmra.mrb[230].mxu0 %v6218_v18 }
 0x56f   : > { %6588 = vmatprep.mubr.f32.mxu0 %v6224_v2 }
 0x572   : > { %6589 = vmatmul.mubr.f32.gmra.mrb[232].mxu0 %v6223_v44 }
 0x573   : > { %6593 = vmatprep.mubr.f32.mxu0 %v6229_v28 }
 0x576   : > { %6594 = vmatmul.mubr.f32.gmra.mrb[234].mxu0 %v6228_v45 }
 0x577   : > { %6598 = vmatprep.mubr.f32.mxu0 %v6234_v37 }
 0x57a   : > { %6599 = vmatmul.mubr.f32.gmra.mrb[236].mxu0 %v6233_v5 }
 0x57b   : > { %6603 = vmatprep.mubr.f32.mxu0 %v6239_v20 }
 0x57e   : > { %6604 = vmatmul.mubr.f32.gmra.mrb[238].mxu0 %v6238_v17 }
 0x57f   : > { %6608 = vmatprep.mubr.f32.mxu0 %v6244_v19 }
 0x582   : > { %6609 = vmatmul.mubr.f32.gmra.mrb[240].mxu0 %v6243_v59 }
 0x583   : > { %6613 = vmatprep.mubr.f32.mxu0 %v6249_v62 }
 0x586   : > { %6614 = vmatmul.mubr.f32.gmra.mrb[242].mxu0 %v6248_v63 }
 0x587   : > { %6618 = vmatprep.mubr.f32.mxu0 %v6254_v60 }
 0x58a   : > { %6619 = vmatmul.mubr.f32.gmra.mrb[244].mxu0 %v6253_v52 }
 0x58b   : > { %7731 = vmatprep.mubr.msk.f32.mxu0 %vm6256_vm11, %v6170_v25 }
 0x58e   : > { %7732 = vmatmul.mubr.msk.f32.vlgmr.msra.gmra.mrb[246].mxu0 %vm6256_vm11, %v6175_v26 }
 0x58f   : > { %7734 = vmatprep.mubr.msk.f32.mxu0 %vm6256_vm11, %v6180_v49 }
 0x592   : > { %7735 = vmatmul.mubr.msk.f32.gmra.mrb[248].mxu0 %vm6256_vm11, %v6185_v3 }
 0x593   : > { %7737 = vmatprep.mubr.msk.f32.mxu0 %vm6256_vm11, %v6190_v42 }
 0x596   : > { %7738 = vmatmul.mubr.msk.f32.gmra.mrb[250].mxu0 %vm6256_vm11, %v6195_v21 }
 0x597   : > { %7740 = vmatprep.mubr.msk.f32.mxu0 %vm6256_vm11, %v6200_v38 }
 0x59a   : > { %7741 = vmatmul.mubr.msk.f32.gmra.mrb[252].mxu0 %vm6256_vm11, %v6205_v13 }
 0x59b   : > { %7743 = vmatprep.mubr.msk.f32.mxu0 %vm6256_vm11, %v6210_v10 }
 0x59e   : > { %7744 = vmatmul.mubr.msk.f32.gmra.mrb[254].mxu0 %vm6256_vm11, %v6215_v15 }
 0x59f   : > { %7746 = vmatprep.mubr.msk.f32.mxu0 %vm6256_vm11, %v6220_v54 }
 0x5a2   : > { %7747 = vmatmul.mubr.msk.f32.gmra.mrb[0].mxu0 %vm6256_vm11, %v6225_v43 }
 0x5a3   : > { %7749 = vmatprep.mubr.msk.f32.mxu0 %vm6256_vm11, %v6230_v41 }
 0x5a6   : > { %7750 = vmatmul.mubr.msk.f32.gmra.mrb[2].mxu0 %vm6256_vm11, %v6235_v61 }
 0x5a7   : > { %7752 = vmatprep.mubr.msk.f32.mxu0 %vm6256_vm11, %v6240_v51 }
 0x5aa   : > { %7753 = vmatmul.mubr.msk.f32.gmra.mrb[4].mxu0 %vm6256_vm11, %v6245_v53 }
 0x5ab   : > { %7755 = vmatprep.mubr.msk.f32.mxu0 %vm6256_vm11, %v6250_v35 }
 0x5ae   : > { %7756 = vmatmul.mubr.msk.f32.gmra.mrb[6].mxu0 %vm6256_vm11, %v6255_v12 }
 0x619   : > { %v6535_v30 = vpop.f32.mrb[170].mxu0 }
 0x61a   : > { %v6537_v56 = vpop.f32.mrb[171].mxu0 }
 0x61d   : > { %v6540_v14 = vpop.f32.mrb[212].mxu0 }
 0x61e   : > { %v6542_v27 = vpop.f32.mrb[213].mxu0 }
 0x621   : > { %v6545_v39 = vpop.f32.mrb[214].mxu0 }
 0x622   : > { %v6547_v6 = vpop.f32.mrb[215].mxu0 }
 0x625   : > { %v6550_v0 = vpop.f32.mrb[216].mxu0 }
 0x626   : > { %v6552_v7 = vpop.f32.mrb[217].mxu0 }
 0x629   : > { %v6555_v36 = vpop.f32.mrb[218].mxu0 }
 0x62a   : > { %v6557_v23 = vpop.f32.mrb[219].mxu0 }
 0x62d   : > { %v6560_v9 = vpop.f32.mrb[220].mxu0 }
 0x62e   : > { %v6562_v57 = vpop.f32.mrb[221].mxu0 }
 0x631   : > { %v6565_v32 = vpop.f32.mrb[222].mxu0 }
 0x632   : > { %v6567_v31 = vpop.f32.mrb[223].mxu0 }
 0x635   : > { %v6570_v22 = vpop.f32.mrb[224].mxu0 }
 0x636   : > { %v6572_v48 = vpop.f32.mrb[225].mxu0 }
 0x639   : > { %v6575_v11 = vpop.f32.mrb[226].mxu0 }
 0x63a   : > { %v6577_v29 = vpop.f32.mrb[227].mxu0 }
 0x63d   : > { %v6580_v16 = vpop.f32.mrb[228].mxu0 }
 0x63e   : > { %v6582_v47 = vpop.f32.mrb[229].mxu0 }
 0x641   : > { %v6585_v34 = vpop.f32.mrb[230].mxu0 }
 0x642   : > { %v6587_v55 = vpop.f32.mrb[231].mxu0 }
 0x645   : > { %v6590_v33 = vpop.f32.mrb[232].mxu0 }
 0x646   : > { %v6592_v58 = vpop.f32.mrb[233].mxu0 }
 0x649   : > { %v15554_v24 = vpop.f32.mrb[234].mxu0 }
 0x64a   : > { %v6597_v50 = vpop.f32.mrb[235].mxu0 }
 0x64d   : > { %v6600_v40 = vpop.f32.mrb[236].mxu0 }
 0x64e   : > { %v6602_v8 = vpop.f32.mrb[237].mxu0 }
 0x651   : > { %v15556_v46 = vpop.f32.mrb[238].mxu0 }
 0x652   : > { %v6607_v1 = vpop.f32.mrb[239].mxu0 }
 0x655   : > { %v15558_v4 = vpop.f32.mrb[240].mxu0 }
 0x656   : > { %v6612_v18 = vpop.f32.mrb[241].mxu0 }
 0x659   : > { %v15560_v2 = vpop.f32.mrb[242].mxu0 }
 0x65a   : > { %v6617_v44 = vpop.f32.mrb[243].mxu0 }
 0x65d   : > { %v15562_v28 = vpop.f32.mrb[244].mxu0 }
 0x65e   : > { %v6622_v45 = vpop.f32.mrb[245].mxu0 }
 0x661   : > { %v7733_v37 = vpop.f32.mrb[246].mxu0 }
 0x662   : > { %v6696_v5 = vadd.f32 %v7733_v37, %v6540_v14  ;;  %v6690_v20 = vpop.f32.mrb[247].mxu0 }
 0x663   : > { %v6691_v17 = vadd.f32 %v6690_v20, %v6535_v30 }
 0x664   : > { %v7116_v19 = vpack.c.bf16 %v6696_v5, %v6696_v5 }
 0x665   : > { %v7115_v59 = vpack.c.bf16 %v6691_v17, %v6691_v17  ;;  %v7736_v62 = vpop.f32.mrb[248].mxu0 }
 0x666   : > { %6853 = vst.msk [vmem:[%s15568_s27 + $0x4] sm:$0xf] %vm6851_vm12, %v7116_v19  ;;  %v6706_v63 = vadd.f32 %v7736_v62, %v6550_v0  ;;  %v6700_v60 = vpop.f32.mrb[249].mxu0 }
 0x667   : > { %6852 = vst.msk [vmem:[%s15568_s27] sm:$0xf] %vm6851_vm12, %v7115_v59  ;;  %v6701_v52 = vadd.f32 %v6700_v60, %v6545_v39 }
 0x668   : > { %v7118_v25 = vpack.c.bf16 %v6706_v63, %v6706_v63 }
 0x669   : > { %v7117_v26 = vpack.c.bf16 %v6701_v52, %v6701_v52  ;;  %v7739_v49 = vpop.f32.mrb[250].mxu0 }
 0x66a   : > { %6855 = vst.msk [vmem:[%s15568_s27 + $0xc] sm:$0xf] %vm6851_vm12, %v7118_v25  ;;  %v6716_v3 = vadd.f32 %v7739_v49, %v6560_v9  ;;  %v6710_v42 = vpop.f32.mrb[251].mxu0 }
 0x66b   : > { %6854 = vst.msk [vmem:[%s15568_s27 + $0x8] sm:$0xf] %vm6851_vm12, %v7117_v26  ;;  %v6711_v21 = vadd.f32 %v6710_v42, %v6555_v36 }
 0x66c   : > { %v7120_v38 = vpack.c.bf16 %v6716_v3, %v6716_v3 }
 0x66d   : > { %v7119_v13 = vpack.c.bf16 %v6711_v21, %v6711_v21  ;;  %v7742_v10 = vpop.f32.mrb[252].mxu0 }
 0x66e   : > { %6857 = vst.msk [vmem:[%s15568_s27 + $0x14] sm:$0xf] %vm6851_vm12, %v7120_v38  ;;  %v6726_v15 = vadd.f32 %v7742_v10, %v6570_v22  ;;  %v6720_v54 = vpop.f32.mrb[253].mxu0 }
 0x66f   : > { %6856 = vst.msk [vmem:[%s15568_s27 + $0x10] sm:$0xf] %vm6851_vm12, %v7119_v13  ;;  %v6721_v43 = vadd.f32 %v6720_v54, %v6565_v32 }
 0x670   : > { %v7122_v41 = vpack.c.bf16 %v6726_v15, %v6726_v15 }
 0x671   : > { %v7121_v61 = vpack.c.bf16 %v6721_v43, %v6721_v43  ;;  %v7745_v51 = vpop.f32.mrb[254].mxu0 }
 0x672   : > { %6859 = vst.msk [vmem:[%s15568_s27 + $0x1c] sm:$0xf] %vm6851_vm12, %v7122_v41  ;;  %v6736_v53 = vadd.f32 %v7745_v51, %v6580_v16  ;;  %v6730_v35 = vpop.f32.mrb[255].mxu0 }
 0x673   : > { %6858 = vst.msk [vmem:[%s15568_s27 + $0x18] sm:$0xf] %vm6851_vm12, %v7121_v61  ;;  %v6731_v12 = vadd.f32 %v6730_v35, %v6575_v11 }
 0x674   : > { %v7124_v30 = vpack.c.bf16 %v6736_v53, %v6736_v53 }
 0x675   : > { %v7123_v56 = vpack.c.bf16 %v6731_v12, %v6731_v12  ;;  %v7748_v14 = vpop.f32.mrb[0].mxu0 }
 0x676   : > { %6861 = vst.msk [vmem:[%s15568_s27 + $0x24] sm:$0xf] %vm6851_vm12, %v7124_v30  ;;  %v6746_v27 = vadd.f32 %v7748_v14, %v6590_v33  ;;  %v6740_v39 = vpop.f32.mrb[1].mxu0 }
 0x677   : > { %6860 = vst.msk [vmem:[%s15568_s27 + $0x20] sm:$0xf] %vm6851_vm12, %v7123_v56  ;;  %v6741_v6 = vadd.f32 %v6740_v39, %v6585_v34 }
 0x678   : > { %v7126_v0 = vpack.c.bf16 %v6746_v27, %v6746_v27 }
 0x679   : > { %v7125_v7 = vpack.c.bf16 %v6741_v6, %v6741_v6  ;;  %v7751_v36 = vpop.f32.mrb[2].mxu0 }
 0x67a   : > { %6863 = vst.msk [vmem:[%s15568_s27 + $0x2c] sm:$0xf] %vm6851_vm12, %v7126_v0  ;;  %v6756_v23 = vadd.f32 %v7751_v36, %v6600_v40  ;;  %v6750_v9 = vpop.f32.mrb[3].mxu0 }
 0x67b   : > { %6862 = vst.msk [vmem:[%s15568_s27 + $0x28] sm:$0xf] %vm6851_vm12, %v7125_v7  ;;  %v6751_v57 = vadd.f32 %v6750_v9, %v15554_v24 }
 0x67c   : > { %v7128_v32 = vpack.c.bf16 %v6756_v23, %v6756_v23 }
 0x67d   : > { %v7127_v31 = vpack.c.bf16 %v6751_v57, %v6751_v57  ;;  %v7754_v22 = vpop.f32.mrb[4].mxu0 }
 0x67e   : > { %6865 = vst.msk [vmem:[%s15568_s27 + $0x34] sm:$0xf] %vm6851_vm12, %v7128_v32  ;;  %v6766_v48 = vadd.f32 %v7754_v22, %v15558_v4  ;;  %v6760_v11 = vpop.f32.mrb[5].mxu0 }
 0x67f   : > { %6864 = vst.msk [vmem:[%s15568_s27 + $0x30] sm:$0xf] %vm6851_vm12, %v7127_v31  ;;  %v6761_v29 = vadd.f32 %v6760_v11, %v15556_v46 }
 0x680   : > { %v7130_v16 = vpack.c.bf16 %v6766_v48, %v6766_v48 }
 0x681   : > { %v7129_v47 = vpack.c.bf16 %v6761_v29, %v6761_v29  ;;  %v7757_v34 = vpop.f32.mrb[6].mxu0 }
 0x682   : > { %6867 = vst.msk [vmem:[%s15568_s27 + $0x3c] sm:$0xf] %vm6851_vm12, %v7130_v16  ;;  %v6776_v55 = vadd.f32 %v7757_v34, %v15562_v28  ;;  %v6770_v33 = vpop.f32.mrb[7].mxu0 }
 0x683   : > { %6866 = vst.msk [vmem:[%s15568_s27 + $0x38] sm:$0xf] %vm6851_vm12, %v7129_v47  ;;  %v6771_v58 = vadd.f32 %v6770_v33, %v15560_v2 }
 0x684   : > { %v7132_v24 = vpack.c.bf16 %v6776_v55, %v6776_v55 }
 0x685   : > { %v7131_v50 = vpack.c.bf16 %v6771_v58, %v6771_v58 }
 0x686   : > { %6869 = vst.msk [vmem:[%s15568_s27 + $0x44] sm:$0xf] %vm6851_vm12, %v7132_v24 }
 0x687   : > { %6868 = vst.msk [vmem:[%s15568_s27 + $0x40] sm:$0xf] %vm6851_vm12, %v7131_v50 }
 0x688 PF: > { %s16_s21 = sadd.s32 1, %s9376_s21  }
 0x689   : > { %p13_p4 = scmp.ge.s32.totalorder %s16_s21, 4  }
 0x68b   :  { %15 = sbr.rel (!%p13_p4) target bundleno = 1 (0x1), region = 74 }

// kernel: mnist_cnn_forward.3
= control target key start
LH: loop header
LB: loop body
LE: loop exit
PB: predicated region body
PF: predicated region fallthrough
CT: control target
= control target key end

     0   :  { %v1203_v28 = vlaneseq  ;;  %v8794_v36 = vmov 1966171168   ;;  %s10784_s0 = inlined_call_operand.vmem [shape: bf16[2,9216], index: 0, kind: input, shape index: {}]   ;;  %s10785_s1 = inlined_call_operand.vmem [shape: bf16[9216,128], index: 1, kind: input, shape index: {}]   ;;  %s10786_s2 = inlined_call_operand.vmem [shape: f32[1,128], index: 2, kind: input, shape index: {}]   ;;  %s10787_s3 = inlined_call_operand.vmem [shape: f32[128,10], index: 3, kind: input, shape index: {}]   ;;  %s10788_s4 = inlined_call_operand.vmem [shape: f32[1,10], index: 4, kind: input, shape index: {}]   ;;  %s10789_s5 = inlined_call_operand.hbm [shape: f32[2,10], index: 5, kind: output, shape index: {}]  }
   0x1   :  { %v8181_v0 = vld [vmem:[%s10785_s1 + $0x40] sm:$0xff]   ;;  %v8185_v4 = vld [vmem:[%s10785_s1 + $0x48] sm:$0xff]   ;;  %v8189_v8 = vld [vmem:[%s10785_s1 + $0x50] sm:$0xff]   ;;  %v1201_v37 = vunpack.c.l.s4 %v8794_v36 }
   0x2   :  { %v8182_v1 = vld [vmem:[%s10785_s1 + $0xc0] sm:$0xff]   ;;  %7308 = vmatprep.subr.bf16.mxu0 %v8181_v0  ;;  %v8186_v5 = vld [vmem:[%s10785_s1 + $0xc8] sm:$0xff]   ;;  %v8190_v9 = vld [vmem:[%s10785_s1 + $0xd0] sm:$0xff]   ;;  %v1204_v33 = vshrl.u32 %v1203_v28, 7 }
   0x3   :  { %v8183_v2 = vld [vmem:[%s10785_s1] sm:$0xff]   ;;  %7330 = vmatprep.subr.bf16.mxu1 %v8182_v1  ;;  %v8187_v6 = vld [vmem:[%s10785_s1 + $0x8] sm:$0xff]   ;;  %v8191_v10 = vld [vmem:[%s10785_s1 + $0x10] sm:$0xff]   ;;  %v1202_v40 = vunpack.c.0.s8 %v1201_v37 }
   0x4   :  { %v8184_v3 = vld [vmem:[%s10785_s1 + $0x80] sm:$0xff]   ;;  %7309 = vmatpush3.bf16.msra.mxu0 %v8183_v2  ;;  %v8188_v7 = vld [vmem:[%s10785_s1 + $0x88] sm:$0xff]   ;;  %v8192_v11 = vld [vmem:[%s10785_s1 + $0x90] sm:$0xff]  }
   0x5   :  { %7331 = vmatpush3.bf16.msra.mxu1 %v8184_v3  ;;  %7310 = vmatprep.subr.bf16.mxu0 %v8185_v4  ;;  %v8193_v12 = vld [vmem:[%s10785_s1 + $0x58] sm:$0xff]   ;;  %v8197_v16 = vld [vmem:[%s10785_s1 + $0x60] sm:$0xff]   ;;  %v8201_v20 = vld [vmem:[%s10785_s1 + $0x68] sm:$0xff]   ;;  %v8934_v41 = vsub.s32 %v1202_v40, %v1204_v33 }
   0x6   :  { %7332 = vmatprep.subr.bf16.mxu1 %v8186_v5  ;;  %v8194_v13 = vld [vmem:[%s10785_s1 + $0xd8] sm:$0xff]   ;;  %v8198_v17 = vld [vmem:[%s10785_s1 + $0xe0] sm:$0xff]   ;;  %v8202_v21 = vld [vmem:[%s10785_s1 + $0xe8] sm:$0xff]  }
   0x7   :  { %v8195_v14 = vld [vmem:[%s10785_s1 + $0x18] sm:$0xff]   ;;  %v8199_v18 = vld [vmem:[%s10785_s1 + $0x20] sm:$0xff]   ;;  %v8203_v22 = vld [vmem:[%s10785_s1 + $0x28] sm:$0xff]  }
   0x8   :  { %7311 = vmatpush3.bf16.msra.mxu0 %v8187_v6  ;;  %v8196_v15 = vld [vmem:[%s10785_s1 + $0x98] sm:$0xff]   ;;  %v8200_v19 = vld [vmem:[%s10785_s1 + $0xa0] sm:$0xff]   ;;  %v8204_v23 = vld [vmem:[%s10785_s1 + $0xa8] sm:$0xff]  }
   0x9   :  { %7333 = vmatpush3.bf16.msra.mxu1 %v8188_v7  ;;  %7312 = vmatprep.subr.bf16.mxu0 %v8189_v8  ;;  %v8205_v24 = vld [vmem:[%s10785_s1 + $0x70] sm:$0xff]   ;;  %v8209_v29 = vld [vmem:[%s10785_s1 + $0x78] sm:$0xff]   ;;  %v22_v34 = vld [vmem:[%s10784_s0] sm:$0xff] }
   0xa   :  { %7334 = vmatprep.subr.bf16.mxu1 %v8190_v9  ;;  %v8206_v25 = vld [vmem:[%s10785_s1 + $0xf0] sm:$0xff]   ;;  %v8210_v30 = vld [vmem:[%s10785_s1 + $0xf8] sm:$0xff]   ;;  %v8214_v35 = vld [vmem:[%s10785_s1 + $0x140] sm:$0xff]   ;;  %v1199_v39 = vcombine.high %v22_v34, %v22_v34  ;;  %v1206_v42 = vrot.slane %v22_v34, %v8934_v41 }
   0xb   :  { %v8207_v26 = vld [vmem:[%s10785_s1 + $0x30] sm:$0xff]   ;;  %v8211_v31 = vld [vmem:[%s10785_s1 + $0x38] sm:$0xff]   ;;  %v8215_v38 = vld [vmem:[%s10785_s1 + $0x1c0] sm:$0xff]  }
   0xc   :  { %7313 = vmatpush3.bf16.msra.mxu0 %v8191_v10  ;;  %v8208_v27 = vld [vmem:[%s10785_s1 + $0xb0] sm:$0xff]   ;;  %v8212_v32 = vld [vmem:[%s10785_s1 + $0xb8] sm:$0xff]   ;;  %v8938_v43 = vrot.slane %v1199_v39, %v8934_v41  ;;  %v1214_v44 = vcombine.high %v1206_v42, %v1206_v42  ;;  %v1222_v45 = vrot.slane %v1206_v42, %v8934_v41  ;;  %v8216_v47 = vld [vmem:[%s10785_s1 + $0x100] sm:$0xff]  }
   0xd   :  { %7335 = vmatpush3.bf16.msra.mxu1 %v8192_v11  ;;  %7314 = vmatprep.subr.bf16.mxu0 %v8193_v12  ;;  %v8217_v49 = vld [vmem:[%s10785_s1 + $0x180] sm:$0xff]   ;;  %v8218_v52 = vld [vmem:[%s10785_s1 + $0x148] sm:$0xff]   ;;  %v8222_v58 = vld [vmem:[%s10785_s1 + $0x150] sm:$0xff]  }
   0xe   :  { %7336 = vmatprep.subr.bf16.mxu1 %v8194_v13  ;;  %v1215_v46 = vcombine.high %v8938_v43, %v8938_v43  ;;  %v1236_v48 = vrot.slane %v1214_v44, %v8934_v41  ;;  %v1244_v51 = vcombine.high %v1222_v45, %v1222_v45  ;;  %v8219_v54 = vld [vmem:[%s10785_s1 + $0x1c8] sm:$0xff]   ;;  %v8223_v59 = vld [vmem:[%s10785_s1 + $0x1d0] sm:$0xff]   ;;  %v8226_v62 = vld [vmem:[%s10785_s1 + $0x158] sm:$0xff]  }
   0xf   :  { %v8220_v55 = vld [vmem:[%s10785_s1 + $0x108] sm:$0xff]   ;;  %v8224_v60 = vld [vmem:[%s10785_s1 + $0x110] sm:$0xff]   ;;  %v8227_v63 = vld [vmem:[%s10785_s1 + $0x1d8] sm:$0xff]  }
  0x10   :  { %7315 = vmatpush3.bf16.msra.mxu0 %v8195_v14  ;;  %v1243_v50 = vrot.slane %v1215_v46, %v8934_v41  ;;  %5200 = vmatprep.mubr.bf16.mxu0 %v1236_v48  ;;  %v1246_v53 = vcombine.high %v1236_v48, %v1236_v48  ;;  %v8221_v57 = vld [vmem:[%s10785_s1 + $0x188] sm:$0xff]   ;;  %v8225_v61 = vld [vmem:[%s10785_s1 + $0x190] sm:$0xff]   ;;  %v8228_v0 = vld [vmem:[%s10785_s1 + $0x118] sm:$0xff]  }
  0x11   :  { %7337 = vmatpush3.bf16.msra.mxu1 %v8196_v15  ;;  %7316 = vmatprep.subr.bf16.mxu0 %v8197_v16  ;;  %v8229_v1 = vld [vmem:[%s10785_s1 + $0x198] sm:$0xff]   ;;  %v8230_v2 = vld [vmem:[%s10785_s1 + $0x160] sm:$0xff]   ;;  %v8234_v6 = vld [vmem:[%s10785_s1 + $0x168] sm:$0xff]  }
  0x12   :  { %7338 = vmatprep.subr.bf16.mxu1 %v8198_v17  ;;  %v1247_v56 = vcombine.high %v1243_v50, %v1243_v50  ;;  %5240 = vmatprep.mubr.bf16.mxu1 %v1246_v53  ;;  %v8231_v3 = vld [vmem:[%s10785_s1 + $0x1e0] sm:$0xff]   ;;  %v8235_v7 = vld [vmem:[%s10785_s1 + $0x1e8] sm:$0xff]   ;;  %v8238_v10 = vld [vmem:[%s10785_s1 + $0x170] sm:$0xff]  }
  0x13   :  { %v8232_v4 = vld [vmem:[%s10785_s1 + $0x120] sm:$0xff]   ;;  %v8236_v8 = vld [vmem:[%s10785_s1 + $0x128] sm:$0xff]   ;;  %v8239_v11 = vld [vmem:[%s10785_s1 + $0x1f0] sm:$0xff]  }
  0x14   :  { %7317 = vmatpush3.bf16.msra.mxu0 %v8199_v18  ;;  %v8233_v5 = vld [vmem:[%s10785_s1 + $0x1a0] sm:$0xff]   ;;  %v8237_v9 = vld [vmem:[%s10785_s1 + $0x1a8] sm:$0xff]   ;;  %v8240_v12 = vld [vmem:[%s10785_s1 + $0x130] sm:$0xff]   ;;  %v1229_v18 = vrot.slane %v8938_v43, %v8934_v41 }
  0x15   :  { %7339 = vmatpush3.bf16.msra.mxu1 %v8200_v19  ;;  %7318 = vmatprep.subr.bf16.mxu0 %v8201_v20  ;;  %v8241_v13 = vld [vmem:[%s10785_s1 + $0x1b0] sm:$0xff]   ;;  %v8242_v14 = vld [vmem:[%s10785_s1 + $0x178] sm:$0xff]   ;;  %v8246_v19 = vld [vmem:[%s10785_s1 + $0x240] sm:$0xff]  }
  0x16   :  { %7340 = vmatprep.subr.bf16.mxu1 %v8202_v21  ;;  %v8243_v15 = vld [vmem:[%s10785_s1 + $0x1f8] sm:$0xff]   ;;  %v8247_v20 = vld [vmem:[%s10785_s1 + $0x2c0] sm:$0xff]   ;;  %v8254_v28 = vld [vmem:[%s10785_s1 + $0x250] sm:$0xff]  }
  0x17   :  { %v8244_v16 = vld [vmem:[%s10785_s1 + $0x138] sm:$0xff]   ;;  %v8248_v21 = vld [vmem:[%s10785_s1 + $0x200] sm:$0xff]   ;;  %v8266_v40 = vld [vmem:[%s10785_s1 + $0x268] sm:$0xff]  }
  0x18   :  { %7319 = vmatpush3.bf16.msra.mxu0 %v8203_v22  ;;  %v8245_v17 = vld [vmem:[%s10785_s1 + $0x1b8] sm:$0xff]   ;;  %v8249_v22 = vld [vmem:[%s10785_s1 + $0x280] sm:$0xff]   ;;  %v8267_v42 = vld [vmem:[%s10785_s1 + $0x2e8] sm:$0xff]  }
  0x19   :  { %7341 = vmatpush3.bf16.msra.mxu1 %v8204_v23  ;;  %7320 = vmatprep.subr.bf16.mxu0 %v8205_v24  ;;  %v1245_v23 = vcombine.high %v1229_v18, %v1229_v18  ;;  %v8250_v24 = vld [vmem:[%s10785_s1 + $0x248] sm:$0xff]   ;;  %v8259_v33 = vld [vmem:[%s10785_s1 + $0x2d8] sm:$0xff]   ;;  %v8262_v36 = vld [vmem:[%s10785_s1 + $0x260] sm:$0xff]  }
  0x1a   :  { %7342 = vmatprep.subr.bf16.mxu1 %v8206_v25  ;;  %v8251_v25 = vld [vmem:[%s10785_s1 + $0x2c8] sm:$0xff]   ;;  %v8260_v34 = vld [vmem:[%s10785_s1 + $0x218] sm:$0xff]   ;;  %v8263_v37 = vld [vmem:[%s10785_s1 + $0x2e0] sm:$0xff]  }
  0x1b   :  { %v8265_v39 = vld [vmem:[%s10785_s1 + $0x2a0] sm:$0xff]   ;;  %v8268_v43 = vld [vmem:[%s10785_s1 + $0x228] sm:$0xff]  }
  0x1c   :  { %7321 = vmatpush3.bf16.msra.mxu0 %v8207_v26  ;;  %v8252_v26 = vld [vmem:[%s10785_s1 + $0x208] sm:$0xff]  }
  0x1d   :  { %7343 = vmatpush3.bf16.msra.mxu1 %v8208_v27  ;;  %7322 = vmatprep.subr.bf16.mxu0 %v8209_v29  ;;  %v8253_v27 = vld [vmem:[%s10785_s1 + $0x288] sm:$0xff]   ;;  %v8255_v29 = vld [vmem:[%s10785_s1 + $0x2d0] sm:$0xff]  }
  0x1e   :  { %7344 = vmatprep.subr.bf16.mxu1 %v8210_v30  ;;  %v8256_v30 = vld [vmem:[%s10785_s1 + $0x210] sm:$0xff]   ;;  %v8269_v44 = vld [vmem:[%s10785_s1 + $0x2a8] sm:$0xff]  }
  0x1f   :  { %v23_v46 = vld [vmem:[%s10784_s0 + $0x8] sm:$0xff] }
  0x20   :  { %7323 = vmatpush3.bf16.msra.mxu0 %v8211_v31  ;;  %v8257_v31 = vld [vmem:[%s10785_s1 + $0x290] sm:$0xff]   ;;  %v1255_v48 = vrot.slane %v23_v46, %v8934_v41 }
  0x21   :  { %7345 = vmatpush3.bf16.msra.mxu1 %v8212_v32  ;;  %7352 = vmatprep.subr.bf16.mxu0 %v8214_v35  ;;  %v8258_v32 = vld [vmem:[%s10785_s1 + $0x258] sm:$0xff]  }
  0x22   :  { %7374 = vmatprep.subr.bf16.mxu1 %v8215_v38  ;;  %v8261_v35 = vld [vmem:[%s10785_s1 + $0x298] sm:$0xff]   ;;  %v8264_v38 = vld [vmem:[%s10785_s1 + $0x220] sm:$0xff]  }
  0x23   :  { %5201 = vmatmul.mubr.bf16.vlgmr.msra.gmra.mrb[0].mxu0 %v1222_v45  ;;  %v8270_v45 = vld [vmem:[%s10785_s1 + $0x270] sm:$0xff]  }
  0x24   :  { %7353 = vmatpush3.bf16.msra.mxu0 %v8216_v47  ;;  %5241 = vmatmul.mubr.bf16.vlgmr.msra.gmra.mrb[0].mxu1 %v1244_v51  ;;  %v8271_v47 = vld [vmem:[%s10785_s1 + $0x2f0] sm:$0xff]  }
  0x25   :  { %7354 = vmatprep.subr.bf16.mxu0 %v8218_v52  ;;  %7375 = vmatpush3.bf16.msra.mxu1 %v8217_v49  ;;  %v1248_v49 = vcombine.high %v23_v46, %v23_v46  ;;  %v8273_v51 = vld [vmem:[%s10785_s1 + $0x2b0] sm:$0xff]   ;;  %v1263_v52 = vcombine.high %v1255_v48, %v1255_v48 }
  0x26   :  { %5280 = vmatprep.mubr.bf16.mxu0 %v1243_v50  ;;  %7376 = vmatprep.subr.bf16.mxu1 %v8219_v54  ;;  %v8272_v50 = vld [vmem:[%s10785_s1 + $0x230] sm:$0xff]   ;;  %v8274_v54 = vld [vmem:[%s10785_s1 + $0x278] sm:$0xff]  }
  0x27   :  { %5320 = vmatprep.mubr.bf16.mxu1 %v1247_v56  ;;  %v9126_v53 = vrot.slane %v1248_v49, %v8934_v41  ;;  %v1285_v56 = vrot.slane %v1263_v52, %v8934_v41  ;;  %v8321_v46 = vld [vmem:[%s10785_s1 + $0x410] sm:$0xff]   ;;  %v8324_v49 = vld [vmem:[%s10785_s1 + $0x4d8] sm:$0xff]   ;;  %v8327_v52 = vld [vmem:[%s10785_s1 + $0x460] sm:$0xff]  }
  0x28   :  { %7355 = vmatpush3.bf16.msra.mxu0 %v8220_v55  ;;  %v8275_v55 = vld [vmem:[%s10785_s1 + $0x2f8] sm:$0xff]  }
  0x29   :  { %7356 = vmatprep.subr.bf16.mxu0 %v8222_v58  ;;  %7377 = vmatpush3.bf16.msra.mxu1 %v8221_v57  ;;  %v1264_v57 = vcombine.high %v9126_v53, %v9126_v53  ;;  %v8276_v58 = vld [vmem:[%s10785_s1 + $0x238] sm:$0xff]  }
  0x2a   :  { %7378 = vmatprep.subr.bf16.mxu1 %v8223_v59  ;;  %v8277_v59 = vld [vmem:[%s10785_s1 + $0x2b8] sm:$0xff]  }
  0x2c   :  { %7357 = vmatpush3.bf16.msra.mxu0 %v8224_v60  ;;  %v1295_v60 = vcombine.high %v1285_v56, %v1285_v56 }
  0x2d   :  { %7358 = vmatprep.subr.bf16.mxu0 %v8226_v62  ;;  %7379 = vmatpush3.bf16.msra.mxu1 %v8225_v61  ;;  %v1271_v61 = vrot.slane %v1255_v48, %v8934_v41  ;;  %v8278_v62 = vld [vmem:[%s10785_s1 + $0x340] sm:$0xff]   ;;  %v8323_v48 = vld [vmem:[%s10785_s1 + $0x458] sm:$0xff]  }
  0x2e   :  { %7380 = vmatprep.subr.bf16.mxu1 %v8227_v63  ;;  %v8279_v63 = vld [vmem:[%s10785_s1 + $0x3c0] sm:$0xff]  }
  0x30   :  { %7359 = vmatpush3.bf16.msra.mxu0 %v8228_v0  ;;  %v1292_v0 = vrot.slane %v1264_v57, %v8934_v41  ;;  %v8332_v57 = vld [vmem:[%s10785_s1 + $0x4e8] sm:$0xff]  }
  0x31   :  { %7360 = vmatprep.subr.bf16.mxu0 %v8230_v2  ;;  %7381 = vmatpush3.bf16.msra.mxu1 %v8229_v1  ;;  %v8280_v1 = vld [vmem:[%s10785_s1 + $0x300] sm:$0xff]  }
  0x32   :  { %7382 = vmatprep.subr.bf16.mxu1 %v8231_v3  ;;  %v8281_v2 = vld [vmem:[%s10785_s1 + $0x380] sm:$0xff]   ;;  %v1293_v3 = vcombine.high %v1271_v61, %v1271_v61 }
  0x34   :  { %7361 = vmatpush3.bf16.msra.mxu0 %v8232_v4  ;;  %v8282_v4 = vld [vmem:[%s10785_s1 + $0x348] sm:$0xff]  }
  0x35   :  { %7362 = vmatprep.subr.bf16.mxu0 %v8234_v6  ;;  %7383 = vmatpush3.bf16.msra.mxu1 %v8233_v5  ;;  %v8283_v5 = vld [vmem:[%s10785_s1 + $0x3c8] sm:$0xff]   ;;  %v1296_v6 = vcombine.high %v1292_v0, %v1292_v0 }
  0x36   :  { %7384 = vmatprep.subr.bf16.mxu1 %v8235_v7  ;;  %v8284_v7 = vld [vmem:[%s10785_s1 + $0x308] sm:$0xff]  }
  0x38   :  { %7363 = vmatpush3.bf16.msra.mxu0 %v8236_v8  ;;  %v8285_v8 = vld [vmem:[%s10785_s1 + $0x388] sm:$0xff]  }
  0x39   :  { %7364 = vmatprep.subr.bf16.mxu0 %v8238_v10  ;;  %7385 = vmatpush3.bf16.msra.mxu1 %v8237_v9  ;;  %v8286_v9 = vld [vmem:[%s10785_s1 + $0x350] sm:$0xff]  }
  0x3a   :  { %7386 = vmatprep.subr.bf16.mxu1 %v8239_v11  ;;  %v8287_v10 = vld [vmem:[%s10785_s1 + $0x3d0] sm:$0xff]  }
  0x3b   :  { %v8288_v11 = vld [vmem:[%s10785_s1 + $0x310] sm:$0xff]  }
  0x3c   :  { %7365 = vmatpush3.bf16.msra.mxu0 %v8240_v12  ;;  %v8289_v12 = vld [vmem:[%s10785_s1 + $0x390] sm:$0xff]  }
  0x3d   :  { %7366 = vmatprep.subr.bf16.mxu0 %v8242_v14  ;;  %7387 = vmatpush3.bf16.msra.mxu1 %v8241_v13  ;;  %v8290_v13 = vld [vmem:[%s10785_s1 + $0x358] sm:$0xff]  }
  0x3e   :  { %7388 = vmatprep.subr.bf16.mxu1 %v8243_v15  ;;  %v8291_v14 = vld [vmem:[%s10785_s1 + $0x3d8] sm:$0xff]  }
  0x3f   :  { %v8292_v15 = vld [vmem:[%s10785_s1 + $0x318] sm:$0xff]  }
  0x40   :  { %7367 = vmatpush3.bf16.msra.mxu0 %v8244_v16  ;;  %v8293_v16 = vld [vmem:[%s10785_s1 + $0x398] sm:$0xff]  }
  0x41   :  { %7396 = vmatprep.subr.bf16.mxu0 %v8246_v19  ;;  %7389 = vmatpush3.bf16.msra.mxu1 %v8245_v17  ;;  %v8294_v17 = vld [vmem:[%s10785_s1 + $0x360] sm:$0xff]  }
  0x42   :  { %7418 = vmatprep.subr.bf16.mxu1 %v8247_v20  ;;  %v8296_v19 = vld [vmem:[%s10785_s1 + $0x320] sm:$0xff]  }
  0x43   :  { %5281 = vmatmul.mubr.bf16.vlgmr.msra.gmra.mrb[4].mxu0 %v1229_v18  ;;  %v8295_v18 = vld [vmem:[%s10785_s1 + $0x3e0] sm:$0xff]  }
  0x44   :  { %7397 = vmatpush3.bf16.msra.mxu0 %v8248_v21  ;;  %5321 = vmatmul.mubr.bf16.vlgmr.msra.gmra.mrb[4].mxu1 %v1245_v23  ;;  %v8297_v20 = vld [vmem:[%s10785_s1 + $0x3a0] sm:$0xff]   ;;  %v8298_v21 = vld [vmem:[%s10785_s1 + $0x368] sm:$0xff]  }
  0x45   :  { %7398 = vmatprep.subr.bf16.mxu0 %v8250_v24  ;;  %7419 = vmatpush3.bf16.msra.mxu1 %v8249_v22  ;;  %v8299_v22 = vld [vmem:[%s10785_s1 + $0x3e8] sm:$0xff]  }
  0x46   :  { %7420 = vmatprep.subr.bf16.mxu1 %v8251_v25  ;;  %5360 = vmatprep.mubr.bf16.mxu0 %v1285_v56  ;;  %v8300_v23 = vld [vmem:[%s10785_s1 + $0x328] sm:$0xff]   ;;  %v8302_v25 = vld [vmem:[%s10785_s1 + $0x370] sm:$0xff]  }
  0x47   :  { %5400 = vmatprep.mubr.bf16.mxu1 %v1295_v60  ;;  %v8301_v24 = vld [vmem:[%s10785_s1 + $0x3a8] sm:$0xff]   ;;  %v8335_v60 = vld [vmem:[%s10785_s1 + $0x470] sm:$0xff]  }
  0x48   :  { %7399 = vmatpush3.bf16.msra.mxu0 %v8252_v26  ;;  %v8303_v26 = vld [vmem:[%s10785_s1 + $0x3f0] sm:$0xff]   ;;  %v8331_v56 = vld [vmem:[%s10785_s1 + $0x468] sm:$0xff]  }
  0x49   :  { %7400 = vmatprep.subr.bf16.mxu0 %v8254_v28  ;;  %7421 = vmatpush3.bf16.msra.mxu1 %v8253_v27  ;;  %v8304_v27 = vld [vmem:[%s10785_s1 + $0x330] sm:$0xff]  }
  0x4a   :  { %7422 = vmatprep.subr.bf16.mxu1 %v8255_v29  ;;  %v8305_v28 = vld [vmem:[%s10785_s1 + $0x3b0] sm:$0xff]   ;;  %v8306_v29 = vld [vmem:[%s10785_s1 + $0x378] sm:$0xff]  }
  0x4c   :  { %7401 = vmatpush3.bf16.msra.mxu0 %v8256_v30  ;;  %v8307_v30 = vld [vmem:[%s10785_s1 + $0x3f8] sm:$0xff]  }
  0x4d   :  { %7402 = vmatprep.subr.bf16.mxu0 %v8258_v32  ;;  %7423 = vmatpush3.bf16.msra.mxu1 %v8257_v31  ;;  %v8308_v31 = vld [vmem:[%s10785_s1 + $0x338] sm:$0xff]  }
  0x4e   :  { %7424 = vmatprep.subr.bf16.mxu1 %v8259_v33  ;;  %v8309_v32 = vld [vmem:[%s10785_s1 + $0x3b8] sm:$0xff]   ;;  %v1278_v33 = vrot.slane %v9126_v53, %v8934_v41  ;;  %v8328_v53 = vld [vmem:[%s10785_s1 + $0x4e0] sm:$0xff]  }
  0x50   :  { %7403 = vmatpush3.bf16.msra.mxu0 %v8260_v34  ;;  %v8311_v34 = vld [vmem:[%s10785_s1 + $0x440] sm:$0xff]  }
  0x51   :  { %7404 = vmatprep.subr.bf16.mxu0 %v8262_v36  ;;  %7425 = vmatpush3.bf16.msra.mxu1 %v8261_v35  ;;  %v8312_v35 = vld [vmem:[%s10785_s1 + $0x4c0] sm:$0xff]  }
  0x52   :  { %7426 = vmatprep.subr.bf16.mxu1 %v8263_v37  ;;  %v8313_v36 = vld [vmem:[%s10785_s1 + $0x400] sm:$0xff]  }
  0x53   :  { %v8314_v37 = vld [vmem:[%s10785_s1 + $0x480] sm:$0xff]  }
  0x54   :  { %7405 = vmatpush3.bf16.msra.mxu0 %v8264_v38  ;;  %v1294_v38 = vcombine.high %v1278_v33, %v1278_v33 }
  0x55   :  { %7406 = vmatprep.subr.bf16.mxu0 %v8266_v40  ;;  %7427 = vmatpush3.bf16.msra.mxu1 %v8265_v39  ;;  %v8315_v39 = vld [vmem:[%s10785_s1 + $0x448] sm:$0xff]  }
  0x56   :  { %7428 = vmatprep.subr.bf16.mxu1 %v8267_v42  ;;  %v8316_v40 = vld [vmem:[%s10785_s1 + $0x4c8] sm:$0xff]  }
  0x57   :  { %v8317_v42 = vld [vmem:[%s10785_s1 + $0x408] sm:$0xff]  }
  0x58   :  { %7407 = vmatpush3.bf16.msra.mxu0 %v8268_v43  ;;  %v8318_v43 = vld [vmem:[%s10785_s1 + $0x488] sm:$0xff]  }
  0x59   :  { %7408 = vmatprep.subr.bf16.mxu0 %v8270_v45  ;;  %7429 = vmatpush3.bf16.msra.mxu1 %v8269_v44  ;;  %v8319_v44 = vld [vmem:[%s10785_s1 + $0x450] sm:$0xff]  }
  0x5a   :  { %7430 = vmatprep.subr.bf16.mxu1 %v8271_v47  ;;  %v8320_v45 = vld [vmem:[%s10785_s1 + $0x4d0] sm:$0xff]  }
  0x5b   :  { %v8322_v47 = vld [vmem:[%s10785_s1 + $0x490] sm:$0xff]  }
  0x5c   :  { %7409 = vmatpush3.bf16.msra.mxu0 %v8272_v50  ;;  %v8325_v50 = vld [vmem:[%s10785_s1 + $0x418] sm:$0xff]  }
  0x5d   :  { %7410 = vmatprep.subr.bf16.mxu0 %v8274_v54  ;;  %7431 = vmatpush3.bf16.msra.mxu1 %v8273_v51  ;;  %v8326_v51 = vld [vmem:[%s10785_s1 + $0x498] sm:$0xff]   ;;  %v8329_v54 = vld [vmem:[%s10785_s1 + $0x420] sm:$0xff]  }
  0x5e   :  { %7432 = vmatprep.subr.bf16.mxu1 %v8275_v55  ;;  %v8330_v55 = vld [vmem:[%s10785_s1 + $0x4a0] sm:$0xff]  }
  0x60   :  { %7411 = vmatpush3.bf16.msra.mxu0 %v8276_v58  ;;  %v8333_v58 = vld [vmem:[%s10785_s1 + $0x428] sm:$0xff]  }
  0x61   :  { %7440 = vmatprep.subr.bf16.mxu0 %v8278_v62  ;;  %7433 = vmatpush3.bf16.msra.mxu1 %v8277_v59  ;;  %v8334_v59 = vld [vmem:[%s10785_s1 + $0x4a8] sm:$0xff]   ;;  %v8336_v62 = vld [vmem:[%s10785_s1 + $0x4f0] sm:$0xff]  }
  0x62   :  { %7462 = vmatprep.subr.bf16.mxu1 %v8279_v63 }
  0x63   :  { %5361 = vmatmul.mubr.bf16.vlgmr.msra.gmra.mrb[8].mxu0 %v1271_v61  ;;  %v24_v61 = vld [vmem:[%s10784_s0 + $0x10] sm:$0xff] }
  0x64   :  { %7441 = vmatpush3.bf16.msra.mxu0 %v8280_v1  ;;  %5440 = vmatprep.mubr.bf16.mxu0 %v1292_v0  ;;  %v1304_v63 = vrot.slane %v24_v61, %v8934_v41  ;;  %v1297_v0 = vcombine.high %v24_v61, %v24_v61  ;;  %v8337_v1 = vld [vmem:[%s10785_s1 + $0x430] sm:$0xff]  }
  0x65   :  { %5401 = vmatmul.mubr.bf16.vlgmr.msra.gmra.mrb[8].mxu1 %v1293_v3  ;;  %7442 = vmatprep.subr.bf16.mxu0 %v8282_v4  ;;  %v8386_v61 = vld [vmem:[%s10785_s1 + $0x610] sm:$0xff]  }
  0x66   :  { %7463 = vmatpush3.bf16.msra.mxu1 %v8281_v2  ;;  %5480 = vmatprep.mubr.bf16.mxu1 %v1296_v6  ;;  %v8338_v2 = vld [vmem:[%s10785_s1 + $0x4b0] sm:$0xff]   ;;  %v1312_v3 = vcombine.high %v1304_v63, %v1304_v63  ;;  %v9332_v4 = vrot.slane %v1297_v0, %v8934_v41  ;;  %v8340_v6 = vld [vmem:[%s10785_s1 + $0x4f8] sm:$0xff]  }
  0x67   :  { %7464 = vmatprep.subr.bf16.mxu1 %v8283_v5  ;;  %v8339_v5 = vld [vmem:[%s10785_s1 + $0x478] sm:$0xff]  }
  0x68   :  { %7443 = vmatpush3.bf16.msra.mxu0 %v8284_v7  ;;  %v1334_v7 = vrot.slane %v1312_v3, %v8934_v41  ;;  %v8389_v0 = vld [vmem:[%s10785_s1 + $0x6d8] sm:$0xff]   ;;  %v8392_v3 = vld [vmem:[%s10785_s1 + $0x660] sm:$0xff]  }
  0x69   :  { %7444 = vmatprep.subr.bf16.mxu0 %v8286_v9  ;;  %v8341_v9 = vld [vmem:[%s10785_s1 + $0x438] sm:$0xff]  }
  0x6a   :  { %7465 = vmatpush3.bf16.msra.mxu1 %v8285_v8  ;;  %v1313_v8 = vcombine.high %v9332_v4, %v9332_v4 }
  0x6b   :  { %7466 = vmatprep.subr.bf16.mxu1 %v8287_v10  ;;  %v8342_v10 = vld [vmem:[%s10785_s1 + $0x4b8] sm:$0xff]  }
  0x6c   :  { %7445 = vmatpush3.bf16.msra.mxu0 %v8288_v11  ;;  %v1344_v11 = vcombine.high %v1334_v7, %v1334_v7 }
  0x6d   :  { %7446 = vmatprep.subr.bf16.mxu0 %v8290_v13  ;;  %v8343_v13 = vld [vmem:[%s10785_s1 + $0x540] sm:$0xff]  }
  0x6e   :  { %7467 = vmatpush3.bf16.msra.mxu1 %v8289_v12  ;;  %v1320_v12 = vrot.slane %v1304_v63, %v8934_v41  ;;  %v8388_v63 = vld [vmem:[%s10785_s1 + $0x658] sm:$0xff]  }
  0x6f   :  { %7468 = vmatprep.subr.bf16.mxu1 %v8291_v14  ;;  %v8344_v14 = vld [vmem:[%s10785_s1 + $0x5c0] sm:$0xff]  }
  0x70   :  { %7447 = vmatpush3.bf16.msra.mxu0 %v8292_v15  ;;  %v1341_v15 = vrot.slane %v1313_v8, %v8934_v41  ;;  %v8397_v8 = vld [vmem:[%s10785_s1 + $0x6e8] sm:$0xff]  }
  0x71   :  { %7448 = vmatprep.subr.bf16.mxu0 %v8294_v17  ;;  %v8346_v17 = vld [vmem:[%s10785_s1 + $0x580] sm:$0xff]  }
  0x72   :  { %7469 = vmatpush3.bf16.msra.mxu1 %v8293_v16  ;;  %v8345_v16 = vld [vmem:[%s10785_s1 + $0x500] sm:$0xff]  }
  0x73   :  { %7470 = vmatprep.subr.bf16.mxu1 %v8295_v18  ;;  %v1342_v18 = vcombine.high %v1320_v12, %v1320_v12 }
  0x74   :  { %7449 = vmatpush3.bf16.msra.mxu0 %v8296_v19  ;;  %v8347_v19 = vld [vmem:[%s10785_s1 + $0x548] sm:$0xff]  }
  0x75   :  { %7450 = vmatprep.subr.bf16.mxu0 %v8298_v21  ;;  %v1345_v21 = vcombine.high %v1341_v15, %v1341_v15 }
  0x76   :  { %7471 = vmatpush3.bf16.msra.mxu1 %v8297_v20  ;;  %v8348_v20 = vld [vmem:[%s10785_s1 + $0x5c8] sm:$0xff]  }
  0x77   :  { %7472 = vmatprep.subr.bf16.mxu1 %v8299_v22  ;;  %v8349_v22 = vld [vmem:[%s10785_s1 + $0x508] sm:$0xff]  }
  0x78   :  { %7451 = vmatpush3.bf16.msra.mxu0 %v8300_v23  ;;  %v8350_v23 = vld [vmem:[%s10785_s1 + $0x588] sm:$0xff]  }
  0x79   :  { %7452 = vmatprep.subr.bf16.mxu0 %v8302_v25  ;;  %v8352_v25 = vld [vmem:[%s10785_s1 + $0x5d0] sm:$0xff]  }
  0x7a   :  { %7473 = vmatpush3.bf16.msra.mxu1 %v8301_v24  ;;  %v8351_v24 = vld [vmem:[%s10785_s1 + $0x550] sm:$0xff]  }
  0x7b   :  { %7474 = vmatprep.subr.bf16.mxu1 %v8303_v26  ;;  %v8353_v26 = vld [vmem:[%s10785_s1 + $0x510] sm:$0xff]  }
  0x7c   :  { %7453 = vmatpush3.bf16.msra.mxu0 %v8304_v27  ;;  %v8354_v27 = vld [vmem:[%s10785_s1 + $0x590] sm:$0xff]  }
  0x7d   :  { %7454 = vmatprep.subr.bf16.mxu0 %v8306_v29  ;;  %v8356_v29 = vld [vmem:[%s10785_s1 + $0x5d8] sm:$0xff]  }
  0x7e   :  { %7475 = vmatpush3.bf16.msra.mxu1 %v8305_v28  ;;  %v8355_v28 = vld [vmem:[%s10785_s1 + $0x558] sm:$0xff]  }
  0x7f   :  { %7476 = vmatprep.subr.bf16.mxu1 %v8307_v30  ;;  %v8357_v30 = vld [vmem:[%s10785_s1 + $0x518] sm:$0xff]  }
  0x80   :  { %7455 = vmatpush3.bf16.msra.mxu0 %v8308_v31  ;;  %v8358_v31 = vld [vmem:[%s10785_s1 + $0x598] sm:$0xff]  }
  0x81   :  { %7484 = vmatprep.subr.bf16.mxu0 %v8311_v34  ;;  %v8361_v34 = vld [vmem:[%s10785_s1 + $0x520] sm:$0xff]  }
  0x82   :  { %7477 = vmatpush3.bf16.msra.mxu1 %v8309_v32  ;;  %v8359_v32 = vld [vmem:[%s10785_s1 + $0x560] sm:$0xff]  }
  0x83   :  { %5441 = vmatmul.mubr.bf16.vlgmr.msra.gmra.mrb[12].mxu0 %v1278_v33  ;;  %7506 = vmatprep.subr.bf16.mxu1 %v8312_v35  ;;  %v8360_v33 = vld [vmem:[%s10785_s1 + $0x5e0] sm:$0xff]  }
  0x84   :  { %7485 = vmatpush3.bf16.msra.mxu0 %v8313_v36  ;;  %5520 = vmatprep.mubr.bf16.mxu0 %v1334_v7  ;;  %v8362_v35 = vld [vmem:[%s10785_s1 + $0x5a0] sm:$0xff]   ;;  %v8363_v36 = vld [vmem:[%s10785_s1 + $0x568] sm:$0xff]  }
  0x85   :  { %5481 = vmatmul.mubr.bf16.vlgmr.msra.gmra.mrb[12].mxu1 %v1294_v38  ;;  %7486 = vmatprep.subr.bf16.mxu0 %v8315_v39  ;;  %v8365_v38 = vld [vmem:[%s10785_s1 + $0x528] sm:$0xff]  }
  0x86   :  { %7507 = vmatpush3.bf16.msra.mxu1 %v8314_v37  ;;  %5560 = vmatprep.mubr.bf16.mxu1 %v1344_v11  ;;  %v8364_v37 = vld [vmem:[%s10785_s1 + $0x5e8] sm:$0xff]   ;;  %v8400_v11 = vld [vmem:[%s10785_s1 + $0x670] sm:$0xff]  }
  0x87   :  { %7508 = vmatprep.subr.bf16.mxu1 %v8316_v40  ;;  %v8366_v39 = vld [vmem:[%s10785_s1 + $0x5a8] sm:$0xff]   ;;  %v8367_v40 = vld [vmem:[%s10785_s1 + $0x570] sm:$0xff]  }
  0x88   :  { %7487 = vmatpush3.bf16.msra.mxu0 %v8317_v42  ;;  %v8368_v42 = vld [vmem:[%s10785_s1 + $0x5f0] sm:$0xff]   ;;  %v8396_v7 = vld [vmem:[%s10785_s1 + $0x668] sm:$0xff]  }
  0x89   :  { %7488 = vmatprep.subr.bf16.mxu0 %v8319_v44  ;;  %v8370_v44 = vld [vmem:[%s10785_s1 + $0x5b0] sm:$0xff]  }
  0x8a   :  { %7509 = vmatpush3.bf16.msra.mxu1 %v8318_v43  ;;  %v8369_v43 = vld [vmem:[%s10785_s1 + $0x530] sm:$0xff]  }
  0x8b   :  { %7510 = vmatprep.subr.bf16.mxu1 %v8320_v45  ;;  %v8371_v45 = vld [vmem:[%s10785_s1 + $0x578] sm:$0xff]  }
  0x8c   :  { %7489 = vmatpush3.bf16.msra.mxu0 %v8321_v46  ;;  %v8372_v46 = vld [vmem:[%s10785_s1 + $0x5f8] sm:$0xff]  }
  0x8d   :  { %7490 = vmatprep.subr.bf16.mxu0 %v8323_v48  ;;  %v8374_v48 = vld [vmem:[%s10785_s1 + $0x5b8] sm:$0xff]  }
  0x8e   :  { %7511 = vmatpush3.bf16.msra.mxu1 %v8322_v47  ;;  %v8373_v47 = vld [vmem:[%s10785_s1 + $0x538] sm:$0xff]  }
  0x8f   :  { %7512 = vmatprep.subr.bf16.mxu1 %v8324_v49  ;;  %v1327_v49 = vrot.slane %v9332_v4, %v8934_v41  ;;  %v8393_v4 = vld [vmem:[%s10785_s1 + $0x6e0] sm:$0xff]  }
  0x90   :  { %7491 = vmatpush3.bf16.msra.mxu0 %v8325_v50  ;;  %v8376_v50 = vld [vmem:[%s10785_s1 + $0x640] sm:$0xff]  }
  0x91   :  { %7492 = vmatprep.subr.bf16.mxu0 %v8327_v52  ;;  %v8378_v52 = vld [vmem:[%s10785_s1 + $0x600] sm:$0xff]  }
  0x92   :  { %7513 = vmatpush3.bf16.msra.mxu1 %v8326_v51  ;;  %v8377_v51 = vld [vmem:[%s10785_s1 + $0x6c0] sm:$0xff]  }
  0x93   :  { %7514 = vmatprep.subr.bf16.mxu1 %v8328_v53  ;;  %v8379_v53 = vld [vmem:[%s10785_s1 + $0x680] sm:$0xff]  }
  0x94   :  { %7493 = vmatpush3.bf16.msra.mxu0 %v8329_v54  ;;  %v1343_v54 = vcombine.high %v1327_v49, %v1327_v49 }
  0x95   :  { %7494 = vmatprep.subr.bf16.mxu0 %v8331_v56  ;;  %v8381_v56 = vld [vmem:[%s10785_s1 + $0x6c8] sm:$0xff]  }
  0x96   :  { %7515 = vmatpush3.bf16.msra.mxu1 %v8330_v55  ;;  %v8380_v55 = vld [vmem:[%s10785_s1 + $0x648] sm:$0xff]  }
  0x97   :  { %7516 = vmatprep.subr.bf16.mxu1 %v8332_v57  ;;  %v8382_v57 = vld [vmem:[%s10785_s1 + $0x608] sm:$0xff]  }
  0x98   :  { %7495 = vmatpush3.bf16.msra.mxu0 %v8333_v58  ;;  %v8383_v58 = vld [vmem:[%s10785_s1 + $0x688] sm:$0xff]  }
  0x99   :  { %7496 = vmatprep.subr.bf16.mxu0 %v8335_v60  ;;  %v8385_v60 = vld [vmem:[%s10785_s1 + $0x6d0] sm:$0xff]  }
  0x9a   :  { %7517 = vmatpush3.bf16.msra.mxu1 %v8334_v59  ;;  %v8384_v59 = vld [vmem:[%s10785_s1 + $0x650] sm:$0xff]  }
  0x9b   :  { %7518 = vmatprep.subr.bf16.mxu1 %v8336_v62  ;;  %v8387_v62 = vld [vmem:[%s10785_s1 + $0x690] sm:$0xff]  }
  0x9c   :  { %7497 = vmatpush3.bf16.msra.mxu0 %v8337_v1  ;;  %v8390_v1 = vld [vmem:[%s10785_s1 + $0x618] sm:$0xff]  }
  0x9d   :  { %7498 = vmatprep.subr.bf16.mxu0 %v8339_v5  ;;  %v8394_v5 = vld [vmem:[%s10785_s1 + $0x620] sm:$0xff]  }
  0x9e   :  { %7519 = vmatpush3.bf16.msra.mxu1 %v8338_v2  ;;  %v8391_v2 = vld [vmem:[%s10785_s1 + $0x698] sm:$0xff]  }
  0x9f   :  { %7520 = vmatprep.subr.bf16.mxu1 %v8340_v6  ;;  %v8395_v6 = vld [vmem:[%s10785_s1 + $0x6a0] sm:$0xff]  }
  0xa0   :  { %7499 = vmatpush3.bf16.msra.mxu0 %v8341_v9  ;;  %v8398_v9 = vld [vmem:[%s10785_s1 + $0x628] sm:$0xff]  }
  0xa1   :  { %7528 = vmatprep.subr.bf16.mxu0 %v8343_v13  ;;  %v8401_v13 = vld [vmem:[%s10785_s1 + $0x6f0] sm:$0xff]  }
  0xa2   :  { %7521 = vmatpush3.bf16.msra.mxu1 %v8342_v10  ;;  %v8399_v10 = vld [vmem:[%s10785_s1 + $0x6a8] sm:$0xff]  }
  0xa3   :  { %5521 = vmatmul.mubr.bf16.vlgmr.msra.gmra.mrb[16].mxu0 %v1320_v12  ;;  %7550 = vmatprep.subr.bf16.mxu1 %v8344_v14  ;;  %v25_v12 = vld [vmem:[%s10784_s0 + $0x18] sm:$0xff] }
  0xa4   :  { %7529 = vmatpush3.bf16.msra.mxu0 %v8345_v16  ;;  %5600 = vmatprep.mubr.bf16.mxu0 %v1341_v15  ;;  %v1353_v14 = vrot.slane %v25_v12, %v8934_v41  ;;  %v1346_v15 = vcombine.high %v25_v12, %v25_v12  ;;  %v8402_v16 = vld [vmem:[%s10785_s1 + $0x630] sm:$0xff]   ;;  %v8439_v12 = vld [vmem:[%s10785_s1 + $0x7b8] sm:$0xff]  }
  0xa5   :  { %5561 = vmatmul.mubr.bf16.vlgmr.msra.gmra.mrb[16].mxu1 %v1342_v18  ;;  %7530 = vmatprep.subr.bf16.mxu0 %v8347_v19 }
  0xa6   :  { %7551 = vmatpush3.bf16.msra.mxu1 %v8346_v17  ;;  %5640 = vmatprep.mubr.bf16.mxu1 %v1345_v21  ;;  %v8404_v17 = vld [vmem:[%s10785_s1 + $0x678] sm:$0xff]   ;;  %v1361_v18 = vcombine.high %v1353_v14, %v1353_v14  ;;  %v9538_v19 = vrot.slane %v1346_v15, %v8934_v41  ;;  %v8442_v15 = vld [vmem:[%s10785_s1 + $0x8c0] sm:$0xff]  }
  0xa7   :  { %7552 = vmatprep.subr.bf16.mxu1 %v8348_v20  ;;  %v8403_v20 = vld [vmem:[%s10785_s1 + $0x6b0] sm:$0xff]   ;;  %v8405_v21 = vld [vmem:[%s10785_s1 + $0x6f8] sm:$0xff]  }
  0xa8   :  { %7531 = vmatpush3.bf16.msra.mxu0 %v8349_v22  ;;  %v1383_v22 = vrot.slane %v1361_v18, %v8934_v41 }
  0xa9   :  { %7532 = vmatprep.subr.bf16.mxu0 %v8351_v24  ;;  %v8406_v24 = vld [vmem:[%s10785_s1 + $0x638] sm:$0xff]  }
  0xaa   :  { %7553 = vmatpush3.bf16.msra.mxu1 %v8350_v23  ;;  %v1362_v23 = vcombine.high %v9538_v19, %v9538_v19 }
  0xab   :  { %7554 = vmatprep.subr.bf16.mxu1 %v8352_v25  ;;  %v1393_v25 = vcombine.high %v1383_v22, %v1383_v22 }
  0xac   :  { %7533 = vmatpush3.bf16.msra.mxu0 %v8353_v26  ;;  %v1369_v26 = vrot.slane %v1353_v14, %v8934_v41  ;;  %v8441_v14 = vld [vmem:[%s10785_s1 + $0x840] sm:$0xff]  }
  0xad   :  { %7534 = vmatprep.subr.bf16.mxu0 %v8355_v28  ;;  %v8407_v28 = vld [vmem:[%s10785_s1 + $0x6b8] sm:$0xff]  }
  0xae   :  { %7555 = vmatpush3.bf16.msra.mxu1 %v8354_v27  ;;  %v8408_v27 = vld [vmem:[%s10785_s1 + $0x740] sm:$0xff]  }
  0xaf   :  { %7556 = vmatprep.subr.bf16.mxu1 %v8356_v29  ;;  %v1390_v29 = vrot.slane %v1362_v23, %v8934_v41  ;;  %v8449_v23 = vld [vmem:[%s10785_s1 + $0x850] sm:$0xff]  }
  0xb0   :  { %7535 = vmatpush3.bf16.msra.mxu0 %v8357_v30  ;;  %v8409_v30 = vld [vmem:[%s10785_s1 + $0x7c0] sm:$0xff]  }
  0xb1   :  { %7536 = vmatprep.subr.bf16.mxu0 %v8359_v32  ;;  %v1391_v32 = vcombine.high %v1369_v26, %v1369_v26 }
  0xb2   :  { %7557 = vmatpush3.bf16.msra.mxu1 %v8358_v31  ;;  %v8410_v31 = vld [vmem:[%s10785_s1 + $0x700] sm:$0xff]  }
  0xb3   :  { %7558 = vmatprep.subr.bf16.mxu1 %v8360_v33  ;;  %v8412_v33 = vld [vmem:[%s10785_s1 + $0x748] sm:$0xff]  }
  0xb4   :  { %7537 = vmatpush3.bf16.msra.mxu0 %v8361_v34  ;;  %v8411_v34 = vld [vmem:[%s10785_s1 + $0x780] sm:$0xff]  }
  0xb5   :  { %7538 = vmatprep.subr.bf16.mxu0 %v8363_v36  ;;  %v8413_v36 = vld [vmem:[%s10785_s1 + $0x7c8] sm:$0xff]  }
  0xb6   :  { %7559 = vmatpush3.bf16.msra.mxu1 %v8362_v35  ;;  %v1394_v35 = vcombine.high %v1390_v29, %v1390_v29 }
  0xb7   :  { %7560 = vmatprep.subr.bf16.mxu1 %v8364_v37  ;;  %v8414_v37 = vld [vmem:[%s10785_s1 + $0x708] sm:$0xff]  }
  0xb8   :  { %7539 = vmatpush3.bf16.msra.mxu0 %v8365_v38  ;;  %v8416_v38 = vld [vmem:[%s10785_s1 + $0x750] sm:$0xff]  }
  0xb9   :  { %7540 = vmatprep.subr.bf16.mxu0 %v8367_v40  ;;  %v8417_v40 = vld [vmem:[%s10785_s1 + $0x7d0] sm:$0xff]  }
  0xba   :  { %7561 = vmatpush3.bf16.msra.mxu1 %v8366_v39  ;;  %v8415_v39 = vld [vmem:[%s10785_s1 + $0x788] sm:$0xff]  }
  0xbb   :  { %7562 = vmatprep.subr.bf16.mxu1 %v8368_v42  ;;  %v8418_v42 = vld [vmem:[%s10785_s1 + $0x710] sm:$0xff]  }
  0xbc   :  { %7541 = vmatpush3.bf16.msra.mxu0 %v8369_v43  ;;  %v8420_v43 = vld [vmem:[%s10785_s1 + $0x758] sm:$0xff]  }
  0xbd   :  { %7542 = vmatprep.subr.bf16.mxu0 %v8371_v45  ;;  %v8421_v45 = vld [vmem:[%s10785_s1 + $0x7d8] sm:$0xff]  }
  0xbe   :  { %7563 = vmatpush3.bf16.msra.mxu1 %v8370_v44  ;;  %v8419_v44 = vld [vmem:[%s10785_s1 + $0x790] sm:$0xff]  }
  0xbf   :  { %7564 = vmatprep.subr.bf16.mxu1 %v8372_v46  ;;  %v8422_v46 = vld [vmem:[%s10785_s1 + $0x718] sm:$0xff]  }
  0xc0   :  { %7543 = vmatpush3.bf16.msra.mxu0 %v8373_v47  ;;  %v8423_v47 = vld [vmem:[%s10785_s1 + $0x798] sm:$0xff]  }
  0xc1   :  { %7572 = vmatprep.subr.bf16.mxu0 %v8376_v50  ;;  %v8426_v50 = vld [vmem:[%s10785_s1 + $0x720] sm:$0xff]  }
  0xc2   :  { %7565 = vmatpush3.bf16.msra.mxu1 %v8374_v48  ;;  %v8424_v48 = vld [vmem:[%s10785_s1 + $0x760] sm:$0xff]  }
  0xc3   :  { %5601 = vmatmul.mubr.bf16.vlgmr.msra.gmra.mrb[20].mxu0 %v1327_v49  ;;  %7594 = vmatprep.subr.bf16.mxu1 %v8377_v51  ;;  %v8425_v49 = vld [vmem:[%s10785_s1 + $0x7e0] sm:$0xff]  }
  0xc4   :  { %7573 = vmatpush3.bf16.msra.mxu0 %v8378_v52  ;;  %5680 = vmatprep.mubr.bf16.mxu0 %v1383_v22  ;;  %v8427_v51 = vld [vmem:[%s10785_s1 + $0x7a0] sm:$0xff]   ;;  %v8428_v52 = vld [vmem:[%s10785_s1 + $0x768] sm:$0xff]  }
  0xc5   :  { %5641 = vmatmul.mubr.bf16.vlgmr.msra.gmra.mrb[20].mxu1 %v1343_v54  ;;  %7574 = vmatprep.subr.bf16.mxu0 %v8380_v55  ;;  %v8430_v54 = vld [vmem:[%s10785_s1 + $0x728] sm:$0xff]  }
  0xc6   :  { %7595 = vmatpush3.bf16.msra.mxu1 %v8379_v53  ;;  %5720 = vmatprep.mubr.bf16.mxu1 %v1393_v25  ;;  %v8429_v53 = vld [vmem:[%s10785_s1 + $0x7e8] sm:$0xff]   ;;  %v8451_v25 = vld [vmem:[%s10785_s1 + $0x810] sm:$0xff]  }
  0xc7   :  { %7596 = vmatprep.subr.bf16.mxu1 %v8381_v56  ;;  %v8431_v55 = vld [vmem:[%s10785_s1 + $0x7a8] sm:$0xff]   ;;  %v6730_v56 = vld [vmem:[%s10786_s2] ss:$0 sm:$0xff] }
  0xc8   :  { %7575 = vmatpush3.bf16.msra.mxu0 %v8382_v57  ;;  %v8432_v57 = vld [vmem:[%s10785_s1 + $0x770] sm:$0xff]   ;;  %v8448_v22 = vld [vmem:[%s10785_s1 + $0x888] sm:$0xff]  }
  0xc9   :  { %7576 = vmatprep.subr.bf16.mxu0 %v8384_v59  ;;  %v8433_v59 = vld [vmem:[%s10785_s1 + $0x7f0] sm:$0xff]  }
  0xca   :  { %7597 = vmatpush3.bf16.msra.mxu1 %v8383_v58 }
  0xcb   :  { %7598 = vmatprep.subr.bf16.mxu1 %v8385_v60 }
  0xcc   :  { %7577 = vmatpush3.bf16.msra.mxu0 %v8386_v61  ;;  %v8434_v61 = vld [vmem:[%s10785_s1 + $0x730] sm:$0xff]  }
  0xcd   :  { %7578 = vmatprep.subr.bf16.mxu0 %v8388_v63 }
  0xce   :  { %7599 = vmatpush3.bf16.msra.mxu1 %v8387_v62 }
  0xcf   :  { %7600 = vmatprep.subr.bf16.mxu1 %v8389_v0 }
  0xd0   :  { %7579 = vmatpush3.bf16.msra.mxu0 %v8390_v1  ;;  %v8435_v1 = vld [vmem:[%s10785_s1 + $0x7b0] sm:$0xff]  }
  0xd1   :  { %7580 = vmatprep.subr.bf16.mxu0 %v8392_v3 }
  0xd2   :  { %7601 = vmatpush3.bf16.msra.mxu1 %v8391_v2  ;;  %v8436_v2 = vld [vmem:[%s10785_s1 + $0x778] sm:$0xff]  }
  0xd3   :  { %7602 = vmatprep.subr.bf16.mxu1 %v8393_v4 }
  0xd4   :  { %7581 = vmatpush3.bf16.msra.mxu0 %v8394_v5 }
  0xd5   :  { %7582 = vmatprep.subr.bf16.mxu0 %v8396_v7 }
  0xd6   :  { %7603 = vmatpush3.bf16.msra.mxu1 %v8395_v6 }
  0xd7   :  { %7604 = vmatprep.subr.bf16.mxu1 %v8397_v8  ;;  %v8437_v8 = vld [vmem:[%s10785_s1 + $0x7f8] sm:$0xff]  }
  0xd8   :  { %7583 = vmatpush3.bf16.msra.mxu0 %v8398_v9 }
  0xd9   :  { %7584 = vmatprep.subr.bf16.mxu0 %v8400_v11 }
  0xda   :  { %7605 = vmatpush3.bf16.msra.mxu1 %v8399_v10  ;;  %v8438_v10 = vld [vmem:[%s10785_s1 + $0x738] sm:$0xff]  }
  0xdb   :  { %7606 = vmatprep.subr.bf16.mxu1 %v8401_v13  ;;  %v1376_v13 = vrot.slane %v9538_v19, %v8934_v41  ;;  %v8445_v19 = vld [vmem:[%s10785_s1 + $0x848] sm:$0xff]  }
  0xdc   :  { %7585 = vmatpush3.bf16.msra.mxu0 %v8402_v16  ;;  %v8443_v16 = vld [vmem:[%s10785_s1 + $0x800] sm:$0xff]  }
  0xdd   :  { %7586 = vmatprep.subr.bf16.mxu0 %v8404_v17  ;;  %v8444_v17 = vld [vmem:[%s10785_s1 + $0x880] sm:$0xff]   ;;  %v1392_v18 = vcombine.high %v1376_v13, %v1376_v13 }
  0xde   :  { %7607 = vmatpush3.bf16.msra.mxu1 %v8403_v20  ;;  %v8446_v20 = vld [vmem:[%s10785_s1 + $0x8c8] sm:$0xff]  }
  0xdf   :  { %7608 = vmatprep.subr.bf16.mxu1 %v8405_v21  ;;  %v8447_v21 = vld [vmem:[%s10785_s1 + $0x808] sm:$0xff]  }
  0xe0   :  { %7587 = vmatpush3.bf16.msra.mxu0 %v8406_v24  ;;  %v8450_v24 = vld [vmem:[%s10785_s1 + $0x8d0] sm:$0xff]  }
  0xe1   :  { %7616 = vmatprep.subr.bf16.mxu0 %v8408_v27  ;;  %v8453_v27 = vld [vmem:[%s10785_s1 + $0x858] sm:$0xff]  }
  0xe2   :  { %7609 = vmatpush3.bf16.msra.mxu1 %v8407_v28  ;;  %v8454_v28 = vld [vmem:[%s10785_s1 + $0x8d8] sm:$0xff]  }
  0xe3   :  { %5681 = vmatmul.mubr.bf16.vlgmr.msra.gmra.mrb[24].mxu0 %v1369_v26  ;;  %7638 = vmatprep.subr.bf16.mxu1 %v8409_v30  ;;  %v8452_v26 = vld [vmem:[%s10785_s1 + $0x890] sm:$0xff]   ;;  %v8456_v30 = vld [vmem:[%s10785_s1 + $0x898] sm:$0xff]  }
  0xe4   :  { %7617 = vmatpush3.bf16.msra.mxu0 %v8410_v31  ;;  %5760 = vmatprep.mubr.bf16.mxu0 %v1390_v29  ;;  %v8455_v29 = vld [vmem:[%s10785_s1 + $0x818] sm:$0xff]   ;;  %v8457_v31 = vld [vmem:[%s10785_s1 + $0x860] sm:$0xff]  }
  0xe5   :  { %5721 = vmatmul.mubr.bf16.vlgmr.msra.gmra.mrb[24].mxu1 %v1391_v32  ;;  %7618 = vmatprep.subr.bf16.mxu0 %v8412_v33  ;;  %v8458_v32 = vld [vmem:[%s10785_s1 + $0x8e0] sm:$0xff]  }
  0xe6   :  { %7639 = vmatpush3.bf16.msra.mxu1 %v8411_v34  ;;  %5800 = vmatprep.mubr.bf16.mxu1 %v1394_v35  ;;  %v8459_v33 = vld [vmem:[%s10785_s1 + $0x820] sm:$0xff]   ;;  %v8461_v35 = vld [vmem:[%s10785_s1 + $0x868] sm:$0xff]  }
  0xe7   :  { %7640 = vmatprep.subr.bf16.mxu1 %v8413_v36  ;;  %v8460_v34 = vld [vmem:[%s10785_s1 + $0x8a0] sm:$0xff]   ;;  %v8462_v36 = vld [vmem:[%s10785_s1 + $0x8e8] sm:$0xff]  }
  0xe8   :  { %7619 = vmatpush3.bf16.msra.mxu0 %v8414_v37  ;;  %v8463_v37 = vld [vmem:[%s10785_s1 + $0x828] sm:$0xff]  }
  0xe9   :  { %7620 = vmatprep.subr.bf16.mxu0 %v8416_v38  ;;  %v8464_v38 = vld [vmem:[%s10785_s1 + $0x8a8] sm:$0xff]  }
  0xea   :  { %7641 = vmatpush3.bf16.msra.mxu1 %v8415_v39  ;;  %v8465_v39 = vld [vmem:[%s10785_s1 + $0x870] sm:$0xff]  }
  0xeb   :  { %7642 = vmatprep.subr.bf16.mxu1 %v8417_v40  ;;  %v8466_v40 = vld [vmem:[%s10785_s1 + $0x8f0] sm:$0xff]  }
  0xec   :  { %7621 = vmatpush3.bf16.msra.mxu0 %v8418_v42 }
  0xed   :  { %7622 = vmatprep.subr.bf16.mxu0 %v8420_v43  ;;  %v8467_v43 = vld [vmem:[%s10785_s1 + $0x830] sm:$0xff]  }
  0xee   :  { %7643 = vmatpush3.bf16.msra.mxu1 %v8419_v44 }
  0xef   :  { %7644 = vmatprep.subr.bf16.mxu1 %v8421_v45  ;;  %v26_v45 = vld [vmem:[%s10784_s0 + $0x20] sm:$0xff] }
  0xf0   :  { %7623 = vmatpush3.bf16.msra.mxu0 %v8422_v46 }
  0xf1   :  { %7624 = vmatprep.subr.bf16.mxu0 %v8424_v48 }
  0xf2   :  { %7645 = vmatpush3.bf16.msra.mxu1 %v8423_v47 }
  0xf3   :  { %7646 = vmatprep.subr.bf16.mxu1 %v8425_v49  ;;  %v8468_v49 = vld [vmem:[%s10785_s1 + $0x8b0] sm:$0xff]  }
  0xf4   :  { %7625 = vmatpush3.bf16.msra.mxu0 %v8426_v50  ;;  %v8469_v50 = vld [vmem:[%s10785_s1 + $0x878] sm:$0xff]  }
  0xf5   :  { %7626 = vmatprep.subr.bf16.mxu0 %v8428_v52  ;;  %v1395_v52 = vcombine.high %v26_v45, %v26_v45 }
  0xf6   :  { %7647 = vmatpush3.bf16.msra.mxu1 %v8427_v51  ;;  %v7324_v58 = vpop.f32.mrb[0].mxu0  ;;  %v1402_v51 = vrot.slane %v26_v45, %v8934_v41 }
  0xf7   :  { %v7325_v60 = vpop.f32.mrb[1].mxu0  ;;  %7648 = vmatprep.subr.bf16.mxu1 %v8429_v53  ;;  %v7346_v62 = vpop.f32.mrb[0].mxu1 }
  0xf8   :  { %v7326_v63 = vadd.f32 %v7325_v60, %v7324_v58  ;;  %v7327_v0 = vpop.f32.mrb[2].mxu0  ;;  %7627 = vmatpush3.bf16.msra.mxu0 %v8430_v54  ;;  %v7347_v3 = vpop.f32.mrb[1].mxu1  ;;  %v8470_v58 = vld [vmem:[%s10785_s1 + $0x8f8] sm:$0xff]  }
  0xf9   :  { %v7328_v4 = vpop.f32.mrb[3].mxu0  ;;  %7628 = vmatprep.subr.bf16.mxu0 %v8432_v57  ;;  %v7348_v6 = vadd.f32 %v7347_v3, %v7346_v62  ;;  %v7349_v7 = vpop.f32.mrb[2].mxu1  ;;  %v9759_v62 = vrot.slane %v1395_v52, %v8934_v41  ;;  %v8472_v0 = vld [vmem:[%s10785_s1 + $0x8b8] sm:$0xff]   ;;  %v8473_v3 = vld [vmem:[%s10785_s1 + $0x940] sm:$0xff]  }
  0xfa   :  { %v5203_v5 = vadd.f32 %v7326_v63, %v6730_v56  ;;  %7649 = vmatpush3.bf16.msra.mxu1 %v8431_v55  ;;  %v7350_v9 = vpop.f32.mrb[3].mxu1  ;;  %v8475_v7 = vld [vmem:[%s10785_s1 + $0x900] sm:$0xff]   ;;  %v8504_v52 = vld [vmem:[%s10785_s1 + $0x9b8] sm:$0xff]  }
  0xfb   :  { %7650 = vmatprep.subr.bf16.mxu1 %v8433_v59  ;;  %v1410_v59 = vcombine.high %v1402_v51, %v1402_v51  ;;  %v1411_v4 = vcombine.high %v9759_v62, %v9759_v62  ;;  %v8476_v9 = vld [vmem:[%s10785_s1 + $0x980] sm:$0xff]  }
  0xfc   :  { %v9653_v11 = vadd.f32 %v7348_v6, %v5203_v5  ;;  %7629 = vmatpush3.bf16.msra.mxu0 %v8434_v61  ;;  %v8471_v61 = vld [vmem:[%s10785_s1 + $0x838] sm:$0xff]   ;;  %v8474_v6 = vld [vmem:[%s10785_s1 + $0x9c0] sm:$0xff]  }
  0xfd   :  { %7630 = vmatprep.subr.bf16.mxu0 %v8436_v2  ;;  %v1418_v2 = vrot.slane %v1402_v51, %v8934_v41 }
  0xfe   :  { %7651 = vmatpush3.bf16.msra.mxu1 %v8435_v1  ;;  %v1432_v1 = vrot.slane %v1410_v59, %v8934_v41  ;;  %v8510_v59 = vld [vmem:[%s10785_s1 + $0xa48] sm:$0xff]  }
  0xff   :  { %7652 = vmatprep.subr.bf16.mxu1 %v8437_v8  ;;  %v1439_v8 = vrot.slane %v1411_v4, %v8934_v41  ;;  %v8519_v4 = vld [vmem:[%s10785_s1 + $0xad8] sm:$0xff]  }
 0x100   :  { %7631 = vmatpush3.bf16.msra.mxu0 %v8438_v10  ;;  %v1442_v5 = vcombine.high %v1432_v1, %v1432_v1  ;;  %v1440_v10 = vcombine.high %v1418_v2, %v1418_v2 }
 0x101   :  { %7660 = vmatprep.subr.bf16.mxu0 %v8441_v14  ;;  %v8479_v14 = vld [vmem:[%s10785_s1 + $0x908] sm:$0xff]  }
 0x102   :  { %7653 = vmatpush3.bf16.msra.mxu1 %v8439_v12  ;;  %v8478_v12 = vld [vmem:[%s10785_s1 + $0x9c8] sm:$0xff]  }
 0x103   :  { %5761 = vmatmul.mubr.bf16.vlgmr.msra.gmra.mrb[28].mxu0 %v1376_v13  ;;  %7682 = vmatprep.subr.bf16.mxu1 %v8442_v15  ;;  %v1443_v13 = vcombine.high %v1439_v8, %v1439_v8  ;;  %v8480_v15 = vld [vmem:[%s10785_s1 + $0x988] sm:$0xff]  }
 0x104   :  { %7661 = vmatpush3.bf16.msra.mxu0 %v8443_v16  ;;  %5840 = vmatprep.mubr.bf16.mxu0 %v1432_v1  ;;  %v8481_v16 = vld [vmem:[%s10785_s1 + $0x950] sm:$0xff]  }
 0x105   :  { %5801 = vmatmul.mubr.bf16.vlgmr.msra.gmra.mrb[28].mxu1 %v1392_v18  ;;  %7662 = vmatprep.subr.bf16.mxu0 %v8445_v19  ;;  %v8483_v18 = vld [vmem:[%s10785_s1 + $0x910] sm:$0xff]  }
 0x106   :  { %7683 = vmatpush3.bf16.msra.mxu1 %v8444_v17  ;;  %5880 = vmatprep.mubr.bf16.mxu1 %v1442_v5  ;;  %v8482_v17 = vld [vmem:[%s10785_s1 + $0x9d0] sm:$0xff]   ;;  %v8520_v5 = vld [vmem:[%s10785_s1 + $0xa18] sm:$0xff]  }
 0x107   :  { %7684 = vmatprep.subr.bf16.mxu1 %v8446_v20  ;;  %v8484_v19 = vld [vmem:[%s10785_s1 + $0x990] sm:$0xff]   ;;  %v8485_v20 = vld [vmem:[%s10785_s1 + $0x958] sm:$0xff]  }
 0x108   :  { %7663 = vmatpush3.bf16.msra.mxu0 %v8447_v21  ;;  %v8486_v21 = vld [vmem:[%s10785_s1 + $0x9d8] sm:$0xff]   ;;  %v8516_v1 = vld [vmem:[%s10785_s1 + $0xa10] sm:$0xff]  }
 0x109   :  { %7664 = vmatprep.subr.bf16.mxu0 %v8449_v23  ;;  %v8488_v23 = vld [vmem:[%s10785_s1 + $0x998] sm:$0xff]  }
 0x10a   :  { %7685 = vmatpush3.bf16.msra.mxu1 %v8448_v22  ;;  %v8487_v22 = vld [vmem:[%s10785_s1 + $0x918] sm:$0xff]  }
 0x10b   :  { %7686 = vmatprep.subr.bf16.mxu1 %v8450_v24  ;;  %v8489_v24 = vld [vmem:[%s10785_s1 + $0x960] sm:$0xff]  }
 0x10c   :  { %7665 = vmatpush3.bf16.msra.mxu0 %v8451_v25  ;;  %v8490_v25 = vld [vmem:[%s10785_s1 + $0x9e0] sm:$0xff]  }
 0x10d   :  { %7666 = vmatprep.subr.bf16.mxu0 %v8453_v27  ;;  %v8492_v27 = vld [vmem:[%s10785_s1 + $0x9a0] sm:$0xff]  }
 0x10e   :  { %7687 = vmatpush3.bf16.msra.mxu1 %v8452_v26  ;;  %v8491_v26 = vld [vmem:[%s10785_s1 + $0x920] sm:$0xff]  }
 0x10f   :  { %7688 = vmatprep.subr.bf16.mxu1 %v8454_v28  ;;  %v8493_v28 = vld [vmem:[%s10785_s1 + $0x968] sm:$0xff]  }
 0x110   :  { %7667 = vmatpush3.bf16.msra.mxu0 %v8455_v29  ;;  %v8494_v29 = vld [vmem:[%s10785_s1 + $0x9e8] sm:$0xff]  }
 0x111   :  { %7668 = vmatprep.subr.bf16.mxu0 %v8457_v31  ;;  %v8496_v31 = vld [vmem:[%s10785_s1 + $0x9a8] sm:$0xff]  }
 0x112   :  { %7689 = vmatpush3.bf16.msra.mxu1 %v8456_v30  ;;  %v8495_v30 = vld [vmem:[%s10785_s1 + $0x928] sm:$0xff]  }
 0x113   :  { %7690 = vmatprep.subr.bf16.mxu1 %v8458_v32  ;;  %v8497_v32 = vld [vmem:[%s10785_s1 + $0x970] sm:$0xff]  }
 0x114   :  { %7669 = vmatpush3.bf16.msra.mxu0 %v8459_v33 }
 0x115   :  { %7670 = vmatprep.subr.bf16.mxu0 %v8461_v35 }
 0x116   :  { %7691 = vmatpush3.bf16.msra.mxu1 %v8460_v34  ;;  %v7368_v42 = vpop.f32.mrb[4].mxu0  ;;  %v8498_v34 = vld [vmem:[%s10785_s1 + $0x9f0] sm:$0xff]  }
 0x117   :  { %v7369_v44 = vpop.f32.mrb[5].mxu0  ;;  %7692 = vmatprep.subr.bf16.mxu1 %v8462_v36  ;;  %v7390_v46 = vpop.f32.mrb[4].mxu1  ;;  %v8499_v36 = vld [vmem:[%s10785_s1 + $0x930] sm:$0xff]  }
 0x118   :  { %v7370_v47 = vadd.f32 %v7369_v44, %v7368_v42  ;;  %v7371_v48 = vpop.f32.mrb[6].mxu0  ;;  %7671 = vmatpush3.bf16.msra.mxu0 %v8463_v37  ;;  %v7391_v53 = vpop.f32.mrb[5].mxu1  ;;  %v8501_v42 = vld [vmem:[%s10785_s1 + $0x978] sm:$0xff]  }
 0x119   :  { %v7372_v54 = vpop.f32.mrb[7].mxu0  ;;  %7672 = vmatprep.subr.bf16.mxu0 %v8465_v39  ;;  %v7392_v56 = vadd.f32 %v7391_v53, %v7390_v46  ;;  %v7393_v57 = vpop.f32.mrb[6].mxu1  ;;  %v8502_v48 = vld [vmem:[%s10785_s1 + $0x9f8] sm:$0xff]   ;;  %v1425_v53 = vrot.slane %v9759_v62, %v8934_v41  ;;  %v8513_v62 = vld [vmem:[%s10785_s1 + $0xa88] sm:$0xff]  }
 0x11a   :  { %v5283_v55 = vadd.f32 %v7370_v47, %v9653_v11  ;;  %7693 = vmatpush3.bf16.msra.mxu1 %v8464_v38  ;;  %v7394_v60 = vpop.f32.mrb[7].mxu1  ;;  %v8477_v11 = vld [vmem:[%s10785_s1 + $0x948] sm:$0xff]   ;;  %v8506_v54 = vld [vmem:[%s10785_s1 + $0xa40] sm:$0xff]  }
 0x11b   :  { %7694 = vmatprep.subr.bf16.mxu1 %v8466_v40  ;;  %v8500_v40 = vld [vmem:[%s10785_s1 + $0x9b0] sm:$0xff]   ;;  %v8509_v57 = vld [vmem:[%s10785_s1 + $0xa80] sm:$0xff]   ;;  %v8511_v60 = vld [vmem:[%s10785_s1 + $0xac8] sm:$0xff]  }
 0x11c   :  { %v9761_v63 = vadd.f32 %v7392_v56, %v5283_v55  ;;  %7673 = vmatpush3.bf16.msra.mxu0 %v8467_v43  ;;  %v8507_v55 = vld [vmem:[%s10785_s1 + $0xac0] sm:$0xff]  }
 0x11d   :  { %7674 = vmatprep.subr.bf16.mxu0 %v8469_v50  ;;  %v8503_v50 = vld [vmem:[%s10785_s1 + $0x938] sm:$0xff]   ;;  %v8508_v56 = vld [vmem:[%s10785_s1 + $0xa00] sm:$0xff]  }
 0x11e   :  { %7695 = vmatpush3.bf16.msra.mxu1 %v8468_v49 }
 0x11f   :  { %7696 = vmatprep.subr.bf16.mxu1 %v8470_v58  ;;  %v1441_v58 = vcombine.high %v1425_v53, %v1425_v53 }
 0x120   :  { %7675 = vmatpush3.bf16.msra.mxu0 %v8471_v61  ;;  %v8512_v61 = vld [vmem:[%s10785_s1 + $0xa08] sm:$0xff]  }
 0x121   :  { %7704 = vmatprep.subr.bf16.mxu0 %v8473_v3  ;;  %v8518_v3 = vld [vmem:[%s10785_s1 + $0xa58] sm:$0xff]  }
 0x122   :  { %7697 = vmatpush3.bf16.msra.mxu1 %v8472_v0  ;;  %v8515_v0 = vld [vmem:[%s10785_s1 + $0xad0] sm:$0xff]  }
 0x123   :  { %5841 = vmatmul.mubr.bf16.vlgmr.msra.gmra.mrb[32].mxu0 %v1418_v2  ;;  %7726 = vmatprep.subr.bf16.mxu1 %v8474_v6  ;;  %v8517_v2 = vld [vmem:[%s10785_s1 + $0xa90] sm:$0xff]   ;;  %v8521_v6 = vld [vmem:[%s10785_s1 + $0xa98] sm:$0xff]  }
 0x124   :  { %7705 = vmatpush3.bf16.msra.mxu0 %v8475_v7  ;;  %5920 = vmatprep.mubr.bf16.mxu0 %v1439_v8  ;;  %v8522_v7 = vld [vmem:[%s10785_s1 + $0xa60] sm:$0xff]  }
 0x125   :  { %5881 = vmatmul.mubr.bf16.vlgmr.msra.gmra.mrb[32].mxu1 %v1440_v10  ;;  %7706 = vmatprep.subr.bf16.mxu0 %v8477_v11  ;;  %v8523_v8 = vld [vmem:[%s10785_s1 + $0xae0] sm:$0xff]   ;;  %v8526_v11 = vld [vmem:[%s10785_s1 + $0xa68] sm:$0xff]  }
 0x126   :  { %7727 = vmatpush3.bf16.msra.mxu1 %v8476_v9  ;;  %5960 = vmatprep.mubr.bf16.mxu1 %v1443_v13  ;;  %v8524_v9 = vld [vmem:[%s10785_s1 + $0xa20] sm:$0xff]   ;;  %v8528_v13 = vld [vmem:[%s10785_s1 + $0xa28] sm:$0xff]  }
 0x127   :  { %7728 = vmatprep.subr.bf16.mxu1 %v8478_v12  ;;  %v8525_v10 = vld [vmem:[%s10785_s1 + $0xaa0] sm:$0xff]   ;;  %v8527_v12 = vld [vmem:[%s10785_s1 + $0xae8] sm:$0xff]  }
 0x128   :  { %7707 = vmatpush3.bf16.msra.mxu0 %v8479_v14  ;;  %v8529_v14 = vld [vmem:[%s10785_s1 + $0xaa8] sm:$0xff]  }
 0x129   :  { %7708 = vmatprep.subr.bf16.mxu0 %v8481_v16 }
 0x12a   :  { %7729 = vmatpush3.bf16.msra.mxu1 %v8480_v15  ;;  %v8530_v15 = vld [vmem:[%s10785_s1 + $0xa70] sm:$0xff]  }
 0x12b   :  { %7730 = vmatprep.subr.bf16.mxu1 %v8482_v17  ;;  %v8531_v17 = vld [vmem:[%s10785_s1 + $0xaf0] sm:$0xff]  }
 0x12c   :  { %7709 = vmatpush3.bf16.msra.mxu0 %v8483_v18 }
 0x12d   :  { %7710 = vmatprep.subr.bf16.mxu0 %v8485_v20 }
 0x12e   :  { %7731 = vmatpush3.bf16.msra.mxu1 %v8484_v19  ;;  %v8532_v19 = vld [vmem:[%s10785_s1 + $0xa30] sm:$0xff]  }
 0x12f   :  { %7732 = vmatprep.subr.bf16.mxu1 %v8486_v21 }
 0x130   :  { %7711 = vmatpush3.bf16.msra.mxu0 %v8487_v22 }
 0x131   :  { %7712 = vmatprep.subr.bf16.mxu0 %v8489_v24  ;;  %v8534_v24 = vld [vmem:[%s10785_s1 + $0xa78] sm:$0xff]  }
 0x132   :  { %7733 = vmatpush3.bf16.msra.mxu1 %v8488_v23  ;;  %v8533_v23 = vld [vmem:[%s10785_s1 + $0xab0] sm:$0xff]  }
 0x133   :  { %7734 = vmatprep.subr.bf16.mxu1 %v8490_v25  ;;  %v27_v25 = vld [vmem:[%s10784_s0 + $0x28] sm:$0xff] }
 0x134   :  { %7713 = vmatpush3.bf16.msra.mxu0 %v8491_v26 }
 0x135   :  { %7714 = vmatprep.subr.bf16.mxu0 %v8493_v28  ;;  %v1451_v28 = vrot.slane %v27_v25, %v8934_v41 }
 0x136   :  { %7735 = vmatpush3.bf16.msra.mxu1 %v8492_v27  ;;  %v7412_v33 = vpop.f32.mrb[8].mxu0 }
 0x137   :  { %v7413_v35 = vpop.f32.mrb[9].mxu0  ;;  %7736 = vmatprep.subr.bf16.mxu1 %v8494_v29  ;;  %v1444_v29 = vcombine.high %v27_v25, %v27_v25  ;;  %v8568_v25 = vld [vmem:[%s10785_s1 + $0xb38] sm:$0xff]  }
 0x138   :  { %v7434_v37 = vpop.f32.mrb[8].mxu1  ;;  %v7414_v38 = vadd.f32 %v7413_v35, %v7412_v33  ;;  %v7415_v39 = vpop.f32.mrb[10].mxu0  ;;  %7715 = vmatpush3.bf16.msra.mxu0 %v8495_v30  ;;  %v8535_v33 = vld [vmem:[%s10785_s1 + $0xaf8] sm:$0xff]  }
 0x139   :  { %v7435_v43 = vpop.f32.mrb[9].mxu1  ;;  %v7416_v44 = vpop.f32.mrb[11].mxu0  ;;  %7716 = vmatprep.subr.bf16.mxu0 %v8497_v32  ;;  %v8536_v35 = vld [vmem:[%s10785_s1 + $0xa38] sm:$0xff]  }
 0x13a   :  { %v5363_v45 = vadd.f32 %v7414_v38, %v9761_v63  ;;  %v7436_v46 = vadd.f32 %v7435_v43, %v7434_v37  ;;  %v7437_v47 = vpop.f32.mrb[10].mxu1  ;;  %7737 = vmatpush3.bf16.msra.mxu1 %v8496_v31  ;;  %v8514_v63 = vld [vmem:[%s10785_s1 + $0xa50] sm:$0xff]   ;;  %v9971_v37 = vrot.slane %v1444_v29, %v8934_v41  ;;  %v8537_v39 = vld [vmem:[%s10785_s1 + $0xab8] sm:$0xff]   ;;  %v8538_v43 = vld [vmem:[%s10785_s1 + $0xb40] sm:$0xff]  }
 0x13b   :  { %v7438_v49 = vpop.f32.mrb[11].mxu1  ;;  %7738 = vmatprep.subr.bf16.mxu1 %v8498_v34  ;;  %v8540_v47 = vld [vmem:[%s10785_s1 + $0xb00] sm:$0xff]  }
 0x13c   :  { %v9865_v51 = vadd.f32 %v7436_v46, %v5363_v45  ;;  %7717 = vmatpush3.bf16.msra.mxu0 %v8499_v36  ;;  %v1459_v36 = vcombine.high %v1451_v28, %v1451_v28  ;;  %v1460_v44 = vcombine.high %v9971_v37, %v9971_v37  ;;  %v8539_v45 = vld [vmem:[%s10785_s1 + $0xbc0] sm:$0xff]  }
 0x13d   :  { %7718 = vmatprep.subr.bf16.mxu0 %v8501_v42  ;;  %v1467_v42 = vrot.slane %v1451_v28, %v8934_v41  ;;  %v8541_v49 = vld [vmem:[%s10785_s1 + $0xb80] sm:$0xff]   ;;  %v1474_v28 = vrot.slane %v9971_v37, %v8934_v41  ;;  %v8578_v37 = vld [vmem:[%s10785_s1 + $0xc88] sm:$0xff]  }
 0x13e   :  { %7739 = vmatpush3.bf16.msra.mxu1 %v8500_v40  ;;  %v1481_v40 = vrot.slane %v1459_v36, %v8934_v41  ;;  %v8571_v29 = vld [vmem:[%s10785_s1 + $0xc40] sm:$0xff]   ;;  %v8577_v36 = vld [vmem:[%s10785_s1 + $0xc08] sm:$0xff]  }
 0x13f   :  { %7740 = vmatprep.subr.bf16.mxu1 %v8502_v48  ;;  %v1488_v48 = vrot.slane %v1460_v44, %v8934_v41  ;;  %v8584_v44 = vld [vmem:[%s10785_s1 + $0xcd8] sm:$0xff]  }
 0x140   :  { %7719 = vmatpush3.bf16.msra.mxu0 %v8503_v50  ;;  %v1491_v46 = vcombine.high %v1481_v40, %v1481_v40  ;;  %v1489_v50 = vcombine.high %v1467_v42, %v1467_v42 }
 0x141   :  { %7748 = vmatprep.subr.bf16.mxu0 %v8506_v54  ;;  %v8544_v54 = vld [vmem:[%s10785_s1 + $0xb08] sm:$0xff]  }
 0x142   :  { %7741 = vmatpush3.bf16.msra.mxu1 %v8504_v52  ;;  %v8543_v52 = vld [vmem:[%s10785_s1 + $0xbc8] sm:$0xff]  }
 0x143   :  { %5921 = vmatmul.mubr.bf16.vlgmr.msra.gmra.mrb[36].mxu0 %v1425_v53  ;;  %7770 = vmatprep.subr.bf16.mxu1 %v8507_v55  ;;  %v1492_v53 = vcombine.high %v1488_v48, %v1488_v48  ;;  %v8545_v55 = vld [vmem:[%s10785_s1 + $0xb88] sm:$0xff]  }
 0x144   :  { %7749 = vmatpush3.bf16.msra.mxu0 %v8508_v56  ;;  %6000 = vmatprep.mubr.bf16.mxu0 %v1481_v40  ;;  %v8546_v56 = vld [vmem:[%s10785_s1 + $0xb50] sm:$0xff]  }
 0x145   :  { %5961 = vmatmul.mubr.bf16.vlgmr.msra.gmra.mrb[36].mxu1 %v1441_v58  ;;  %7750 = vmatprep.subr.bf16.mxu0 %v8510_v59  ;;  %v8548_v58 = vld [vmem:[%s10785_s1 + $0xb10] sm:$0xff]  }
 0x146   :  { %7771 = vmatpush3.bf16.msra.mxu1 %v8509_v57  ;;  %6040 = vmatprep.mubr.bf16.mxu1 %v1491_v46  ;;  %v8547_v57 = vld [vmem:[%s10785_s1 + $0xbd0] sm:$0xff]   ;;  %v8586_v46 = vld [vmem:[%s10785_s1 + $0xc98] sm:$0xff]  }
 0x147   :  { %7772 = vmatprep.subr.bf16.mxu1 %v8511_v60  ;;  %v8549_v59 = vld [vmem:[%s10785_s1 + $0xb90] sm:$0xff]   ;;  %v8550_v60 = vld [vmem:[%s10785_s1 + $0xb58] sm:$0xff]  }
 0x148   :  { %7751 = vmatpush3.bf16.msra.mxu0 %v8512_v61  ;;  %v8551_v61 = vld [vmem:[%s10785_s1 + $0xbd8] sm:$0xff]   ;;  %v8581_v40 = vld [vmem:[%s10785_s1 + $0xc10] sm:$0xff]  }
 0x149   :  { %7752 = vmatprep.subr.bf16.mxu0 %v8514_v63  ;;  %v8553_v63 = vld [vmem:[%s10785_s1 + $0xb98] sm:$0xff]  }
 0x14a   :  { %7773 = vmatpush3.bf16.msra.mxu1 %v8513_v62  ;;  %v8552_v62 = vld [vmem:[%s10785_s1 + $0xb18] sm:$0xff]  }
 0x14b   :  { %7774 = vmatprep.subr.bf16.mxu1 %v8515_v0  ;;  %v8554_v0 = vld [vmem:[%s10785_s1 + $0xb60] sm:$0xff]  }
 0x14c   :  { %7753 = vmatpush3.bf16.msra.mxu0 %v8516_v1  ;;  %v8555_v1 = vld [vmem:[%s10785_s1 + $0xbe0] sm:$0xff]  }
 0x14d   :  { %7754 = vmatprep.subr.bf16.mxu0 %v8518_v3  ;;  %v8557_v3 = vld [vmem:[%s10785_s1 + $0xba0] sm:$0xff]  }
 0x14e   :  { %7775 = vmatpush3.bf16.msra.mxu1 %v8517_v2  ;;  %v8556_v2 = vld [vmem:[%s10785_s1 + $0xb20] sm:$0xff]  }
 0x14f   :  { %7776 = vmatprep.subr.bf16.mxu1 %v8519_v4  ;;  %v8558_v4 = vld [vmem:[%s10785_s1 + $0xb68] sm:$0xff]  }
 0x150   :  { %7755 = vmatpush3.bf16.msra.mxu0 %v8520_v5  ;;  %v8559_v5 = vld [vmem:[%s10785_s1 + $0xbe8] sm:$0xff]  }
 0x151   :  { %7756 = vmatprep.subr.bf16.mxu0 %v8522_v7  ;;  %v8561_v7 = vld [vmem:[%s10785_s1 + $0xba8] sm:$0xff]  }
 0x152   :  { %7777 = vmatpush3.bf16.msra.mxu1 %v8521_v6  ;;  %v8560_v6 = vld [vmem:[%s10785_s1 + $0xb28] sm:$0xff]  }
 0x153   :  { %7778 = vmatprep.subr.bf16.mxu1 %v8523_v8  ;;  %v8562_v8 = vld [vmem:[%s10785_s1 + $0xb70] sm:$0xff]  }
 0x154   :  { %7757 = vmatpush3.bf16.msra.mxu0 %v8524_v9 }
 0x155   :  { %7758 = vmatprep.subr.bf16.mxu0 %v8526_v11 }
 0x156   :  { %7779 = vmatpush3.bf16.msra.mxu1 %v8525_v10  ;;  %v7456_v16 = vpop.f32.mrb[12].mxu0  ;;  %v8563_v10 = vld [vmem:[%s10785_s1 + $0xbf0] sm:$0xff]  }
 0x157   :  { %v7457_v18 = vpop.f32.mrb[13].mxu0  ;;  %7780 = vmatprep.subr.bf16.mxu1 %v8527_v12  ;;  %v8564_v12 = vld [vmem:[%s10785_s1 + $0xb30] sm:$0xff]  }
 0x158   :  { %v7478_v20 = vpop.f32.mrb[12].mxu1  ;;  %v7458_v21 = vadd.f32 %v7457_v18, %v7456_v16  ;;  %v7459_v22 = vpop.f32.mrb[14].mxu0  ;;  %7759 = vmatpush3.bf16.msra.mxu0 %v8528_v13  ;;  %v8565_v16 = vld [vmem:[%s10785_s1 + $0xbb0] sm:$0xff]  }
 0x159   :  { %v7479_v26 = vpop.f32.mrb[13].mxu1  ;;  %v7460_v27 = vpop.f32.mrb[15].mxu0  ;;  %7760 = vmatprep.subr.bf16.mxu0 %v8530_v15 }
 0x15a   :  { %v5443_v30 = vadd.f32 %v7458_v21, %v9865_v51  ;;  %v7480_v31 = vadd.f32 %v7479_v26, %v7478_v20  ;;  %v7481_v32 = vpop.f32.mrb[14].mxu1  ;;  %7781 = vmatpush3.bf16.msra.mxu1 %v8529_v14  ;;  %v8542_v51 = vld [vmem:[%s10785_s1 + $0xb48] sm:$0xff]   ;;  %v8569_v27 = vld [vmem:[%s10785_s1 + $0xbb8] sm:$0xff]  }
 0x15b   :  { %v7482_v34 = vpop.f32.mrb[15].mxu1  ;;  %7782 = vmatprep.subr.bf16.mxu1 %v8531_v17  ;;  %v8566_v17 = vld [vmem:[%s10785_s1 + $0xb78] sm:$0xff]   ;;  %v8574_v32 = vld [vmem:[%s10785_s1 + $0xc80] sm:$0xff]  }
 0x15c   :  { %v9973_v38 = vadd.f32 %v7480_v31, %v5443_v30  ;;  %7761 = vmatpush3.bf16.msra.mxu0 %v8532_v19  ;;  %v8572_v30 = vld [vmem:[%s10785_s1 + $0xcc0] sm:$0xff]   ;;  %v8575_v34 = vld [vmem:[%s10785_s1 + $0xc48] sm:$0xff]  }
 0x15d   :  { %7762 = vmatprep.subr.bf16.mxu0 %v8534_v24  ;;  %v8573_v31 = vld [vmem:[%s10785_s1 + $0xc00] sm:$0xff]  }
 0x15e   :  { %7783 = vmatpush3.bf16.msra.mxu1 %v8533_v23  ;;  %v8567_v23 = vld [vmem:[%s10785_s1 + $0xbf8] sm:$0xff]  }
 0x15f   :  { %7784 = vmatprep.subr.bf16.mxu1 %v8535_v33  ;;  %v1490_v33 = vcombine.high %v1474_v28, %v1474_v28 }
 0x160   :  { %7763 = vmatpush3.bf16.msra.mxu0 %v8536_v35  ;;  %v8576_v35 = vld [vmem:[%s10785_s1 + $0xcc8] sm:$0xff]  }
 0x161   :  { %7792 = vmatprep.subr.bf16.mxu0 %v8538_v43  ;;  %v8583_v43 = vld [vmem:[%s10785_s1 + $0xc58] sm:$0xff]  }
 0x162   :  { %7785 = vmatpush3.bf16.msra.mxu1 %v8537_v39  ;;  %v8580_v39 = vld [vmem:[%s10785_s1 + $0xcd0] sm:$0xff]  }
 0x163   :  { %6001 = vmatmul.mubr.bf16.vlgmr.msra.gmra.mrb[40].mxu0 %v1467_v42  ;;  %7814 = vmatprep.subr.bf16.mxu1 %v8539_v45  ;;  %v8582_v42 = vld [vmem:[%s10785_s1 + $0xc90] sm:$0xff]   ;;  %v8585_v45 = vld [vmem:[%s10785_s1 + $0xc18] sm:$0xff]  }
 0x164   :  { %7793 = vmatpush3.bf16.msra.mxu0 %v8540_v47  ;;  %6080 = vmatprep.mubr.bf16.mxu0 %v1488_v48  ;;  %v8587_v47 = vld [vmem:[%s10785_s1 + $0xc60] sm:$0xff]  }
 0x165   :  { %6041 = vmatmul.mubr.bf16.vlgmr.msra.gmra.mrb[40].mxu1 %v1489_v50  ;;  %7794 = vmatprep.subr.bf16.mxu0 %v8542_v51  ;;  %v8588_v48 = vld [vmem:[%s10785_s1 + $0xce0] sm:$0xff]   ;;  %v8591_v51 = vld [vmem:[%s10785_s1 + $0xc68] sm:$0xff]  }
 0x166   :  { %7815 = vmatpush3.bf16.msra.mxu1 %v8541_v49  ;;  %6120 = vmatprep.mubr.bf16.mxu1 %v1492_v53  ;;  %v8589_v49 = vld [vmem:[%s10785_s1 + $0xc20] sm:$0xff]   ;;  %v8593_v53 = vld [vmem:[%s10785_s1 + $0xc28] sm:$0xff]  }
 0x167   :  { %7816 = vmatprep.subr.bf16.mxu1 %v8543_v52  ;;  %v8590_v50 = vld [vmem:[%s10785_s1 + $0xca0] sm:$0xff]   ;;  %v8592_v52 = vld [vmem:[%s10785_s1 + $0xce8] sm:$0xff]  }
 0x168   :  { %7795 = vmatpush3.bf16.msra.mxu0 %v8544_v54  ;;  %v8594_v54 = vld [vmem:[%s10785_s1 + $0xca8] sm:$0xff]  }
 0x169   :  { %7796 = vmatprep.subr.bf16.mxu0 %v8546_v56 }
 0x16a   :  { %7817 = vmatpush3.bf16.msra.mxu1 %v8545_v55  ;;  %v8595_v55 = vld [vmem:[%s10785_s1 + $0xc70] sm:$0xff]  }
 0x16b   :  { %7818 = vmatprep.subr.bf16.mxu1 %v8547_v57  ;;  %v8596_v57 = vld [vmem:[%s10785_s1 + $0xcf0] sm:$0xff]  }
 0x16c   :  { %7797 = vmatpush3.bf16.msra.mxu0 %v8548_v58 }
 0x16d   :  { %7798 = vmatprep.subr.bf16.mxu0 %v8550_v60 }
 0x16e   :  { %7819 = vmatpush3.bf16.msra.mxu1 %v8549_v59  ;;  %v8597_v59 = vld [vmem:[%s10785_s1 + $0xc30] sm:$0xff]  }
 0x16f   :  { %7820 = vmatprep.subr.bf16.mxu1 %v8551_v61 }
 0x170   :  { %7799 = vmatpush3.bf16.msra.mxu0 %v8552_v62 }
 0x171   :  { %7800 = vmatprep.subr.bf16.mxu0 %v8554_v0 }
 0x172   :  { %7821 = vmatpush3.bf16.msra.mxu1 %v8553_v63  ;;  %v8598_v63 = vld [vmem:[%s10785_s1 + $0xcb0] sm:$0xff]  }
 0x173   :  { %7822 = vmatprep.subr.bf16.mxu1 %v8555_v1 }
 0x174   :  { %7801 = vmatpush3.bf16.msra.mxu0 %v8556_v2  ;;  %v8599_v2 = vld [vmem:[%s10785_s1 + $0xc78] sm:$0xff]  }
 0x175   :  { %7802 = vmatprep.subr.bf16.mxu0 %v8558_v4 }
 0x176   :  { %7823 = vmatpush3.bf16.msra.mxu1 %v8557_v3  ;;  %v7500_v9 = vpop.f32.mrb[16].mxu0  ;;  %v28_v3 = vld [vmem:[%s10784_s0 + $0x30] sm:$0xff] }
 0x177   :  { %v7501_v11 = vpop.f32.mrb[17].mxu0  ;;  %7824 = vmatprep.subr.bf16.mxu1 %v8559_v5 }
 0x178   :  { %v7522_v13 = vpop.f32.mrb[16].mxu1  ;;  %v7502_v14 = vadd.f32 %v7501_v11, %v7500_v9  ;;  %v7503_v15 = vpop.f32.mrb[18].mxu0  ;;  %7803 = vmatpush3.bf16.msra.mxu0 %v8560_v6  ;;  %v1493_v9 = vcombine.high %v28_v3, %v28_v3  ;;  %v8601_v11 = vld [vmem:[%s10785_s1 + $0xc38] sm:$0xff]  }
 0x179   :  { %v7523_v18 = vpop.f32.mrb[17].mxu1  ;;  %v7504_v19 = vpop.f32.mrb[19].mxu0  ;;  %7804 = vmatprep.subr.bf16.mxu0 %v8562_v8  ;;  %v1500_v8 = vrot.slane %v28_v3, %v8934_v41  ;;  %v8634_v3 = vld [vmem:[%s10785_s1 + $0xdb8] sm:$0xff]  }
 0x17a   :  { %v5523_v20 = vadd.f32 %v7502_v14, %v9973_v38  ;;  %v7524_v21 = vadd.f32 %v7523_v18, %v7522_v13  ;;  %v7525_v22 = vpop.f32.mrb[18].mxu1  ;;  %7825 = vmatpush3.bf16.msra.mxu1 %v8561_v7  ;;  %v8579_v38 = vld [vmem:[%s10785_s1 + $0xc50] sm:$0xff]   ;;  %v8600_v7 = vld [vmem:[%s10785_s1 + $0xcf8] sm:$0xff]   ;;  %v10188_v15 = vrot.slane %v1493_v9, %v8934_v41  ;;  %v8604_v19 = vld [vmem:[%s10785_s1 + $0xdc0] sm:$0xff]  }
 0x17b   :  { %v7526_v24 = vpop.f32.mrb[19].mxu1  ;;  %7826 = vmatprep.subr.bf16.mxu1 %v8563_v10  ;;  %v8602_v13 = vld [vmem:[%s10785_s1 + $0xcb8] sm:$0xff]   ;;  %v1508_v14 = vcombine.high %v1500_v8, %v1500_v8 }
 0x17c   :  { %v10077_v26 = vadd.f32 %v7524_v21, %v5523_v20  ;;  %7805 = vmatpush3.bf16.msra.mxu0 %v8564_v12  ;;  %v1509_v20 = vcombine.high %v10188_v15, %v10188_v15  ;;  %v8605_v21 = vld [vmem:[%s10785_s1 + $0xd00] sm:$0xff]  }
 0x17d   :  { %7806 = vmatprep.subr.bf16.mxu0 %v8566_v17  ;;  %v8603_v17 = vld [vmem:[%s10785_s1 + $0xd40] sm:$0xff]   ;;  %v1530_v18 = vrot.slane %v1508_v14, %v8934_v41  ;;  %v8644_v14 = vld [vmem:[%s10785_s1 + $0xe50] sm:$0xff]  }
 0x17e   :  { %7827 = vmatpush3.bf16.msra.mxu1 %v8565_v16  ;;  %v1516_v16 = vrot.slane %v1500_v8, %v8934_v41  ;;  %v1537_v24 = vrot.slane %v1509_v20, %v8934_v41  ;;  %v8639_v8 = vld [vmem:[%s10785_s1 + $0xe80] sm:$0xff]   ;;  %v8650_v20 = vld [vmem:[%s10785_s1 + $0xe18] sm:$0xff]  }
 0x17f   :  { %7828 = vmatprep.subr.bf16.mxu1 %v8567_v23  ;;  %v1540_v22 = vcombine.high %v1530_v18, %v1530_v18  ;;  %v8606_v23 = vld [vmem:[%s10785_s1 + $0xd80] sm:$0xff]  }
 0x180   :  { %7807 = vmatpush3.bf16.msra.mxu0 %v8568_v25  ;;  %v1538_v25 = vcombine.high %v1516_v16, %v1516_v16 }
 0x181   :  { %7836 = vmatprep.subr.bf16.mxu0 %v8571_v29  ;;  %v8609_v29 = vld [vmem:[%s10785_s1 + $0xd08] sm:$0xff]  }
 0x182   :  { %7829 = vmatpush3.bf16.msra.mxu1 %v8569_v27  ;;  %v8608_v27 = vld [vmem:[%s10785_s1 + $0xdc8] sm:$0xff]  }
 0x183   :  { %6081 = vmatmul.mubr.bf16.vlgmr.msra.gmra.mrb[44].mxu0 %v1474_v28  ;;  %7858 = vmatprep.subr.bf16.mxu1 %v8572_v30  ;;  %v1541_v28 = vcombine.high %v1537_v24, %v1537_v24  ;;  %v8610_v30 = vld [vmem:[%s10785_s1 + $0xd88] sm:$0xff]  }
 0x184   :  { %7837 = vmatpush3.bf16.msra.mxu0 %v8573_v31  ;;  %6160 = vmatprep.mubr.bf16.mxu0 %v1530_v18  ;;  %v8611_v31 = vld [vmem:[%s10785_s1 + $0xd50] sm:$0xff]   ;;  %v8648_v18 = vld [vmem:[%s10785_s1 + $0xe58] sm:$0xff]  }
 0x185   :  { %6121 = vmatmul.mubr.bf16.vlgmr.msra.gmra.mrb[44].mxu1 %v1490_v33  ;;  %7838 = vmatprep.subr.bf16.mxu0 %v8575_v34  ;;  %v8613_v33 = vld [vmem:[%s10785_s1 + $0xd10] sm:$0xff]  }
 0x186   :  { %7859 = vmatpush3.bf16.msra.mxu1 %v8574_v32  ;;  %6200 = vmatprep.mubr.bf16.mxu1 %v1540_v22  ;;  %v8612_v32 = vld [vmem:[%s10785_s1 + $0xdd0] sm:$0xff]   ;;  %v8652_v22 = vld [vmem:[%s10785_s1 + $0xe60] sm:$0xff]  }
 0x187   :  { %7860 = vmatprep.subr.bf16.mxu1 %v8576_v35  ;;  %v8614_v34 = vld [vmem:[%s10785_s1 + $0xd90] sm:$0xff]   ;;  %v8615_v35 = vld [vmem:[%s10785_s1 + $0xd58] sm:$0xff]  }
 0x188   :  { %7839 = vmatpush3.bf16.msra.mxu0 %v8577_v36  ;;  %v8616_v36 = vld [vmem:[%s10785_s1 + $0xdd8] sm:$0xff]  }
 0x189   :  { %7840 = vmatprep.subr.bf16.mxu0 %v8579_v38  ;;  %v8618_v38 = vld [vmem:[%s10785_s1 + $0xd98] sm:$0xff]  }
 0x18a   :  { %7861 = vmatpush3.bf16.msra.mxu1 %v8578_v37  ;;  %v8617_v37 = vld [vmem:[%s10785_s1 + $0xd18] sm:$0xff]  }
 0x18b   :  { %7862 = vmatprep.subr.bf16.mxu1 %v8580_v39  ;;  %v8619_v39 = vld [vmem:[%s10785_s1 + $0xd60] sm:$0xff]  }
 0x18c   :  { %7841 = vmatpush3.bf16.msra.mxu0 %v8581_v40  ;;  %v8620_v40 = vld [vmem:[%s10785_s1 + $0xde0] sm:$0xff]  }
 0x18d   :  { %7842 = vmatprep.subr.bf16.mxu0 %v8583_v43  ;;  %v8622_v43 = vld [vmem:[%s10785_s1 + $0xda0] sm:$0xff]  }
 0x18e   :  { %7863 = vmatpush3.bf16.msra.mxu1 %v8582_v42  ;;  %v8621_v42 = vld [vmem:[%s10785_s1 + $0xd20] sm:$0xff]  }
 0x18f   :  { %7864 = vmatprep.subr.bf16.mxu1 %v8584_v44  ;;  %v8623_v44 = vld [vmem:[%s10785_s1 + $0xd68] sm:$0xff]  }
 0x190   :  { %7843 = vmatpush3.bf16.msra.mxu0 %v8585_v45  ;;  %v8624_v45 = vld [vmem:[%s10785_s1 + $0xde8] sm:$0xff]  }
 0x191   :  { %7844 = vmatprep.subr.bf16.mxu0 %v8587_v47  ;;  %v8626_v47 = vld [vmem:[%s10785_s1 + $0xda8] sm:$0xff]  }
 0x192   :  { %7865 = vmatpush3.bf16.msra.mxu1 %v8586_v46  ;;  %v8625_v46 = vld [vmem:[%s10785_s1 + $0xd28] sm:$0xff]  }
 0x193   :  { %7866 = vmatprep.subr.bf16.mxu1 %v8588_v48  ;;  %v8627_v48 = vld [vmem:[%s10785_s1 + $0xd70] sm:$0xff]  }
 0x194   :  { %7845 = vmatpush3.bf16.msra.mxu0 %v8589_v49 }
 0x195   :  { %7846 = vmatprep.subr.bf16.mxu0 %v8591_v51 }
 0x196   :  { %7867 = vmatpush3.bf16.msra.mxu1 %v8590_v50  ;;  %v7544_v56 = vpop.f32.mrb[20].mxu0  ;;  %v8628_v50 = vld [vmem:[%s10785_s1 + $0xdf0] sm:$0xff]  }
 0x197   :  { %v7545_v58 = vpop.f32.mrb[21].mxu0  ;;  %7868 = vmatprep.subr.bf16.mxu1 %v8592_v52  ;;  %v8629_v52 = vld [vmem:[%s10785_s1 + $0xd30] sm:$0xff]  }
 0x198   :  { %v7566_v60 = vpop.f32.mrb[20].mxu1  ;;  %v7546_v61 = vadd.f32 %v7545_v58, %v7544_v56  ;;  %v7547_v62 = vpop.f32.mrb[22].mxu0  ;;  %7847 = vmatpush3.bf16.msra.mxu0 %v8593_v53  ;;  %v8630_v56 = vld [vmem:[%s10785_s1 + $0xdb0] sm:$0xff]  }
 0x199   :  { %v7567_v0 = vpop.f32.mrb[21].mxu1  ;;  %v7548_v1 = vpop.f32.mrb[23].mxu0  ;;  %7848 = vmatprep.subr.bf16.mxu0 %v8595_v55 }
 0x19a   :  { %v5603_v4 = vadd.f32 %v7546_v61, %v10077_v26  ;;  %v7568_v5 = vadd.f32 %v7567_v0, %v7566_v60  ;;  %v7569_v6 = vpop.f32.mrb[22].mxu1  ;;  %7869 = vmatpush3.bf16.msra.mxu1 %v8594_v54  ;;  %v8607_v26 = vld [vmem:[%s10785_s1 + $0xd48] sm:$0xff]   ;;  %v8633_v1 = vld [vmem:[%s10785_s1 + $0xd38] sm:$0xff]  }
 0x19b   :  { %v7570_v10 = vpop.f32.mrb[23].mxu1  ;;  %7870 = vmatprep.subr.bf16.mxu1 %v8596_v57  ;;  %v8631_v57 = vld [vmem:[%s10785_s1 + $0xd78] sm:$0xff]   ;;  %v8637_v6 = vld [vmem:[%s10785_s1 + $0xec0] sm:$0xff]  }
 0x19c   :  { %v10182_v12 = vadd.f32 %v7568_v5, %v5603_v4  ;;  %7849 = vmatpush3.bf16.msra.mxu0 %v8597_v59  ;;  %v1523_v4 = vrot.slane %v10188_v15, %v8934_v41  ;;  %v8636_v5 = vld [vmem:[%s10785_s1 + $0xe40] sm:$0xff]   ;;  %v8640_v10 = vld [vmem:[%s10785_s1 + $0xe48] sm:$0xff]   ;;  %v8645_v15 = vld [vmem:[%s10785_s1 + $0xed0] sm:$0xff]  }
 0x19d   :  { %7850 = vmatprep.subr.bf16.mxu0 %v8599_v2 }
 0x19e   :  { %7871 = vmatpush3.bf16.msra.mxu1 %v8598_v63  ;;  %v8632_v63 = vld [vmem:[%s10785_s1 + $0xdf8] sm:$0xff]   ;;  %v1539_v9 = vcombine.high %v1523_v4, %v1523_v4 }
 0x19f   :  { %7872 = vmatprep.subr.bf16.mxu1 %v8600_v7  ;;  %v8638_v7 = vld [vmem:[%s10785_s1 + $0xe00] sm:$0xff]  }
 0x1a0   :  { %7851 = vmatpush3.bf16.msra.mxu0 %v8601_v11  ;;  %v8641_v11 = vld [vmem:[%s10785_s1 + $0xec8] sm:$0xff]  }
 0x1a1   :  { %7880 = vmatprep.subr.bf16.mxu0 %v8603_v17  ;;  %v8647_v17 = vld [vmem:[%s10785_s1 + $0xe90] sm:$0xff]  }
 0x1a2   :  { %7873 = vmatpush3.bf16.msra.mxu1 %v8602_v13  ;;  %v8643_v13 = vld [vmem:[%s10785_s1 + $0xe88] sm:$0xff]  }
 0x1a3   :  { %6161 = vmatmul.mubr.bf16.vlgmr.msra.gmra.mrb[48].mxu0 %v1516_v16  ;;  %7902 = vmatprep.subr.bf16.mxu1 %v8604_v19  ;;  %v8646_v16 = vld [vmem:[%s10785_s1 + $0xe10] sm:$0xff]   ;;  %v8649_v19 = vld [vmem:[%s10785_s1 + $0xed8] sm:$0xff]  }
 0x1a4   :  { %7881 = vmatpush3.bf16.msra.mxu0 %v8605_v21  ;;  %6240 = vmatprep.mubr.bf16.mxu0 %v1537_v24  ;;  %v8651_v21 = vld [vmem:[%s10785_s1 + $0xe98] sm:$0xff]   ;;  %v8654_v24 = vld [vmem:[%s10785_s1 + $0xe20] sm:$0xff]  }
 0x1a5   :  { %6201 = vmatmul.mubr.bf16.vlgmr.msra.gmra.mrb[48].mxu1 %v1538_v25  ;;  %7882 = vmatprep.subr.bf16.mxu0 %v8607_v26  ;;  %v8655_v25 = vld [vmem:[%s10785_s1 + $0xea0] sm:$0xff]   ;;  %v8656_v26 = vld [vmem:[%s10785_s1 + $0xe68] sm:$0xff]  }
 0x1a6   :  { %7903 = vmatpush3.bf16.msra.mxu1 %v8606_v23  ;;  %6280 = vmatprep.mubr.bf16.mxu1 %v1541_v28  ;;  %v8653_v23 = vld [vmem:[%s10785_s1 + $0xee0] sm:$0xff]   ;;  %v8658_v28 = vld [vmem:[%s10785_s1 + $0xe28] sm:$0xff]  }
 0x1a7   :  { %7904 = vmatprep.subr.bf16.mxu1 %v8608_v27  ;;  %v8657_v27 = vld [vmem:[%s10785_s1 + $0xee8] sm:$0xff]  }
 0x1a8   :  { %7883 = vmatpush3.bf16.msra.mxu0 %v8609_v29  ;;  %v8659_v29 = vld [vmem:[%s10785_s1 + $0xea8] sm:$0xff]  }
 0x1a9   :  { %7884 = vmatprep.subr.bf16.mxu0 %v8611_v31 }
 0x1aa   :  { %7905 = vmatpush3.bf16.msra.mxu1 %v8610_v30  ;;  %v8660_v30 = vld [vmem:[%s10785_s1 + $0xe70] sm:$0xff]  }
 0x1ab   :  { %7906 = vmatprep.subr.bf16.mxu1 %v8612_v32  ;;  %v8661_v32 = vld [vmem:[%s10785_s1 + $0xef0] sm:$0xff]  }
 0x1ac   :  { %7885 = vmatpush3.bf16.msra.mxu0 %v8613_v33 }
 0x1ad   :  { %7886 = vmatprep.subr.bf16.mxu0 %v8615_v35 }
 0x1ae   :  { %7907 = vmatpush3.bf16.msra.mxu1 %v8614_v34  ;;  %v8662_v34 = vld [vmem:[%s10785_s1 + $0xe30] sm:$0xff]  }
 0x1af   :  { %7908 = vmatprep.subr.bf16.mxu1 %v8616_v36 }
 0x1b0   :  { %7887 = vmatpush3.bf16.msra.mxu0 %v8617_v37 }
 0x1b1   :  { %7888 = vmatprep.subr.bf16.mxu0 %v8619_v39 }
 0x1b2   :  { %7909 = vmatpush3.bf16.msra.mxu1 %v8618_v38  ;;  %v8663_v38 = vld [vmem:[%s10785_s1 + $0xeb0] sm:$0xff]  }
 0x1b3   :  { %7910 = vmatprep.subr.bf16.mxu1 %v8620_v40 }
 0x1b4   :  { %7889 = vmatpush3.bf16.msra.mxu0 %v8621_v42  ;;  %v8664_v42 = vld [vmem:[%s10785_s1 + $0xe78] sm:$0xff]  }
 0x1b5   :  { %7890 = vmatprep.subr.bf16.mxu0 %v8623_v44 }
 0x1b6   :  { %7911 = vmatpush3.bf16.msra.mxu1 %v8622_v43  ;;  %v7588_v49 = vpop.f32.mrb[24].mxu0  ;;  %v8665_v43 = vld [vmem:[%s10785_s1 + $0xef8] sm:$0xff]  }
 0x1b7   :  { %v7589_v51 = vpop.f32.mrb[25].mxu0  ;;  %7912 = vmatprep.subr.bf16.mxu1 %v8624_v45 }
 0x1b8   :  { %v7610_v53 = vpop.f32.mrb[24].mxu1  ;;  %v7590_v54 = vadd.f32 %v7589_v51, %v7588_v49  ;;  %v7591_v55 = vpop.f32.mrb[26].mxu0  ;;  %7891 = vmatpush3.bf16.msra.mxu0 %v8625_v46  ;;  %v8666_v49 = vld [vmem:[%s10785_s1 + $0xe38] sm:$0xff]  }
 0x1b9   :  { %v7611_v58 = vpop.f32.mrb[25].mxu1  ;;  %v7592_v59 = vpop.f32.mrb[27].mxu0  ;;  %7892 = vmatprep.subr.bf16.mxu0 %v8627_v48 }
 0x1ba   :  { %v5683_v60 = vadd.f32 %v7590_v54, %v10182_v12  ;;  %v7612_v61 = vadd.f32 %v7611_v58, %v7610_v53  ;;  %v7613_v62 = vpop.f32.mrb[26].mxu1  ;;  %7913 = vmatpush3.bf16.msra.mxu1 %v8626_v47  ;;  %v8642_v12 = vld [vmem:[%s10785_s1 + $0xe08] sm:$0xff]   ;;  %v29_v47 = vld [vmem:[%s10784_s0 + $0x38] sm:$0xff]  ;;  %v8669_v58 = vld [vmem:[%s10785_s1 + $0xfc0] sm:$0xff]  }
 0x1bb   :  { %v7614_v0 = vpop.f32.mrb[27].mxu1  ;;  %7914 = vmatprep.subr.bf16.mxu1 %v8628_v50  ;;  %v1549_v50 = vrot.slane %v29_v47, %v8934_v41  ;;  %v1542_v51 = vcombine.high %v29_v47, %v29_v47  ;;  %v8667_v53 = vld [vmem:[%s10785_s1 + $0xeb8] sm:$0xff]   ;;  %v8671_v62 = vld [vmem:[%s10785_s1 + $0xf80] sm:$0xff]  }
 0x1bc   :  { %v10289_v2 = vadd.f32 %v7612_v61, %v5683_v60  ;;  %7893 = vmatpush3.bf16.msra.mxu0 %v8629_v52  ;;  %v8670_v60 = vld [vmem:[%s10785_s1 + $0xf00] sm:$0xff]  }
 0x1bd   :  { %7894 = vmatprep.subr.bf16.mxu0 %v8631_v57  ;;  %v1557_v54 = vcombine.high %v1549_v50, %v1549_v50  ;;  %v1565_v55 = vrot.slane %v1549_v50, %v8934_v41  ;;  %v10404_v57 = vrot.slane %v1542_v51, %v8934_v41  ;;  %v8703_v47 = vld [vmem:[%s10785_s1 + $0x1000] sm:$0xff]   ;;  %v8705_v50 = vld [vmem:[%s10785_s1 + $0x1048] sm:$0xff]  }
 0x1be   :  { %7915 = vmatpush3.bf16.msra.mxu1 %v8630_v56  ;;  %v8668_v56 = vld [vmem:[%s10785_s1 + $0xf40] sm:$0xff]   ;;  %v8706_v51 = vld [vmem:[%s10785_s1 + $0x10c8] sm:$0xff]  }
 0x1bf   :  { %7916 = vmatprep.subr.bf16.mxu1 %v8632_v63  ;;  %v1579_v59 = vrot.slane %v1557_v54, %v8934_v41  ;;  %v1558_v61 = vcombine.high %v10404_v57, %v10404_v57  ;;  %v1587_v0 = vcombine.high %v1565_v55, %v1565_v55  ;;  %v8709_v54 = vld [vmem:[%s10785_s1 + $0x1050] sm:$0xff]  }
 0x1c0   :  { %7895 = vmatpush3.bf16.msra.mxu0 %v8633_v1  ;;  %v8672_v1 = vld [vmem:[%s10785_s1 + $0xf48] sm:$0xff]  }
 0x1c1   :  { %7924 = vmatprep.subr.bf16.mxu0 %v8636_v5  ;;  %v1589_v63 = vcombine.high %v1579_v59, %v1579_v59 }
 0x1c2   :  { %7917 = vmatpush3.bf16.msra.mxu1 %v8634_v3  ;;  %v8673_v3 = vld [vmem:[%s10785_s1 + $0xfc8] sm:$0xff]  }
 0x1c3   :  { %6241 = vmatmul.mubr.bf16.vlgmr.msra.gmra.mrb[52].mxu0 %v1523_v4  ;;  %7946 = vmatprep.subr.bf16.mxu1 %v8637_v6  ;;  %v8674_v4 = vld [vmem:[%s10785_s1 + $0xf08] sm:$0xff]  }
 0x1c4   :  { %7925 = vmatpush3.bf16.msra.mxu0 %v8638_v7  ;;  %6320 = vmatprep.mubr.bf16.mxu0 %v1579_v59  ;;  %v8675_v6 = vld [vmem:[%s10785_s1 + $0xf88] sm:$0xff]   ;;  %v8676_v7 = vld [vmem:[%s10785_s1 + $0xf50] sm:$0xff]   ;;  %v8714_v59 = vld [vmem:[%s10785_s1 + $0x10d8] sm:$0xff]  }
 0x1c5   :  { %6281 = vmatmul.mubr.bf16.vlgmr.msra.gmra.mrb[52].mxu1 %v1539_v9  ;;  %7926 = vmatprep.subr.bf16.mxu0 %v8640_v10  ;;  %v8678_v9 = vld [vmem:[%s10785_s1 + $0xf10] sm:$0xff]  }
 0x1c6   :  { %7947 = vmatpush3.bf16.msra.mxu1 %v8639_v8  ;;  %6360 = vmatprep.mubr.bf16.mxu1 %v1589_v63  ;;  %v8677_v8 = vld [vmem:[%s10785_s1 + $0xfd0] sm:$0xff]   ;;  %v8718_v63 = vld [vmem:[%s10785_s1 + $0x10e0] sm:$0xff]  }
 0x1c7   :  { %7948 = vmatprep.subr.bf16.mxu1 %v8641_v11  ;;  %v8679_v10 = vld [vmem:[%s10785_s1 + $0xf90] sm:$0xff]   ;;  %v8680_v11 = vld [vmem:[%s10785_s1 + $0xf58] sm:$0xff]  }
 0x1c8   :  { %7927 = vmatpush3.bf16.msra.mxu0 %v8642_v12  ;;  %v8681_v12 = vld [vmem:[%s10785_s1 + $0xfd8] sm:$0xff]  }
 0x1c9   :  { %7928 = vmatprep.subr.bf16.mxu0 %v8644_v14  ;;  %v8683_v14 = vld [vmem:[%s10785_s1 + $0xf98] sm:$0xff]  }
 0x1ca   :  { %7949 = vmatpush3.bf16.msra.mxu1 %v8643_v13  ;;  %v8682_v13 = vld [vmem:[%s10785_s1 + $0xf18] sm:$0xff]  }
 0x1cb   :  { %7950 = vmatprep.subr.bf16.mxu1 %v8645_v15  ;;  %v8684_v15 = vld [vmem:[%s10785_s1 + $0xf60] sm:$0xff]  }
 0x1cc   :  { %7929 = vmatpush3.bf16.msra.mxu0 %v8646_v16  ;;  %v8685_v16 = vld [vmem:[%s10785_s1 + $0xfe0] sm:$0xff]  }
 0x1cd   :  { %7930 = vmatprep.subr.bf16.mxu0 %v8648_v18  ;;  %v8687_v18 = vld [vmem:[%s10785_s1 + $0xfa0] sm:$0xff]  }
 0x1ce   :  { %7951 = vmatpush3.bf16.msra.mxu1 %v8647_v17  ;;  %v8686_v17 = vld [vmem:[%s10785_s1 + $0xf20] sm:$0xff]  }
 0x1cf   :  { %7952 = vmatprep.subr.bf16.mxu1 %v8649_v19  ;;  %v8688_v19 = vld [vmem:[%s10785_s1 + $0xf68] sm:$0xff]  }
 0x1d0   :  { %7931 = vmatpush3.bf16.msra.mxu0 %v8650_v20  ;;  %v8689_v20 = vld [vmem:[%s10785_s1 + $0xfe8] sm:$0xff]  }
 0x1d1   :  { %7932 = vmatprep.subr.bf16.mxu0 %v8652_v22  ;;  %v8691_v22 = vld [vmem:[%s10785_s1 + $0xfa8] sm:$0xff]  }
 0x1d2   :  { %7953 = vmatpush3.bf16.msra.mxu1 %v8651_v21  ;;  %v8690_v21 = vld [vmem:[%s10785_s1 + $0xf28] sm:$0xff]  }
 0x1d3   :  { %7954 = vmatprep.subr.bf16.mxu1 %v8653_v23  ;;  %v8692_v23 = vld [vmem:[%s10785_s1 + $0xf70] sm:$0xff]  }
 0x1d4   :  { %7933 = vmatpush3.bf16.msra.mxu0 %v8654_v24 }
 0x1d5   :  { %7934 = vmatprep.subr.bf16.mxu0 %v8656_v26 }
 0x1d6   :  { %7955 = vmatpush3.bf16.msra.mxu1 %v8655_v25  ;;  %v7632_v31 = vpop.f32.mrb[28].mxu0  ;;  %v8693_v25 = vld [vmem:[%s10785_s1 + $0xff0] sm:$0xff]  }
 0x1d7   :  { %v7633_v33 = vpop.f32.mrb[29].mxu0  ;;  %7956 = vmatprep.subr.bf16.mxu1 %v8657_v27  ;;  %v8694_v27 = vld [vmem:[%s10785_s1 + $0xf30] sm:$0xff]  }
 0x1d8   :  { %v7654_v35 = vpop.f32.mrb[28].mxu1  ;;  %v7634_v36 = vadd.f32 %v7633_v33, %v7632_v31  ;;  %v7635_v37 = vpop.f32.mrb[30].mxu0  ;;  %7935 = vmatpush3.bf16.msra.mxu0 %v8658_v28  ;;  %v8695_v31 = vld [vmem:[%s10785_s1 + $0xfb0] sm:$0xff]  }
 0x1d9   :  { %v7655_v39 = vpop.f32.mrb[29].mxu1  ;;  %v7636_v40 = vpop.f32.mrb[31].mxu0  ;;  %7936 = vmatprep.subr.bf16.mxu0 %v8660_v30 }
 0x1da   :  { %v5763_v44 = vadd.f32 %v7634_v36, %v10289_v2  ;;  %v7656_v45 = vadd.f32 %v7655_v39, %v7654_v35  ;;  %v7657_v46 = vpop.f32.mrb[30].mxu1  ;;  %7957 = vmatpush3.bf16.msra.mxu1 %v8659_v29  ;;  %v1586_v2 = vrot.slane %v1558_v61, %v8934_v41  ;;  %v8698_v40 = vld [vmem:[%s10785_s1 + $0xf38] sm:$0xff]  }
 0x1db   :  { %v7658_v48 = vpop.f32.mrb[31].mxu1  ;;  %7958 = vmatprep.subr.bf16.mxu1 %v8661_v32  ;;  %v8696_v32 = vld [vmem:[%s10785_s1 + $0xf78] sm:$0xff]   ;;  %v8702_v46 = vld [vmem:[%s10785_s1 + $0x10c0] sm:$0xff]  }
 0x1dc   :  { %v10394_v52 = vadd.f32 %v7656_v45, %v5763_v44  ;;  %7937 = vmatpush3.bf16.msra.mxu0 %v8662_v34  ;;  %v1590_v5 = vcombine.high %v1586_v2, %v1586_v2  ;;  %v1572_v44 = vrot.slane %v10404_v57, %v8934_v41  ;;  %v8701_v45 = vld [vmem:[%s10785_s1 + $0x1040] sm:$0xff]   ;;  %v8712_v57 = vld [vmem:[%s10785_s1 + $0x1090] sm:$0xff]   ;;  %v8716_v61 = vld [vmem:[%s10785_s1 + $0x1098] sm:$0xff]  }
 0x1dd   :  { %7938 = vmatprep.subr.bf16.mxu0 %v8664_v42  ;;  %v8704_v48 = vld [vmem:[%s10785_s1 + $0x1080] sm:$0xff]  }
 0x1de   :  { %7959 = vmatpush3.bf16.msra.mxu1 %v8663_v38  ;;  %v8697_v38 = vld [vmem:[%s10785_s1 + $0xff8] sm:$0xff]  }
 0x1df   :  { %7960 = vmatprep.subr.bf16.mxu1 %v8665_v43  ;;  %v8699_v43 = vld [vmem:[%s10785_s1 + $0xfb8] sm:$0xff]  }
 0x1e0   :  { %7939 = vmatpush3.bf16.msra.mxu0 %v8666_v49  ;;  %v1588_v49 = vcombine.high %v1572_v44, %v1572_v44 }
 0x1e1   :  { %7968 = vmatprep.subr.bf16.mxu0 %v8668_v56  ;;  %v8711_v56 = vld [vmem:[%s10785_s1 + $0x1010] sm:$0xff]  }
 0x1e2   :  { %7961 = vmatpush3.bf16.msra.mxu1 %v8667_v53  ;;  %v8708_v53 = vld [vmem:[%s10785_s1 + $0x1088] sm:$0xff]  }
 0x1e3   :  { %6321 = vmatmul.mubr.bf16.vlgmr.msra.gmra.mrb[56].mxu0 %v1565_v55  ;;  %7990 = vmatprep.subr.bf16.mxu1 %v8669_v58  ;;  %v8710_v55 = vld [vmem:[%s10785_s1 + $0x10d0] sm:$0xff]   ;;  %v8713_v58 = vld [vmem:[%s10785_s1 + $0x1058] sm:$0xff]  }
 0x1e4   :  { %7969 = vmatpush3.bf16.msra.mxu0 %v8670_v60  ;;  %6400 = vmatprep.mubr.bf16.mxu0 %v1586_v2  ;;  %v8715_v60 = vld [vmem:[%s10785_s1 + $0x1018] sm:$0xff]   ;;  %v8721_v2 = vld [vmem:[%s10785_s1 + $0x1068] sm:$0xff]  }
 0x1e5   :  { %6361 = vmatmul.mubr.bf16.vlgmr.msra.gmra.mrb[56].mxu1 %v1587_v0  ;;  %7970 = vmatprep.subr.bf16.mxu0 %v8672_v1  ;;  %v8719_v0 = vld [vmem:[%s10785_s1 + $0x1020] sm:$0xff]  }
 0x1e6   :  { %7991 = vmatpush3.bf16.msra.mxu1 %v8671_v62  ;;  %6440 = vmatprep.mubr.bf16.mxu1 %v1590_v5  ;;  %v8717_v62 = vld [vmem:[%s10785_s1 + $0x1060] sm:$0xff]   ;;  %v8724_v5 = vld [vmem:[%s10785_s1 + $0x10a8] sm:$0xff]  }
 0x1e7   :  { %7992 = vmatprep.subr.bf16.mxu1 %v8673_v3  ;;  %v8720_v1 = vld [vmem:[%s10785_s1 + $0x10a0] sm:$0xff]   ;;  %v8722_v3 = vld [vmem:[%s10785_s1 + $0x10e8] sm:$0xff]  }
 0x1e8   :  { %7971 = vmatpush3.bf16.msra.mxu0 %v8674_v4  ;;  %v8723_v4 = vld [vmem:[%s10785_s1 + $0x1028] sm:$0xff]  }
 0x1e9   :  { %7972 = vmatprep.subr.bf16.mxu0 %v8676_v7 }
 0x1ea   :  { %7993 = vmatpush3.bf16.msra.mxu1 %v8675_v6  ;;  %v8725_v6 = vld [vmem:[%s10785_s1 + $0x1070] sm:$0xff]  }
 0x1eb   :  { %7994 = vmatprep.subr.bf16.mxu1 %v8677_v8  ;;  %v8726_v8 = vld [vmem:[%s10785_s1 + $0x10f0] sm:$0xff]  }
 0x1ec   :  { %7973 = vmatpush3.bf16.msra.mxu0 %v8678_v9 }
 0x1ed   :  { %7974 = vmatprep.subr.bf16.mxu0 %v8680_v11 }
 0x1ee   :  { %7995 = vmatpush3.bf16.msra.mxu1 %v8679_v10  ;;  %v8727_v10 = vld [vmem:[%s10785_s1 + $0x1030] sm:$0xff]  }
 0x1ef   :  { %7996 = vmatprep.subr.bf16.mxu1 %v8681_v12 }
 0x1f0   :  { %7975 = vmatpush3.bf16.msra.mxu0 %v8682_v13 }
 0x1f1   :  { %7976 = vmatprep.subr.bf16.mxu0 %v8684_v15 }
 0x1f2   :  { %7997 = vmatpush3.bf16.msra.mxu1 %v8683_v14 }
 0x1f3   :  { %7998 = vmatprep.subr.bf16.mxu1 %v8685_v16  ;;  %v8728_v16 = vld [vmem:[%s10785_s1 + $0x10b0] sm:$0xff]  }
 0x1f4   :  { %7977 = vmatpush3.bf16.msra.mxu0 %v8686_v17  ;;  %v8729_v17 = vld [vmem:[%s10785_s1 + $0x1078] sm:$0xff]  }
 0x1f5   :  { %7978 = vmatprep.subr.bf16.mxu0 %v8688_v19 }
 0x1f6   :  { %7999 = vmatpush3.bf16.msra.mxu1 %v8687_v18  ;;  %v7676_v24 = vpop.f32.mrb[32].mxu0 }
 0x1f7   :  { %v7677_v26 = vpop.f32.mrb[33].mxu0  ;;  %8000 = vmatprep.subr.bf16.mxu1 %v8689_v20 }
 0x1f8   :  { %v7698_v28 = vpop.f32.mrb[32].mxu1  ;;  %v7678_v29 = vadd.f32 %v7677_v26, %v7676_v24  ;;  %v7679_v30 = vpop.f32.mrb[34].mxu0  ;;  %7979 = vmatpush3.bf16.msra.mxu0 %v8690_v21  ;;  %v8730_v21 = vld [vmem:[%s10785_s1 + $0x10f8] sm:$0xff]  }
 0x1f9   :  { %v7699_v33 = vpop.f32.mrb[33].mxu1  ;;  %v7680_v34 = vpop.f32.mrb[35].mxu0  ;;  %7980 = vmatprep.subr.bf16.mxu0 %v8692_v23  ;;  %v30_v23 = vld [vmem:[%s10784_s0 + $0x40] sm:$0xff] }
 0x1fa   :  { %v5843_v35 = vadd.f32 %v7678_v29, %v10394_v52  ;;  %v7700_v36 = vadd.f32 %v7699_v33, %v7698_v28  ;;  %v7701_v37 = vpop.f32.mrb[34].mxu1  ;;  %8001 = vmatpush3.bf16.msra.mxu1 %v8691_v22  ;;  %v8707_v52 = vld [vmem:[%s10785_s1 + $0x1008] sm:$0xff]   ;;  %v1598_v26 = vrot.slane %v30_v23, %v8934_v41  ;;  %v8733_v28 = vld [vmem:[%s10785_s1 + $0x1140] sm:$0xff]   ;;  %v8732_v29 = vld [vmem:[%s10785_s1 + $0x10b8] sm:$0xff]  }
 0x1fb   :  { %v7702_v39 = vpop.f32.mrb[35].mxu1  ;;  %8002 = vmatprep.subr.bf16.mxu1 %v8693_v25  ;;  %v8731_v25 = vld [vmem:[%s10785_s1 + $0x1038] sm:$0xff]   ;;  %v8734_v33 = vld [vmem:[%s10785_s1 + $0x11c0] sm:$0xff]  }
 0x1fc   :  { %v10501_v42 = vadd.f32 %v7700_v36, %v5843_v35  ;;  %7981 = vmatpush3.bf16.msra.mxu0 %v8694_v27  ;;  %v1591_v27 = vcombine.high %v30_v23, %v30_v23  ;;  %v1606_v30 = vcombine.high %v1598_v26, %v1598_v26  ;;  %v8735_v35 = vld [vmem:[%s10785_s1 + $0x1100] sm:$0xff]  }
 0x1fd   :  { %7982 = vmatprep.subr.bf16.mxu0 %v8696_v32 }
 0x1fe   :  { %8003 = vmatpush3.bf16.msra.mxu1 %v8695_v31  ;;  %v1614_v31 = vrot.slane %v1598_v26, %v8934_v41  ;;  %v10616_v32 = vrot.slane %v1591_v27, %v8934_v41  ;;  %v1628_v34 = vrot.slane %v1606_v30, %v8934_v41 }
 0x1ff   :  { %8004 = vmatprep.subr.bf16.mxu1 %v8697_v38  ;;  %v8737_v38 = vld [vmem:[%s10785_s1 + $0x1148] sm:$0xff]  }
 0x200   :  { %7983 = vmatpush3.bf16.msra.mxu0 %v8698_v40  ;;  %v1607_v36 = vcombine.high %v10616_v32, %v10616_v32  ;;  %v1636_v37 = vcombine.high %v1614_v31, %v1614_v31  ;;  %v1638_v39 = vcombine.high %v1628_v34, %v1628_v34  ;;  %v8736_v40 = vld [vmem:[%s10785_s1 + $0x1180] sm:$0xff]  }
 0x201   :  { %8012 = vmatprep.subr.bf16.mxu0 %v8701_v45 }
 0x202   :  { %8005 = vmatpush3.bf16.msra.mxu1 %v8699_v43  ;;  %v8738_v43 = vld [vmem:[%s10785_s1 + $0x11c8] sm:$0xff]  }
 0x203   :  { %6401 = vmatmul.mubr.bf16.vlgmr.msra.gmra.mrb[60].mxu0 %v1572_v44  ;;  %8034 = vmatprep.subr.bf16.mxu1 %v8702_v46  ;;  %v8739_v44 = vld [vmem:[%s10785_s1 + $0x1108] sm:$0xff]   ;;  %v8741_v46 = vld [vmem:[%s10785_s1 + $0x1150] sm:$0xff]  }
 0x204   :  { %8013 = vmatpush3.bf16.msra.mxu0 %v8703_v47  ;;  %6480 = vmatprep.mubr.bf16.mxu0 %v1628_v34  ;;  %v8740_v47 = vld [vmem:[%s10785_s1 + $0x1188] sm:$0xff]  }
 0x205   :  { %6441 = vmatmul.mubr.bf16.vlgmr.msra.gmra.mrb[60].mxu1 %v1588_v49  ;;  %8014 = vmatprep.subr.bf16.mxu0 %v8705_v50  ;;  %v8743_v49 = vld [vmem:[%s10785_s1 + $0x1110] sm:$0xff]   ;;  %v8745_v50 = vld [vmem:[%s10785_s1 + $0x1158] sm:$0xff]  }
 0x206   :  { %8035 = vmatpush3.bf16.msra.mxu1 %v8704_v48  ;;  %6520 = vmatprep.mubr.bf16.mxu1 %v1638_v39  ;;  %v8742_v48 = vld [vmem:[%s10785_s1 + $0x11d0] sm:$0xff]  }
 0x207   :  { %8036 = vmatprep.subr.bf16.mxu1 %v8706_v51  ;;  %v8744_v51 = vld [vmem:[%s10785_s1 + $0x1190] sm:$0xff]  }
 0x208   :  { %8015 = vmatpush3.bf16.msra.mxu0 %v8707_v52  ;;  %v8746_v52 = vld [vmem:[%s10785_s1 + $0x11d8] sm:$0xff]  }
 0x209   :  { %8016 = vmatprep.subr.bf16.mxu0 %v8709_v54  ;;  %v8749_v54 = vld [vmem:[%s10785_s1 + $0x1160] sm:$0xff]  }
 0x20a   :  { %8037 = vmatpush3.bf16.msra.mxu1 %v8708_v53  ;;  %v8747_v53 = vld [vmem:[%s10785_s1 + $0x1118] sm:$0xff]  }
 0x20b   :  { %8038 = vmatprep.subr.bf16.mxu1 %v8710_v55  ;;  %v8748_v55 = vld [vmem:[%s10785_s1 + $0x1198] sm:$0xff]  }
 0x20c   :  { %8017 = vmatpush3.bf16.msra.mxu0 %v8711_v56  ;;  %v8750_v56 = vld [vmem:[%s10785_s1 + $0x11e0] sm:$0xff]  }
 0x20d   :  { %8018 = vmatprep.subr.bf16.mxu0 %v8713_v58  ;;  %v8753_v58 = vld [vmem:[%s10785_s1 + $0x1168] sm:$0xff]  }
 0x20e   :  { %8039 = vmatpush3.bf16.msra.mxu1 %v8712_v57  ;;  %v8751_v57 = vld [vmem:[%s10785_s1 + $0x1120] sm:$0xff]  }
 0x20f   :  { %8040 = vmatprep.subr.bf16.mxu1 %v8714_v59  ;;  %v8752_v59 = vld [vmem:[%s10785_s1 + $0x11a0] sm:$0xff]  }
 0x210   :  { %8019 = vmatpush3.bf16.msra.mxu0 %v8715_v60  ;;  %v8754_v60 = vld [vmem:[%s10785_s1 + $0x11e8] sm:$0xff]  }
 0x211   :  { %8020 = vmatprep.subr.bf16.mxu0 %v8717_v62  ;;  %v8757_v62 = vld [vmem:[%s10785_s1 + $0x1170] sm:$0xff]  }
 0x212   :  { %8041 = vmatpush3.bf16.msra.mxu1 %v8716_v61  ;;  %v8755_v61 = vld [vmem:[%s10785_s1 + $0x1128] sm:$0xff]  }
 0x213   :  { %8042 = vmatprep.subr.bf16.mxu1 %v8718_v63 }
 0x214   :  { %8021 = vmatpush3.bf16.msra.mxu0 %v8719_v0  ;;  %v8756_v0 = vld [vmem:[%s10785_s1 + $0x11a8] sm:$0xff]  }
 0x215   :  { %8022 = vmatprep.subr.bf16.mxu0 %v8721_v2  ;;  %v8758_v2 = vld [vmem:[%s10785_s1 + $0x11f0] sm:$0xff]  }
 0x216   :  { %8043 = vmatpush3.bf16.msra.mxu1 %v8720_v1  ;;  %v7720_v7 = vpop.f32.mrb[36].mxu0 }
 0x217   :  { %v7721_v9 = vpop.f32.mrb[37].mxu0  ;;  %8044 = vmatprep.subr.bf16.mxu1 %v8722_v3 }
 0x218   :  { %v7742_v11 = vpop.f32.mrb[36].mxu1  ;;  %v7722_v12 = vadd.f32 %v7721_v9, %v7720_v7  ;;  %v7723_v13 = vpop.f32.mrb[38].mxu0  ;;  %8023 = vmatpush3.bf16.msra.mxu0 %v8723_v4  ;;  %v8761_v7 = vld [vmem:[%s10785_s1 + $0x1178] sm:$0xff]  }
 0x219   :  { %v7743_v14 = vpop.f32.mrb[37].mxu1  ;;  %v7724_v15 = vpop.f32.mrb[39].mxu0  ;;  %8024 = vmatprep.subr.bf16.mxu0 %v8725_v6  ;;  %v8759_v6 = vld [vmem:[%s10785_s1 + $0x1130] sm:$0xff]  }
 0x21a   :  { %v5923_v18 = vadd.f32 %v7722_v12, %v10501_v42  ;;  %v7744_v19 = vadd.f32 %v7743_v14, %v7742_v11  ;;  %v7745_v20 = vpop.f32.mrb[38].mxu1  ;;  %8045 = vmatpush3.bf16.msra.mxu1 %v8724_v5  ;;  %v1635_v42 = vrot.slane %v1607_v36, %v8934_v41  ;;  %v8760_v13 = vld [vmem:[%s10785_s1 + $0x11b0] sm:$0xff]   ;;  %v8762_v15 = vld [vmem:[%s10785_s1 + $0x11f8] sm:$0xff]  }
 0x21b   :  { %v7746_v22 = vpop.f32.mrb[39].mxu1  ;;  %8046 = vmatprep.subr.bf16.mxu1 %v8726_v8 }
 0x21c   :  { %v10602_v24 = vadd.f32 %v7744_v19, %v5923_v18  ;;  %8025 = vmatpush3.bf16.msra.mxu0 %v8727_v10  ;;  %v1639_v45 = vcombine.high %v1635_v42, %v1635_v42 }
 0x21d   :  { %8026 = vmatprep.subr.bf16.mxu0 %v8729_v17  ;;  %v8763_v17 = vld [vmem:[%s10785_s1 + $0x1138] sm:$0xff]  }
 0x21e   :  { %8047 = vmatpush3.bf16.msra.mxu1 %v8728_v16 }
 0x21f   :  { %8048 = vmatprep.subr.bf16.mxu1 %v8730_v21 }
 0x220   :  { %8027 = vmatpush3.bf16.msra.mxu0 %v8731_v25 }
 0x221   :  { %8056 = vmatprep.subr.bf16.mxu0 %v8733_v28 }
 0x222   :  { %8049 = vmatpush3.bf16.msra.mxu1 %v8732_v29 }
 0x223   :  { %6481 = vmatmul.mubr.bf16.vlgmr.msra.gmra.mrb[64].mxu0 %v1614_v31  ;;  %8078 = vmatprep.subr.bf16.mxu1 %v8734_v33 }
 0x224   :  { %8057 = vmatpush3.bf16.msra.mxu0 %v8735_v35  ;;  %6560 = vmatprep.mubr.bf16.mxu0 %v1635_v42 }
 0x225   :  { %6521 = vmatmul.mubr.bf16.vlgmr.msra.gmra.mrb[64].mxu1 %v1636_v37  ;;  %8058 = vmatprep.subr.bf16.mxu0 %v8737_v38 }
 0x226   :  { %8079 = vmatpush3.bf16.msra.mxu1 %v8736_v40  ;;  %6600 = vmatprep.mubr.bf16.mxu1 %v1639_v45 }
 0x227   :  { %8080 = vmatprep.subr.bf16.mxu1 %v8738_v43 }
 0x228   :  { %8059 = vmatpush3.bf16.msra.mxu0 %v8739_v44 }
 0x229   :  { %8060 = vmatprep.subr.bf16.mxu0 %v8741_v46 }
 0x22a   :  { %8081 = vmatpush3.bf16.msra.mxu1 %v8740_v47 }
 0x22b   :  { %8082 = vmatprep.subr.bf16.mxu1 %v8742_v48 }
 0x22c   :  { %8061 = vmatpush3.bf16.msra.mxu0 %v8743_v49 }
 0x22d   :  { %8062 = vmatprep.subr.bf16.mxu0 %v8745_v50 }
 0x22e   :  { %8083 = vmatpush3.bf16.msra.mxu1 %v8744_v51 }
 0x22f   :  { %8084 = vmatprep.subr.bf16.mxu1 %v8746_v52 }
 0x230   :  { %8063 = vmatpush3.bf16.msra.mxu0 %v8747_v53 }
 0x231   :  { %8064 = vmatprep.subr.bf16.mxu0 %v8749_v54 }
 0x232   :  { %8085 = vmatpush3.bf16.msra.mxu1 %v8748_v55 }
 0x233   :  { %8086 = vmatprep.subr.bf16.mxu1 %v8750_v56 }
 0x234   :  { %8065 = vmatpush3.bf16.msra.mxu0 %v8751_v57 }
 0x235   :  { %8066 = vmatprep.subr.bf16.mxu0 %v8753_v58 }
 0x236   :  { %8087 = vmatpush3.bf16.msra.mxu1 %v8752_v59  ;;  %v7764_v63 = vpop.f32.mrb[40].mxu0 }
 0x237   :  { %v7765_v1 = vpop.f32.mrb[41].mxu0  ;;  %8088 = vmatprep.subr.bf16.mxu1 %v8754_v60 }
 0x238   :  { %v7786_v3 = vpop.f32.mrb[40].mxu1  ;;  %v7766_v4 = vadd.f32 %v7765_v1, %v7764_v63  ;;  %v7767_v5 = vpop.f32.mrb[42].mxu0  ;;  %8067 = vmatpush3.bf16.msra.mxu0 %v8755_v61 }
 0x239   :  { %v7787_v8 = vpop.f32.mrb[41].mxu1  ;;  %v7768_v9 = vpop.f32.mrb[43].mxu0  ;;  %8068 = vmatprep.subr.bf16.mxu0 %v8757_v62 }
 0x23a   :  { %v6003_v10 = vadd.f32 %v7766_v4, %v10602_v24  ;;  %v7788_v11 = vadd.f32 %v7787_v8, %v7786_v3  ;;  %v7789_v12 = vpop.f32.mrb[42].mxu1  ;;  %8089 = vmatpush3.bf16.msra.mxu1 %v8756_v0 }
 0x23b   :  { %v7790_v14 = vpop.f32.mrb[43].mxu1  ;;  %8090 = vmatprep.subr.bf16.mxu1 %v8758_v2 }
 0x23c   :  { %v6043_v16 = vadd.f32 %v7788_v11, %v6003_v10  ;;  %8069 = vmatpush3.bf16.msra.mxu0 %v8759_v6 }
 0x23d   :  { %10 = vsyncpa [#allocation3], 0  ;;  %8070 = vmatprep.subr.bf16.mxu0 %v8761_v7  ;;  %v1621_v18 = vrot.slane %v10616_v32, %v8934_v41  ;;  %v8764_v19 = vld [vmem:[%s10785_s1 + $0x11b8] sm:$0xff]   ;;  %v6609_v45 = vld [vmem:[%s10787_s3] sm:$0xff]  ;;  %v8795_v48 = vmov 0.0|0.0   ;;  %vm8796_vm0 = vmmov 0  }
 0x23e   :  { %8091 = vmatpush3.bf16.msra.mxu1 %v8760_v13  ;;  %v6610_v46 = vld [vmem:[%s10787_s3 + $0x8] sm:$0xff]  ;;  %v6611_v47 = vld [vmem:[%s10787_s3 + $0x10] sm:$0xff]  ;;  %v6612_v50 = vld [vmem:[%s10787_s3 + $0x18] sm:$0xff]  ;;  %vm6702_vm1 = vcmask 74752   ;;  %s8798_s15 = smov [#allocation2]  }
 0x23f   :  { %8092 = vmatprep.subr.bf16.mxu1 %v8762_v15  ;;  %v1637_v20 = vcombine.high %v1621_v18, %v1621_v18  ;;  %v8153_v49 = vpack.c.bf16 %v6610_v46, %v6609_v45  ;;  %v8156_v51 = vpack.c.bf16 %v6612_v50, %v6611_v47  ;;  %v6613_v52 = vld [vmem:[%s10787_s3 + $0x20] sm:$0xff]  ;;  %v6614_v53 = vld [vmem:[%s10787_s3 + $0x28] sm:$0xff]  ;;  %v6615_v55 = vld [vmem:[%s10787_s3 + $0x30] sm:$0xff] }
 0x240   :  { %8071 = vmatpush3.bf16.msra.mxu0 %v8763_v17  ;;  %v8159_v54 = vpack.c.bf16 %v6614_v53, %v6613_v52  ;;  %v6616_v56 = vld [vmem:[%s10787_s3 + $0x38] sm:$0xff]  ;;  %v6617_v58 = vld [vmem:[%s10787_s3 + $0x40] sm:$0xff]  ;;  %v6618_v59 = vld [vmem:[%s10787_s3 + $0x48] sm:$0xff] }
 0x241   :  { %8152 = vmatprep.subr.bf16.mxu0 %v8795_v48  ;;  %v8162_v57 = vpack.c.bf16 %v6616_v56, %v6615_v55  ;;  %v8165_v60 = vpack.c.bf16 %v6618_v59, %v6617_v58  ;;  %v6619_v61 = vld [vmem:[%s10787_s3 + $0x50] sm:$0xff]  ;;  %v6620_v62 = vld [vmem:[%s10787_s3 + $0x58] sm:$0xff]  ;;  %v6621_v5 = vld [vmem:[%s10787_s3 + $0x60] sm:$0xff] }
 0x242   :  { %8093 = vmatpush3.bf16.msra.mxu1 %v8764_v19  ;;  %v8168_v63 = vpack.c.bf16 %v6620_v62, %v6619_v61  ;;  %v6622_v6 = vld [vmem:[%s10787_s3 + $0x68] sm:$0xff]  ;;  %v6623_v15 = vld [vmem:[%s10787_s3 + $0x70] sm:$0xff] }
 0x243   :  { %6561 = vmatmul.mubr.bf16.vlgmr.msra.gmra.mrb[68].mxu0 %v1621_v18  ;;  %v8171_v9 = vpack.c.bf16 %v6622_v6, %v6621_v5  ;;  %v8797_v18 = vmov 0.0  }
 0x244   :  { %8154 = vmatpush3.bf16.msra.mxu0 %v8153_v49  ;;  %8149 = vmatprep.mubr.msk.f32.mxu0 %vm8796_vm0, %v8797_v18 }
 0x245   :  { %6601 = vmatmul.mubr.bf16.vlgmr.msra.gmra.mrb[68].mxu1 %v1637_v20  ;;  %8155 = vmatprep.subr.bf16.mxu0 %v8795_v48 }
 0x248   :  { %8157 = vmatpush3.bf16.msra.mxu0 %v8156_v51 }
 0x249   :  { %8158 = vmatprep.subr.bf16.mxu0 %v8795_v48 }
 0x24c   :  { %8160 = vmatpush3.bf16.msra.mxu0 %v8159_v54 }
 0x24d   :  { %8161 = vmatprep.subr.bf16.mxu0 %v8795_v48 }
 0x250   :  { %8163 = vmatpush3.bf16.msra.mxu0 %v8162_v57 }
 0x251   :  { %8164 = vmatprep.subr.bf16.mxu0 %v8795_v48 }
 0x254   :  { %8166 = vmatpush3.bf16.msra.mxu0 %v8165_v60 }
 0x255   :  { %8167 = vmatprep.subr.bf16.mxu0 %v8795_v48 }
 0x256   :  { %v7808_v21 = vpop.f32.mrb[44].mxu0 }
 0x257   :  { %v7809_v22 = vpop.f32.mrb[45].mxu0 }
 0x258   :  { %v7830_v23 = vpop.f32.mrb[44].mxu1  ;;  %v7810_v24 = vadd.f32 %v7809_v22, %v7808_v21  ;;  %v7811_v25 = vpop.f32.mrb[46].mxu0  ;;  %8169 = vmatpush3.bf16.msra.mxu0 %v8168_v63 }
 0x259   :  { %v7831_v26 = vpop.f32.mrb[45].mxu1  ;;  %v7812_v27 = vpop.f32.mrb[47].mxu0  ;;  %8170 = vmatprep.subr.bf16.mxu0 %v8795_v48 }
 0x25a   :  { %v6083_v28 = vadd.f32 %v7810_v24, %v6043_v16  ;;  %v7832_v41 = vadd.f32 %v7831_v26, %v7830_v23  ;;  %v7833_v29 = vpop.f32.mrb[46].mxu1  ;;  %v6624_v16 = vld [vmem:[%s10787_s3 + $0x78] sm:$0xff] }
 0x25b   :  { %v7834_v30 = vpop.f32.mrb[47].mxu1  ;;  %v8174_v17 = vpack.c.bf16 %v6624_v16, %v6623_v15 }
 0x25c   :  { %v6123_v31 = vadd.f32 %v7832_v41, %v6083_v28  ;;  %8172 = vmatpush3.bf16.msra.mxu0 %v8171_v9 }
 0x25d   :  { %8173 = vmatprep.subr.bf16.mxu0 %v8795_v48 }
 0x260   :  { %8175 = vmatpush3.bf16.msra.mxu0 %v8174_v17 }
 0x276   :  { %v7852_v32 = vpop.f32.mrb[48].mxu0 }
 0x277   :  { %v7853_v33 = vpop.f32.mrb[49].mxu0 }
 0x278   :  { %v7874_v34 = vpop.f32.mrb[48].mxu1  ;;  %v7854_v35 = vadd.f32 %v7853_v33, %v7852_v32  ;;  %v7855_v36 = vpop.f32.mrb[50].mxu0 }
 0x279   :  { %v7875_v37 = vpop.f32.mrb[49].mxu1  ;;  %v7856_v38 = vpop.f32.mrb[51].mxu0 }
 0x27a   :  { %v6163_v39 = vadd.f32 %v7854_v35, %v6123_v31  ;;  %v7876_v40 = vadd.f32 %v7875_v37, %v7874_v34  ;;  %v7877_v42 = vpop.f32.mrb[50].mxu1 }
 0x27b   :  { %v7878_v43 = vpop.f32.mrb[51].mxu1 }
 0x27c   :  { %v6203_v44 = vadd.f32 %v7876_v40, %v6163_v39 }
 0x296   :  { %v7896_v0 = vpop.f32.mrb[52].mxu0 }
 0x297   :  { %v7897_v1 = vpop.f32.mrb[53].mxu0 }
 0x298   :  { %v7918_v2 = vpop.f32.mrb[52].mxu1  ;;  %v7898_v3 = vadd.f32 %v7897_v1, %v7896_v0  ;;  %v7899_v4 = vpop.f32.mrb[54].mxu0 }
 0x299   :  { %v7919_v7 = vpop.f32.mrb[53].mxu1  ;;  %v7900_v8 = vpop.f32.mrb[55].mxu0  ;;  %v7307_v4 = vld [vmem:[%s10788_s4] ss:$0 sm:$0xff]  ;;  %s6722_s4 = sshll.u32 %s8798_s15, 4  ;;  %s6723_s4 = int_to_ptr.vmem [resolvable:$true] %s6722_s4 }
 0x29a   :  { %v6243_v10 = vadd.f32 %v7898_v3, %v6203_v44  ;;  %v7920_v11 = vadd.f32 %v7919_v7, %v7918_v2  ;;  %v7921_v12 = vpop.f32.mrb[54].mxu1  ;;  %s8770_s16 = scalar_lea.vmem %s6723_s4, 32  ;;  %p8775_p1 = scmp.lt.s32.totalorder %s6723_s4, %s6723_s4 }
 0x29b   :  { %v7922_v13 = vpop.f32.mrb[55].mxu1  ;;  %p8771_p0 = scmp.ne.s32.totalorder %s6723_s4, %s8770_s16  ;;  %p8776_p2 = scmp.lt.s32.totalorder %s8770_s16, %s8770_s16 }
 0x29c   :  { %v6283_v14 = vadd.f32 %v7920_v11, %v6243_v10 }
 0x29d   :  { %p8777_p3 = por %p8776_p2, %p8775_p1 }
 0x29f   :  { %p8778_p4 = pnand %p8777_p3, %p8771_p0 }
 0x2b6   :  { %v7940_v19 = vpop.f32.mrb[56].mxu0 }
 0x2b7   :  { %v7941_v20 = vpop.f32.mrb[57].mxu0 }
 0x2b8   :  { %v7962_v21 = vpop.f32.mrb[56].mxu1  ;;  %v7942_v22 = vadd.f32 %v7941_v20, %v7940_v19  ;;  %v7943_v23 = vpop.f32.mrb[58].mxu0 }
 0x2b9   :  { %v7963_v24 = vpop.f32.mrb[57].mxu1  ;;  %v7944_v25 = vpop.f32.mrb[59].mxu0 }
 0x2ba   :  { %v6323_v26 = vadd.f32 %v7942_v22, %v6283_v14  ;;  %v7964_v27 = vadd.f32 %v7963_v24, %v7962_v21  ;;  %v7965_v28 = vpop.f32.mrb[58].mxu1 }
 0x2bb   :  { %v7966_v41 = vpop.f32.mrb[59].mxu1 }
 0x2bc   :  { %v6363_v29 = vadd.f32 %v7964_v27, %v6323_v26 }
 0x2d6   :  { %v7984_v30 = vpop.f32.mrb[60].mxu0 }
 0x2d7   :  { %v7985_v31 = vpop.f32.mrb[61].mxu0 }
 0x2d8   :  { %v8006_v32 = vpop.f32.mrb[60].mxu1  ;;  %v7986_v33 = vadd.f32 %v7985_v31, %v7984_v30  ;;  %v7987_v34 = vpop.f32.mrb[62].mxu0 }
 0x2d9   :  { %v8007_v35 = vpop.f32.mrb[61].mxu1  ;;  %v7988_v36 = vpop.f32.mrb[63].mxu0 }
 0x2da   :  { %v6403_v37 = vadd.f32 %v7986_v33, %v6363_v29  ;;  %v8008_v38 = vadd.f32 %v8007_v35, %v8006_v32  ;;  %v8009_v39 = vpop.f32.mrb[62].mxu1 }
 0x2db   :  { %v8010_v40 = vpop.f32.mrb[63].mxu1 }
 0x2dc   :  { %v6443_v42 = vadd.f32 %v8008_v38, %v6403_v37 }
 0x2f6   :  { %v8028_v43 = vpop.f32.mrb[64].mxu0 }
 0x2f7   :  { %v8029_v44 = vpop.f32.mrb[65].mxu0 }
 0x2f8   :  { %v8050_v45 = vpop.f32.mrb[64].mxu1  ;;  %v8030_v46 = vadd.f32 %v8029_v44, %v8028_v43  ;;  %v8031_v47 = vpop.f32.mrb[66].mxu0 }
 0x2f9   :  { %v8051_v48 = vpop.f32.mrb[65].mxu1  ;;  %v8032_v49 = vpop.f32.mrb[67].mxu0 }
 0x2fa   :  { %v6483_v50 = vadd.f32 %v8030_v46, %v6443_v42  ;;  %v8052_v51 = vadd.f32 %v8051_v48, %v8050_v45  ;;  %v8053_v52 = vpop.f32.mrb[66].mxu1 }
 0x2fb   :  { %v8054_v53 = vpop.f32.mrb[67].mxu1 }
 0x2fc   :  { %v6523_v54 = vadd.f32 %v8052_v51, %v6483_v50 }
 0x316   :  { %v8072_v55 = vpop.f32.mrb[68].mxu0 }
 0x317   :  { %v8073_v56 = vpop.f32.mrb[69].mxu0 }
 0x318   :  { %v8094_v57 = vpop.f32.mrb[68].mxu1  ;;  %v8074_v58 = vadd.f32 %v8073_v56, %v8072_v55  ;;  %v8075_v59 = vpop.f32.mrb[70].mxu0 }
 0x319   :  { %v8095_v60 = vpop.f32.mrb[69].mxu1  ;;  %v8076_v61 = vpop.f32.mrb[71].mxu0 }
 0x31a   :  { %v6563_v62 = vadd.f32 %v8074_v58, %v6523_v54  ;;  %v8096_v63 = vadd.f32 %v8095_v60, %v8094_v57  ;;  %v8097_v0 = vpop.f32.mrb[70].mxu1 }
 0x31b   :  { %v8098_v1 = vpop.f32.mrb[71].mxu1 }
 0x31c   :  { %v6603_v2 = vadd.f32 %v8096_v63, %v6563_v62 }
 0x31e   :  { %v6608_v3 = vmax.f32 %v6603_v2, 0.0 }
 0x320   :  { %8150 = vmatmul.mubr.f32.vlgmr.msra.gmra.mrb[72].mxu0 %v6608_v3 }
 0x3f3   :  { %v6698_v5 = vpop.f32.mrb[72].mxu0 }
 0x3f4   :  { %v6699_v6 = vadd.f32 %v7307_v4, %v6698_v5  ;;  %v8151_v7 = vpop.f32.mrb[73].mxu0 }
 0x3f6   :  { %v6703_v8 = vsel %vm6702_vm1, %v6699_v6, -inf }
 0x3f7   :  { %6704 = vmax.xlane.f32.xlu0 %v6703_v8 }
 0x484   :  { %v6705_v9 = vpop.xlane.xlu0 %6704 }
 0x485   :  { %v6706_v10 = vsub.f32 %v6699_v6, %v6705_v9 }
 0x487   :  { %v6707_v11 = vmul.f32 1.442695, %v6706_v10 }
 0x489   :  { %8766 = vpow2.f32 %v6707_v11 }
 0x493   :  { %v8767_v12 = vpop.eup %8766 }
 0x494   :  { %v6709_v13 = vsel %vm6702_vm1, %v8767_v12, 0.0 }
 0x495   :  { %6710 = vadd.xlane.f32.xlu0 %v6709_v13 }
 0x522   :  { %v6711_v14 = vpop.xlane.xlu0 %6710 }
 0x523   :  { %8768 = vlog2.f32 %v6711_v14 }
 0x52d   :  { %v8769_v15 = vpop.eup %8768 }
 0x52e   :  { %v6713_v16 = vmul.f32 0.6931472, %v8769_v15 }
 0x530   :  { %v6714_v17 = vsub.f32 %v6706_v10, %v6713_v16 }
 0x532   :  { %6715 = vst.msk [vmem:[#allocation2] sm:$0x3] %vm6702_vm1, %v6714_v17 }
 0x533   :  { %8781 = shalt.err (!%p8778_p4)
}
 0x534   :  { %s8782_s19 = scalar_lea.hbm %s10789_s5, 32 }
 0x535   :  { %p8783_p5 = scmp.ne.s32.totalorder %s10789_s5, %s8782_s19  ;;  %p8786_p6 = scmp.lt.u32.totalorder %s8782_s19, %s10789_s5 }
 0x537   :  { %p8788_p7 = pnand %p8786_p6, %p8783_p5 }
 0x539   :  { %8791 = shalt.err (!%p8788_p7)
}
 0x53a   :  { %6725 = dma.vmem_to_hbm [thread:$0]  %s6723_s4, 32, %s10789_s5, [#allocation3]  }
 0x53b   :  { %8792 = dma.done.wait [#allocation3], 32  }
 0x53c   :  { %8793 = vsyncadd [#allocation3], 4294967264 }
 0x53d   :  { %6729 = vsyncpa [#allocation3], 1 }

</bundles_post_ra>
